<compile_context>
chip_gen: v6e
topology: v6e:2x2x1
jax: 0.10.0
libtpu: 0.0.40
codegen_flags: <defaults>
</compile_context>

<pallas_src>
import copy
import math
from functools import partial

import jax
import jax.numpy as jnp
from jax.experimental import pallas as pl
from jax.experimental.pallas import tpu as pltpu

BN_EPS = 1e-5
BN_SCALE = 1.0 / math.sqrt(1.0 + BN_EPS)  # eval BN: running_mean=0, running_var=1, gamma=1, beta=0


def _pick_vmem_limit():
    """Generation-aware scoped-VMEM limit (~70% of physical, safe fallback for v7x 64 MiB)."""
    cap = None
    try:
        cap = getattr(pltpu.get_tpu_info(), "vmem_capacity_bytes", None)
    except Exception:
        cap = None
    if not cap:
        return 48 * 1024 * 1024
    return max(32 * 1024 * 1024, min(int(cap * 0.70), cap - 8 * 1024 * 1024))


_VMEM_LIMIT = _pick_vmem_limit()


# ----------------------------------------------------------------------------
# Config helpers (mirror of _make_divisible / MBConvConfig)
# ----------------------------------------------------------------------------
def _make_divisible(v, divisor=8, min_value=None):
    if min_value is None:
        min_value = divisor
    new_v = max(min_value, int(v + divisor / 2) // divisor * divisor)
    if new_v < 0.9 * v:
        new_v += divisor
    return new_v


def adjust_channels(channels, mult=1.0):
    return _make_divisible(channels * mult, 8)


class MBCfg:
    def __init__(self, expand_ratio, kernel, stride, input_channels, out_channels,
                 num_layers, width_mult=1.0, depth_mult=1.0):
        self.expand_ratio = expand_ratio
        self.kernel = kernel
        self.stride = stride
        self.input_channels = adjust_channels(input_channels, width_mult)
        self.out_channels = adjust_channels(out_channels, width_mult) // 2
        self.num_layers = int(math.ceil(num_layers * depth_mult))


# ----------------------------------------------------------------------------
# Small helpers
# ----------------------------------------------------------------------------
def _ceil_to(a, b):
    return -(-a // b) * b


def _sigmoid(y, exact=False):
    if exact:
        return 1.0 / (1.0 + jnp.exp(-y))
    # EUP-friendly: exp + approximate reciprocal ride otherwise-idle slots.
    return pl.reciprocal(1.0 + jnp.exp(-y), approx=True)


def _apply_act(y, act):
    if act == "silu":
        return y * _sigmoid(y)
    if act == "sigmoid":
        return _sigmoid(y)
    return y


def _compiler_params(sem):
    return pltpu.CompilerParams(dimension_semantics=sem, vmem_limit_bytes=_VMEM_LIMIT)


def _row_tiling(m, cap=512):
    """Pad rows to a sublane multiple; tile at `cap` rows when large."""
    mp = max(8, _ceil_to(m, 8))
    if mp <= cap:
        return mp, mp
    return _ceil_to(mp, cap), cap


def _pick_matmul_tiles(m, k, n):
    """Adaptive (M, K, N) tiling: lane-dense N (pad to >=128), K tiled only when >1024,
    M tile chosen so the double-buffered working set fits the VMEM budget."""
    if n < 128:
        np_, tn = 128, 128
    elif n <= 1024:
        np_, tn = n, n
    else:
        tn = 512
        for cand in (512, 384, 256):
            if n % cand == 0:
                tn = cand
                break
        np_ = _ceil_to(n, tn)
    if k <= 1024:
        kp, tk = k, k
    else:
        tk = 512
        for cand in (512, 384, 256):
            if k % cand == 0:
                tk = cand
                break
        kp = _ceil_to(k, tk)
    budget = int(_VMEM_LIMIT * 0.75)
    tm = 8
    for cand in (2048, 1024, 512, 256, 128, 64, 32, 16, 8):
        need = 2 * (cand * tk * 2 + tk * tn * 2 + cand * tn * 2)   # double-buffered bf16 tiles
        if kp != tk:
            need += cand * tn * 4                                   # f32 accumulator scratch
        if need <= budget:
            tm = cand
            break
    mp = _ceil_to(max(m, 8), 8)
    if mp <= tm:
        tm = mp
    else:
        mp = _ceil_to(mp, tm)
    return mp, tm, kp, tk, np_, tn


# ----------------------------------------------------------------------------
# Pallas kernels
# ----------------------------------------------------------------------------
def _mm_kernel(x_ref, w_ref, b_ref, o_ref, *, act):
    # Single K step: no scratch, no init/finalize.
    y = jnp.dot(x_ref[...], w_ref[...], preferred_element_type=jnp.float32) + b_ref[...]
    o_ref[...] = _apply_act(y, act).astype(o_ref.dtype)


def _mm_ktiled_kernel(x_ref, w_ref, b_ref, o_ref, acc_ref, *, act):
    @pl.when(pl.program_id(2) == 0)
    def _init():
        acc_ref[...] = jnp.zeros_like(acc_ref)

    acc_ref[...] += jnp.dot(x_ref[...], w_ref[...], preferred_element_type=jnp.float32)

    @pl.when(pl.program_id(2) == pl.num_programs(2) - 1)
    def _fin():
        y = acc_ref[...] + b_ref[...]
        o_ref[...] = _apply_act(y, act).astype(o_ref.dtype)


def _smm_kernel(s_ref, x_ref, w_ref, b_ref, o_ref, *, act):
    # Project 1x1 conv with the SE channel scale (f32) fused as an input prologue.
    xs = (x_ref[...].astype(jnp.float32) * s_ref[...]).astype(jnp.bfloat16)
    y = jnp.dot(xs, w_ref[...], preferred_element_type=jnp.float32) + b_ref[...]
    o_ref[...] = _apply_act(y, act).astype(o_ref.dtype)


def _smm_ktiled_kernel(s_ref, x_ref, w_ref, b_ref, o_ref, acc_ref, *, act):
    @pl.when(pl.program_id(3) == 0)
    def _init():
        acc_ref[...] = jnp.zeros_like(acc_ref)

    xs = (x_ref[...].astype(jnp.float32) * s_ref[...]).astype(jnp.bfloat16)
    acc_ref[...] += jnp.dot(xs, w_ref[...], preferred_element_type=jnp.float32)

    @pl.when(pl.program_id(3) == pl.num_programs(3) - 1)
    def _fin():
        y = acc_ref[...] + b_ref[...]
        o_ref[...] = _apply_act(y, act).astype(o_ref.dtype)


def _dw_s1_kernel(x_ref, w_ref, b_ref, o_ref, *, k):
    # Stride-1 depthwise conv, tiled over output rows; whole padded image stays resident in
    # VMEM across row tiles.  bf16 taps, f32 accumulation (accumulator bounded per tile).
    # TODO(synk): express the W shift with pltpu.roll (XLU) instead of sublane-crossing slices.
    tho, wo, c = o_ref.shape
    row0 = pl.multiple_of(pl.program_id(1) * tho, tho)
    acc = jnp.zeros((tho, wo, c), jnp.float32)
    for kh in range(k):
        for kw in range(k):
            v = x_ref[pl.ds(row0 + kh, tho), kw:kw + wo, :]           # bf16 (tho, wo, c)
            wv = w_ref[kh * k + kw:kh * k + kw + 1, :]                # bf16 (1, c)
            acc = acc + (v * wv).astype(jnp.float32)
    y = acc + b_ref[...].astype(jnp.float32)
    o_ref[...] = (y * _sigmoid(y)).astype(o_ref.dtype)


def _dw_patch_kernel(p_ref, w_ref, b_ref, o_ref):
    # Depthwise conv on pre-extracted (M, K*K, C) patches (stride-2 layers only).
    kk = w_ref.shape[0]
    acc = jnp.zeros(o_ref.shape, jnp.float32)
    for t in range(kk):
        acc = acc + (p_ref[:, t, :] * w_ref[t:t + 1, :]).astype(jnp.float32)
    y = acc + b_ref[...].astype(jnp.float32)
    o_ref[...] = (y * _sigmoid(y)).astype(o_ref.dtype)


def _gap_kernel(x_ref, o_ref, acc_ref, *, inv_hw):
    @pl.when(pl.program_id(1) == 0)
    def _init():
        acc_ref[...] = jnp.zeros_like(acc_ref)

    acc_ref[...] += jnp.sum(x_ref[...].astype(jnp.float32), axis=0, keepdims=True)

    @pl.when(pl.program_id(1) == pl.num_programs(1) - 1)
    def _fin():
        o_ref[...] = acc_ref[...] * inv_hw


def _se_nf_kernel(x_ref, w1_ref, b1_ref, w2_ref, b2_ref, wp_ref, bp_ref, s_ref, m_ref):
    # Fused SqueezeExcitation gate (fc1 -> SiLU -> fc2 -> sigmoid) and NeighborFusion channel
    # mean of the projected output, both from the pooled activations (f32, exact sigmoids).
    x = x_ref[...]
    h = jnp.dot(x, w1_ref[...], preferred_element_type=jnp.float32) + b1_ref[...]
    h = h * _sigmoid(h, exact=True)
    y = jnp.dot(h, w2_ref[...], preferred_element_type=jnp.float32) + b2_ref[...]
    s = _sigmoid(y, exact=True)
    s_ref[...] = s
    xs = (x * s).astype(jnp.bfloat16)
    m_ref[...] = jnp.dot(xs, wp_ref[...], preferred_element_type=jnp.float32) + bp_ref[...]


def _concat_nf_kernel(h_ref, s_ref, o_ref):
    hf = h_ref[...].astype(jnp.float32)
    o_ref[...] = jnp.concatenate([hf, hf * s_ref[...]], axis=-1).astype(o_ref.dtype)


def _concat_nf_res_kernel(h_ref, s_ref, r_ref, o_ref):
    hf = h_ref[...].astype(jnp.float32)
    y = jnp.concatenate([hf, hf * s_ref[...]], axis=-1) + r_ref[...].astype(jnp.float32)
    o_ref[...] = y.astype(o_ref.dtype)


# ----------------------------------------------------------------------------
# Pallas wrappers
# ----------------------------------------------------------------------------
def matmul_bias_act(x, w, b, act="none", out_dtype=jnp.bfloat16):
    """(M, K) @ (K, N) + b with fused activation; bf16 MXU, lane-dense (>=128) N."""
    m, k = x.shape
    n = w.shape[1]
    mp, tm, kp, tk, np_, tn = _pick_matmul_tiles(m, k, n)
    x = x.astype(jnp.bfloat16)
    w = w.astype(jnp.bfloat16)
    bf = b.astype(jnp.float32).reshape(1, n)
    if mp != m:
        x = jnp.pad(x, ((0, mp - m), (0, 0)))
    if kp != k:
        x = jnp.pad(x, ((0, 0), (0, kp - k)))
        w = jnp.pad(w, ((0, kp - k), (0, 0)))
    if np_ != n:
        w = jnp.pad(w, ((0, 0), (0, np_ - n)))
        bf = jnp.pad(bf, ((0, 0), (0, np_ - n)))
    mt, nt, kt = mp // tm, np_ // tn, kp // tk
    if kt == 1:
        out = pl.pallas_call(
            partial(_mm_kernel, act=act),
            grid=(mt, nt),
            in_specs=[
                pl.BlockSpec((tm, tk), lambda i, j: (i, 0)),
                pl.BlockSpec((tk, tn), lambda i, j: (0, j)),
                pl.BlockSpec((1, tn), lambda i, j: (0, j)),
            ],
            out_specs=pl.BlockSpec((tm, tn), lambda i, j: (i, j)),
            out_shape=jax.ShapeDtypeStruct((mp, np_), out_dtype),
            compiler_params=_compiler_params(("parallel", "parallel")),
        )(x, w, bf)
    else:
        out = pl.pallas_call(
            partial(_mm_ktiled_kernel, act=act),
            grid=(mt, nt, kt),
            in_specs=[
                pl.BlockSpec((tm, tk), lambda i, j, kk: (i, kk)),
                pl.BlockSpec((tk, tn), lambda i, j, kk: (kk, j)),
                pl.BlockSpec((1, tn), lambda i, j, kk: (0, j)),
            ],
            out_specs=pl.BlockSpec((tm, tn), lambda i, j, kk: (i, j)),
            out_shape=jax.ShapeDtypeStruct((mp, np_), out_dtype),
            scratch_shapes=[pltpu.VMEM((tm, tn), jnp.float32)],
            compiler_params=_compiler_params(("parallel", "parallel", "arbitrary")),
        )(x, w, bf)
    return out[:m, :n]


def scaled_matmul_bias_act(x, s, w, b, act="none", out_dtype=jnp.bfloat16):
    """Per-batch (M, K) @ (K, N) with a per-batch (1, K) SE channel scale fused on the input."""
    nb, m, k = x.shape
    n = w.shape[1]
    mp, tm, kp, tk, np_, tn = _pick_matmul_tiles(m, k, n)
    x = x.astype(jnp.bfloat16)
    s = s.astype(jnp.float32)
    w = w.astype(jnp.bfloat16)
    bf = b.astype(jnp.float32).reshape(1, n)
    if mp != m:
        x = jnp.pad(x, ((0, 0), (0, mp - m), (0, 0)))
    if kp != k:
        x = jnp.pad(x, ((0, 0), (0, 0), (0, kp - k)))
        s = jnp.pad(s, ((0, 0), (0, 0), (0, kp - k)))
        w = jnp.pad(w, ((0, kp - k), (0, 0)))
    if np_ != n:
        w = jnp.pad(w, ((0, 0), (0, np_ - n)))
        bf = jnp.pad(bf, ((0, 0), (0, np_ - n)))
    mt, nt, kt = mp // tm, np_ // tn, kp // tk
    if kt == 1:
        out = pl.pallas_call(
            partial(_smm_kernel, act=act),
            grid=(nb, mt, nt),
            in_specs=[
                pl.BlockSpec((None, 1, tk), lambda bi, i, j: (bi, 0, 0)),
                pl.BlockSpec((None, tm, tk), lambda bi, i, j: (bi, i, 0)),
                pl.BlockSpec((tk, tn), lambda bi, i, j: (0, j)),
                pl.BlockSpec((1, tn), lambda bi, i, j: (0, j)),
            ],
            out_specs=pl.BlockSpec((None, tm, tn), lambda bi, i, j: (bi, i, j)),
            out_shape=jax.ShapeDtypeStruct((nb, mp, np_), out_dtype),
            compiler_params=_compiler_params(("parallel", "parallel", "parallel")),
        )(s, x, w, bf)
    else:
        out = pl.pallas_call(
            partial(_smm_ktiled_kernel, act=act),
            grid=(nb, mt, nt, kt),
            in_specs=[
                pl.BlockSpec((None, 1, tk), lambda bi, i, j, kk: (bi, 0, kk)),
                pl.BlockSpec((None, tm, tk), lambda bi, i, j, kk: (bi, i, kk)),
                pl.BlockSpec((tk, tn), lambda bi, i, j, kk: (kk, j)),
                pl.BlockSpec((1, tn), lambda bi, i, j, kk: (0, j)),
            ],
            out_specs=pl.BlockSpec((None, tm, tn), lambda bi, i, j, kk: (bi, i, j)),
            out_shape=jax.ShapeDtypeStruct((nb, mp, np_), out_dtype),
            scratch_shapes=[pltpu.VMEM((tm, tn), jnp.float32)],
            compiler_params=_compiler_params(("parallel", "parallel", "parallel", "arbitrary")),
        )(s, x, w, bf)
    return out[:, :m, :n]


def _dw_row_tile(h, w, c):
    if h <= 32:
        return h
    rows = max(8, (2 * 1024 * 1024) // max(1, w * c * 4))   # keep f32 accumulator ~<=2 MiB
    rows = min(rows, 32, h)
    return max(8, (rows // 8) * 8)


def dwconv_s1_silu(x, wdw, b, k):
    """Stride-1 depthwise conv + SiLU on the NHWC map, tiled over output rows."""
    n, h, wsp, c = x.shape
    pad = (k - 1) // 2
    tho = _dw_row_tile(h, wsp, c)
    ho_pad = _ceil_to(h, tho)
    xp = jnp.pad(x.astype(jnp.bfloat16),
                 ((0, 0), (pad, pad + (ho_pad - h)), (pad, pad), (0, 0)))
    hp_total = ho_pad + 2 * pad
    wp = wsp + 2 * pad
    out = pl.pallas_call(
        partial(_dw_s1_kernel, k=k),
        grid=(n, ho_pad // tho),
        in_specs=[
            pl.BlockSpec((None, hp_total, wp, c), lambda bi, hi: (bi, 0, 0, 0)),
            pl.BlockSpec((k * k, c), lambda bi, hi: (0, 0)),
            pl.BlockSpec((1, c), lambda bi, hi: (0, 0)),
        ],
        out_specs=pl.BlockSpec((None, tho, wsp, c), lambda bi, hi: (bi, hi, 0, 0)),
        out_shape=jax.ShapeDtypeStruct((n, ho_pad, wsp, c), jnp.bfloat16),
        compiler_params=_compiler_params(("parallel", "parallel")),
    )(xp, wdw.astype(jnp.bfloat16), b.astype(jnp.float32).reshape(1, c))
    return out[:, :h]


def dwconv_patch_silu(patches, wdw, b):
    """Depthwise conv + SiLU on (M, K*K, C) patches (stride-2 fallback path)."""
    m, kk, c = patches.shape
    cap = max(8, min(512, ((8 * 1024 * 1024) // max(1, kk * c * 4) // 8) * 8))
    mp, tm = _row_tiling(m, cap=cap)
    if mp != m:
        patches = jnp.pad(patches, ((0, mp - m), (0, 0), (0, 0)))
    out = pl.pallas_call(
        _dw_patch_kernel,
        grid=(mp // tm,),
        in_specs=[
            pl.BlockSpec((tm, kk, c), lambda i: (i, 0, 0)),
            pl.BlockSpec((kk, c), lambda i: (0, 0)),
            pl.BlockSpec((1, c), lambda i: (0, 0)),
        ],
        out_specs=pl.BlockSpec((tm, c), lambda i: (i, 0)),
        out_shape=jax.ShapeDtypeStruct((mp, c), jnp.bfloat16),
        compiler_params=_compiler_params(("parallel",)),
    )(patches.astype(jnp.bfloat16), wdw.astype(jnp.bfloat16), b.astype(jnp.float32).reshape(1, c))
    return out[:m]


def global_avg_pool(x):
    """(N, HW, C) -> (N, 1, C) float32 mean, HW-tiled with a f32 accumulator."""
    n, hw, c = x.shape
    hwp = _ceil_to(hw, 8)
    if hwp <= 2048:
        thw = hwp
    else:
        thw = 1024
        hwp = _ceil_to(hw, thw)
    if hwp != hw:
        x = jnp.pad(x, ((0, 0), (0, hwp - hw), (0, 0)))
    return pl.pallas_call(
        partial(_gap_kernel, inv_hw=1.0 / hw),
        grid=(n, hwp // thw),
        in_specs=[pl.BlockSpec((None, thw, c), lambda bi, i: (bi, i, 0))],
        out_specs=pl.BlockSpec((None, 1, c), lambda bi, i: (bi, 0, 0)),
        out_shape=jax.ShapeDtypeStruct((n, 1, c), jnp.float32),
        scratch_shapes=[pltpu.VMEM((1, c), jnp.float32)],
        compiler_params=_compiler_params(("parallel", "arbitrary")),
    )(x)


def fused_se_nf(pooled, p_se, w_proj, b_proj):
    """One tiny kernel: SE gate sigmoid(fc2(SiLU(fc1(pooled)))) and the NeighborFusion
    channel mean of the projected output (== (pooled * gate) @ Wproj + bproj)."""
    nb, ce = pooled.shape
    csq = p_se["w1"].shape[1]
    cout = w_proj.shape[1]
    nbp = max(8, _ceil_to(nb, 8))
    cep = _ceil_to(max(ce, 128), 128)
    sqp = _ceil_to(max(csq, 128), 128)
    cop = _ceil_to(max(cout, 128), 128)
    x = jnp.pad(pooled.astype(jnp.float32), ((0, nbp - nb), (0, cep - ce)))
    w1 = jnp.pad(p_se["w1"].astype(jnp.float32), ((0, cep - ce), (0, sqp - csq)))
    b1 = jnp.pad(p_se["b1"].astype(jnp.float32).reshape(1, csq), ((0, 0), (0, sqp - csq)))
    w2 = jnp.pad(p_se["w2"].astype(jnp.float32), ((0, sqp - csq), (0, cep - ce)))
    b2 = jnp.pad(p_se["b2"].astype(jnp.float32).reshape(1, ce), ((0, 0), (0, cep - ce)))
    wp = jnp.pad(w_proj.astype(jnp.bfloat16), ((0, cep - ce), (0, cop - cout)))
    bp = jnp.pad(b_proj.astype(jnp.float32).reshape(1, cout), ((0, 0), (0, cop - cout)))
    s, m = pl.pallas_call(
        _se_nf_kernel,
        grid=(1,),
        in_specs=[
            pl.BlockSpec((nbp, cep), lambda i: (0, 0)),
            pl.BlockSpec((cep, sqp), lambda i: (0, 0)),
            pl.BlockSpec((1, sqp), lambda i: (0, 0)),
            pl.BlockSpec((sqp, cep), lambda i: (0, 0)),
            pl.BlockSpec((1, cep), lambda i: (0, 0)),
            pl.BlockSpec((cep, cop), lambda i: (0, 0)),
            pl.BlockSpec((1, cop), lambda i: (0, 0)),
        ],
        out_specs=[
            pl.BlockSpec((nbp, cep), lambda i: (0, 0)),
            pl.BlockSpec((nbp, cop), lambda i: (0, 0)),
        ],
        out_shape=(jax.ShapeDtypeStruct((nbp, cep), jnp.float32),
                   jax.ShapeDtypeStruct((nbp, cop), jnp.float32)),
        compiler_params=_compiler_params(("arbitrary",)),
    )(x, w1, b1, w2, b2, wp, bp)
    return s[:nb, :ce], m[:nb, :cout]


def concat_neighbor(h, s, residual=None):
    """out = concat([h, h * s], channel-last) (+ residual), emitted lane-dense as (HW, 2C)."""
    n, hw, c = h.shape
    h = h.astype(jnp.bfloat16)
    s = s.astype(jnp.float32)
    hwp, tm = _row_tiling(hw, cap=1024)
    if hwp != hw:
        h = jnp.pad(h, ((0, 0), (0, hwp - hw), (0, 0)))
    specs = [
        pl.BlockSpec((None, tm, c), lambda bi, i: (bi, i, 0)),
        pl.BlockSpec((None, 1, c), lambda bi, i: (bi, 0, 0)),
    ]
    args = [h, s]
    kern = _concat_nf_kernel
    if residual is not None:
        r = residual.astype(jnp.bfloat16)
        if hwp != hw:
            r = jnp.pad(r, ((0, 0), (0, hwp - hw), (0, 0)))
        specs.append(pl.BlockSpec((None, tm, 2 * c), lambda bi, i: (bi, i, 0)))
        args.append(r)
        kern = _concat_nf_res_kernel
    out = pl.pallas_call(
        kern,
        grid=(n, hwp // tm),
        in_specs=specs,
        out_specs=pl.BlockSpec((None, tm, 2 * c), lambda bi, i: (bi, i, 0)),
        out_shape=jax.ShapeDtypeStruct((n, hwp, 2 * c), jnp.bfloat16),
        compiler_params=_compiler_params(("parallel", "parallel")),
    )(*args)
    return out[:, :hw]


# ----------------------------------------------------------------------------
# JAX glue: im2col (stem / stride-2 depthwise only), layer wrappers
# ----------------------------------------------------------------------------
def extract_patches(x, k, stride, pad):
    n, h, w, c = x.shape
    xp = jnp.pad(x, ((0, 0), (pad, pad), (pad, pad), (0, 0)))
    ho = (h + 2 * pad - k) // stride + 1
    wo = (w + 2 * pad - k) // stride + 1
    cols = []
    for kh in range(k):
        for kw in range(k):
            cols.append(xp[:, kh:kh + stride * ho:stride, kw:kw + stride * wo:stride, :])
    patches = jnp.stack(cols, axis=3)  # (N, Ho, Wo, K*K, C)
    return patches, ho, wo


def conv1x1_bn_act(x, p, act):
    n, h, w, c = x.shape
    y = matmul_bias_act(x.reshape(n * h * w, c), p["w"], p["b"], act)
    return y.reshape(n, h, w, -1)


def stem_conv(x, p, k, stride):
    # 3x3/stride-2 regular conv via im2col; cheap here since C_in = 3.
    n, h, w, c = x.shape
    pad = (k - 1) // 2
    patches, ho, wo = extract_patches(x, k, stride, pad)
    y = matmul_bias_act(patches.reshape(n * ho * wo, k * k * c), p["w"], p["b"], "silu")
    return y.reshape(n, ho, wo, -1)


def dwconv_bn_silu(x, p, k, stride):
    n, h, w, c = x.shape
    if stride == 1:
        return dwconv_s1_silu(x, p["w"], p["b"], k)
    # Stride-2 layers (one per stage): im2col fallback.
    # TODO(synk): replace with a direct strided-read depthwise kernel to avoid the patch tensor.
    pad = (k - 1) // 2
    patches, ho, wo = extract_patches(x, k, stride, pad)
    y = dwconv_patch_silu(patches.reshape(n * ho * wo, k * k, c), p["w"], p["b"])
    return y.reshape(n, ho, wo, c)


def mbconv_forward(x, p, cfg):
    inp = x
    h = x
    if "expand" in p:
        h = conv1x1_bn_act(h, p["expand"], "silu")
    h = dwconv_bn_silu(h, p["dw"], cfg["kernel"], cfg["stride"])
    n, ho, wo, ce = h.shape
    pooled = global_avg_pool(h.reshape(n, ho * wo, ce)).reshape(n, ce)          # (N, Ce) f32
    s_se, nf_mean = fused_se_nf(pooled, p["se"], p["project"]["w"], p["project"]["b"])
    proj = scaled_matmul_bias_act(h.reshape(n, ho * wo, ce), s_se.reshape(n, 1, ce),
                                  p["project"]["w"], p["project"]["b"], act="none")
    cout = proj.shape[-1]
    s_nf = jax.nn.sigmoid(p["nf_w"] * nf_mean).reshape(n, 1, cout)              # exact sigmoid
    use_res = cfg["stride"] == 1 and cfg["input_channels"] == cfg["out_channels"] * 2
    residual = inp.reshape(n, ho * wo, cfg["input_channels"]) if use_res else None
    out = concat_neighbor(proj, s_nf, residual=residual)                        # (N, HW, 2*Cout)
    return out.reshape(n, ho, wo, 2 * cout)


# ----------------------------------------------------------------------------
# Parameter construction (deterministic, mirrors PyTorch __init__ shapes & init rules)
# ----------------------------------------------------------------------------
class KeyGen:
    def __init__(self, seed):
        self.key = jax.random.PRNGKey(seed)

    def next(self):
        self.key, sub = jax.random.split(self.key)
        return sub


def init_conv_bn(kg, k, cin, cout, groups=1):
    fan_out = k * k * cout // groups
    std = math.sqrt(2.0 / fan_out)  # kaiming normal, mode='fan_out'
    if groups == 1:
        w = std * jax.random.normal(kg.next(), (k, k, cin, cout), jnp.float32)
        w = (w * BN_SCALE).reshape(k * k * cin, cout).astype(jnp.bfloat16)
    else:  # depthwise
        w = std * jax.random.normal(kg.next(), (k, k, cout), jnp.float32)
        w = (w * BN_SCALE).reshape(k * k, cout).astype(jnp.bfloat16)
    return {"w": w, "b": jnp.zeros((cout,), jnp.float32)}


def init_se(kg, cin, csq):
    # SE weights kept in f32 (tiny; used only inside the fused SE kernel).
    w1 = math.sqrt(2.0 / csq) * jax.random.normal(kg.next(), (cin, csq), jnp.float32)
    w2 = math.sqrt(2.0 / cin) * jax.random.normal(kg.next(), (csq, cin), jnp.float32)
    return {"w1": w1, "b1": jnp.zeros((csq,), jnp.float32),
            "w2": w2, "b2": jnp.zeros((cin,), jnp.float32)}


def build_model(seed, settings, num_classes):
    kg = KeyGen(seed)
    params = {"stem": init_conv_bn(kg, 3, 3, settings[0].input_channels)}

    blocks_p, blocks_cfg = [], []
    for cnf in settings:
        for li in range(cnf.num_layers):
            bc = copy.copy(cnf)
            if li > 0:
                bc.input_channels = bc.out_channels * 2
                bc.stride = 1
            expanded = _make_divisible(bc.input_channels * bc.expand_ratio, 8)
            bp = {}
            if expanded != bc.input_channels:
                bp["expand"] = init_conv_bn(kg, 1, bc.input_channels, expanded)
            bp["dw"] = init_conv_bn(kg, bc.kernel, expanded, expanded, groups=expanded)
            csq = max(1, bc.input_channels // 4)
            bp["se"] = init_se(kg, expanded, csq)
            bp["project"] = init_conv_bn(kg, 1, expanded, bc.out_channels)
            bp["nf_w"] = math.sqrt(2.0) * jax.random.normal(kg.next(), (), jnp.float32)
            blocks_p.append(bp)
            blocks_cfg.append(dict(kernel=bc.kernel, stride=bc.stride,
                                   input_channels=bc.input_channels, out_channels=bc.out_channels))
    params["blocks"] = blocks_p

    last_in = settings[-1].out_channels * 2
    last_out = 4 * last_in
    params["head"] = init_conv_bn(kg, 1, last_in, last_out)

    init_range = 1.0 / math.sqrt(num_classes)
    params["fc_w"] = jax.random.uniform(kg.next(), (last_out, num_classes), jnp.float32,
                                        minval=-init_range, maxval=init_range).astype(jnp.bfloat16)
    params["fc_b"] = jnp.zeros((num_classes,), jnp.float32)
    return params, blocks_cfg


def efficientnet_forward(params, blocks_cfg, x_nchw):
    x = jnp.transpose(x_nchw, (0, 2, 3, 1)).astype(jnp.bfloat16)     # NCHW -> NHWC, bf16 activations
    x = stem_conv(x, params["stem"], 3, 2)
    for bp, cfg in zip(params["blocks"], blocks_cfg):
        x = mbconv_forward(x, bp, cfg)
    x = conv1x1_bn_act(x, params["head"], "silu")
    n, h, w, c = x.shape
    pooled = global_avg_pool(x.reshape(n, h * w, c))                 # adaptive avg pool (1x1), f32
    # Dropout is identity at eval; classifier linear (f32 logits):
    return matmul_bias_act(pooled.reshape(n, c), params["fc_w"], params["fc_b"],
                           "none", out_dtype=jnp.float32)


# ----------------------------------------------------------------------------
# Main
# ----------------------------------------------------------------------------
if __name__ == "__main__":
    # Small-but-faithful inverted residual setting (same structural rules as b0_ftm).
    settings = [
        MBCfg(expand_ratio=1, kernel=3, stride=1, input_channels=8, out_channels=16, num_layers=1),
        MBCfg(expand_ratio=4, kernel=3, stride=2, input_channels=16, out_channels=24, num_layers=2),
    ]
    num_classes = 10

    params, blocks_cfg = build_model(seed=42, settings=settings, num_classes=num_classes)

    x = jax.random.normal(jax.random.PRNGKey(0), (2, 3, 16, 16), jnp.float32)  # NCHW input

    fwd = jax.jit(lambda p, inp: efficientnet_forward(p, blocks_cfg, inp))
    out = fwd(params, x)
    out = jax.block_until_ready(out)

    assert out.shape == (2, num_classes), out.shape
    assert bool(jnp.all(jnp.isfinite(out)))
    print("KERNEL_OK")
</pallas_src>

<mosaic_0001>
module attributes {stable_mosaic.version = 11 : i64} {
  func.func @_mm_kernel(%arg0: i32, %arg1: i32, %arg2: memref<128x27xbf16, #tpu.memory_space<vmem>>, %arg3: memref<27x128xbf16, #tpu.memory_space<vmem>>, %arg4: memref<1x128xf32, #tpu.memory_space<vmem>>, %arg5: memref<128x128xbf16, #tpu.memory_space<vmem>>) attributes {dimension_semantics = [#tpu.dimension_semantics<parallel>, #tpu.dimension_semantics<parallel>], iteration_bounds = array<i64: 1, 1>, scalar_prefetch = 0 : i64, scratch_operands = 0 : i64, tpu.core_type = #tpu.core_type<tc>, window_params = [{transform_indices = @transform_0, window_bounds = array<i64: 128, 27>}, {transform_indices = @transform_1, window_bounds = array<i64: 27, 128>}, {transform_indices = @transform_2, window_bounds = array<i64: 1, 128>}, {transform_indices = @transform_3, window_bounds = array<i64: 128, 128>}]} {
    %c0 = arith.constant 0 : index
    %c0_0 = arith.constant 0 : index
    %0 = vector.load %arg2[%c0, %c0_0] : memref<128x27xbf16, #tpu.memory_space<vmem>>, vector<128x27xbf16>
    %c0_1 = arith.constant 0 : index
    %c0_2 = arith.constant 0 : index
    %1 = vector.load %arg3[%c0_1, %c0_2] : memref<27x128xbf16, #tpu.memory_space<vmem>>, vector<27x128xbf16>
    %cst = arith.constant dense<0.000000e+00> : vector<128x128xf32>
    %2 = tpu.matmul %0, %1, %cst {dimension_numbers = #tpu.dot_dimension_numbers<[1], [0], [0], [1], [0, 0, 1, 1], [], []>} : vector<128x27xbf16>, vector<27x128xbf16>, vector<128x128xf32> -> vector<128x128xf32>
    %c0_3 = arith.constant 0 : index
    %c0_4 = arith.constant 0 : index
    %3 = vector.load %arg4[%c0_3, %c0_4] : memref<1x128xf32, #tpu.memory_space<vmem>>, vector<1x128xf32>
    %4 = vector.broadcast %3 : vector<1x128xf32> to vector<128x128xf32>
    %5 = arith.addf %2, %4 : vector<128x128xf32>
    %cst_5 = arith.constant 0.000000e+00 : f32
    %6 = vector.broadcast %cst_5 : f32 to vector<128x128xf32>
    %7 = arith.subf %6, %5 : vector<128x128xf32>
    %8 = math.exp %7 : vector<128x128xf32>
    %cst_6 = arith.constant 1.000000e+00 : f32
    %9 = vector.broadcast %cst_6 : f32 to vector<128x128xf32>
    %10 = arith.addf %9, %8 : vector<128x128xf32>
    %11 = tpu.reciprocal %10 {approx = true} : vector<128x128xf32> -> vector<128x128xf32>
    %12 = arith.mulf %5, %11 : vector<128x128xf32>
    %13 = arith.truncf %12 : vector<128x128xf32> to vector<128x128xbf16>
    %c0_7 = arith.constant 0 : index
    %c0_8 = arith.constant 0 : index
    %14 = vector.load %arg5[%c0_7, %c0_8] : memref<128x128xbf16, #tpu.memory_space<vmem>>, vector<128x128xbf16>
    tpu.vector_store %arg5[%c0_7, %c0_8], %13 {strides = array<i32>} : memref<128x128xbf16, #tpu.memory_space<vmem>>, vector<128x128xbf16>,
    return
  }
  func.func @transform_0(%arg0: i32, %arg1: i32) -> (i32, i32) {
    %c0_i32 = arith.constant 0 : i32
    %c0_i32_0 = arith.constant 0 : i32
    return %arg0, %c0_i32 : i32, i32
  }
  func.func @transform_1(%arg0: i32, %arg1: i32) -> (i32, i32) {
    %c0_i32 = arith.constant 0 : i32
    %c0_i32_0 = arith.constant 0 : i32
    return %c0_i32, %arg1 : i32, i32
  }
  func.func @transform_2(%arg0: i32, %arg1: i32) -> (i32, i32) {
    %c0_i32 = arith.constant 0 : i32
    %c0_i32_0 = arith.constant 0 : i32
    return %c0_i32, %arg1 : i32, i32
  }
  func.func @transform_3(%arg0: i32, %arg1: i32) -> (i32, i32) {
    %c0_i32 = arith.constant 0 : i32
    return %arg0, %arg1 : i32, i32
  }
}

module attributes {stable_mosaic.version = 11 : i64} {
  func.func @_dw_s1_kernel(%arg0: i32, %arg1: i32, %arg2: memref<1x10x10x8xbf16, #tpu.memory_space<vmem>>, %arg3: memref<9x8xbf16, #tpu.memory_space<vmem>>, %arg4: memref<1x8xf32, #tpu.memory_space<vmem>>, %arg5: memref<1x8x8x8xbf16, #tpu.memory_space<vmem>>) attributes {dimension_semantics = [#tpu.dimension_semantics<parallel>, #tpu.dimension_semantics<parallel>], iteration_bounds = array<i64: 2, 1>, scalar_prefetch = 0 : i64, scratch_operands = 0 : i64, tpu.core_type = #tpu.core_type<tc>, window_params = [{transform_indices = @transform_0, window_bounds = array<i64: 1, 10, 10, 8>}, {pipeline_mode = #tpu.pipeline_mode<synchronous>, transform_indices = @transform_1, window_bounds = array<i64: 9, 8>}, {pipeline_mode = #tpu.pipeline_mode<synchronous>, transform_indices = @transform_2, window_bounds = array<i64: 1, 8>}, {transform_indices = @transform_3, window_bounds = array<i64: 1, 8, 8, 8>}]} {
    %c8_i32 = arith.constant 8 : i32
    %0 = arith.muli %arg1, %c8_i32 : i32
    %1 = tpu.assume_multiple %0, 8 : i32
    %cst = arith.constant 0.000000e+00 : f32
    %2 = vector.broadcast %cst : f32 to vector<8x8x8xf32>
    %c0_i32 = arith.constant 0 : i32
    %3 = arith.addi %1, %c0_i32 : i32
    %c0 = arith.constant 0 : index
    %4 = arith.index_cast %3 : i32 to index
    %c0_0 = arith.constant 0 : index
    %c0_1 = arith.constant 0 : index
    %5 = vector.load %arg2[%c0, %4, %c0_0, %c0_1] : memref<1x10x10x8xbf16, #tpu.memory_space<vmem>>, vector<1x8x8x8xbf16>
    %6 = vector.shape_cast %5 : vector<1x8x8x8xbf16> to vector<8x8x8xbf16>
    %c0_2 = arith.constant 0 : index
    %c0_3 = arith.constant 0 : index
    %7 = vector.load %arg3[%c0_2, %c0_3] : memref<9x8xbf16, #tpu.memory_space<vmem>>, vector<1x8xbf16>
    %8 = vector.shape_cast %7 : vector<1x8xbf16> to vector<1x1x8xbf16>
    %9 = vector.broadcast %8 : vector<1x1x8xbf16> to vector<8x8x8xbf16>
    %10 = arith.mulf %6, %9 : vector<8x8x8xbf16>
    %11 = arith.extf %10 : vector<8x8x8xbf16> to vector<8x8x8xf32>
    %12 = arith.addf %2, %11 : vector<8x8x8xf32>
    %c0_i32_4 = arith.constant 0 : i32
    %13 = arith.addi %1, %c0_i32_4 : i32
    %c0_5 = arith.constant 0 : index
    %14 = arith.index_cast %13 : i32 to index
    %c1 = arith.constant 1 : index
    %c0_6 = arith.constant 0 : index
    %15 = vector.load %arg2[%c0_5, %14, %c1, %c0_6] : memref<1x10x10x8xbf16, #tpu.memory_space<vmem>>, vector<1x8x8x8xbf16>
    %16 = vector.shape_cast %15 : vector<1x8x8x8xbf16> to vector<8x8x8xbf16>
    %c1_7 = arith.constant 1 : index
    %c0_8 = arith.constant 0 : index
    %17 = vector.load %arg3[%c1_7, %c0_8] : memref<9x8xbf16, #tpu.memory_space<vmem>>, vector<1x8xbf16>
    %18 = vector.shape_cast %17 : vector<1x8xbf16> to vector<1x1x8xbf16>
    %19 = vector.broadcast %18 : vector<1x1x8xbf16> to vector<8x8x8xbf16>
    %20 = arith.mulf %16, %19 : vector<8x8x8xbf16>
    %21 = arith.extf %20 : vector<8x8x8xbf16> to vector<8x8x8xf32>
    %22 = arith.addf %12, %21 : vector<8x8x8xf32>
    %c0_i32_9 = arith.constant 0 : i32
    %23 = arith.addi %1, %c0_i32_9 : i32
    %c0_10 = arith.constant 0 : index
    %24 = arith.index_cast %23 : i32 to index
    %c2 = arith.constant 2 : index
    %c0_11 = arith.constant 0 : index
    %25 = vector.load %arg2[%c0_10, %24, %c2, %c0_11] : memref<1x10x10x8xbf16, #tpu.memory_space<vmem>>, vector<1x8x8x8xbf16>
    %26 = vector.shape_cast %25 : vector<1x8x8x8xbf16> to vector<8x8x8xbf16>
    %c2_12 = arith.constant 2 : index
    %c0_13 = arith.constant 0 : index
    %27 = vector.load %arg3[%c2_12, %c0_13] : memref<9x8xbf16, #tpu.memory_space<vmem>>, vector<1x8xbf16>
    %28 = vector.shape_cast %27 : vector<1x8xbf16> to vector<1x1x8xbf16>
    %29 = vector.broadcast %28 : vector<1x1x8xbf16> to vector<8x8x8xbf16>
    %30 = arith.mulf %26, %29 : vector<8x8x8xbf16>
    %31 = arith.extf %30 : vector<8x8x8xbf16> to vector<8x8x8xf32>
    %32 = arith.addf %22, %31 : vector<8x8x8xf32>
    %c1_i32 = arith.constant 1 : i32
    %33 = arith.addi %1, %c1_i32 : i32
    %c0_14 = arith.constant 0 : index
    %34 = arith.index_cast %33 : i32 to index
    %c0_15 = arith.constant 0 : index
    %c0_16 = arith.constant 0 : index
    %35 = vector.load %arg2[%c0_14, %34, %c0_15, %c0_16] : memref<1x10x10x8xbf16, #tpu.memory_space<vmem>>, vector<1x8x8x8xbf16>
    %36 = vector.shape_cast %35 : vector<1x8x8x8xbf16> to vector<8x8x8xbf16>
    %c3 = arith.constant 3 : index
    %c0_17 = arith.constant 0 : index
    %37 = vector.load %arg3[%c3, %c0_17] : memref<9x8xbf16, #tpu.memory_space<vmem>>, vector<1x8xbf16>
    %38 = vector.shape_cast %37 : vector<1x8xbf16> to vector<1x1x8xbf16>
    %39 = vector.broadcast %38 : vector<1x1x8xbf16> to vector<8x8x8xbf16>
    %40 = arith.mulf %36, %39 : vector<8x8x8xbf16>
    %41 = arith.extf %40 : vector<8x8x8xbf16> to vector<8x8x8xf32>
    %42 = arith.addf %32, %41 : vector<8x8x8xf32>
    %c1_i32_18 = arith.constant 1 : i32
    %43 = arith.addi %1, %c1_i32_18 : i32
    %c0_19 = arith.constant 0 : index
    %44 = arith.index_cast %43 : i32 to index
    %c1_20 = arith.constant 1 : index
    %c0_21 = arith.constant 0 : index
    %45 = vector.load %arg2[%c0_19, %44, %c1_20, %c0_21] : memref<1x10x10x8xbf16, #tpu.memory_space<vmem>>, vector<1x8x8x8xbf16>
    %46 = vector.shape_cast %45 : vector<1x8x8x8xbf16> to vector<8x8x8xbf16>
    %c4 = arith.constant 4 : index
    %c0_22 = arith.constant 0 : index
    %47 = vector.load %arg3[%c4, %c0_22] : memref<9x8xbf16, #tpu.memory_space<vmem>>, vector<1x8xbf16>
    %48 = vector.shape_cast %47 : vector<1x8xbf16> to vector<1x1x8xbf16>
    %49 = vector.broadcast %48 : vector<1x1x8xbf16> to vector<8x8x8xbf16>
    %50 = arith.mulf %46, %49 : vector<8x8x8xbf16>
    %51 = arith.extf %50 : vector<8x8x8xbf16> to vector<8x8x8xf32>
    %52 = arith.addf %42, %51 : vector<8x8x8xf32>
    %c1_i32_23 = arith.constant 1 : i32
    %53 = arith.addi %1, %c1_i32_23 : i32
    %c0_24 = arith.constant 0 : index
    %54 = arith.index_cast %53 : i32 to index
    %c2_25 = arith.constant 2 : index
    %c0_26 = arith.constant 0 : index
    %55 = vector.load %arg2[%c0_24, %54, %c2_25, %c0_26] : memref<1x10x10x8xbf16, #tpu.memory_space<vmem>>, vector<1x8x8x8xbf16>
    %56 = vector.shape_cast %55 : vector<1x8x8x8xbf16> to vector<8x8x8xbf16>
    %c5 = arith.constant 5 : index
    %c0_27 = arith.constant 0 : index
    %57 = vector.load %arg3[%c5, %c0_27] : memref<9x8xbf16, #tpu.memory_space<vmem>>, vector<1x8xbf16>
    %58 = vector.shape_cast %57 : vector<1x8xbf16> to vector<1x1x8xbf16>
    %59 = vector.broadcast %58 : vector<1x1x8xbf16> to vector<8x8x8xbf16>
    %60 = arith.mulf %56, %59 : vector<8x8x8xbf16>
    %61 = arith.extf %60 : vector<8x8x8xbf16> to vector<8x8x8xf32>
    %62 = arith.addf %52, %61 : vector<8x8x8xf32>
    %c2_i32 = arith.constant 2 : i32
    %63 = arith.addi %1, %c2_i32 : i32
    %c0_28 = arith.constant 0 : index
    %64 = arith.index_cast %63 : i32 to index
    %c0_29 = arith.constant 0 : index
    %c0_30 = arith.constant 0 : index
    %65 = vector.load %arg2[%c0_28, %64, %c0_29, %c0_30] : memref<1x10x10x8xbf16, #tpu.memory_space<vmem>>, vector<1x8x8x8xbf16>
    %66 = vector.shape_cast %65 : vector<1x8x8x8xbf16> to vector<8x8x8xbf16>
    %c6 = arith.constant 6 : index
    %c0_31 = arith.constant 0 : index
    %67 = vector.load %arg3[%c6, %c0_31] : memref<9x8xbf16, #tpu.memory_space<vmem>>, vector<1x8xbf16>
    %68 = vector.shape_cast %67 : vector<1x8xbf16> to vector<1x1x8xbf16>
    %69 = vector.broadcast %68 : vector<1x1x8xbf16> to vector<8x8x8xbf16>
    %70 = arith.mulf %66, %69 : vector<8x8x8xbf16>
    %71 = arith.extf %70 : vector<8x8x8xbf16> to vector<8x8x8xf32>
    %72 = arith.addf %62, %71 : vector<8x8x8xf32>
    %c2_i32_32 = arith.constant 2 : i32
    %73 = arith.addi %1, %c2_i32_32 : i32
    %c0_33 = arith.constant 0 : index
    %74 = arith.index_cast %73 : i32 to index
    %c1_34 = arith.constant 1 : index
    %c0_35 = arith.constant 0 : index
    %75 = vector.load %arg2[%c0_33, %74, %c1_34, %c0_35] : memref<1x10x10x8xbf16, #tpu.memory_space<vmem>>, vector<1x8x8x8xbf16>
    %76 = vector.shape_cast %75 : vector<1x8x8x8xbf16> to vector<8x8x8xbf16>
    %c7 = arith.constant 7 : index
    %c0_36 = arith.constant 0 : index
    %77 = vector.load %arg3[%c7, %c0_36] : memref<9x8xbf16, #tpu.memory_space<vmem>>, vector<1x8xbf16>
    %78 = vector.shape_cast %77 : vector<1x8xbf16> to vector<1x1x8xbf16>
    %79 = vector.broadcast %78 : vector<1x1x8xbf16> to vector<8x8x8xbf16>
    %80 = arith.mulf %76, %79 : vector<8x8x8xbf16>
    %81 = arith.extf %80 : vector<8x8x8xbf16> to vector<8x8x8xf32>
    %82 = arith.addf %72, %81 : vector<8x8x8xf32>
    %c2_i32_37 = arith.constant 2 : i32
    %83 = arith.addi %1, %c2_i32_37 : i32
    %c0_38 = arith.constant 0 : index
    %84 = arith.index_cast %83 : i32 to index
    %c2_39 = arith.constant 2 : index
    %c0_40 = arith.constant 0 : index
    %85 = vector.load %arg2[%c0_38, %84, %c2_39, %c0_40] : memref<1x10x10x8xbf16, #tpu.memory_space<vmem>>, vector<1x8x8x8xbf16>
    %86 = vector.shape_cast %85 : vector<1x8x8x8xbf16> to vector<8x8x8xbf16>
    %c8 = arith.constant 8 : index
    %c0_41 = arith.constant 0 : index
    %87 = vector.load %arg3[%c8, %c0_41] : memref<9x8xbf16, #tpu.memory_space<vmem>>, vector<1x8xbf16>
    %88 = vector.shape_cast %87 : vector<1x8xbf16> to vector<1x1x8xbf16>
    %89 = vector.broadcast %88 : vector<1x1x8xbf16> to vector<8x8x8xbf16>
    %90 = arith.mulf %86, %89 : vector<8x8x8xbf16>
    %91 = arith.extf %90 : vector<8x8x8xbf16> to vector<8x8x8xf32>
    %92 = arith.addf %82, %91 : vector<8x8x8xf32>
    %c0_42 = arith.constant 0 : index
    %c0_43 = arith.constant 0 : index
    %93 = vector.load %arg4[%c0_42, %c0_43] : memref<1x8xf32, #tpu.memory_space<vmem>>, vector<1x8xf32>
    %94 = vector.shape_cast %93 : vector<1x8xf32> to vector<1x1x8xf32>
    %95 = vector.broadcast %94 : vector<1x1x8xf32> to vector<8x8x8xf32>
    %96 = arith.addf %92, %95 : vector<8x8x8xf32>
    %cst_44 = arith.constant 0.000000e+00 : f32
    %97 = vector.broadcast %cst_44 : f32 to vector<8x8x8xf32>
    %98 = arith.subf %97, %96 : vector<8x8x8xf32>
    %99 = math.exp %98 : vector<8x8x8xf32>
    %cst_45 = arith.constant 1.000000e+00 : f32
    %100 = vector.broadcast %cst_45 : f32 to vector<8x8x8xf32>
    %101 = arith.addf %100, %99 : vector<8x8x8xf32>
    %102 = tpu.reciprocal %101 {approx = true} : vector<8x8x8xf32> -> vector<8x8x8xf32>
    %103 = arith.mulf %96, %102 : vector<8x8x8xf32>
    %104 = arith.truncf %103 : vector<8x8x8xf32> to vector<8x8x8xbf16>
    %c0_46 = arith.constant 0 : index
    %c0_47 = arith.constant 0 : index
    %c0_48 = arith.constant 0 : index
    %c0_49 = arith.constant 0 : index
    %105 = vector.load %arg5[%c0_46, %c0_47, %c0_48, %c0_49] : memref<1x8x8x8xbf16, #tpu.memory_space<vmem>>, vector<1x8x8x8xbf16>
    %106 = vector.shape_cast %105 : vector<1x8x8x8xbf16> to vector<8x8x8xbf16>
    %107 = vector.shape_cast %104 : vector<8x8x8xbf16> to vector<1x8x8x8xbf16>
    tpu.vector_store %arg5[%c0_46, %c0_47, %c0_48, %c0_49], %107 {strides = array<i32>} : memref<1x8x8x8xbf16, #tpu.memory_space<vmem>>, vector<1x8x8x8xbf16>,
    return
  }
  func.func @transform_0(%arg0: i32, %arg1: i32) -> (i32, i32, i32, i32) {
    %c0_i32 = arith.constant 0 : i32
    %c0_i32_0 = arith.constant 0 : i32
    %c0_i32_1 = arith.constant 0 : i32
    %c0_i32_2 = arith.constant 0 : i32
    return %arg0, %c0_i32, %c0_i32_0, %c0_i32_1 : i32, i32, i32, i32
  }
  func.func @transform_1(%arg0: i32, %arg1: i32) -> (i32, i32) {
    %c0_i32 = arith.constant 0 : i32
    %c0_i32_0 = arith.constant 0 : i32
    %c0_i32_1 = arith.constant 0 : i32
    return %c0_i32, %c0_i32_0 : i32, i32
  }
  func.func @transform_2(%arg0: i32, %arg1: i32) -> (i32, i32) {
    %c0_i32 = arith.constant 0 : i32
    %c0_i32_0 = arith.constant 0 : i32
    %c0_i32_1 = arith.constant 0 : i32
    return %c0_i32, %c0_i32_0 : i32, i32
  }
  func.func @transform_3(%arg0: i32, %arg1: i32) -> (i32, i32, i32, i32) {
    %c0_i32 = arith.constant 0 : i32
    %c0_i32_0 = arith.constant 0 : i32
    %c0_i32_1 = arith.constant 0 : i32
    return %arg0, %arg1, %c0_i32, %c0_i32_0 : i32, i32, i32, i32
  }
}

module attributes {stable_mosaic.version = 11 : i64} {
  func.func @_gap_kernel(%arg0: i32, %arg1: i32, %arg2: memref<1x64x8xbf16, #tpu.memory_space<vmem>>, %arg3: memref<1x1x8xf32, #tpu.memory_space<vmem>>, %arg4: memref<1x8xf32, #tpu.memory_space<vmem>>) attributes {dimension_semantics = [#tpu.dimension_semantics<parallel>, #tpu.dimension_semantics<arbitrary>], iteration_bounds = array<i64: 2, 1>, scalar_prefetch = 0 : i64, scratch_operands = 1 : i64, tpu.core_type = #tpu.core_type<tc>, window_params = [{transform_indices = @transform_0, window_bounds = array<i64: 1, 64, 8>}, {transform_indices = @transform_1, window_bounds = array<i64: 1, 1, 8>}]} {
    %c0_i32 = arith.constant 0 : i32
    %0 = arith.cmpi eq, %arg1, %c0_i32 : i32
    %1 = arith.extui %0 : i1 to i32
    %c0_i32_0 = arith.constant 0 : i32
    %2 = arith.cmpi ne, %1, %c0_i32_0 : i32
    scf.if %2 {
      %cst_9 = arith.constant 0.000000e+00 : f32
      %14 = vector.broadcast %cst_9 : f32 to vector<1x8xf32>
      %c0_10 = arith.constant 0 : index
      %c0_11 = arith.constant 0 : index
      %15 = vector.load %arg4[%c0_10, %c0_11] : memref<1x8xf32, #tpu.memory_space<vmem>>, vector<1x8xf32>
      tpu.vector_store %arg4[%c0_10, %c0_11], %14 {strides = array<i32>} : memref<1x8xf32, #tpu.memory_space<vmem>>, vector<1x8xf32>,
    } else {
    }
    %c0 = arith.constant 0 : index
    %c0_1 = arith.constant 0 : index
    %3 = vector.load %arg4[%c0, %c0_1] : memref<1x8xf32, #tpu.memory_space<vmem>>, vector<1x8xf32>
    %c0_2 = arith.constant 0 : index
    %c0_3 = arith.constant 0 : index
    %c0_4 = arith.constant 0 : index
    %4 = vector.load %arg2[%c0_2, %c0_3, %c0_4] : memref<1x64x8xbf16, #tpu.memory_space<vmem>>, vector<1x64x8xbf16>
    %5 = vector.shape_cast %4 : vector<1x64x8xbf16> to vector<64x8xbf16>
    %6 = arith.extf %5 : vector<64x8xbf16> to vector<64x8xf32>
    %cst = arith.constant dense<0.000000e+00> : vector<8xf32>
    %7 = vector.multi_reduction <add>, %6, %cst [0] : vector<64x8xf32> to vector<8xf32>
    %8 = vector.shape_cast %7 : vector<8xf32> to vector<1x8xf32>
    %9 = arith.addf %3, %8 : vector<1x8xf32>
    %c0_5 = arith.constant 0 : index
    %c0_6 = arith.constant 0 : index
    %10 = vector.load %arg4[%c0_5, %c0_6] : memref<1x8xf32, #tpu.memory_space<vmem>>, vector<1x8xf32>
    tpu.vector_store %arg4[%c0_5, %c0_6], %9 {strides = array<i32>} : memref<1x8xf32, #tpu.memory_space<vmem>>, vector<1x8xf32>,
    %c0_i32_7 = arith.constant 0 : i32
    %11 = arith.cmpi eq, %arg1, %c0_i32_7 : i32
    %12 = arith.extui %11 : i1 to i32
    %c0_i32_8 = arith.constant 0 : i32
    %13 = arith.cmpi ne, %12, %c0_i32_8 : i32
    scf.if %13 {
      %c0_9 = arith.constant 0 : index
      %c0_10 = arith.constant 0 : index
      %14 = vector.load %arg4[%c0_9, %c0_10] : memref<1x8xf32, #tpu.memory_space<vmem>>, vector<1x8xf32>
      %cst_11 = arith.constant 1.562500e-02 : f32
      %15 = vector.broadcast %cst_11 : f32 to vector<1x8xf32>
      %16 = arith.mulf %14, %15 : vector<1x8xf32>
      %c0_12 = arith.constant 0 : index
      %c0_13 = arith.constant 0 : index
      %c0_14 = arith.constant 0 : index
      %17 = vector.load %arg3[%c0_12, %c0_13, %c0_14] : memref<1x1x8xf32, #tpu.memory_space<vmem>>, vector<1x1x8xf32>
      %18 = vector.shape_cast %17 : vector<1x1x8xf32> to vector<1x8xf32>
      %19 = vector.shape_cast %16 : vector<1x8xf32> to vector<1x1x8xf32>
      tpu.vector_store %arg3[%c0_12, %c0_13, %c0_14], %19 {strides = array<i32>} : memref<1x1x8xf32, #tpu.memory_space<vmem>>, vector<1x1x8xf32>,
    } else {
    }
    return
  }
  func.func @transform_0(%arg0: i32, %arg1: i32) -> (i32, i32, i32) {
    %c0_i32 = arith.constant 0 : i32
    %c0_i32_0 = arith.constant 0 : i32
    return %arg0, %arg1, %c0_i32 : i32, i32, i32
  }
  func.func @transform_1(%arg0: i32, %arg1: i32) -> (i32, i32, i32) {
    %c0_i32 = arith.constant 0 : i32
    %c0_i32_0 = arith.constant 0 : i32
    %c0_i32_1 = arith.constant 0 : i32
    return %arg0, %c0_i32, %c0_i32_0 : i32, i32, i32
  }
}

module attributes {stable_mosaic.version = 11 : i64} {
  func.func @_se_nf_kernel(%arg0: i32, %arg1: memref<8x128xf32, #tpu.memory_space<vmem>>, %arg2: memref<128x128xf32, #tpu.memory_space<vmem>>, %arg3: memref<1x128xf32, #tpu.memory_space<vmem>>, %arg4: memref<128x128xf32, #tpu.memory_space<vmem>>, %arg5: memref<1x128xf32, #tpu.memory_space<vmem>>, %arg6: memref<128x128xbf16, #tpu.memory_space<vmem>>, %arg7: memref<1x128xf32, #tpu.memory_space<vmem>>, %arg8: memref<8x128xf32, #tpu.memory_space<vmem>>, %arg9: memref<8x128xf32, #tpu.memory_space<vmem>>) attributes {dimension_semantics = [#tpu.dimension_semantics<arbitrary>], iteration_bounds = array<i64: 1>, scalar_prefetch = 0 : i64, scratch_operands = 0 : i64, tpu.core_type = #tpu.core_type<tc>, window_params = [{pipeline_mode = #tpu.pipeline_mode<synchronous>, transform_indices = @transform_0, window_bounds = array<i64: 8, 128>}, {pipeline_mode = #tpu.pipeline_mode<synchronous>, transform_indices = @transform_1, window_bounds = array<i64: 128, 128>}, {pipeline_mode = #tpu.pipeline_mode<synchronous>, transform_indices = @transform_2, window_bounds = array<i64: 1, 128>}, {pipeline_mode = #tpu.pipeline_mode<synchronous>, transform_indices = @transform_3, window_bounds = array<i64: 128, 128>}, {pipeline_mode = #tpu.pipeline_mode<synchronous>, transform_indices = @transform_4, window_bounds = array<i64: 1, 128>}, {pipeline_mode = #tpu.pipeline_mode<synchronous>, transform_indices = @transform_5, window_bounds = array<i64: 128, 128>}, {pipeline_mode = #tpu.pipeline_mode<synchronous>, transform_indices = @transform_6, window_bounds = array<i64: 1, 128>}, {pipeline_mode = #tpu.pipeline_mode<synchronous>, transform_indices = @transform_7, window_bounds = array<i64: 8, 128>}, {pipeline_mode = #tpu.pipeline_mode<synchronous>, transform_indices = @transform_8, window_bounds = array<i64: 8, 128>}]} {
    %c0 = arith.constant 0 : index
    %c0_0 = arith.constant 0 : index
    %0 = vector.load %arg1[%c0, %c0_0] : memref<8x128xf32, #tpu.memory_space<vmem>>, vector<8x128xf32>
    %c0_1 = arith.constant 0 : index
    %c0_2 = arith.constant 0 : index
    %1 = vector.load %arg2[%c0_1, %c0_2] : memref<128x128xf32, #tpu.memory_space<vmem>>, vector<128x128xf32>
    %cst = arith.constant dense<0.000000e+00> : vector<8x128xf32>
    %2 = tpu.matmul %0, %1, %cst {dimension_numbers = #tpu.dot_dimension_numbers<[1], [0], [0], [1], [0, 0, 1, 1], [], []>} : vector<8x128xf32>, vector<128x128xf32>, vector<8x128xf32> -> vector<8x128xf32>
    %c0_3 = arith.constant 0 : index
    %c0_4 = arith.constant 0 : index
    %3 = vector.load %arg3[%c0_3, %c0_4] : memref<1x128xf32, #tpu.memory_space<vmem>>, vector<1x128xf32>
    %4 = vector.broadcast %3 : vector<1x128xf32> to vector<8x128xf32>
    %5 = arith.addf %2, %4 : vector<8x128xf32>
    %cst_5 = arith.constant 0.000000e+00 : f32
    %6 = vector.broadcast %cst_5 : f32 to vector<8x128xf32>
    %7 = arith.subf %6, %5 : vector<8x128xf32>
    %8 = math.exp %7 : vector<8x128xf32>
    %cst_6 = arith.constant 1.000000e+00 : f32
    %9 = vector.broadcast %cst_6 : f32 to vector<8x128xf32>
    %10 = arith.addf %9, %8 : vector<8x128xf32>
    %cst_7 = arith.constant 1.000000e+00 : f32
    %11 = vector.broadcast %cst_7 : f32 to vector<8x128xf32>
    %12 = arith.divf %11, %10 : vector<8x128xf32>
    %13 = arith.mulf %5, %12 : vector<8x128xf32>
    %c0_8 = arith.constant 0 : index
    %c0_9 = arith.constant 0 : index
    %14 = vector.load %arg4[%c0_8, %c0_9] : memref<128x128xf32, #tpu.memory_space<vmem>>, vector<128x128xf32>
    %cst_10 = arith.constant dense<0.000000e+00> : vector<8x128xf32>
    %15 = tpu.matmul %13, %14, %cst_10 {dimension_numbers = #tpu.dot_dimension_numbers<[1], [0], [0], [1], [0, 0, 1, 1], [], []>} : vector<8x128xf32>, vector<128x128xf32>, vector<8x128xf32> -> vector<8x128xf32>
    %c0_11 = arith.constant 0 : index
    %c0_12 = arith.constant 0 : index
    %16 = vector.load %arg5[%c0_11, %c0_12] : memref<1x128xf32, #tpu.memory_space<vmem>>, vector<1x128xf32>
    %17 = vector.broadcast %16 : vector<1x128xf32> to vector<8x128xf32>
    %18 = arith.addf %15, %17 : vector<8x128xf32>
    %cst_13 = arith.constant 0.000000e+00 : f32
    %19 = vector.broadcast %cst_13 : f32 to vector<8x128xf32>
    %20 = arith.subf %19, %18 : vector<8x128xf32>
    %21 = math.exp %20 : vector<8x128xf32>
    %cst_14 = arith.constant 1.000000e+00 : f32
    %22 = vector.broadcast %cst_14 : f32 to vector<8x128xf32>
    %23 = arith.addf %22, %21 : vector<8x128xf32>
    %cst_15 = arith.constant 1.000000e+00 : f32
    %24 = vector.broadcast %cst_15 : f32 to vector<8x128xf32>
    %25 = arith.divf %24, %23 : vector<8x128xf32>
    %c0_16 = arith.constant 0 : index
    %c0_17 = arith.constant 0 : index
    %26 = vector.load %arg8[%c0_16, %c0_17] : memref<8x128xf32, #tpu.memory_space<vmem>>, vector<8x128xf32>
    tpu.vector_store %arg8[%c0_16, %c0_17], %25 {strides = array<i32>} : memref<8x128xf32, #tpu.memory_space<vmem>>, vector<8x128xf32>,
    %27 = arith.mulf %0, %25 : vector<8x128xf32>
    %28 = arith.truncf %27 : vector<8x128xf32> to vector<8x128xbf16>
    %c0_18 = arith.constant 0 : index
    %c0_19 = arith.constant 0 : index
    %29 = vector.load %arg6[%c0_18, %c0_19] : memref<128x128xbf16, #tpu.memory_space<vmem>>, vector<128x128xbf16>
    %cst_20 = arith.constant dense<0.000000e+00> : vector<8x128xf32>
    %30 = tpu.matmul %28, %29, %cst_20 {dimension_numbers = #tpu.dot_dimension_numbers<[1], [0], [0], [1], [0, 0, 1, 1], [], []>} : vector<8x128xbf16>, vector<128x128xbf16>, vector<8x128xf32> -> vector<8x128xf32>
    %c0_21 = arith.constant 0 : index
    %c0_22 = arith.constant 0 : index
    %31 = vector.load %arg7[%c0_21, %c0_22] : memref<1x128xf32, #tpu.memory_space<vmem>>, vector<1x128xf32>
    %32 = vector.broadcast %31 : vector<1x128xf32> to vector<8x128xf32>
    %33 = arith.addf %30, %32 : vector<8x128xf32>
    %c0_23 = arith.constant 0 : index
    %c0_24 = arith.constant 0 : index
    %34 = vector.load %arg9[%c0_23, %c0_24] : memref<8x128xf32, #tpu.memory_space<vmem>>, vector<8x128xf32>
    tpu.vector_store %arg9[%c0_23, %c0_24], %33 {strides = array<i32>} : memref<8x128xf32, #tpu.memory_space<vmem>>, vector<8x128xf32>,
    return
  }
  func.func @transform_0(%arg0: i32) -> (i32, i32) {
    %c0_i32 = arith.constant 0 : i32
    %c0_i32_0 = arith.constant 0 : i32
    %c0_i32_1 = arith.constant 0 : i32
    return %c0_i32, %c0_i32_0 : i32, i32
  }
  func.func @transform_1(%arg0: i32) -> (i32, i32) {
    %c0_i32 = arith.constant 0 : i32
    %c0_i32_0 = arith.constant 0 : i32
    %c0_i32_1 = arith.constant 0 : i32
    return %c0_i32, %c0_i32_0 : i32, i32
  }
  func.func @transform_2(%arg0: i32) -> (i32, i32) {
    %c0_i32 = arith.constant 0 : i32
    %c0_i32_0 = arith.constant 0 : i32
    %c0_i32_1 = arith.constant 0 : i32
    return %c0_i32, %c0_i32_0 : i32, i32
  }
  func.func @transform_3(%arg0: i32) -> (i32, i32) {
    %c0_i32 = arith.constant 0 : i32
    %c0_i32_0 = arith.constant 0 : i32
    %c0_i32_1 = arith.constant 0 : i32
    return %c0_i32, %c0_i32_0 : i32, i32
  }
  func.func @transform_4(%arg0: i32) -> (i32, i32) {
    %c0_i32 = arith.constant 0 : i32
    %c0_i32_0 = arith.constant 0 : i32
    %c0_i32_1 = arith.constant 0 : i32
    return %c0_i32, %c0_i32_0 : i32, i32
  }
  func.func @transform_5(%arg0: i32) -> (i32, i32) {
    %c0_i32 = arith.constant 0 : i32
    %c0_i32_0 = arith.constant 0 : i32
    %c0_i32_1 = arith.constant 0 : i32
    return %c0_i32, %c0_i32_0 : i32, i32
  }
  func.func @transform_6(%arg0: i32) -> (i32, i32) {
    %c0_i32 = arith.constant 0 : i32
    %c0_i32_0 = arith.constant 0 : i32
    %c0_i32_1 = arith.constant 0 : i32
    return %c0_i32, %c0_i32_0 : i32, i32
  }
  func.func @transform_7(%arg0: i32) -> (i32, i32) {
    %c0_i32 = arith.constant 0 : i32
    %c0_i32_0 = arith.constant 0 : i32
    %c0_i32_1 = arith.constant 0 : i32
    return %c0_i32, %c0_i32_0 : i32, i32
  }
  func.func @transform_8(%arg0: i32) -> (i32, i32) {
    %c0_i32 = arith.constant 0 : i32
    %c0_i32_0 = arith.constant 0 : i32
    %c0_i32_1 = arith.constant 0 : i32
    return %c0_i32, %c0_i32_0 : i32, i32
  }
}

module attributes {stable_mosaic.version = 11 : i64} {
  func.func @_smm_kernel(%arg0: i32, %arg1: i32, %arg2: i32, %arg3: memref<1x1x8xf32, #tpu.memory_space<vmem>>, %arg4: memref<1x64x8xbf16, #tpu.memory_space<vmem>>, %arg5: memref<8x128xbf16, #tpu.memory_space<vmem>>, %arg6: memref<1x128xf32, #tpu.memory_space<vmem>>, %arg7: memref<1x64x128xbf16, #tpu.memory_space<vmem>>) attributes {dimension_semantics = [#tpu.dimension_semantics<parallel>, #tpu.dimension_semantics<parallel>, #tpu.dimension_semantics<parallel>], iteration_bounds = array<i64: 2, 1, 1>, scalar_prefetch = 0 : i64, scratch_operands = 0 : i64, tpu.core_type = #tpu.core_type<tc>, window_params = [{transform_indices = @transform_0, window_bounds = array<i64: 1, 1, 8>}, {transform_indices = @transform_1, window_bounds = array<i64: 1, 64, 8>}, {transform_indices = @transform_2, window_bounds = array<i64: 8, 128>}, {transform_indices = @transform_3, window_bounds = array<i64: 1, 128>}, {transform_indices = @transform_4, window_bounds = array<i64: 1, 64, 128>}]} {
    %c0 = arith.constant 0 : index
    %c0_0 = arith.constant 0 : index
    %c0_1 = arith.constant 0 : index
    %0 = vector.load %arg4[%c0, %c0_0, %c0_1] : memref<1x64x8xbf16, #tpu.memory_space<vmem>>, vector<1x64x8xbf16>
    %1 = vector.shape_cast %0 : vector<1x64x8xbf16> to vector<64x8xbf16>
    %2 = arith.extf %1 : vector<64x8xbf16> to vector<64x8xf32>
    %c0_2 = arith.constant 0 : index
    %c0_3 = arith.constant 0 : index
    %c0_4 = arith.constant 0 : index
    %3 = vector.load %arg3[%c0_2, %c0_3, %c0_4] : memref<1x1x8xf32, #tpu.memory_space<vmem>>, vector<1x1x8xf32>
    %4 = vector.shape_cast %3 : vector<1x1x8xf32> to vector<1x8xf32>
    %5 = vector.broadcast %4 : vector<1x8xf32> to vector<64x8xf32>
    %6 = arith.mulf %2, %5 : vector<64x8xf32>
    %7 = arith.truncf %6 : vector<64x8xf32> to vector<64x8xbf16>
    %c0_5 = arith.constant 0 : index
    %c0_6 = arith.constant 0 : index
    %8 = vector.load %arg5[%c0_5, %c0_6] : memref<8x128xbf16, #tpu.memory_space<vmem>>, vector<8x128xbf16>
    %cst = arith.constant dense<0.000000e+00> : vector<64x128xf32>
    %9 = tpu.matmul %7, %8, %cst {dimension_numbers = #tpu.dot_dimension_numbers<[1], [0], [0], [1], [0, 0, 1, 1], [], []>} : vector<64x8xbf16>, vector<8x128xbf16>, vector<64x128xf32> -> vector<64x128xf32>
    %c0_7 = arith.constant 0 : index
    %c0_8 = arith.constant 0 : index
    %10 = vector.load %arg6[%c0_7, %c0_8] : memref<1x128xf32, #tpu.memory_space<vmem>>, vector<1x128xf32>
    %11 = vector.broadcast %10 : vector<1x128xf32> to vector<64x128xf32>
    %12 = arith.addf %9, %11 : vector<64x128xf32>
    %13 = arith.truncf %12 : vector<64x128xf32> to vector<64x128xbf16>
    %c0_9 = arith.constant 0 : index
    %c0_10 = arith.constant 0 : index
    %c0_11 = arith.constant 0 : index
    %14 = vector.load %arg7[%c0_9, %c0_10, %c0_11] : memref<1x64x128xbf16, #tpu.memory_space<vmem>>, vector<1x64x128xbf16>
    %15 = vector.shape_cast %14 : vector<1x64x128xbf16> to vector<64x128xbf16>
    %16 = vector.shape_cast %13 : vector<64x128xbf16> to vector<1x64x128xbf16>
    tpu.vector_store %arg7[%c0_9, %c0_10, %c0_11], %16 {strides = array<i32>} : memref<1x64x128xbf16, #tpu.memory_space<vmem>>, vector<1x64x128xbf16>,
    return
  }
  func.func @transform_0(%arg0: i32, %arg1: i32, %arg2: i32) -> (i32, i32, i32) {
    %c0_i32 = arith.constant 0 : i32
    %c0_i32_0 = arith.constant 0 : i32
    %c0_i32_1 = arith.constant 0 : i32
    return %arg0, %c0_i32, %c0_i32_0 : i32, i32, i32
  }
  func.func @transform_1(%arg0: i32, %arg1: i32, %arg2: i32) -> (i32, i32, i32) {
    %c0_i32 = arith.constant 0 : i32
    %c0_i32_0 = arith.constant 0 : i32
    return %arg0, %arg1, %c0_i32 : i32, i32, i32
  }
  func.func @transform_2(%arg0: i32, %arg1: i32, %arg2: i32) -> (i32, i32) {
    %c0_i32 = arith.constant 0 : i32
    %c0_i32_0 = arith.constant 0 : i32
    return %c0_i32, %arg2 : i32, i32
  }
  func.func @transform_3(%arg0: i32, %arg1: i32, %arg2: i32) -> (i32, i32) {
    %c0_i32 = arith.constant 0 : i32
    %c0_i32_0 = arith.constant 0 : i32
    return %c0_i32, %arg2 : i32, i32
  }
  func.func @transform_4(%arg0: i32, %arg1: i32, %arg2: i32) -> (i32, i32, i32) {
    %c0_i32 = arith.constant 0 : i32
    return %arg0, %arg1, %arg2 : i32, i32, i32
  }
}

module attributes {stable_mosaic.version = 11 : i64} {
  func.func @_concat_nf_kernel(%arg0: i32, %arg1: i32, %arg2: memref<1x64x8xbf16, #tpu.memory_space<vmem>>, %arg3: memref<1x1x8xf32, #tpu.memory_space<vmem>>, %arg4: memref<1x64x16xbf16, #tpu.memory_space<vmem>>) attributes {dimension_semantics = [#tpu.dimension_semantics<parallel>, #tpu.dimension_semantics<parallel>], iteration_bounds = array<i64: 2, 1>, scalar_prefetch = 0 : i64, scratch_operands = 0 : i64, tpu.core_type = #tpu.core_type<tc>, window_params = [{transform_indices = @transform_0, window_bounds = array<i64: 1, 64, 8>}, {transform_indices = @transform_1, window_bounds = array<i64: 1, 1, 8>}, {transform_indices = @transform_2, window_bounds = array<i64: 1, 64, 16>}]} {
    %c0 = arith.constant 0 : index
    %c0_0 = arith.constant 0 : index
    %c0_1 = arith.constant 0 : index
    %0 = vector.load %arg2[%c0, %c0_0, %c0_1] : memref<1x64x8xbf16, #tpu.memory_space<vmem>>, vector<1x64x8xbf16>
    %1 = vector.shape_cast %0 : vector<1x64x8xbf16> to vector<64x8xbf16>
    %2 = arith.extf %1 : vector<64x8xbf16> to vector<64x8xf32>
    %c0_2 = arith.constant 0 : index
    %c0_3 = arith.constant 0 : index
    %c0_4 = arith.constant 0 : index
    %3 = vector.load %arg3[%c0_2, %c0_3, %c0_4] : memref<1x1x8xf32, #tpu.memory_space<vmem>>, vector<1x1x8xf32>
    %4 = vector.shape_cast %3 : vector<1x1x8xf32> to vector<1x8xf32>
    %5 = vector.broadcast %4 : vector<1x8xf32> to vector<64x8xf32>
    %6 = arith.mulf %2, %5 : vector<64x8xf32>
    %7 = tpu.concatenate %2, %6 in 1 : vector<64x8xf32>, vector<64x8xf32> -> vector<64x16xf32>
    %8 = arith.truncf %7 : vector<64x16xf32> to vector<64x16xbf16>
    %c0_5 = arith.constant 0 : index
    %c0_6 = arith.constant 0 : index
    %c0_7 = arith.constant 0 : index
    %9 = vector.load %arg4[%c0_5, %c0_6, %c0_7] : memref<1x64x16xbf16, #tpu.memory_space<vmem>>, vector<1x64x16xbf16>
    %10 = vector.shape_cast %9 : vector<1x64x16xbf16> to vector<64x16xbf16>
    %11 = vector.shape_cast %8 : vector<64x16xbf16> to vector<1x64x16xbf16>
    tpu.vector_store %arg4[%c0_5, %c0_6, %c0_7], %11 {strides = array<i32>} : memref<1x64x16xbf16, #tpu.memory_space<vmem>>, vector<1x64x16xbf16>,
    return
  }
  func.func @transform_0(%arg0: i32, %arg1: i32) -> (i32, i32, i32) {
    %c0_i32 = arith.constant 0 : i32
    %c0_i32_0 = arith.constant 0 : i32
    return %arg0, %arg1, %c0_i32 : i32, i32, i32
  }
  func.func @transform_1(%arg0: i32, %arg1: i32) -> (i32, i32, i32) {
    %c0_i32 = arith.constant 0 : i32
    %c0_i32_0 = arith.constant 0 : i32
    %c0_i32_1 = arith.constant 0 : i32
    return %arg0, %c0_i32, %c0_i32_0 : i32, i32, i32
  }
  func.func @transform_2(%arg0: i32, %arg1: i32) -> (i32, i32, i32) {
    %c0_i32 = arith.constant 0 : i32
    %c0_i32_0 = arith.constant 0 : i32
    return %arg0, %arg1, %c0_i32 : i32, i32, i32
  }
}

module attributes {stable_mosaic.version = 11 : i64} {
  func.func @_mm_kernel(%arg0: i32, %arg1: i32, %arg2: memref<128x16xbf16, #tpu.memory_space<vmem>>, %arg3: memref<16x128xbf16, #tpu.memory_space<vmem>>, %arg4: memref<1x128xf32, #tpu.memory_space<vmem>>, %arg5: memref<128x128xbf16, #tpu.memory_space<vmem>>) attributes {dimension_semantics = [#tpu.dimension_semantics<parallel>, #tpu.dimension_semantics<parallel>], iteration_bounds = array<i64: 1, 1>, scalar_prefetch = 0 : i64, scratch_operands = 0 : i64, tpu.core_type = #tpu.core_type<tc>, window_params = [{transform_indices = @transform_0, window_bounds = array<i64: 128, 16>}, {transform_indices = @transform_1, window_bounds = array<i64: 16, 128>}, {transform_indices = @transform_2, window_bounds = array<i64: 1, 128>}, {transform_indices = @transform_3, window_bounds = array<i64: 128, 128>}]} {
    %c0 = arith.constant 0 : index
    %c0_0 = arith.constant 0 : index
    %0 = vector.load %arg2[%c0, %c0_0] : memref<128x16xbf16, #tpu.memory_space<vmem>>, vector<128x16xbf16>
    %c0_1 = arith.constant 0 : index
    %c0_2 = arith.constant 0 : index
    %1 = vector.load %arg3[%c0_1, %c0_2] : memref<16x128xbf16, #tpu.memory_space<vmem>>, vector<16x128xbf16>
    %cst = arith.constant dense<0.000000e+00> : vector<128x128xf32>
    %2 = tpu.matmul %0, %1, %cst {dimension_numbers = #tpu.dot_dimension_numbers<[1], [0], [0], [1], [0, 0, 1, 1], [], []>} : vector<128x16xbf16>, vector<16x128xbf16>, vector<128x128xf32> -> vector<128x128xf32>
    %c0_3 = arith.constant 0 : index
    %c0_4 = arith.constant 0 : index
    %3 = vector.load %arg4[%c0_3, %c0_4] : memref<1x128xf32, #tpu.memory_space<vmem>>, vector<1x128xf32>
    %4 = vector.broadcast %3 : vector<1x128xf32> to vector<128x128xf32>
    %5 = arith.addf %2, %4 : vector<128x128xf32>
    %cst_5 = arith.constant 0.000000e+00 : f32
    %6 = vector.broadcast %cst_5 : f32 to vector<128x128xf32>
    %7 = arith.subf %6, %5 : vector<128x128xf32>
    %8 = math.exp %7 : vector<128x128xf32>
    %cst_6 = arith.constant 1.000000e+00 : f32
    %9 = vector.broadcast %cst_6 : f32 to vector<128x128xf32>
    %10 = arith.addf %9, %8 : vector<128x128xf32>
    %11 = tpu.reciprocal %10 {approx = true} : vector<128x128xf32> -> vector<128x128xf32>
    %12 = arith.mulf %5, %11 : vector<128x128xf32>
    %13 = arith.truncf %12 : vector<128x128xf32> to vector<128x128xbf16>
    %c0_7 = arith.constant 0 : index
    %c0_8 = arith.constant 0 : index
    %14 = vector.load %arg5[%c0_7, %c0_8] : memref<128x128xbf16, #tpu.memory_space<vmem>>, vector<128x128xbf16>
    tpu.vector_store %arg5[%c0_7, %c0_8], %13 {strides = array<i32>} : memref<128x128xbf16, #tpu.memory_space<vmem>>, vector<128x128xbf16>,
    return
  }
  func.func @transform_0(%arg0: i32, %arg1: i32) -> (i32, i32) {
    %c0_i32 = arith.constant 0 : i32
    %c0_i32_0 = arith.constant 0 : i32
    return %arg0, %c0_i32 : i32, i32
  }
  func.func @transform_1(%arg0: i32, %arg1: i32) -> (i32, i32) {
    %c0_i32 = arith.constant 0 : i32
    %c0_i32_0 = arith.constant 0 : i32
    return %c0_i32, %arg1 : i32, i32
  }
  func.func @transform_2(%arg0: i32, %arg1: i32) -> (i32, i32) {
    %c0_i32 = arith.constant 0 : i32
    %c0_i32_0 = arith.constant 0 : i32
    return %c0_i32, %arg1 : i32, i32
  }
  func.func @transform_3(%arg0: i32, %arg1: i32) -> (i32, i32) {
    %c0_i32 = arith.constant 0 : i32
    return %arg0, %arg1 : i32, i32
  }
}

module attributes {stable_mosaic.version = 11 : i64} {
  func.func @_gap_kernel(%arg0: i32, %arg1: i32, %arg2: memref<1x16x64xbf16, #tpu.memory_space<vmem>>, %arg3: memref<1x1x64xf32, #tpu.memory_space<vmem>>, %arg4: memref<1x64xf32, #tpu.memory_space<vmem>>) attributes {dimension_semantics = [#tpu.dimension_semantics<parallel>, #tpu.dimension_semantics<arbitrary>], iteration_bounds = array<i64: 2, 1>, scalar_prefetch = 0 : i64, scratch_operands = 1 : i64, tpu.core_type = #tpu.core_type<tc>, window_params = [{transform_indices = @transform_0, window_bounds = array<i64: 1, 16, 64>}, {transform_indices = @transform_1, window_bounds = array<i64: 1, 1, 64>}]} {
    %c0_i32 = arith.constant 0 : i32
    %0 = arith.cmpi eq, %arg1, %c0_i32 : i32
    %1 = arith.extui %0 : i1 to i32
    %c0_i32_0 = arith.constant 0 : i32
    %2 = arith.cmpi ne, %1, %c0_i32_0 : i32
    scf.if %2 {
      %cst_9 = arith.constant 0.000000e+00 : f32
      %14 = vector.broadcast %cst_9 : f32 to vector<1x64xf32>
      %c0_10 = arith.constant 0 : index
      %c0_11 = arith.constant 0 : index
      %15 = vector.load %arg4[%c0_10, %c0_11] : memref<1x64xf32, #tpu.memory_space<vmem>>, vector<1x64xf32>
      tpu.vector_store %arg4[%c0_10, %c0_11], %14 {strides = array<i32>} : memref<1x64xf32, #tpu.memory_space<vmem>>, vector<1x64xf32>,
    } else {
    }
    %c0 = arith.constant 0 : index
    %c0_1 = arith.constant 0 : index
    %3 = vector.load %arg4[%c0, %c0_1] : memref<1x64xf32, #tpu.memory_space<vmem>>, vector<1x64xf32>
    %c0_2 = arith.constant 0 : index
    %c0_3 = arith.constant 0 : index
    %c0_4 = arith.constant 0 : index
    %4 = vector.load %arg2[%c0_2, %c0_3, %c0_4] : memref<1x16x64xbf16, #tpu.memory_space<vmem>>, vector<1x16x64xbf16>
    %5 = vector.shape_cast %4 : vector<1x16x64xbf16> to vector<16x64xbf16>
    %6 = arith.extf %5 : vector<16x64xbf16> to vector<16x64xf32>
    %cst = arith.constant dense<0.000000e+00> : vector<64xf32>
    %7 = vector.multi_reduction <add>, %6, %cst [0] : vector<16x64xf32> to vector<64xf32>
    %8 = vector.shape_cast %7 : vector<64xf32> to vector<1x64xf32>
    %9 = arith.addf %3, %8 : vector<1x64xf32>
    %c0_5 = arith.constant 0 : index
    %c0_6 = arith.constant 0 : index
    %10 = vector.load %arg4[%c0_5, %c0_6] : memref<1x64xf32, #tpu.memory_space<vmem>>, vector<1x64xf32>
    tpu.vector_store %arg4[%c0_5, %c0_6], %9 {strides = array<i32>} : memref<1x64xf32, #tpu.memory_space<vmem>>, vector<1x64xf32>,
    %c0_i32_7 = arith.constant 0 : i32
    %11 = arith.cmpi eq, %arg1, %c0_i32_7 : i32
    %12 = arith.extui %11 : i1 to i32
    %c0_i32_8 = arith.constant 0 : i32
    %13 = arith.cmpi ne, %12, %c0_i32_8 : i32
    scf.if %13 {
      %c0_9 = arith.constant 0 : index
      %c0_10 = arith.constant 0 : index
      %14 = vector.load %arg4[%c0_9, %c0_10] : memref<1x64xf32, #tpu.memory_space<vmem>>, vector<1x64xf32>
      %cst_11 = arith.constant 6.250000e-02 : f32
      %15 = vector.broadcast %cst_11 : f32 to vector<1x64xf32>
      %16 = arith.mulf %14, %15 : vector<1x64xf32>
      %c0_12 = arith.constant 0 : index
      %c0_13 = arith.constant 0 : index
      %c0_14 = arith.constant 0 : index
      %17 = vector.load %arg3[%c0_12, %c0_13, %c0_14] : memref<1x1x64xf32, #tpu.memory_space<vmem>>, vector<1x1x64xf32>
      %18 = vector.shape_cast %17 : vector<1x1x64xf32> to vector<1x64xf32>
      %19 = vector.shape_cast %16 : vector<1x64xf32> to vector<1x1x64xf32>
      tpu.vector_store %arg3[%c0_12, %c0_13, %c0_14], %19 {strides = array<i32>} : memref<1x1x64xf32, #tpu.memory_space<vmem>>, vector<1x1x64xf32>,
    } else {
    }
    return
  }
  func.func @transform_0(%arg0: i32, %arg1: i32) -> (i32, i32, i32) {
    %c0_i32 = arith.constant 0 : i32
    %c0_i32_0 = arith.constant 0 : i32
    return %arg0, %arg1, %c0_i32 : i32, i32, i32
  }
  func.func @transform_1(%arg0: i32, %arg1: i32) -> (i32, i32, i32) {
    %c0_i32 = arith.constant 0 : i32
    %c0_i32_0 = arith.constant 0 : i32
    %c0_i32_1 = arith.constant 0 : i32
    return %arg0, %c0_i32, %c0_i32_0 : i32, i32, i32
  }
}

module attributes {stable_mosaic.version = 11 : i64} {
  func.func @_dw_patch_kernel(%arg0: i32, %arg1: memref<32x9x64xbf16, #tpu.memory_space<vmem>>, %arg2: memref<9x64xbf16, #tpu.memory_space<vmem>>, %arg3: memref<1x64xf32, #tpu.memory_space<vmem>>, %arg4: memref<32x64xbf16, #tpu.memory_space<vmem>>) attributes {dimension_semantics = [#tpu.dimension_semantics<parallel>], iteration_bounds = array<i64: 1>, scalar_prefetch = 0 : i64, scratch_operands = 0 : i64, tpu.core_type = #tpu.core_type<tc>, window_params = [{transform_indices = @transform_0, window_bounds = array<i64: 32, 9, 64>}, {pipeline_mode = #tpu.pipeline_mode<synchronous>, transform_indices = @transform_1, window_bounds = array<i64: 9, 64>}, {pipeline_mode = #tpu.pipeline_mode<synchronous>, transform_indices = @transform_2, window_bounds = array<i64: 1, 64>}, {transform_indices = @transform_3, window_bounds = array<i64: 32, 64>}]} {
    %cst = arith.constant 0.000000e+00 : f32
    %0 = vector.broadcast %cst : f32 to vector<32x64xf32>
    %c0 = arith.constant 0 : index
    %c0_0 = arith.constant 0 : index
    %c0_1 = arith.constant 0 : index
    %1 = vector.load %arg1[%c0, %c0_0, %c0_1] : memref<32x9x64xbf16, #tpu.memory_space<vmem>>, vector<32x1x64xbf16>
    %2 = vector.shape_cast %1 : vector<32x1x64xbf16> to vector<32x64xbf16>
    %c0_2 = arith.constant 0 : index
    %c0_3 = arith.constant 0 : index
    %3 = vector.load %arg2[%c0_2, %c0_3] : memref<9x64xbf16, #tpu.memory_space<vmem>>, vector<1x64xbf16>
    %4 = vector.broadcast %3 : vector<1x64xbf16> to vector<32x64xbf16>
    %5 = arith.mulf %2, %4 : vector<32x64xbf16>
    %6 = arith.extf %5 : vector<32x64xbf16> to vector<32x64xf32>
    %7 = arith.addf %0, %6 : vector<32x64xf32>
    %c0_4 = arith.constant 0 : index
    %c1 = arith.constant 1 : index
    %c0_5 = arith.constant 0 : index
    %8 = vector.load %arg1[%c0_4, %c1, %c0_5] : memref<32x9x64xbf16, #tpu.memory_space<vmem>>, vector<32x1x64xbf16>
    %9 = vector.shape_cast %8 : vector<32x1x64xbf16> to vector<32x64xbf16>
    %c1_6 = arith.constant 1 : index
    %c0_7 = arith.constant 0 : index
    %10 = vector.load %arg2[%c1_6, %c0_7] : memref<9x64xbf16, #tpu.memory_space<vmem>>, vector<1x64xbf16>
    %11 = vector.broadcast %10 : vector<1x64xbf16> to vector<32x64xbf16>
    %12 = arith.mulf %9, %11 : vector<32x64xbf16>
    %13 = arith.extf %12 : vector<32x64xbf16> to vector<32x64xf32>
    %14 = arith.addf %7, %13 : vector<32x64xf32>
    %c0_8 = arith.constant 0 : index
    %c2 = arith.constant 2 : index
    %c0_9 = arith.constant 0 : index
    %15 = vector.load %arg1[%c0_8, %c2, %c0_9] : memref<32x9x64xbf16, #tpu.memory_space<vmem>>, vector<32x1x64xbf16>
    %16 = vector.shape_cast %15 : vector<32x1x64xbf16> to vector<32x64xbf16>
    %c2_10 = arith.constant 2 : index
    %c0_11 = arith.constant 0 : index
    %17 = vector.load %arg2[%c2_10, %c0_11] : memref<9x64xbf16, #tpu.memory_space<vmem>>, vector<1x64xbf16>
    %18 = vector.broadcast %17 : vector<1x64xbf16> to vector<32x64xbf16>
    %19 = arith.mulf %16, %18 : vector<32x64xbf16>
    %20 = arith.extf %19 : vector<32x64xbf16> to vector<32x64xf32>
    %21 = arith.addf %14, %20 : vector<32x64xf32>
    %c0_12 = arith.constant 0 : index
    %c3 = arith.constant 3 : index
    %c0_13 = arith.constant 0 : index
    %22 = vector.load %arg1[%c0_12, %c3, %c0_13] : memref<32x9x64xbf16, #tpu.memory_space<vmem>>, vector<32x1x64xbf16>
    %23 = vector.shape_cast %22 : vector<32x1x64xbf16> to vector<32x64xbf16>
    %c3_14 = arith.constant 3 : index
    %c0_15 = arith.constant 0 : index
    %24 = vector.load %arg2[%c3_14, %c0_15] : memref<9x64xbf16, #tpu.memory_space<vmem>>, vector<1x64xbf16>
    %25 = vector.broadcast %24 : vector<1x64xbf16> to vector<32x64xbf16>
    %26 = arith.mulf %23, %25 : vector<32x64xbf16>
    %27 = arith.extf %26 : vector<32x64xbf16> to vector<32x64xf32>
    %28 = arith.addf %21, %27 : vector<32x64xf32>
    %c0_16 = arith.constant 0 : index
    %c4 = arith.constant 4 : index
    %c0_17 = arith.constant 0 : index
    %29 = vector.load %arg1[%c0_16, %c4, %c0_17] : memref<32x9x64xbf16, #tpu.memory_space<vmem>>, vector<32x1x64xbf16>
    %30 = vector.shape_cast %29 : vector<32x1x64xbf16> to vector<32x64xbf16>
    %c4_18 = arith.constant 4 : index
    %c0_19 = arith.constant 0 : index
    %31 = vector.load %arg2[%c4_18, %c0_19] : memref<9x64xbf16, #tpu.memory_space<vmem>>, vector<1x64xbf16>
    %32 = vector.broadcast %31 : vector<1x64xbf16> to vector<32x64xbf16>
    %33 = arith.mulf %30, %32 : vector<32x64xbf16>
    %34 = arith.extf %33 : vector<32x64xbf16> to vector<32x64xf32>
    %35 = arith.addf %28, %34 : vector<32x64xf32>
    %c0_20 = arith.constant 0 : index
    %c5 = arith.constant 5 : index
    %c0_21 = arith.constant 0 : index
    %36 = vector.load %arg1[%c0_20, %c5, %c0_21] : memref<32x9x64xbf16, #tpu.memory_space<vmem>>, vector<32x1x64xbf16>
    %37 = vector.shape_cast %36 : vector<32x1x64xbf16> to vector<32x64xbf16>
    %c5_22 = arith.constant 5 : index
    %c0_23 = arith.constant 0 : index
    %38 = vector.load %arg2[%c5_22, %c0_23] : memref<9x64xbf16, #tpu.memory_space<vmem>>, vector<1x64xbf16>
    %39 = vector.broadcast %38 : vector<1x64xbf16> to vector<32x64xbf16>
    %40 = arith.mulf %37, %39 : vector<32x64xbf16>
    %41 = arith.extf %40 : vector<32x64xbf16> to vector<32x64xf32>
    %42 = arith.addf %35, %41 : vector<32x64xf32>
    %c0_24 = arith.constant 0 : index
    %c6 = arith.constant 6 : index
    %c0_25 = arith.constant 0 : index
    %43 = vector.load %arg1[%c0_24, %c6, %c0_25] : memref<32x9x64xbf16, #tpu.memory_space<vmem>>, vector<32x1x64xbf16>
    %44 = vector.shape_cast %43 : vector<32x1x64xbf16> to vector<32x64xbf16>
    %c6_26 = arith.constant 6 : index
    %c0_27 = arith.constant 0 : index
    %45 = vector.load %arg2[%c6_26, %c0_27] : memref<9x64xbf16, #tpu.memory_space<vmem>>, vector<1x64xbf16>
    %46 = vector.broadcast %45 : vector<1x64xbf16> to vector<32x64xbf16>
    %47 = arith.mulf %44, %46 : vector<32x64xbf16>
    %48 = arith.extf %47 : vector<32x64xbf16> to vector<32x64xf32>
    %49 = arith.addf %42, %48 : vector<32x64xf32>
    %c0_28 = arith.constant 0 : index
    %c7 = arith.constant 7 : index
    %c0_29 = arith.constant 0 : index
    %50 = vector.load %arg1[%c0_28, %c7, %c0_29] : memref<32x9x64xbf16, #tpu.memory_space<vmem>>, vector<32x1x64xbf16>
    %51 = vector.shape_cast %50 : vector<32x1x64xbf16> to vector<32x64xbf16>
    %c7_30 = arith.constant 7 : index
    %c0_31 = arith.constant 0 : index
    %52 = vector.load %arg2[%c7_30, %c0_31] : memref<9x64xbf16, #tpu.memory_space<vmem>>, vector<1x64xbf16>
    %53 = vector.broadcast %52 : vector<1x64xbf16> to vector<32x64xbf16>
    %54 = arith.mulf %51, %53 : vector<32x64xbf16>
    %55 = arith.extf %54 : vector<32x64xbf16> to vector<32x64xf32>
    %56 = arith.addf %49, %55 : vector<32x64xf32>
    %c0_32 = arith.constant 0 : index
    %c8 = arith.constant 8 : index
    %c0_33 = arith.constant 0 : index
    %57 = vector.load %arg1[%c0_32, %c8, %c0_33] : memref<32x9x64xbf16, #tpu.memory_space<vmem>>, vector<32x1x64xbf16>
    %58 = vector.shape_cast %57 : vector<32x1x64xbf16> to vector<32x64xbf16>
    %c8_34 = arith.constant 8 : index
    %c0_35 = arith.constant 0 : index
    %59 = vector.load %arg2[%c8_34, %c0_35] : memref<9x64xbf16, #tpu.memory_space<vmem>>, vector<1x64xbf16>
    %60 = vector.broadcast %59 : vector<1x64xbf16> to vector<32x64xbf16>
    %61 = arith.mulf %58, %60 : vector<32x64xbf16>
    %62 = arith.extf %61 : vector<32x64xbf16> to vector<32x64xf32>
    %63 = arith.addf %56, %62 : vector<32x64xf32>
    %c0_36 = arith.constant 0 : index
    %c0_37 = arith.constant 0 : index
    %64 = vector.load %arg3[%c0_36, %c0_37] : memref<1x64xf32, #tpu.memory_space<vmem>>, vector<1x64xf32>
    %65 = vector.broadcast %64 : vector<1x64xf32> to vector<32x64xf32>
    %66 = arith.addf %63, %65 : vector<32x64xf32>
    %cst_38 = arith.constant 0.000000e+00 : f32
    %67 = vector.broadcast %cst_38 : f32 to vector<32x64xf32>
    %68 = arith.subf %67, %66 : vector<32x64xf32>
    %69 = math.exp %68 : vector<32x64xf32>
    %cst_39 = arith.constant 1.000000e+00 : f32
    %70 = vector.broadcast %cst_39 : f32 to vector<32x64xf32>
    %71 = arith.addf %70, %69 : vector<32x64xf32>
    %72 = tpu.reciprocal %71 {approx = true} : vector<32x64xf32> -> vector<32x64xf32>
    %73 = arith.mulf %66, %72 : vector<32x64xf32>
    %74 = arith.truncf %73 : vector<32x64xf32> to vector<32x64xbf16>
    %c0_40 = arith.constant 0 : index
    %c0_41 = arith.constant 0 : index
    %75 = vector.load %arg4[%c0_40, %c0_41] : memref<32x64xbf16, #tpu.memory_space<vmem>>, vector<32x64xbf16>
    tpu.vector_store %arg4[%c0_40, %c0_41], %74 {strides = array<i32>} : memref<32x64xbf16, #tpu.memory_space<vmem>>, vector<32x64xbf16>,
    return
  }
  func.func @transform_0(%arg0: i32) -> (i32, i32, i32) {
    %c0_i32 = arith.constant 0 : i32
    %c0_i32_0 = arith.constant 0 : i32
    %c0_i32_1 = arith.constant 0 : i32
    return %arg0, %c0_i32, %c0_i32_0 : i32, i32, i32
  }
  func.func @transform_1(%arg0: i32) -> (i32, i32) {
    %c0_i32 = arith.constant 0 : i32
    %c0_i32_0 = arith.constant 0 : i32
    %c0_i32_1 = arith.constant 0 : i32
    return %c0_i32, %c0_i32_0 : i32, i32
  }
  func.func @transform_2(%arg0: i32) -> (i32, i32) {
    %c0_i32 = arith.constant 0 : i32
    %c0_i32_0 = arith.constant 0 : i32
    %c0_i32_1 = arith.constant 0 : i32
    return %c0_i32, %c0_i32_0 : i32, i32
  }
  func.func @transform_3(%arg0: i32) -> (i32, i32) {
    %c0_i32 = arith.constant 0 : i32
    %c0_i32_0 = arith.constant 0 : i32
    return %arg0, %c0_i32 : i32, i32
  }
}

module attributes {stable_mosaic.version = 11 : i64} {
  func.func @_smm_kernel(%arg0: i32, %arg1: i32, %arg2: i32, %arg3: memref<1x1x64xf32, #tpu.memory_space<vmem>>, %arg4: memref<1x16x64xbf16, #tpu.memory_space<vmem>>, %arg5: memref<64x128xbf16, #tpu.memory_space<vmem>>, %arg6: memref<1x128xf32, #tpu.memory_space<vmem>>, %arg7: memref<1x16x128xbf16, #tpu.memory_space<vmem>>) attributes {dimension_semantics = [#tpu.dimension_semantics<parallel>, #tpu.dimension_semantics<parallel>, #tpu.dimension_semantics<parallel>], iteration_bounds = array<i64: 2, 1, 1>, scalar_prefetch = 0 : i64, scratch_operands = 0 : i64, tpu.core_type = #tpu.core_type<tc>, window_params = [{transform_indices = @transform_0, window_bounds = array<i64: 1, 1, 64>}, {transform_indices = @transform_1, window_bounds = array<i64: 1, 16, 64>}, {transform_indices = @transform_2, window_bounds = array<i64: 64, 128>}, {transform_indices = @transform_3, window_bounds = array<i64: 1, 128>}, {transform_indices = @transform_4, window_bounds = array<i64: 1, 16, 128>}]} {
    %c0 = arith.constant 0 : index
    %c0_0 = arith.constant 0 : index
    %c0_1 = arith.constant 0 : index
    %0 = vector.load %arg4[%c0, %c0_0, %c0_1] : memref<1x16x64xbf16, #tpu.memory_space<vmem>>, vector<1x16x64xbf16>
    %1 = vector.shape_cast %0 : vector<1x16x64xbf16> to vector<16x64xbf16>
    %2 = arith.extf %1 : vector<16x64xbf16> to vector<16x64xf32>
    %c0_2 = arith.constant 0 : index
    %c0_3 = arith.constant 0 : index
    %c0_4 = arith.constant 0 : index
    %3 = vector.load %arg3[%c0_2, %c0_3, %c0_4] : memref<1x1x64xf32, #tpu.memory_space<vmem>>, vector<1x1x64xf32>
    %4 = vector.shape_cast %3 : vector<1x1x64xf32> to vector<1x64xf32>
    %5 = vector.broadcast %4 : vector<1x64xf32> to vector<16x64xf32>
    %6 = arith.mulf %2, %5 : vector<16x64xf32>
    %7 = arith.truncf %6 : vector<16x64xf32> to vector<16x64xbf16>
    %c0_5 = arith.constant 0 : index
    %c0_6 = arith.constant 0 : index
    %8 = vector.load %arg5[%c0_5, %c0_6] : memref<64x128xbf16, #tpu.memory_space<vmem>>, vector<64x128xbf16>
    %cst = arith.constant dense<0.000000e+00> : vector<16x128xf32>
    %9 = tpu.matmul %7, %8, %cst {dimension_numbers = #tpu.dot_dimension_numbers<[1], [0], [0], [1], [0, 0, 1, 1], [], []>} : vector<16x64xbf16>, vector<64x128xbf16>, vector<16x128xf32> -> vector<16x128xf32>
    %c0_7 = arith.constant 0 : index
    %c0_8 = arith.constant 0 : index
    %10 = vector.load %arg6[%c0_7, %c0_8] : memref<1x128xf32, #tpu.memory_space<vmem>>, vector<1x128xf32>
    %11 = vector.broadcast %10 : vector<1x128xf32> to vector<16x128xf32>
    %12 = arith.addf %9, %11 : vector<16x128xf32>
    %13 = arith.truncf %12 : vector<16x128xf32> to vector<16x128xbf16>
    %c0_9 = arith.constant 0 : index
    %c0_10 = arith.constant 0 : index
    %c0_11 = arith.constant 0 : index
    %14 = vector.load %arg7[%c0_9, %c0_10, %c0_11] : memref<1x16x128xbf16, #tpu.memory_space<vmem>>, vector<1x16x128xbf16>
    %15 = vector.shape_cast %14 : vector<1x16x128xbf16> to vector<16x128xbf16>
    %16 = vector.shape_cast %13 : vector<16x128xbf16> to vector<1x16x128xbf16>
    tpu.vector_store %arg7[%c0_9, %c0_10, %c0_11], %16 {strides = array<i32>} : memref<1x16x128xbf16, #tpu.memory_space<vmem>>, vector<1x16x128xbf16>,
    return
  }
  func.func @transform_0(%arg0: i32, %arg1: i32, %arg2: i32) -> (i32, i32, i32) {
    %c0_i32 = arith.constant 0 : i32
    %c0_i32_0 = arith.constant 0 : i32
    %c0_i32_1 = arith.constant 0 : i32
    return %arg0, %c0_i32, %c0_i32_0 : i32, i32, i32
  }
  func.func @transform_1(%arg0: i32, %arg1: i32, %arg2: i32) -> (i32, i32, i32) {
    %c0_i32 = arith.constant 0 : i32
    %c0_i32_0 = arith.constant 0 : i32
    return %arg0, %arg1, %c0_i32 : i32, i32, i32
  }
  func.func @transform_2(%arg0: i32, %arg1: i32, %arg2: i32) -> (i32, i32) {
    %c0_i32 = arith.constant 0 : i32
    %c0_i32_0 = arith.constant 0 : i32
    return %c0_i32, %arg2 : i32, i32
  }
  func.func @transform_3(%arg0: i32, %arg1: i32, %arg2: i32) -> (i32, i32) {
    %c0_i32 = arith.constant 0 : i32
    %c0_i32_0 = arith.constant 0 : i32
    return %c0_i32, %arg2 : i32, i32
  }
  func.func @transform_4(%arg0: i32, %arg1: i32, %arg2: i32) -> (i32, i32, i32) {
    %c0_i32 = arith.constant 0 : i32
    return %arg0, %arg1, %arg2 : i32, i32, i32
  }
}

module attributes {stable_mosaic.version = 11 : i64} {
  func.func @_concat_nf_kernel(%arg0: i32, %arg1: i32, %arg2: memref<1x16x12xbf16, #tpu.memory_space<vmem>>, %arg3: memref<1x1x12xf32, #tpu.memory_space<vmem>>, %arg4: memref<1x16x24xbf16, #tpu.memory_space<vmem>>) attributes {dimension_semantics = [#tpu.dimension_semantics<parallel>, #tpu.dimension_semantics<parallel>], iteration_bounds = array<i64: 2, 1>, scalar_prefetch = 0 : i64, scratch_operands = 0 : i64, tpu.core_type = #tpu.core_type<tc>, window_params = [{transform_indices = @transform_0, window_bounds = array<i64: 1, 16, 12>}, {transform_indices = @transform_1, window_bounds = array<i64: 1, 1, 12>}, {transform_indices = @transform_2, window_bounds = array<i64: 1, 16, 24>}]} {
    %c0 = arith.constant 0 : index
    %c0_0 = arith.constant 0 : index
    %c0_1 = arith.constant 0 : index
    %0 = vector.load %arg2[%c0, %c0_0, %c0_1] : memref<1x16x12xbf16, #tpu.memory_space<vmem>>, vector<1x16x12xbf16>
    %1 = vector.shape_cast %0 : vector<1x16x12xbf16> to vector<16x12xbf16>
    %2 = arith.extf %1 : vector<16x12xbf16> to vector<16x12xf32>
    %c0_2 = arith.constant 0 : index
    %c0_3 = arith.constant 0 : index
    %c0_4 = arith.constant 0 : index
    %3 = vector.load %arg3[%c0_2, %c0_3, %c0_4] : memref<1x1x12xf32, #tpu.memory_space<vmem>>, vector<1x1x12xf32>
    %4 = vector.shape_cast %3 : vector<1x1x12xf32> to vector<1x12xf32>
    %5 = vector.broadcast %4 : vector<1x12xf32> to vector<16x12xf32>
    %6 = arith.mulf %2, %5 : vector<16x12xf32>
    %7 = tpu.concatenate %2, %6 in 1 : vector<16x12xf32>, vector<16x12xf32> -> vector<16x24xf32>
    %8 = arith.truncf %7 : vector<16x24xf32> to vector<16x24xbf16>
    %c0_5 = arith.constant 0 : index
    %c0_6 = arith.constant 0 : index
    %c0_7 = arith.constant 0 : index
    %9 = vector.load %arg4[%c0_5, %c0_6, %c0_7] : memref<1x16x24xbf16, #tpu.memory_space<vmem>>, vector<1x16x24xbf16>
    %10 = vector.shape_cast %9 : vector<1x16x24xbf16> to vector<16x24xbf16>
    %11 = vector.shape_cast %8 : vector<16x24xbf16> to vector<1x16x24xbf16>
    tpu.vector_store %arg4[%c0_5, %c0_6, %c0_7], %11 {strides = array<i32>} : memref<1x16x24xbf16, #tpu.memory_space<vmem>>, vector<1x16x24xbf16>,
    return
  }
  func.func @transform_0(%arg0: i32, %arg1: i32) -> (i32, i32, i32) {
    %c0_i32 = arith.constant 0 : i32
    %c0_i32_0 = arith.constant 0 : i32
    return %arg0, %arg1, %c0_i32 : i32, i32, i32
  }
  func.func @transform_1(%arg0: i32, %arg1: i32) -> (i32, i32, i32) {
    %c0_i32 = arith.constant 0 : i32
    %c0_i32_0 = arith.constant 0 : i32
    %c0_i32_1 = arith.constant 0 : i32
    return %arg0, %c0_i32, %c0_i32_0 : i32, i32, i32
  }
  func.func @transform_2(%arg0: i32, %arg1: i32) -> (i32, i32, i32) {
    %c0_i32 = arith.constant 0 : i32
    %c0_i32_0 = arith.constant 0 : i32
    return %arg0, %arg1, %c0_i32 : i32, i32, i32
  }
}

module attributes {stable_mosaic.version = 11 : i64} {
  func.func @_mm_kernel(%arg0: i32, %arg1: i32, %arg2: memref<32x24xbf16, #tpu.memory_space<vmem>>, %arg3: memref<24x128xbf16, #tpu.memory_space<vmem>>, %arg4: memref<1x128xf32, #tpu.memory_space<vmem>>, %arg5: memref<32x128xbf16, #tpu.memory_space<vmem>>) attributes {dimension_semantics = [#tpu.dimension_semantics<parallel>, #tpu.dimension_semantics<parallel>], iteration_bounds = array<i64: 1, 1>, scalar_prefetch = 0 : i64, scratch_operands = 0 : i64, tpu.core_type = #tpu.core_type<tc>, window_params = [{transform_indices = @transform_0, window_bounds = array<i64: 32, 24>}, {transform_indices = @transform_1, window_bounds = array<i64: 24, 128>}, {transform_indices = @transform_2, window_bounds = array<i64: 1, 128>}, {transform_indices = @transform_3, window_bounds = array<i64: 32, 128>}]} {
    %c0 = arith.constant 0 : index
    %c0_0 = arith.constant 0 : index
    %0 = vector.load %arg2[%c0, %c0_0] : memref<32x24xbf16, #tpu.memory_space<vmem>>, vector<32x24xbf16>
    %c0_1 = arith.constant 0 : index
    %c0_2 = arith.constant 0 : index
    %1 = vector.load %arg3[%c0_1, %c0_2] : memref<24x128xbf16, #tpu.memory_space<vmem>>, vector<24x128xbf16>
    %cst = arith.constant dense<0.000000e+00> : vector<32x128xf32>
    %2 = tpu.matmul %0, %1, %cst {dimension_numbers = #tpu.dot_dimension_numbers<[1], [0], [0], [1], [0, 0, 1, 1], [], []>} : vector<32x24xbf16>, vector<24x128xbf16>, vector<32x128xf32> -> vector<32x128xf32>
    %c0_3 = arith.constant 0 : index
    %c0_4 = arith.constant 0 : index
    %3 = vector.load %arg4[%c0_3, %c0_4] : memref<1x128xf32, #tpu.memory_space<vmem>>, vector<1x128xf32>
    %4 = vector.broadcast %3 : vector<1x128xf32> to vector<32x128xf32>
    %5 = arith.addf %2, %4 : vector<32x128xf32>
    %cst_5 = arith.constant 0.000000e+00 : f32
    %6 = vector.broadcast %cst_5 : f32 to vector<32x128xf32>
    %7 = arith.subf %6, %5 : vector<32x128xf32>
    %8 = math.exp %7 : vector<32x128xf32>
    %cst_6 = arith.constant 1.000000e+00 : f32
    %9 = vector.broadcast %cst_6 : f32 to vector<32x128xf32>
    %10 = arith.addf %9, %8 : vector<32x128xf32>
    %11 = tpu.reciprocal %10 {approx = true} : vector<32x128xf32> -> vector<32x128xf32>
    %12 = arith.mulf %5, %11 : vector<32x128xf32>
    %13 = arith.truncf %12 : vector<32x128xf32> to vector<32x128xbf16>
    %c0_7 = arith.constant 0 : index
    %c0_8 = arith.constant 0 : index
    %14 = vector.load %arg5[%c0_7, %c0_8] : memref<32x128xbf16, #tpu.memory_space<vmem>>, vector<32x128xbf16>
    tpu.vector_store %arg5[%c0_7, %c0_8], %13 {strides = array<i32>} : memref<32x128xbf16, #tpu.memory_space<vmem>>, vector<32x128xbf16>,
    return
  }
  func.func @transform_0(%arg0: i32, %arg1: i32) -> (i32, i32) {
    %c0_i32 = arith.constant 0 : i32
    %c0_i32_0 = arith.constant 0 : i32
    return %arg0, %c0_i32 : i32, i32
  }
  func.func @transform_1(%arg0: i32, %arg1: i32) -> (i32, i32) {
    %c0_i32 = arith.constant 0 : i32
    %c0_i32_0 = arith.constant 0 : i32
    return %c0_i32, %arg1 : i32, i32
  }
  func.func @transform_2(%arg0: i32, %arg1: i32) -> (i32, i32) {
    %c0_i32 = arith.constant 0 : i32
    %c0_i32_0 = arith.constant 0 : i32
    return %c0_i32, %arg1 : i32, i32
  }
  func.func @transform_3(%arg0: i32, %arg1: i32) -> (i32, i32) {
    %c0_i32 = arith.constant 0 : i32
    return %arg0, %arg1 : i32, i32
  }
}

module attributes {stable_mosaic.version = 11 : i64} {
  func.func @_dw_s1_kernel(%arg0: i32, %arg1: i32, %arg2: memref<1x6x6x96xbf16, #tpu.memory_space<vmem>>, %arg3: memref<9x96xbf16, #tpu.memory_space<vmem>>, %arg4: memref<1x96xf32, #tpu.memory_space<vmem>>, %arg5: memref<1x4x4x96xbf16, #tpu.memory_space<vmem>>) attributes {dimension_semantics = [#tpu.dimension_semantics<parallel>, #tpu.dimension_semantics<parallel>], iteration_bounds = array<i64: 2, 1>, scalar_prefetch = 0 : i64, scratch_operands = 0 : i64, tpu.core_type = #tpu.core_type<tc>, window_params = [{transform_indices = @transform_0, window_bounds = array<i64: 1, 6, 6, 96>}, {pipeline_mode = #tpu.pipeline_mode<synchronous>, transform_indices = @transform_1, window_bounds = array<i64: 9, 96>}, {pipeline_mode = #tpu.pipeline_mode<synchronous>, transform_indices = @transform_2, window_bounds = array<i64: 1, 96>}, {transform_indices = @transform_3, window_bounds = array<i64: 1, 4, 4, 96>}]} {
    %c4_i32 = arith.constant 4 : i32
    %0 = arith.muli %arg1, %c4_i32 : i32
    %1 = tpu.assume_multiple %0, 4 : i32
    %cst = arith.constant 0.000000e+00 : f32
    %2 = vector.broadcast %cst : f32 to vector<4x4x96xf32>
    %c0_i32 = arith.constant 0 : i32
    %3 = arith.addi %1, %c0_i32 : i32
    %c0 = arith.constant 0 : index
    %4 = arith.index_cast %3 : i32 to index
    %c0_0 = arith.constant 0 : index
    %c0_1 = arith.constant 0 : index
    %5 = vector.load %arg2[%c0, %4, %c0_0, %c0_1] : memref<1x6x6x96xbf16, #tpu.memory_space<vmem>>, vector<1x4x4x96xbf16>
    %6 = vector.shape_cast %5 : vector<1x4x4x96xbf16> to vector<4x4x96xbf16>
    %c0_2 = arith.constant 0 : index
    %c0_3 = arith.constant 0 : index
    %7 = vector.load %arg3[%c0_2, %c0_3] : memref<9x96xbf16, #tpu.memory_space<vmem>>, vector<1x96xbf16>
    %8 = vector.shape_cast %7 : vector<1x96xbf16> to vector<1x1x96xbf16>
    %9 = vector.broadcast %8 : vector<1x1x96xbf16> to vector<4x4x96xbf16>
    %10 = arith.mulf %6, %9 : vector<4x4x96xbf16>
    %11 = arith.extf %10 : vector<4x4x96xbf16> to vector<4x4x96xf32>
    %12 = arith.addf %2, %11 : vector<4x4x96xf32>
    %c0_i32_4 = arith.constant 0 : i32
    %13 = arith.addi %1, %c0_i32_4 : i32
    %c0_5 = arith.constant 0 : index
    %14 = arith.index_cast %13 : i32 to index
    %c1 = arith.constant 1 : index
    %c0_6 = arith.constant 0 : index
    %15 = vector.load %arg2[%c0_5, %14, %c1, %c0_6] : memref<1x6x6x96xbf16, #tpu.memory_space<vmem>>, vector<1x4x4x96xbf16>
    %16 = vector.shape_cast %15 : vector<1x4x4x96xbf16> to vector<4x4x96xbf16>
    %c1_7 = arith.constant 1 : index
    %c0_8 = arith.constant 0 : index
    %17 = vector.load %arg3[%c1_7, %c0_8] : memref<9x96xbf16, #tpu.memory_space<vmem>>, vector<1x96xbf16>
    %18 = vector.shape_cast %17 : vector<1x96xbf16> to vector<1x1x96xbf16>
    %19 = vector.broadcast %18 : vector<1x1x96xbf16> to vector<4x4x96xbf16>
    %20 = arith.mulf %16, %19 : vector<4x4x96xbf16>
    %21 = arith.extf %20 : vector<4x4x96xbf16> to vector<4x4x96xf32>
    %22 = arith.addf %12, %21 : vector<4x4x96xf32>
    %c0_i32_9 = arith.constant 0 : i32
    %23 = arith.addi %1, %c0_i32_9 : i32
    %c0_10 = arith.constant 0 : index
    %24 = arith.index_cast %23 : i32 to index
    %c2 = arith.constant 2 : index
    %c0_11 = arith.constant 0 : index
    %25 = vector.load %arg2[%c0_10, %24, %c2, %c0_11] : memref<1x6x6x96xbf16, #tpu.memory_space<vmem>>, vector<1x4x4x96xbf16>
    %26 = vector.shape_cast %25 : vector<1x4x4x96xbf16> to vector<4x4x96xbf16>
    %c2_12 = arith.constant 2 : index
    %c0_13 = arith.constant 0 : index
    %27 = vector.load %arg3[%c2_12, %c0_13] : memref<9x96xbf16, #tpu.memory_space<vmem>>, vector<1x96xbf16>
    %28 = vector.shape_cast %27 : vector<1x96xbf16> to vector<1x1x96xbf16>
    %29 = vector.broadcast %28 : vector<1x1x96xbf16> to vector<4x4x96xbf16>
    %30 = arith.mulf %26, %29 : vector<4x4x96xbf16>
    %31 = arith.extf %30 : vector<4x4x96xbf16> to vector<4x4x96xf32>
    %32 = arith.addf %22, %31 : vector<4x4x96xf32>
    %c1_i32 = arith.constant 1 : i32
    %33 = arith.addi %1, %c1_i32 : i32
    %c0_14 = arith.constant 0 : index
    %34 = arith.index_cast %33 : i32 to index
    %c0_15 = arith.constant 0 : index
    %c0_16 = arith.constant 0 : index
    %35 = vector.load %arg2[%c0_14, %34, %c0_15, %c0_16] : memref<1x6x6x96xbf16, #tpu.memory_space<vmem>>, vector<1x4x4x96xbf16>
    %36 = vector.shape_cast %35 : vector<1x4x4x96xbf16> to vector<4x4x96xbf16>
    %c3 = arith.constant 3 : index
    %c0_17 = arith.constant 0 : index
    %37 = vector.load %arg3[%c3, %c0_17] : memref<9x96xbf16, #tpu.memory_space<vmem>>, vector<1x96xbf16>
    %38 = vector.shape_cast %37 : vector<1x96xbf16> to vector<1x1x96xbf16>
    %39 = vector.broadcast %38 : vector<1x1x96xbf16> to vector<4x4x96xbf16>
    %40 = arith.mulf %36, %39 : vector<4x4x96xbf16>
    %41 = arith.extf %40 : vector<4x4x96xbf16> to vector<4x4x96xf32>
    %42 = arith.addf %32, %41 : vector<4x4x96xf32>
    %c1_i32_18 = arith.constant 1 : i32
    %43 = arith.addi %1, %c1_i32_18 : i32
    %c0_19 = arith.constant 0 : index
    %44 = arith.index_cast %43 : i32 to index
    %c1_20 = arith.constant 1 : index
    %c0_21 = arith.constant 0 : index
    %45 = vector.load %arg2[%c0_19, %44, %c1_20, %c0_21] : memref<1x6x6x96xbf16, #tpu.memory_space<vmem>>, vector<1x4x4x96xbf16>
    %46 = vector.shape_cast %45 : vector<1x4x4x96xbf16> to vector<4x4x96xbf16>
    %c4 = arith.constant 4 : index
    %c0_22 = arith.constant 0 : index
    %47 = vector.load %arg3[%c4, %c0_22] : memref<9x96xbf16, #tpu.memory_space<vmem>>, vector<1x96xbf16>
    %48 = vector.shape_cast %47 : vector<1x96xbf16> to vector<1x1x96xbf16>
    %49 = vector.broadcast %48 : vector<1x1x96xbf16> to vector<4x4x96xbf16>
    %50 = arith.mulf %46, %49 : vector<4x4x96xbf16>
    %51 = arith.extf %50 : vector<4x4x96xbf16> to vector<4x4x96xf32>
    %52 = arith.addf %42, %51 : vector<4x4x96xf32>
    %c1_i32_23 = arith.constant 1 : i32
    %53 = arith.addi %1, %c1_i32_23 : i32
    %c0_24 = arith.constant 0 : index
    %54 = arith.index_cast %53 : i32 to index
    %c2_25 = arith.constant 2 : index
    %c0_26 = arith.constant 0 : index
    %55 = vector.load %arg2[%c0_24, %54, %c2_25, %c0_26] : memref<1x6x6x96xbf16, #tpu.memory_space<vmem>>, vector<1x4x4x96xbf16>
    %56 = vector.shape_cast %55 : vector<1x4x4x96xbf16> to vector<4x4x96xbf16>
    %c5 = arith.constant 5 : index
    %c0_27 = arith.constant 0 : index
    %57 = vector.load %arg3[%c5, %c0_27] : memref<9x96xbf16, #tpu.memory_space<vmem>>, vector<1x96xbf16>
    %58 = vector.shape_cast %57 : vector<1x96xbf16> to vector<1x1x96xbf16>
    %59 = vector.broadcast %58 : vector<1x1x96xbf16> to vector<4x4x96xbf16>
    %60 = arith.mulf %56, %59 : vector<4x4x96xbf16>
    %61 = arith.extf %60 : vector<4x4x96xbf16> to vector<4x4x96xf32>
    %62 = arith.addf %52, %61 : vector<4x4x96xf32>
    %c2_i32 = arith.constant 2 : i32
    %63 = arith.addi %1, %c2_i32 : i32
    %c0_28 = arith.constant 0 : index
    %64 = arith.index_cast %63 : i32 to index
    %c0_29 = arith.constant 0 : index
    %c0_30 = arith.constant 0 : index
    %65 = vector.load %arg2[%c0_28, %64, %c0_29, %c0_30] : memref<1x6x6x96xbf16, #tpu.memory_space<vmem>>, vector<1x4x4x96xbf16>
    %66 = vector.shape_cast %65 : vector<1x4x4x96xbf16> to vector<4x4x96xbf16>
    %c6 = arith.constant 6 : index
    %c0_31 = arith.constant 0 : index
    %67 = vector.load %arg3[%c6, %c0_31] : memref<9x96xbf16, #tpu.memory_space<vmem>>, vector<1x96xbf16>
    %68 = vector.shape_cast %67 : vector<1x96xbf16> to vector<1x1x96xbf16>
    %69 = vector.broadcast %68 : vector<1x1x96xbf16> to vector<4x4x96xbf16>
    %70 = arith.mulf %66, %69 : vector<4x4x96xbf16>
    %71 = arith.extf %70 : vector<4x4x96xbf16> to vector<4x4x96xf32>
    %72 = arith.addf %62, %71 : vector<4x4x96xf32>
    %c2_i32_32 = arith.constant 2 : i32
    %73 = arith.addi %1, %c2_i32_32 : i32
    %c0_33 = arith.constant 0 : index
    %74 = arith.index_cast %73 : i32 to index
    %c1_34 = arith.constant 1 : index
    %c0_35 = arith.constant 0 : index
    %75 = vector.load %arg2[%c0_33, %74, %c1_34, %c0_35] : memref<1x6x6x96xbf16, #tpu.memory_space<vmem>>, vector<1x4x4x96xbf16>
    %76 = vector.shape_cast %75 : vector<1x4x4x96xbf16> to vector<4x4x96xbf16>
    %c7 = arith.constant 7 : index
    %c0_36 = arith.constant 0 : index
    %77 = vector.load %arg3[%c7, %c0_36] : memref<9x96xbf16, #tpu.memory_space<vmem>>, vector<1x96xbf16>
    %78 = vector.shape_cast %77 : vector<1x96xbf16> to vector<1x1x96xbf16>
    %79 = vector.broadcast %78 : vector<1x1x96xbf16> to vector<4x4x96xbf16>
    %80 = arith.mulf %76, %79 : vector<4x4x96xbf16>
    %81 = arith.extf %80 : vector<4x4x96xbf16> to vector<4x4x96xf32>
    %82 = arith.addf %72, %81 : vector<4x4x96xf32>
    %c2_i32_37 = arith.constant 2 : i32
    %83 = arith.addi %1, %c2_i32_37 : i32
    %c0_38 = arith.constant 0 : index
    %84 = arith.index_cast %83 : i32 to index
    %c2_39 = arith.constant 2 : index
    %c0_40 = arith.constant 0 : index
    %85 = vector.load %arg2[%c0_38, %84, %c2_39, %c0_40] : memref<1x6x6x96xbf16, #tpu.memory_space<vmem>>, vector<1x4x4x96xbf16>
    %86 = vector.shape_cast %85 : vector<1x4x4x96xbf16> to vector<4x4x96xbf16>
    %c8 = arith.constant 8 : index
    %c0_41 = arith.constant 0 : index
    %87 = vector.load %arg3[%c8, %c0_41] : memref<9x96xbf16, #tpu.memory_space<vmem>>, vector<1x96xbf16>
    %88 = vector.shape_cast %87 : vector<1x96xbf16> to vector<1x1x96xbf16>
    %89 = vector.broadcast %88 : vector<1x1x96xbf16> to vector<4x4x96xbf16>
    %90 = arith.mulf %86, %89 : vector<4x4x96xbf16>
    %91 = arith.extf %90 : vector<4x4x96xbf16> to vector<4x4x96xf32>
    %92 = arith.addf %82, %91 : vector<4x4x96xf32>
    %c0_42 = arith.constant 0 : index
    %c0_43 = arith.constant 0 : index
    %93 = vector.load %arg4[%c0_42, %c0_43] : memref<1x96xf32, #tpu.memory_space<vmem>>, vector<1x96xf32>
    %94 = vector.shape_cast %93 : vector<1x96xf32> to vector<1x1x96xf32>
    %95 = vector.broadcast %94 : vector<1x1x96xf32> to vector<4x4x96xf32>
    %96 = arith.addf %92, %95 : vector<4x4x96xf32>
    %cst_44 = arith.constant 0.000000e+00 : f32
    %97 = vector.broadcast %cst_44 : f32 to vector<4x4x96xf32>
    %98 = arith.subf %97, %96 : vector<4x4x96xf32>
    %99 = math.exp %98 : vector<4x4x96xf32>
    %cst_45 = arith.constant 1.000000e+00 : f32
    %100 = vector.broadcast %cst_45 : f32 to vector<4x4x96xf32>
    %101 = arith.addf %100, %99 : vector<4x4x96xf32>
    %102 = tpu.reciprocal %101 {approx = true} : vector<4x4x96xf32> -> vector<4x4x96xf32>
    %103 = arith.mulf %96, %102 : vector<4x4x96xf32>
    %104 = arith.truncf %103 : vector<4x4x96xf32> to vector<4x4x96xbf16>
    %c0_46 = arith.constant 0 : index
    %c0_47 = arith.constant 0 : index
    %c0_48 = arith.constant 0 : index
    %c0_49 = arith.constant 0 : index
    %105 = vector.load %arg5[%c0_46, %c0_47, %c0_48, %c0_49] : memref<1x4x4x96xbf16, #tpu.memory_space<vmem>>, vector<1x4x4x96xbf16>
    %106 = vector.shape_cast %105 : vector<1x4x4x96xbf16> to vector<4x4x96xbf16>
    %107 = vector.shape_cast %104 : vector<4x4x96xbf16> to vector<1x4x4x96xbf16>
    tpu.vector_store %arg5[%c0_46, %c0_47, %c0_48, %c0_49], %107 {strides = array<i32>} : memref<1x4x4x96xbf16, #tpu.memory_space<vmem>>, vector<1x4x4x96xbf16>,
    return
  }
  func.func @transform_0(%arg0: i32, %arg1: i32) -> (i32, i32, i32, i32) {
    %c0_i32 = arith.constant 0 : i32
    %c0_i32_0 = arith.constant 0 : i32
    %c0_i32_1 = arith.constant 0 : i32
    %c0_i32_2 = arith.constant 0 : i32
    return %arg0, %c0_i32, %c0_i32_0, %c0_i32_1 : i32, i32, i32, i32
  }
  func.func @transform_1(%arg0: i32, %arg1: i32) -> (i32, i32) {
    %c0_i32 = arith.constant 0 : i32
    %c0_i32_0 = arith.constant 0 : i32
    %c0_i32_1 = arith.constant 0 : i32
    return %c0_i32, %c0_i32_0 : i32, i32
  }
  func.func @transform_2(%arg0: i32, %arg1: i32) -> (i32, i32) {
    %c0_i32 = arith.constant 0 : i32
    %c0_i32_0 = arith.constant 0 : i32
    %c0_i32_1 = arith.constant 0 : i32
    return %c0_i32, %c0_i32_0 : i32, i32
  }
  func.func @transform_3(%arg0: i32, %arg1: i32) -> (i32, i32, i32, i32) {
    %c0_i32 = arith.constant 0 : i32
    %c0_i32_0 = arith.constant 0 : i32
    %c0_i32_1 = arith.constant 0 : i32
    return %arg0, %arg1, %c0_i32, %c0_i32_0 : i32, i32, i32, i32
  }
}

module attributes {stable_mosaic.version = 11 : i64} {
  func.func @_gap_kernel(%arg0: i32, %arg1: i32, %arg2: memref<1x16x96xbf16, #tpu.memory_space<vmem>>, %arg3: memref<1x1x96xf32, #tpu.memory_space<vmem>>, %arg4: memref<1x96xf32, #tpu.memory_space<vmem>>) attributes {dimension_semantics = [#tpu.dimension_semantics<parallel>, #tpu.dimension_semantics<arbitrary>], iteration_bounds = array<i64: 2, 1>, scalar_prefetch = 0 : i64, scratch_operands = 1 : i64, tpu.core_type = #tpu.core_type<tc>, window_params = [{transform_indices = @transform_0, window_bounds = array<i64: 1, 16, 96>}, {transform_indices = @transform_1, window_bounds = array<i64: 1, 1, 96>}]} {
    %c0_i32 = arith.constant 0 : i32
    %0 = arith.cmpi eq, %arg1, %c0_i32 : i32
    %1 = arith.extui %0 : i1 to i32
    %c0_i32_0 = arith.constant 0 : i32
    %2 = arith.cmpi ne, %1, %c0_i32_0 : i32
    scf.if %2 {
      %cst_9 = arith.constant 0.000000e+00 : f32
      %14 = vector.broadcast %cst_9 : f32 to vector<1x96xf32>
      %c0_10 = arith.constant 0 : index
      %c0_11 = arith.constant 0 : index
      %15 = vector.load %arg4[%c0_10, %c0_11] : memref<1x96xf32, #tpu.memory_space<vmem>>, vector<1x96xf32>
      tpu.vector_store %arg4[%c0_10, %c0_11], %14 {strides = array<i32>} : memref<1x96xf32, #tpu.memory_space<vmem>>, vector<1x96xf32>,
    } else {
    }
    %c0 = arith.constant 0 : index
    %c0_1 = arith.constant 0 : index
    %3 = vector.load %arg4[%c0, %c0_1] : memref<1x96xf32, #tpu.memory_space<vmem>>, vector<1x96xf32>
    %c0_2 = arith.constant 0 : index
    %c0_3 = arith.constant 0 : index
    %c0_4 = arith.constant 0 : index
    %4 = vector.load %arg2[%c0_2, %c0_3, %c0_4] : memref<1x16x96xbf16, #tpu.memory_space<vmem>>, vector<1x16x96xbf16>
    %5 = vector.shape_cast %4 : vector<1x16x96xbf16> to vector<16x96xbf16>
    %6 = arith.extf %5 : vector<16x96xbf16> to vector<16x96xf32>
    %cst = arith.constant dense<0.000000e+00> : vector<96xf32>
    %7 = vector.multi_reduction <add>, %6, %cst [0] : vector<16x96xf32> to vector<96xf32>
    %8 = vector.shape_cast %7 : vector<96xf32> to vector<1x96xf32>
    %9 = arith.addf %3, %8 : vector<1x96xf32>
    %c0_5 = arith.constant 0 : index
    %c0_6 = arith.constant 0 : index
    %10 = vector.load %arg4[%c0_5, %c0_6] : memref<1x96xf32, #tpu.memory_space<vmem>>, vector<1x96xf32>
    tpu.vector_store %arg4[%c0_5, %c0_6], %9 {strides = array<i32>} : memref<1x96xf32, #tpu.memory_space<vmem>>, vector<1x96xf32>,
    %c0_i32_7 = arith.constant 0 : i32
    %11 = arith.cmpi eq, %arg1, %c0_i32_7 : i32
    %12 = arith.extui %11 : i1 to i32
    %c0_i32_8 = arith.constant 0 : i32
    %13 = arith.cmpi ne, %12, %c0_i32_8 : i32
    scf.if %13 {
      %c0_9 = arith.constant 0 : index
      %c0_10 = arith.constant 0 : index
      %14 = vector.load %arg4[%c0_9, %c0_10] : memref<1x96xf32, #tpu.memory_space<vmem>>, vector<1x96xf32>
      %cst_11 = arith.constant 6.250000e-02 : f32
      %15 = vector.broadcast %cst_11 : f32 to vector<1x96xf32>
      %16 = arith.mulf %14, %15 : vector<1x96xf32>
      %c0_12 = arith.constant 0 : index
      %c0_13 = arith.constant 0 : index
      %c0_14 = arith.constant 0 : index
      %17 = vector.load %arg3[%c0_12, %c0_13, %c0_14] : memref<1x1x96xf32, #tpu.memory_space<vmem>>, vector<1x1x96xf32>
      %18 = vector.shape_cast %17 : vector<1x1x96xf32> to vector<1x96xf32>
      %19 = vector.shape_cast %16 : vector<1x96xf32> to vector<1x1x96xf32>
      tpu.vector_store %arg3[%c0_12, %c0_13, %c0_14], %19 {strides = array<i32>} : memref<1x1x96xf32, #tpu.memory_space<vmem>>, vector<1x1x96xf32>,
    } else {
    }
    return
  }
  func.func @transform_0(%arg0: i32, %arg1: i32) -> (i32, i32, i32) {
    %c0_i32 = arith.constant 0 : i32
    %c0_i32_0 = arith.constant 0 : i32
    return %arg0, %arg1, %c0_i32 : i32, i32, i32
  }
  func.func @transform_1(%arg0: i32, %arg1: i32) -> (i32, i32, i32) {
    %c0_i32 = arith.constant 0 : i32
    %c0_i32_0 = arith.constant 0 : i32
    %c0_i32_1 = arith.constant 0 : i32
    return %arg0, %c0_i32, %c0_i32_0 : i32, i32, i32
  }
}

module attributes {stable_mosaic.version = 11 : i64} {
  func.func @_smm_kernel(%arg0: i32, %arg1: i32, %arg2: i32, %arg3: memref<1x1x96xf32, #tpu.memory_space<vmem>>, %arg4: memref<1x16x96xbf16, #tpu.memory_space<vmem>>, %arg5: memref<96x128xbf16, #tpu.memory_space<vmem>>, %arg6: memref<1x128xf32, #tpu.memory_space<vmem>>, %arg7: memref<1x16x128xbf16, #tpu.memory_space<vmem>>) attributes {dimension_semantics = [#tpu.dimension_semantics<parallel>, #tpu.dimension_semantics<parallel>, #tpu.dimension_semantics<parallel>], iteration_bounds = array<i64: 2, 1, 1>, scalar_prefetch = 0 : i64, scratch_operands = 0 : i64, tpu.core_type = #tpu.core_type<tc>, window_params = [{transform_indices = @transform_0, window_bounds = array<i64: 1, 1, 96>}, {transform_indices = @transform_1, window_bounds = array<i64: 1, 16, 96>}, {transform_indices = @transform_2, window_bounds = array<i64: 96, 128>}, {transform_indices = @transform_3, window_bounds = array<i64: 1, 128>}, {transform_indices = @transform_4, window_bounds = array<i64: 1, 16, 128>}]} {
    %c0 = arith.constant 0 : index
    %c0_0 = arith.constant 0 : index
    %c0_1 = arith.constant 0 : index
    %0 = vector.load %arg4[%c0, %c0_0, %c0_1] : memref<1x16x96xbf16, #tpu.memory_space<vmem>>, vector<1x16x96xbf16>
    %1 = vector.shape_cast %0 : vector<1x16x96xbf16> to vector<16x96xbf16>
    %2 = arith.extf %1 : vector<16x96xbf16> to vector<16x96xf32>
    %c0_2 = arith.constant 0 : index
    %c0_3 = arith.constant 0 : index
    %c0_4 = arith.constant 0 : index
    %3 = vector.load %arg3[%c0_2, %c0_3, %c0_4] : memref<1x1x96xf32, #tpu.memory_space<vmem>>, vector<1x1x96xf32>
    %4 = vector.shape_cast %3 : vector<1x1x96xf32> to vector<1x96xf32>
    %5 = vector.broadcast %4 : vector<1x96xf32> to vector<16x96xf32>
    %6 = arith.mulf %2, %5 : vector<16x96xf32>
    %7 = arith.truncf %6 : vector<16x96xf32> to vector<16x96xbf16>
    %c0_5 = arith.constant 0 : index
    %c0_6 = arith.constant 0 : index
    %8 = vector.load %arg5[%c0_5, %c0_6] : memref<96x128xbf16, #tpu.memory_space<vmem>>, vector<96x128xbf16>
    %cst = arith.constant dense<0.000000e+00> : vector<16x128xf32>
    %9 = tpu.matmul %7, %8, %cst {dimension_numbers = #tpu.dot_dimension_numbers<[1], [0], [0], [1], [0, 0, 1, 1], [], []>} : vector<16x96xbf16>, vector<96x128xbf16>, vector<16x128xf32> -> vector<16x128xf32>
    %c0_7 = arith.constant 0 : index
    %c0_8 = arith.constant 0 : index
    %10 = vector.load %arg6[%c0_7, %c0_8] : memref<1x128xf32, #tpu.memory_space<vmem>>, vector<1x128xf32>
    %11 = vector.broadcast %10 : vector<1x128xf32> to vector<16x128xf32>
    %12 = arith.addf %9, %11 : vector<16x128xf32>
    %13 = arith.truncf %12 : vector<16x128xf32> to vector<16x128xbf16>
    %c0_9 = arith.constant 0 : index
    %c0_10 = arith.constant 0 : index
    %c0_11 = arith.constant 0 : index
    %14 = vector.load %arg7[%c0_9, %c0_10, %c0_11] : memref<1x16x128xbf16, #tpu.memory_space<vmem>>, vector<1x16x128xbf16>
    %15 = vector.shape_cast %14 : vector<1x16x128xbf16> to vector<16x128xbf16>
    %16 = vector.shape_cast %13 : vector<16x128xbf16> to vector<1x16x128xbf16>
    tpu.vector_store %arg7[%c0_9, %c0_10, %c0_11], %16 {strides = array<i32>} : memref<1x16x128xbf16, #tpu.memory_space<vmem>>, vector<1x16x128xbf16>,
    return
  }
  func.func @transform_0(%arg0: i32, %arg1: i32, %arg2: i32) -> (i32, i32, i32) {
    %c0_i32 = arith.constant 0 : i32
    %c0_i32_0 = arith.constant 0 : i32
    %c0_i32_1 = arith.constant 0 : i32
    return %arg0, %c0_i32, %c0_i32_0 : i32, i32, i32
  }
  func.func @transform_1(%arg0: i32, %arg1: i32, %arg2: i32) -> (i32, i32, i32) {
    %c0_i32 = arith.constant 0 : i32
    %c0_i32_0 = arith.constant 0 : i32
    return %arg0, %arg1, %c0_i32 : i32, i32, i32
  }
  func.func @transform_2(%arg0: i32, %arg1: i32, %arg2: i32) -> (i32, i32) {
    %c0_i32 = arith.constant 0 : i32
    %c0_i32_0 = arith.constant 0 : i32
    return %c0_i32, %arg2 : i32, i32
  }
  func.func @transform_3(%arg0: i32, %arg1: i32, %arg2: i32) -> (i32, i32) {
    %c0_i32 = arith.constant 0 : i32
    %c0_i32_0 = arith.constant 0 : i32
    return %c0_i32, %arg2 : i32, i32
  }
  func.func @transform_4(%arg0: i32, %arg1: i32, %arg2: i32) -> (i32, i32, i32) {
    %c0_i32 = arith.constant 0 : i32
    return %arg0, %arg1, %arg2 : i32, i32, i32
  }
}

module attributes {stable_mosaic.version = 11 : i64} {
  func.func @_concat_nf_res_kernel(%arg0: i32, %arg1: i32, %arg2: memref<1x16x12xbf16, #tpu.memory_space<vmem>>, %arg3: memref<1x1x12xf32, #tpu.memory_space<vmem>>, %arg4: memref<1x16x24xbf16, #tpu.memory_space<vmem>>, %arg5: memref<1x16x24xbf16, #tpu.memory_space<vmem>>) attributes {dimension_semantics = [#tpu.dimension_semantics<parallel>, #tpu.dimension_semantics<parallel>], iteration_bounds = array<i64: 2, 1>, scalar_prefetch = 0 : i64, scratch_operands = 0 : i64, tpu.core_type = #tpu.core_type<tc>, window_params = [{transform_indices = @transform_0, window_bounds = array<i64: 1, 16, 12>}, {transform_indices = @transform_1, window_bounds = array<i64: 1, 1, 12>}, {transform_indices = @transform_2, window_bounds = array<i64: 1, 16, 24>}, {transform_indices = @transform_3, window_bounds = array<i64: 1, 16, 24>}]} {
    %c0 = arith.constant 0 : index
    %c0_0 = arith.constant 0 : index
    %c0_1 = arith.constant 0 : index
    %0 = vector.load %arg2[%c0, %c0_0, %c0_1] : memref<1x16x12xbf16, #tpu.memory_space<vmem>>, vector<1x16x12xbf16>
    %1 = vector.shape_cast %0 : vector<1x16x12xbf16> to vector<16x12xbf16>
    %2 = arith.extf %1 : vector<16x12xbf16> to vector<16x12xf32>
    %c0_2 = arith.constant 0 : index
    %c0_3 = arith.constant 0 : index
    %c0_4 = arith.constant 0 : index
    %3 = vector.load %arg3[%c0_2, %c0_3, %c0_4] : memref<1x1x12xf32, #tpu.memory_space<vmem>>, vector<1x1x12xf32>
    %4 = vector.shape_cast %3 : vector<1x1x12xf32> to vector<1x12xf32>
    %5 = vector.broadcast %4 : vector<1x12xf32> to vector<16x12xf32>
    %6 = arith.mulf %2, %5 : vector<16x12xf32>
    %7 = tpu.concatenate %2, %6 in 1 : vector<16x12xf32>, vector<16x12xf32> -> vector<16x24xf32>
    %c0_5 = arith.constant 0 : index
    %c0_6 = arith.constant 0 : index
    %c0_7 = arith.constant 0 : index
    %8 = vector.load %arg4[%c0_5, %c0_6, %c0_7] : memref<1x16x24xbf16, #tpu.memory_space<vmem>>, vector<1x16x24xbf16>
    %9 = vector.shape_cast %8 : vector<1x16x24xbf16> to vector<16x24xbf16>
    %10 = arith.extf %9 : vector<16x24xbf16> to vector<16x24xf32>
    %11 = arith.addf %7, %10 : vector<16x24xf32>
    %12 = arith.truncf %11 : vector<16x24xf32> to vector<16x24xbf16>
    %c0_8 = arith.constant 0 : index
    %c0_9 = arith.constant 0 : index
    %c0_10 = arith.constant 0 : index
    %13 = vector.load %arg5[%c0_8, %c0_9, %c0_10] : memref<1x16x24xbf16, #tpu.memory_space<vmem>>, vector<1x16x24xbf16>
    %14 = vector.shape_cast %13 : vector<1x16x24xbf16> to vector<16x24xbf16>
    %15 = vector.shape_cast %12 : vector<16x24xbf16> to vector<1x16x24xbf16>
    tpu.vector_store %arg5[%c0_8, %c0_9, %c0_10], %15 {strides = array<i32>} : memref<1x16x24xbf16, #tpu.memory_space<vmem>>, vector<1x16x24xbf16>,
    return
  }
  func.func @transform_0(%arg0: i32, %arg1: i32) -> (i32, i32, i32) {
    %c0_i32 = arith.constant 0 : i32
    %c0_i32_0 = arith.constant 0 : i32
    return %arg0, %arg1, %c0_i32 : i32, i32, i32
  }
  func.func @transform_1(%arg0: i32, %arg1: i32) -> (i32, i32, i32) {
    %c0_i32 = arith.constant 0 : i32
    %c0_i32_0 = arith.constant 0 : i32
    %c0_i32_1 = arith.constant 0 : i32
    return %arg0, %c0_i32, %c0_i32_0 : i32, i32, i32
  }
  func.func @transform_2(%arg0: i32, %arg1: i32) -> (i32, i32, i32) {
    %c0_i32 = arith.constant 0 : i32
    %c0_i32_0 = arith.constant 0 : i32
    return %arg0, %arg1, %c0_i32 : i32, i32, i32
  }
  func.func @transform_3(%arg0: i32, %arg1: i32) -> (i32, i32, i32) {
    %c0_i32 = arith.constant 0 : i32
    %c0_i32_0 = arith.constant 0 : i32
    return %arg0, %arg1, %c0_i32 : i32, i32, i32
  }
}

module attributes {stable_mosaic.version = 11 : i64} {
  func.func @_mm_kernel(%arg0: i32, %arg1: i32, %arg2: memref<8x96xbf16, #tpu.memory_space<vmem>>, %arg3: memref<96x128xbf16, #tpu.memory_space<vmem>>, %arg4: memref<1x128xf32, #tpu.memory_space<vmem>>, %arg5: memref<8x128xf32, #tpu.memory_space<vmem>>) attributes {dimension_semantics = [#tpu.dimension_semantics<parallel>, #tpu.dimension_semantics<parallel>], iteration_bounds = array<i64: 1, 1>, scalar_prefetch = 0 : i64, scratch_operands = 0 : i64, tpu.core_type = #tpu.core_type<tc>, window_params = [{transform_indices = @transform_0, window_bounds = array<i64: 8, 96>}, {transform_indices = @transform_1, window_bounds = array<i64: 96, 128>}, {transform_indices = @transform_2, window_bounds = array<i64: 1, 128>}, {transform_indices = @transform_3, window_bounds = array<i64: 8, 128>}]} {
    %c0 = arith.constant 0 : index
    %c0_0 = arith.constant 0 : index
    %0 = vector.load %arg2[%c0, %c0_0] : memref<8x96xbf16, #tpu.memory_space<vmem>>, vector<8x96xbf16>
    %c0_1 = arith.constant 0 : index
    %c0_2 = arith.constant 0 : index
    %1 = vector.load %arg3[%c0_1, %c0_2] : memref<96x128xbf16, #tpu.memory_space<vmem>>, vector<96x128xbf16>
    %cst = arith.constant dense<0.000000e+00> : vector<8x128xf32>
    %2 = tpu.matmul %0, %1, %cst {dimension_numbers = #tpu.dot_dimension_numbers<[1], [0], [0], [1], [0, 0, 1, 1], [], []>} : vector<8x96xbf16>, vector<96x128xbf16>, vector<8x128xf32> -> vector<8x128xf32>
    %c0_3 = arith.constant 0 : index
    %c0_4 = arith.constant 0 : index
    %3 = vector.load %arg4[%c0_3, %c0_4] : memref<1x128xf32, #tpu.memory_space<vmem>>, vector<1x128xf32>
    %4 = vector.broadcast %3 : vector<1x128xf32> to vector<8x128xf32>
    %5 = arith.addf %2, %4 : vector<8x128xf32>
    %c0_5 = arith.constant 0 : index
    %c0_6 = arith.constant 0 : index
    %6 = vector.load %arg5[%c0_5, %c0_6] : memref<8x128xf32, #tpu.memory_space<vmem>>, vector<8x128xf32>
    tpu.vector_store %arg5[%c0_5, %c0_6], %5 {strides = array<i32>} : memref<8x128xf32, #tpu.memory_space<vmem>>, vector<8x128xf32>,
    return
  }
  func.func @transform_0(%arg0: i32, %arg1: i32) -> (i32, i32) {
    %c0_i32 = arith.constant 0 : i32
    %c0_i32_0 = arith.constant 0 : i32
    return %arg0, %c0_i32 : i32, i32
  }
  func.func @transform_1(%arg0: i32, %arg1: i32) -> (i32, i32) {
    %c0_i32 = arith.constant 0 : i32
    %c0_i32_0 = arith.constant 0 : i32
    return %c0_i32, %arg1 : i32, i32
  }
  func.func @transform_2(%arg0: i32, %arg1: i32) -> (i32, i32) {
    %c0_i32 = arith.constant 0 : i32
    %c0_i32_0 = arith.constant 0 : i32
    return %c0_i32, %arg1 : i32, i32
  }
  func.func @transform_3(%arg0: i32, %arg1: i32) -> (i32, i32) {
    %c0_i32 = arith.constant 0 : i32
    return %arg0, %arg1 : i32, i32
  }
}

</mosaic_0001>

<bundles_post_ra>
// kernel: _lambda_.23
= control target key start
LH: loop header
LB: loop body
LE: loop exit
PB: predicated region body
PF: predicated region fallthrough
CT: control target
= control target key end

     0   :  { %s345_s6 = smov 0   ;;  %s347_s7 = smov 0   ;;  %s393_s0 = inlined_call_operand.vmem [shape: bf16[2,64,8], index: 0, kind: input, shape index: {}]   ;;  %s394_s1 = inlined_call_operand.vmem [shape: f32[2,1,8], index: 1, kind: output, shape index: {}]  }
   0x1   :  { %s349_s8 = smov 0  }
   0x2 LB: > { %s23_s9 = sadd.s32 1, %s328_s7  ;;  %p260_p0 = scmp.ge.s32.totalorder %s332_s8, 1  ;;  %s332_s8 = sphi %s349_s8, %s11_s8   ;;  %s328_s7 = sphi %s347_s7, %s396_s7   ;;  %s324_s6 = sphi %s345_s6, %s395_s6  }
   0x3   : > { %p25_p1 = scmp.ge.s32.totalorder %s23_s9, 2  ;;  %p106_p2 = scmp.lt.s32.totalorder %s332_s8, 3 }
   0x5   : > { %s398_s9 = smov (%p25_p1, %s23_s9), 0  ;;  %p107_p3 = pnand %p260_p0, %p106_p2 }
   0x6   : > { %p129_p4 = scmp.lt.s32.totalorder (!%p107_p3), %s324_s6, 1 }
   0x7   : > { %110 = sbr.rel (%p107_p3) target bundleno = 58 (0x3a), region = 24 }
   0xc   : > { %vm145_vm0 = vcmask 57344   ;;  %v334_v0 = vmov 0.0   ;;  %s400_s6 = smov (!%p129_p4, %s324_s6), 1  ;;  %vm164_vm1 = vcmask 64512  }
   0xd   : > { %146 = vst.msk [vmem:[#allocation2] sm:$0x1] %vm145_vm0, %v334_v0  ;;  %s265_s10 = sshll.u32 %s400_s6, 5  ;;  %s140_s16 = scalar_lea.vmem %s394_s1, %s400_s6 }
   0xe   : > { %s136_s13 = scalar_lea.vmem %s393_s0, %s265_s10 }
   0xf   : > { %v267_v1 = vld [vmem:[%s136_s13] sm:$0xff]   ;;  %v282_v2 = vld [vmem:[%s136_s13 + $0x8] sm:$0xff]   ;;  %v283_v3 = vld [vmem:[%s136_s13 + $0x10] sm:$0xff]  }
  0x10   : > { %v268_v4 = vunpack.c.l.bf16 %v267_v1  ;;  %v269_v5 = vunpack.c.h.bf16 %v267_v1  ;;  %v272_v6 = vunpack.c.l.bf16 %v282_v2  ;;  %v273_v7 = vunpack.c.h.bf16 %v282_v2  ;;  %v284_v12 = vld [vmem:[%s136_s13 + $0x18] sm:$0xff]  }
  0x11   : > { %v276_v8 = vunpack.c.l.bf16 %v283_v3  ;;  %v277_v14 = vunpack.c.h.bf16 %v283_v3  ;;  %v280_v17 = vunpack.c.l.bf16 %v284_v12  ;;  %v281_v20 = vunpack.c.h.bf16 %v284_v12 }
  0x12   : > { %v165_v9 = vsel %vm164_vm1, %v268_v4, 0.0  ;;  %v166_v10 = vsel %vm164_vm1, %v269_v5, 0.0  ;;  %v168_v11 = vsel %vm164_vm1, %v272_v6, 0.0  ;;  %v170_v15 = vsel %vm164_vm1, %v273_v7, 0.0 }
  0x13   : > { %v167_v13 = vadd.f32 %v166_v10, %v165_v9  ;;  %v172_v18 = vsel %vm164_vm1, %v276_v8, 0.0  ;;  %v174_v21 = vsel %vm164_vm1, %v277_v14, 0.0  ;;  %v176_v23 = vsel %vm164_vm1, %v280_v17, 0.0 }
  0x14   : > { %v178_v25 = vsel %vm164_vm1, %v281_v20, 0.0  ;;  %v147_v33 = vld [vmem:[#allocation2] sm:$0x1] }
  0x15   : > { %v169_v16 = vadd.f32 %v168_v11, %v167_v13 }
  0x17   : > { %v171_v19 = vadd.f32 %v170_v15, %v169_v16 }
  0x19   : > { %v173_v22 = vadd.f32 %v172_v18, %v171_v19 }
  0x1b   : > { %v175_v24 = vadd.f32 %v174_v21, %v173_v22 }
  0x1d   : > { %v177_v26 = vadd.f32 %v176_v23, %v175_v24 }
  0x1f   : > { %v179_v27 = vadd.f32 %v178_v25, %v177_v26 }
  0x21   : > { %v180_v28 = vrot.slane %v179_v27, 4 }
  0x23   : > { %v181_v29 = vadd.f32 %v180_v28, %v179_v27 }
  0x25   : > { %v182_v30 = vrot.slane %v181_v29, 2 }
  0x27   : > { %v183_v31 = vadd.f32 %v182_v30, %v181_v29 }
  0x29   : > { %v184_v32 = vrot.slane %v183_v31, 1 }
  0x2b   : > { %v185_v34 = vadd.f32 %v184_v32, %v183_v31 }
  0x2d   : > { %v186_v35 = vadd.f32 %v185_v34, %v147_v33 }
  0x2f   : > { %188 = vst.msk [vmem:[#allocation2] sm:$0x1] %vm145_vm0, %v186_v35 }
  0x36   : > { %v192_v36 = vld [vmem:[#allocation2] sm:$0x1] }
  0x37   : > { %v193_v37 = vmul.f32 0.015625, %v192_v36 }
  0x39   : > { %194 = vst.msk [vmem:[%s140_s16] sm:$0x1] %vm145_vm0, %v193_v37 }
  0x3a PF: > { %s11_s8 = sadd.s32 1, %s332_s8   ;;  %s395_s6 = smov %s328_s7 }
  0x3b   : > { %p8_p5 = scmp.ge.s32.totalorder %s11_s8, 4   ;;  %s396_s7 = smov %s398_s9 }
  0x3d   :  { %10 = sbr.rel (!%p8_p5) target bundleno = 2 (0x2), region = 62 }

// kernel: _lambda_.21
= control target key start
LH: loop header
LB: loop body
LE: loop exit
PB: predicated region body
PF: predicated region fallthrough
CT: control target
= control target key end

     0   :  { %vm118_vm0 = vcmask 1044480   ;;  %vm119_vm1 = vcmask 1045504   ;;  %v609_v1 = vmov 65535   ;;  %vm93_vm2 = vcmask 220160   ;;  %s777_s1 = inlined_call_operand.vmem [shape: bf16[27,128], index: 1, kind: input, shape index: {}]   ;;  %s778_s0 = inlined_call_operand.vmem [shape: bf16[128,27], index: 0, kind: input, shape index: {}]   ;;  %s779_s2 = inlined_call_operand.vmem [shape: f32[1,128], index: 2, kind: input, shape index: {}]   ;;  %s780_s3 = inlined_call_operand.vmem [shape: bf16[128,128], index: 3, kind: output, shape index: {}]  }
   0x1   :  { %v535_v0 = vld [vmem:[%s777_s1 + $0x8] sm:$0x3f]   ;;  %v120_v2 = vsel %vm118_vm0, 4294967295, %v609_v1  ;;  %v537_v4 = vld [vmem:[%s778_s0] sm:$0xff]   ;;  %v541_v10 = vld [vmem:[%s778_s0 + $0x10] sm:$0xff]  }
   0x2   :  { %v121_v3 = vsel %vm119_vm1, %v120_v2, 0  ;;  %v536_v6 = vld [vmem:[%s777_s1] sm:$0xff]   ;;  %514 = vmatprep.mubr.msk.bf16.mxu0 %vm93_vm2, %v537_v4  ;;  %v539_v8 = vld [vmem:[%s778_s0 + $0x8] sm:$0xff]   ;;  %v542_v11 = vld [vmem:[%s778_s0 + $0x30] sm:$0xff]  }
   0x3   :  { %v123_v5 = vand.u32 %v535_v0, %v121_v3  ;;  %v538_v7 = vld [vmem:[%s778_s0 + $0x20] sm:$0xff]   ;;  %v540_v9 = vld [vmem:[%s778_s0 + $0x28] sm:$0xff]   ;;  %v543_v12 = vld [vmem:[%s778_s0 + $0x18] sm:$0xff]  }
   0x4   :  { %522 = vmatprep.mubr.msk.bf16.mxu1 %vm93_vm2, %v538_v7  ;;  %v544_v13 = vld [vmem:[%s778_s0 + $0x38] sm:$0xff]   ;;  %v671_v14 = vld [vmem:[%s779_s2] ss:$0 sm:$0xff] }
   0x5   :  { %510 = vmatprep.subr.bf16.mxu0 %v123_v5  ;;  %530 = vmatprep.subr.bf16.mxu1 %v123_v5 }
   0x6   :  { %511 = vmatpush3.bf16.msra.mxu0 %v123_v5  ;;  %532 = vmatpush3.bf16.msra.mxu1 %v123_v5 }
   0x7   :  { %512 = vmatprep.subr.bf16.mxu0 %v536_v6  ;;  %531 = vmatprep.subr.bf16.mxu1 %v536_v6 }
   0xa   :  { %513 = vmatpush3.bf16.msra.mxu0 %v536_v6  ;;  %533 = vmatpush3.bf16.msra.mxu1 %v536_v6 }
   0xd   :  { %515 = vmatmul.mubr.msk.bf16.vlgmr.msra.gmra.mxu0 %vm93_vm2, %v539_v8  ;;  %523 = vmatmul.mubr.msk.bf16.vlgmr.msra.gmra.mxu1 %vm93_vm2, %v540_v9 }
   0xe   :  { %518 = vmatprep.mubr.msk.bf16.mxu0 %vm93_vm2, %v541_v10  ;;  %526 = vmatprep.mubr.msk.bf16.mxu1 %vm93_vm2, %v542_v11 }
  0x15   :  { %519 = vmatmul.mubr.msk.bf16.gmra.mxu0 %vm93_vm2, %v543_v12  ;;  %527 = vmatmul.mubr.msk.bf16.gmra.mxu1 %vm93_vm2, %v544_v13 }
  0xcd   :  { %v516_v15 = vpop.f32.mrf.mxu0  ;;  %v524_v16 = vpop.f32.mrf.mxu1 }
  0xce   :  { %v674_v17 = vadd.f32 %v516_v15, %v671_v14  ;;  %v677_v18 = vadd.f32 %v524_v16, %v671_v14 }
  0xcf   :  { %v159_v19 = vpop.f32.mrf.mxu0  ;;  %v191_v20 = vpop.f32.mrf.mxu1 }
  0xd0   :  { %v224_v21 = vsub.f32 0.0, %v674_v17  ;;  %v232_v22 = vsub.f32 0.0, %v677_v18  ;;  %v682_v23 = vadd.f32 %v671_v14, %v159_v19  ;;  %v685_v24 = vadd.f32 %v671_v14, %v191_v20 }
  0xd1   :  { %v517_v25 = vpop.f32.mrf.mxu0  ;;  %v525_v26 = vpop.f32.mrf.mxu1 }
  0xd2   :  { %v242_v27 = vmul.f32 1.442695, %v224_v21  ;;  %v258_v28 = vmul.f32 1.442695, %v232_v22  ;;  %v222_v29 = vsub.f32 0.0, %v682_v23  ;;  %v230_v30 = vsub.f32 0.0, %v685_v24 }
  0xd3   :  { %v690_v31 = vadd.f32 %v517_v25, %v671_v14  ;;  %v693_v32 = vadd.f32 %v525_v26, %v671_v14  ;;  %v162_v33 = vpop.f32.mrf.mxu0  ;;  %v194_v34 = vpop.f32.mrf.mxu1 }
  0xd4   :  { %545 = vpow2.f32 %v242_v27  ;;  %v238_v35 = vmul.f32 1.442695, %v222_v29  ;;  %v254_v36 = vmul.f32 1.442695, %v230_v30  ;;  %v696_v37 = vadd.f32 %v671_v14, %v162_v33 }
  0xd5   :  { %547 = vpow2.f32 %v258_v28  ;;  %v225_v38 = vsub.f32 0.0, %v690_v31  ;;  %v233_v39 = vsub.f32 0.0, %v693_v32  ;;  %v701_v40 = vadd.f32 %v671_v14, %v194_v34  ;;  %v520_v41 = vpop.f32.mrf.mxu0  ;;  %v528_v42 = vpop.f32.mrf.mxu1 }
  0xd6   :  { %549 = vpow2.f32 %v238_v35  ;;  %v223_v43 = vsub.f32 0.0, %v696_v37  ;;  %v705_v44 = vadd.f32 %v520_v41, %v671_v14  ;;  %v708_v45 = vadd.f32 %v528_v42, %v671_v14 }
  0xd7   :  { %551 = vpow2.f32 %v254_v36  ;;  %v244_v46 = vmul.f32 1.442695, %v225_v38  ;;  %v260_v47 = vmul.f32 1.442695, %v233_v39  ;;  %v231_v48 = vsub.f32 0.0, %v701_v40  ;;  %v175_v49 = vpop.f32.mrf.mxu0  ;;  %v207_v50 = vpop.f32.mrf.mxu1 }
  0xd8   :  { %v240_v51 = vmul.f32 1.442695, %v223_v43  ;;  %v228_v52 = vsub.f32 0.0, %v705_v44  ;;  %v236_v53 = vsub.f32 0.0, %v708_v45  ;;  %v714_v54 = vadd.f32 %v671_v14, %v175_v49 }
  0xd9   :  { %553 = vpow2.f32 %v244_v46  ;;  %v256_v55 = vmul.f32 1.442695, %v231_v48  ;;  %v717_v56 = vadd.f32 %v671_v14, %v207_v50  ;;  %v521_v57 = vpop.f32.mrf.mxu0  ;;  %v529_v58 = vpop.f32.mrf.mxu1 }
  0xda   :  { %555 = vpow2.f32 %v260_v47  ;;  %v250_v59 = vmul.f32 1.442695, %v228_v52  ;;  %v266_v60 = vmul.f32 1.442695, %v236_v53  ;;  %v226_v61 = vsub.f32 0.0, %v714_v54 }
  0xdb   :  { %557 = vpow2.f32 %v240_v51  ;;  %v234_v62 = vsub.f32 0.0, %v717_v56  ;;  %v722_v63 = vadd.f32 %v521_v57, %v671_v14  ;;  %v725_v0 = vadd.f32 %v529_v58, %v671_v14  ;;  %v178_v1 = vpop.f32.mrf.mxu0  ;;  %v210_v2 = vpop.f32.mrf.mxu1 }
  0xdc   :  { %559 = vpow2.f32 %v256_v55  ;;  %v246_v3 = vmul.f32 1.442695, %v226_v61  ;;  %v728_v4 = vadd.f32 %v671_v14, %v178_v1  ;;  %v731_v5 = vadd.f32 %v671_v14, %v210_v2 }
  0xdd   :  { %561 = vpow2.f32 %v250_v59  ;;  %v262_v6 = vmul.f32 1.442695, %v234_v62  ;;  %v229_v7 = vsub.f32 0.0, %v722_v63  ;;  %v237_v8 = vsub.f32 0.0, %v725_v0 }
  0xde   :  { %563 = vpow2.f32 %v266_v60  ;;  %v227_v9 = vsub.f32 0.0, %v728_v4  ;;  %v235_v13 = vsub.f32 0.0, %v731_v5 }
  0xdf   :  { %565 = vpow2.f32 %v246_v3  ;;  %v252_v10 = vmul.f32 1.442695, %v229_v7  ;;  %v268_v11 = vmul.f32 1.442695, %v237_v8 }
  0xe0   :  { %567 = vpow2.f32 %v262_v6  ;;  %v248_v12 = vmul.f32 1.442695, %v227_v9  ;;  %v264_v25 = vmul.f32 1.442695, %v235_v13 }
  0xe1   :  { %v546_v15 = vpop.eup %545  ;;  %569 = vpow2.f32 %v252_v10 }
  0xe2   :  { %v548_v14 = vpop.eup %547  ;;  %v272_v16 = vadd.f32 1.0, %v546_v15  ;;  %571 = vpow2.f32 %v268_v11 }
  0xe3   :  { %v550_v19 = vpop.eup %549  ;;  %v280_v20 = vadd.f32 1.0, %v548_v14  ;;  %573 = vpow2.f32 %v248_v12 }
  0xe4   :  { %v552_v21 = vpop.eup %551  ;;  %575 = vrcp.f32 %v272_v16  ;;  %v270_v22 = vadd.f32 1.0, %v550_v19 }
  0xe5   :  { %577 = vrcp.f32 %v280_v20  ;;  %v278_v26 = vadd.f32 1.0, %v552_v21 }
  0xe6   :  { %v554_v27 = vpop.eup %553  ;;  %579 = vrcp.f32 %v270_v22 }
  0xe7   :  { %v556_v28 = vpop.eup %555  ;;  %581 = vrcp.f32 %v278_v26  ;;  %v273_v29 = vadd.f32 1.0, %v554_v27 }
  0xe8   :  { %v558_v30 = vpop.eup %557  ;;  %v281_v33 = vadd.f32 1.0, %v556_v28  ;;  %583 = vpow2.f32 %v264_v25 }
  0xe9   :  { %v560_v34 = vpop.eup %559  ;;  %585 = vrcp.f32 %v273_v29  ;;  %v271_v35 = vadd.f32 1.0, %v558_v30 }
  0xea   :  { %v562_v36 = vpop.eup %561  ;;  %587 = vrcp.f32 %v281_v33  ;;  %v279_v38 = vadd.f32 1.0, %v560_v34 }
  0xeb   :  { %v564_v39 = vpop.eup %563  ;;  %589 = vrcp.f32 %v271_v35  ;;  %v276_v41 = vadd.f32 1.0, %v562_v36 }
  0xec   :  { %v566_v42 = vpop.eup %565  ;;  %591 = vrcp.f32 %v279_v38  ;;  %v284_v43 = vadd.f32 1.0, %v564_v39 }
  0xed   :  { %v568_v46 = vpop.eup %567  ;;  %v274_v47 = vadd.f32 1.0, %v566_v42  ;;  %593 = vrcp.f32 %v276_v41 }
  0xee   :  { %v570_v48 = vpop.eup %569  ;;  %595 = vrcp.f32 %v284_v43  ;;  %v282_v58 = vadd.f32 1.0, %v568_v46 }
  0xef   :  { %v572_v49 = vpop.eup %571  ;;  %v277_v50 = vadd.f32 1.0, %v570_v48  ;;  %597 = vrcp.f32 %v274_v47 }
  0xf0   :  { %v574_v51 = vpop.eup %573  ;;  %v285_v52 = vadd.f32 1.0, %v572_v49 }
  0xf1   :  { %v576_v53 = vpop.eup %575  ;;  %599 = vrcp.f32 %v277_v50  ;;  %v275_v55 = vadd.f32 1.0, %v574_v51 }
  0xf2   :  { %v578_v57 = vpop.eup %577  ;;  %601 = vrcp.f32 %v285_v52  ;;  %v304_v3 = vmul.f32 %v576_v53, %v674_v17 }
  0xf3   :  { %v580_v59 = vpop.eup %579  ;;  %603 = vrcp.f32 %v275_v55  ;;  %v312_v8 = vmul.f32 %v578_v57, %v677_v18 }
  0xf4   :  { %v582_v60 = vpop.eup %581  ;;  %605 = vrcp.f32 %v282_v58  ;;  %v302_v11 = vmul.f32 %v580_v59, %v682_v23 }
  0xf5   :  { %v584_v61 = vpop.eup %583  ;;  %v310_v15 = vmul.f32 %v582_v60, %v685_v24 }
  0xf6   :  { %v586_v62 = vpop.eup %585  ;;  %v283_v1 = vadd.f32 1.0, %v584_v61 }
  0xf7   :  { %v588_v2 = vpop.eup %587  ;;  %v305_v6 = vmul.f32 %v586_v62, %v690_v31 }
  0xf8   :  { %v590_v7 = vpop.eup %589  ;;  %v313_v9 = vmul.f32 %v588_v2, %v693_v32  ;;  %607 = vrcp.f32 %v283_v1 }
  0xf9   :  { %v592_v10 = vpop.eup %591  ;;  %v461_v12 = vpack.c.bf16 %v305_v6, %v304_v3  ;;  %v303_v13 = vmul.f32 %v590_v7, %v696_v37 }
  0xfa   :  { %v481_v14 = vpack.c.bf16 %v313_v9, %v312_v8  ;;  %v311_v16 = vmul.f32 %v592_v10, %v701_v40  ;;  %v594_v17 = vpop.eup %593 }
  0xfb   :  { %493 = vst [vmem:[%s780_s3 + $0x8] sm:$0xff] %v461_v12   ;;  %v456_v18 = vpack.c.bf16 %v303_v13, %v302_v11  ;;  %v596_v31 = vpop.eup %595  ;;  %v308_v40 = vmul.f32 %v594_v17, %v705_v44 }
  0xfc   :  { %497 = vst [vmem:[%s780_s3 + $0x28] sm:$0xff] %v481_v14   ;;  %v476_v23 = vpack.c.bf16 %v311_v16, %v310_v15  ;;  %v598_v32 = vpop.eup %597  ;;  %v316_v21 = vmul.f32 %v596_v31, %v708_v45 }
  0xfd   :  { %457 = vst [vmem:[%s780_s3] sm:$0xff] %v456_v18   ;;  %v306_v25 = vmul.f32 %v598_v32, %v714_v54 }
  0xfe   :  { %v600_v24 = vpop.eup %599  ;;  %496 = vst [vmem:[%s780_s3 + $0x20] sm:$0xff] %v476_v23  }
  0xff   :  { %v602_v37 = vpop.eup %601  ;;  %v309_v19 = vmul.f32 %v600_v24, %v722_v63 }
 0x100   :  { %v604_v20 = vpop.eup %603  ;;  %v317_v22 = vmul.f32 %v602_v37, %v725_v0 }
 0x101   :  { %v471_v26 = vpack.c.bf16 %v309_v19, %v308_v40  ;;  %v307_v27 = vmul.f32 %v604_v20, %v728_v4  ;;  %v606_v29 = vpop.eup %605 }
 0x102   :  { %v491_v28 = vpack.c.bf16 %v317_v22, %v316_v21  ;;  %v314_v45 = vmul.f32 %v606_v29, %v717_v56 }
 0x103   :  { %495 = vst [vmem:[%s780_s3 + $0x18] sm:$0xff] %v471_v26   ;;  %v466_v30 = vpack.c.bf16 %v307_v27, %v306_v25 }
 0x104   :  { %499 = vst [vmem:[%s780_s3 + $0x38] sm:$0xff] %v491_v28  }
 0x105   :  { %v608_v44 = vpop.eup %607  ;;  %494 = vst [vmem:[%s780_s3 + $0x10] sm:$0xff] %v466_v30  }
 0x106   :  { %v315_v54 = vmul.f32 %v608_v44, %v731_v5 }
 0x108   :  { %v486_v63 = vpack.c.bf16 %v315_v54, %v314_v45 }
 0x10a   :  { %498 = vst [vmem:[%s780_s3 + $0x30] sm:$0xff] %v486_v63  }

// kernel: _lambda_.22
= control target key start
LH: loop header
LB: loop body
LE: loop exit
PB: predicated region body
PF: predicated region fallthrough
CT: control target
= control target key end

     0   :  { %s1310_s12 = smov 0   ;;  %s1312_s13 = smov 0   ;;  %s1912_s0 = inlined_call_operand.vmem [shape: bf16[2,10,10,8], index: 0, kind: input, shape index: {}]   ;;  %s1913_s1 = inlined_call_operand.vmem [shape: bf16[9,8], index: 1, kind: input, shape index: {}]   ;;  %s1914_s2 = inlined_call_operand.vmem [shape: f32[1,8], index: 2, kind: input, shape index: {}]   ;;  %s1915_s3 = inlined_call_operand.vmem [shape: bf16[2,8,8,8], index: 3, kind: output, shape index: {}]  }
   0x1   :  { %s1314_s14 = smov 0  }
   0x2 LB: > { %s25_s15 = sadd.s32 1, %s1284_s13  ;;  %p1147_p0 = scmp.ge.s32.totalorder %s1288_s14, 1  ;;  %s1288_s14 = sphi %s1314_s14, %s13_s14   ;;  %s1284_s13 = sphi %s1312_s13, %s1917_s13   ;;  %s1280_s12 = sphi %s1310_s12, %s1916_s12  }
   0x3   : > { %p27_p1 = scmp.ge.s32.totalorder %s25_s15, 2  ;;  %p151_p2 = scmp.lt.s32.totalorder %s1288_s14, 3 }
   0x5   : > { %s1919_s15 = smov (%p27_p1, %s25_s15), 0  ;;  %p152_p3 = pnand %p1147_p0, %p151_p2 }
   0x6   : > { %p179_p4 = scmp.lt.s32.totalorder (!%p152_p3), %s1280_s12, 1 }
   0x7   : > { %155 = sbr.rel (%p152_p3) target bundleno = 182 (0xb6), region = 32 }
   0xc   : > { %v206_v0 = vld [vmem:[%s1913_s1] sm:$0x1]  ;;  %v210_v1 = vlaneseq  ;;  %v354_v2 = vld [vmem:[%s1913_s1] sm:$0x2]  ;;  %v506_v5 = vld [vmem:[%s1913_s1] sm:$0x4] }
   0xd   : > { %v208_v3 = vpack.i.b16 %v206_v0, %v206_v0  ;;  %v246_v4 = vshrl.u32 %v206_v0, 16  ;;  %v725_v6 = vld [vmem:[%s1913_s1] sm:$0x8]  ;;  %s1921_s12 = smov (!%p179_p4, %s1280_s12), 1  ;;  %v356_v8 = vpack.i.b16 %v354_v2, %v354_v2  ;;  %v467_v9 = vshrl.u32 %v354_v2, 16 }
   0xe   : > { %v211_v7 = vshrl.u32 %v210_v1, 7  ;;  %v614_v10 = vshrl.u32 %v506_v5, 16  ;;  %v508_v12 = vpack.i.b16 %v506_v5, %v506_v5  ;;  %v727_v13 = vpack.i.b16 %v725_v6, %v725_v6  ;;  %s1209_s24 = smul.u32 80, %s1921_s12  ;;  %s1208_s5 = sshll.u32 %s1921_s12, 5 }
   0xf   : > { %v247_v11 = vpack.i.b16 %v246_v4, %v246_v4  ;;  %v765_v14 = vshrl.u32 %v725_v6, 16  ;;  %v468_v17 = vpack.i.b16 %v467_v9, %v467_v9  ;;  %vm305_vm0 = vcmask 1046528   ;;  %s192_s8 = scalar_lea.vmem %s1915_s3, %s1208_s5 }
  0x10   : > { %v1343_v15 = vsub.s32 0, %v211_v7  ;;  %v360_v16 = vsub.s32 1, %v211_v7  ;;  %v512_v18 = vsub.s32 2, %v211_v7  ;;  %v615_v19 = vpack.i.b16 %v614_v10, %v614_v10  ;;  %s1348_s27 = scalar_lea.vmem %s1912_s0, %s1209_s24 }
  0x11   : > { %v731_v20 = vsub.s32 3, %v211_v7  ;;  %v766_v21 = vpack.i.b16 %v765_v14, %v765_v14  ;;  %v198_v26 = vld [vmem:[%s1348_s27] sm:$0xf]  ;;  %v199_v27 = vld [vmem:[%s1348_s27 + $0x8] sm:$0xf]  ;;  %vm414_vm1 = vcmask 1045504  }
  0x12   : > { %v213_v22 = vrot.slane %v208_v3, %v1343_v15  ;;  %v252_v23 = vrot.slane %v247_v11, %v1343_v15  ;;  %v361_v24 = vrot.slane %v356_v8, %v360_v16  ;;  %v1352_v25 = vrot.slane %v468_v17, %v360_v16  ;;  %v200_v28 = vld [vmem:[%s1348_s27 + $0x10] sm:$0xf]  ;;  %v201_v33 = vld [vmem:[%s1348_s27 + $0x18] sm:$0xf]  ;;  %v202_v34 = vld [vmem:[%s1348_s27 + $0x20] sm:$0xf] }
  0x13   : > { %v1357_v29 = vrot.slane %v508_v12, %v512_v18  ;;  %v1359_v30 = vrot.slane %v615_v19, %v512_v18  ;;  %v1361_v31 = vrot.slane %v727_v13, %v731_v20  ;;  %v1363_v32 = vrot.slane %v766_v21, %v731_v20  ;;  %v203_v35 = vld [vmem:[%s1348_s27 + $0x28] sm:$0xf]  ;;  %v204_v40 = vld [vmem:[%s1348_s27 + $0x30] sm:$0xf]  ;;  %v205_v41 = vld [vmem:[%s1348_s27 + $0x38] sm:$0xf] }
  0x14   : > { %v214_v36 = vmul.bf16 %v213_v22, %v198_v26  ;;  %v215_v37 = vmul.bf16 %v213_v22, %v199_v27  ;;  %v216_v38 = vmul.bf16 %v213_v22, %v200_v28  ;;  %v1151_v39 = vcombine.low %v252_v23, %v252_v23  ;;  %v1371_v45 = vld [vmem:[%s1348_s27 + $0x4] sm:$0x1]  ;;  %v1380_v51 = vld [vmem:[%s1348_s27 + $0xc] sm:$0x1]  ;;  %v1383_v52 = vld [vmem:[%s1348_s27 + $0x14] sm:$0x1] }
  0x15   : > { %v217_v42 = vmul.bf16 %v213_v22, %v201_v33  ;;  %v218_v43 = vmul.bf16 %v213_v22, %v202_v34  ;;  %v219_v44 = vmul.bf16 %v213_v22, %v203_v35  ;;  %v1373_v46 = vcombine.low %v361_v24, %v361_v24  ;;  %v1394_v57 = vld [vmem:[%s1348_s27 + $0x1c] sm:$0x1]  ;;  %v1397_v58 = vld [vmem:[%s1348_s27 + $0x24] sm:$0x1]  ;;  %v1404_v61 = vld [vmem:[%s1348_s27 + $0x2c] sm:$0x1] }
  0x16   : > { %v220_v47 = vmul.bf16 %v213_v22, %v204_v40  ;;  %v221_v48 = vmul.bf16 %v213_v22, %v205_v41  ;;  %v1375_v49 = vunpack.c.l.bf16 %v214_v36  ;;  %v1377_v50 = vunpack.c.l.bf16 %v215_v37  ;;  %v1407_v62 = vld [vmem:[%s1348_s27 + $0x34] sm:$0x1]  ;;  %v1411_v1 = vld [vmem:[%s1348_s27 + $0x3c] sm:$0x1] }
  0x17   : > { %v1385_v53 = vunpack.c.l.bf16 %v216_v38  ;;  %v1387_v54 = vunpack.c.l.bf16 %v217_v42  ;;  %v1389_v55 = vunpack.c.l.bf16 %v218_v43  ;;  %v1391_v56 = vunpack.c.l.bf16 %v219_v44 }
  0x18   : > { %v1399_v59 = vunpack.c.l.bf16 %v220_v47  ;;  %v1401_v60 = vunpack.c.l.bf16 %v221_v48  ;;  %v257_v63 = vmul.bf16 %v1151_v39, %v198_v26  ;;  %v258_v0 = vmul.bf16 %v1151_v39, %v1371_v45 }
  0x19   : > { %v259_v2 = vmul.bf16 %v1151_v39, %v199_v27  ;;  %v260_v3 = vmul.bf16 %v1151_v39, %v1380_v51  ;;  %v261_v4 = vmul.bf16 %v1151_v39, %v200_v28  ;;  %v262_v5 = vmul.bf16 %v1151_v39, %v1383_v52 }
  0x1a   : > { %v263_v6 = vmul.bf16 %v1151_v39, %v201_v33  ;;  %v264_v7 = vmul.bf16 %v1151_v39, %v1394_v57  ;;  %v265_v8 = vmul.bf16 %v1151_v39, %v202_v34  ;;  %v266_v9 = vmul.bf16 %v1151_v39, %v1397_v58 }
  0x1b   : > { %v267_v10 = vmul.bf16 %v1151_v39, %v203_v35  ;;  %v268_v11 = vmul.bf16 %v1151_v39, %v1404_v61  ;;  %v269_v12 = vmul.bf16 %v1151_v39, %v204_v40  ;;  %v270_v13 = vmul.bf16 %v1151_v39, %v1407_v62 }
  0x1c   : > { %v271_v14 = vmul.bf16 %v1151_v39, %v205_v41  ;;  %v272_v16 = vmul.bf16 %v1151_v39, %v1411_v1  ;;  %v273_v17 = vunpack.c.l.bf16 %v257_v63  ;;  %v274_v18 = vunpack.c.l.bf16 %v258_v0 }
  0x1d   : > { %v275_v19 = vunpack.c.l.bf16 %v259_v2  ;;  %v276_v20 = vunpack.c.l.bf16 %v260_v3  ;;  %v277_v21 = vunpack.c.l.bf16 %v261_v4  ;;  %v278_v22 = vunpack.c.l.bf16 %v262_v5 }
  0x1e   : > { %v279_v23 = vunpack.c.l.bf16 %v263_v6  ;;  %v280_v24 = vunpack.c.l.bf16 %v264_v7  ;;  %v281_v26 = vunpack.c.l.bf16 %v265_v8  ;;  %v282_v27 = vunpack.c.l.bf16 %v266_v9 }
  0x1f   : > { %v283_v28 = vunpack.c.l.bf16 %v267_v10  ;;  %v284_v33 = vunpack.c.l.bf16 %v268_v11  ;;  %v285_v34 = vunpack.c.l.bf16 %v269_v12  ;;  %v286_v35 = vunpack.c.l.bf16 %v270_v13  ;;  %v346_v13 = vld [vmem:[%s1348_s27] sm:$0xe] }
  0x20   : > { %v287_v36 = vunpack.c.l.bf16 %v271_v14  ;;  %v288_v37 = vunpack.c.l.bf16 %v272_v16  ;;  %v306_v38 = vrot.slane %v273_v17, 1  ;;  %v307_v40 = vrot.slane %v274_v18, 1 }
  0x21   : > { %v309_v41 = vrot.slane %v275_v19, 1  ;;  %v310_v39 = vrot.slane %v276_v20, 1  ;;  %v312_v42 = vrot.slane %v277_v21, 1  ;;  %v313_v43 = vrot.slane %v278_v22, 1  ;;  %v347_v19 = vld [vmem:[%s1348_s27 + $0x8] sm:$0xe] }
  0x22   : > { %v308_v44 = vsel %vm305_vm0, %v306_v38, %v307_v40  ;;  %v315_v47 = vrot.slane %v279_v23, 1  ;;  %v316_v48 = vrot.slane %v280_v24, 1  ;;  %v318_v63 = vrot.slane %v281_v26, 1  ;;  %v348_v20 = vld [vmem:[%s1348_s27 + $0x10] sm:$0xe] }
  0x23   : > { %v311_v0 = vsel %vm305_vm0, %v309_v41, %v310_v39  ;;  %v314_v2 = vsel %vm305_vm0, %v312_v42, %v313_v43  ;;  %v319_v3 = vrot.slane %v282_v27, 1  ;;  %v321_v4 = vrot.slane %v283_v28, 1  ;;  %v349_v24 = vld [vmem:[%s1348_s27 + $0x18] sm:$0xe]  ;;  %v351_v27 = vld [vmem:[%s1348_s27 + $0x28] sm:$0xe] }
  0x24   : > { %v317_v5 = vsel %vm305_vm0, %v315_v47, %v316_v48  ;;  %v322_v6 = vrot.slane %v284_v33, 1  ;;  %v324_v7 = vrot.slane %v285_v34, 1  ;;  %v325_v8 = vrot.slane %v286_v35, 1  ;;  %v352_v28 = vld [vmem:[%s1348_s27 + $0x30] sm:$0xe] }
  0x25   : > { %v320_v9 = vsel %vm305_vm0, %v318_v63, %v319_v3  ;;  %v327_v10 = vrot.slane %v287_v36, 1  ;;  %v328_v11 = vrot.slane %v288_v37, 1  ;;  %v1426_v12 = vadd.f32 %v308_v44, %v1375_v49  ;;  %v353_v33 = vld [vmem:[%s1348_s27 + $0x38] sm:$0xe] }
  0x26   : > { %v323_v14 = vsel %vm305_vm0, %v321_v4, %v322_v6  ;;  %v326_v16 = vsel %vm305_vm0, %v324_v7, %v325_v8  ;;  %v1432_v17 = vadd.f32 %v311_v0, %v1377_v50  ;;  %v1435_v18 = vadd.f32 %v314_v2, %v1385_v53  ;;  %v350_v50 = vld [vmem:[%s1348_s27 + $0x20] sm:$0xe] }
  0x27   : > { %v329_v21 = vsel %vm305_vm0, %v327_v10, %v328_v11  ;;  %v1441_v49 = vadd.f32 %v317_v5, %v1387_v54  ;;  %v1444_v22 = vadd.f32 %v320_v9, %v1389_v55  ;;  %v1447_v23 = vadd.f32 %v323_v14, %v1391_v56 }
  0x28   : > { %v1452_v53 = vadd.f32 %v326_v16, %v1399_v59  ;;  %v1455_v26 = vadd.f32 %v329_v21, %v1401_v60  ;;  %v366_v54 = vmul.bf16 %v1373_v46, %v346_v13  ;;  %v367_v55 = vmul.bf16 %v1373_v46, %v1371_v45 }
  0x29   : > { %v368_v56 = vmul.bf16 %v1373_v46, %v347_v19  ;;  %v369_v34 = vmul.bf16 %v1373_v46, %v1380_v51  ;;  %v370_v35 = vmul.bf16 %v1373_v46, %v348_v20  ;;  %v371_v59 = vmul.bf16 %v1373_v46, %v1383_v52 }
  0x2a   : > { %v372_v60 = vmul.bf16 %v1373_v46, %v349_v24  ;;  %v373_v36 = vmul.bf16 %v1373_v46, %v1394_v57  ;;  %v374_v37 = vmul.bf16 %v1373_v46, %v350_v50  ;;  %v375_v45 = vmul.bf16 %v1373_v46, %v1397_v58 }
  0x2b   : > { %v376_v38 = vmul.bf16 %v1373_v46, %v351_v27  ;;  %v377_v51 = vmul.bf16 %v1373_v46, %v1404_v61  ;;  %v378_v40 = vmul.bf16 %v1373_v46, %v352_v28  ;;  %v379_v52 = vmul.bf16 %v1373_v46, %v1407_v62 }
  0x2c   : > { %v380_v41 = vmul.bf16 %v1373_v46, %v353_v33  ;;  %v381_v57 = vmul.bf16 %v1373_v46, %v1411_v1  ;;  %v382_v39 = vunpack.c.l.bf16 %v366_v54  ;;  %v383_v42 = vunpack.c.l.bf16 %v367_v55  ;;  %v1489_v55 = vld [vmem:[%s1348_s27 + $0x8] sm:$0xf] }
  0x2d   : > { %v384_v43 = vunpack.c.l.bf16 %v368_v56  ;;  %v385_v44 = vunpack.c.l.bf16 %v369_v34  ;;  %v386_v58 = vunpack.c.l.bf16 %v370_v35  ;;  %v387_v47 = vunpack.c.l.bf16 %v371_v59  ;;  %v1494_v59 = vld [vmem:[%s1348_s27 + $0x10] sm:$0xf] }
  0x2e   : > { %v388_v48 = vunpack.c.l.bf16 %v372_v60  ;;  %v389_v63 = vunpack.c.l.bf16 %v373_v36  ;;  %v390_v0 = vunpack.c.l.bf16 %v374_v37  ;;  %v391_v61 = vunpack.c.l.bf16 %v375_v45  ;;  %v1497_v60 = vld [vmem:[%s1348_s27 + $0x18] sm:$0xf] }
  0x2f   : > { %v392_v2 = vunpack.c.l.bf16 %v376_v38  ;;  %v393_v3 = vunpack.c.l.bf16 %v377_v51  ;;  %v394_v4 = vunpack.c.l.bf16 %v378_v40  ;;  %v395_v5 = vunpack.c.l.bf16 %v379_v52  ;;  %v1504_v51 = vld [vmem:[%s1348_s27 + $0x20] sm:$0xf]  ;;  %v1507_v40 = vld [vmem:[%s1348_s27 + $0x28] sm:$0xf]  ;;  %v1510_v52 = vld [vmem:[%s1348_s27 + $0x30] sm:$0xf] }
  0x30   : > { %v396_v62 = vunpack.c.l.bf16 %v380_v41  ;;  %v397_v6 = vunpack.c.l.bf16 %v381_v57  ;;  %v415_v7 = vrot.slane %v382_v39, 2  ;;  %v416_v8 = vrot.slane %v383_v42, 2  ;;  %v1517_v42 = vld [vmem:[%s1348_s27 + $0x38] sm:$0xf] }
  0x31   : > { %v418_v9 = vrot.slane %v384_v43, 2  ;;  %v419_v46 = vrot.slane %v385_v44, 2  ;;  %v421_v1 = vrot.slane %v386_v58, 2  ;;  %v422_v10 = vrot.slane %v387_v47, 2  ;;  %v1520_v43 = vld [vmem:[%s1348_s27 + $0x40] sm:$0xf] }
  0x32   : > { %v417_v11 = vsel %vm414_vm1, %v415_v7, %v416_v8  ;;  %v424_v13 = vrot.slane %v388_v48, 2  ;;  %v425_v14 = vrot.slane %v389_v63, 2  ;;  %v427_v16 = vrot.slane %v390_v0, 2  ;;  %v1551_v8 = vld [vmem:[%s1348_s27 + $0x20] sm:$0xf] }
  0x33   : > { %v420_v19 = vsel %vm414_vm1, %v418_v9, %v419_v46  ;;  %v423_v20 = vsel %vm414_vm1, %v421_v1, %v422_v10  ;;  %v428_v21 = vrot.slane %v391_v61, 2  ;;  %v430_v24 = vrot.slane %v392_v2, 2  ;;  %v1554_v9 = vld [vmem:[%s1348_s27 + $0x28] sm:$0xf] }
  0x34   : > { %v426_v50 = vsel %vm414_vm1, %v424_v13, %v425_v14  ;;  %v431_v27 = vrot.slane %v393_v3, 2  ;;  %v433_v28 = vrot.slane %v394_v4, 2  ;;  %v434_v54 = vrot.slane %v395_v5, 2  ;;  %v1541_v4 = vld [vmem:[%s1348_s27 + $0x10] sm:$0xf] }
  0x35   : > { %v429_v33 = vsel %vm414_vm1, %v427_v16, %v428_v21  ;;  %v436_v56 = vrot.slane %v396_v62, 2  ;;  %v437_v34 = vrot.slane %v397_v6, 2  ;;  %v447_v35 = vadd.f32 %v417_v11, %v1426_v12  ;;  %v1565_v13 = vld [vmem:[%s1348_s27 + $0xc] sm:$0x1]  ;;  %v1568_v14 = vld [vmem:[%s1348_s27 + $0x14] sm:$0x1] }
  0x36   : > { %v432_v36 = vsel %vm414_vm1, %v430_v24, %v431_v27  ;;  %v435_v37 = vsel %vm414_vm1, %v433_v28, %v434_v54  ;;  %v448_v45 = vadd.f32 %v420_v19, %v1432_v17  ;;  %v449_v38 = vadd.f32 %v423_v20, %v1435_v18  ;;  %v1575_v20 = vld [vmem:[%s1348_s27 + $0x1c] sm:$0x1]  ;;  %v1578_v21 = vld [vmem:[%s1348_s27 + $0x24] sm:$0x1]  ;;  %v1587_v27 = vld [vmem:[%s1348_s27 + $0x2c] sm:$0x1] }
  0x37   : > { %v438_v12 = vsel %vm414_vm1, %v436_v56, %v437_v34  ;;  %v450_v41 = vadd.f32 %v426_v50, %v1441_v49  ;;  %v451_v57 = vadd.f32 %v429_v33, %v1444_v22  ;;  %v452_v39 = vadd.f32 %v432_v36, %v1447_v23  ;;  %v1590_v28 = vld [vmem:[%s1348_s27 + $0x34] sm:$0x1]  ;;  %v1601_v34 = vld [vmem:[%s1348_s27 + $0x3c] sm:$0x1] }
  0x38   : > { %v453_v17 = vadd.f32 %v435_v37, %v1452_v53  ;;  %v454_v18 = vadd.f32 %v438_v12, %v1455_v26  ;;  %v474_v44 = vmul.bf16 %v1489_v55, %v1352_v25  ;;  %v475_v58 = vmul.bf16 %v1494_v59, %v1352_v25 }
  0x39   : > { %v476_v49 = vmul.bf16 %v1497_v60, %v1352_v25  ;;  %v477_v22 = vmul.bf16 %v1504_v51, %v1352_v25  ;;  %v478_v23 = vmul.bf16 %v1507_v40, %v1352_v25  ;;  %v479_v53 = vmul.bf16 %v1510_v52, %v1352_v25 }
  0x3a   : > { %v480_v26 = vmul.bf16 %v1517_v42, %v1352_v25  ;;  %v481_v47 = vmul.bf16 %v1520_v43, %v1352_v25  ;;  %v482_v48 = vunpack.c.l.bf16 %v474_v44  ;;  %v483_v63 = vunpack.c.l.bf16 %v475_v58  ;;  %v1548_v25 = vld [vmem:[%s1348_s27 + $0x18] sm:$0xf] }
  0x3b   : > { %v484_v0 = vunpack.c.l.bf16 %v476_v49  ;;  %v485_v61 = vunpack.c.l.bf16 %v477_v22  ;;  %v486_v2 = vunpack.c.l.bf16 %v478_v23  ;;  %v487_v3 = vunpack.c.l.bf16 %v479_v53 }
  0x3c   : > { %v488_v5 = vunpack.c.l.bf16 %v480_v26  ;;  %v489_v62 = vunpack.c.l.bf16 %v481_v47  ;;  %v1543_v6 = vadd.f32 %v482_v48, %v447_v35  ;;  %v1545_v7 = vadd.f32 %v483_v63, %v448_v45 }
  0x3d   : > { %v1556_v46 = vadd.f32 %v484_v0, %v449_v38  ;;  %v1558_v1 = vadd.f32 %v485_v61, %v450_v41  ;;  %v1560_v10 = vadd.f32 %v486_v2, %v451_v57  ;;  %v1562_v11 = vadd.f32 %v487_v3, %v452_v39 }
  0x3e   : > { %v1570_v16 = vadd.f32 %v488_v5, %v453_v17  ;;  %v1572_v19 = vadd.f32 %v489_v62, %v454_v18  ;;  %v1169_v24 = vcombine.low %v1357_v29, %v1357_v29  ;;  %v1584_v50 = vcombine.low %v1359_v30, %v1359_v30  ;;  %v1604_v30 = vld [vmem:[%s1348_s27 + $0x44] sm:$0x1] }
  0x3f   : > { %v733_v54 = vmul.bf16 %v1541_v4, %v1361_v31  ;;  %v734_v33 = vmul.bf16 %v1548_v25, %v1361_v31  ;;  %v735_v56 = vmul.bf16 %v1551_v8, %v1361_v31  ;;  %v736_v29 = vmul.bf16 %v1554_v9, %v1361_v31 }
  0x40   : > { %v518_v35 = vmul.bf16 %v1169_v24, %v1489_v55  ;;  %v519_v36 = vmul.bf16 %v1169_v24, %v1565_v13  ;;  %v520_v37 = vmul.bf16 %v1169_v24, %v1494_v59  ;;  %v521_v45 = vmul.bf16 %v1169_v24, %v1568_v14 }
  0x41   : > { %v522_v38 = vmul.bf16 %v1169_v24, %v1497_v60  ;;  %v523_v12 = vmul.bf16 %v1169_v24, %v1575_v20  ;;  %v524_v41 = vmul.bf16 %v1169_v24, %v1504_v51  ;;  %v525_v57 = vmul.bf16 %v1169_v24, %v1578_v21 }
  0x42   : > { %v526_v39 = vmul.bf16 %v1169_v24, %v1507_v40  ;;  %v527_v17 = vmul.bf16 %v1169_v24, %v1587_v27  ;;  %v528_v55 = vmul.bf16 %v1169_v24, %v1510_v52  ;;  %v529_v18 = vmul.bf16 %v1169_v24, %v1590_v28 }
  0x43   : > { %v530_v59 = vmul.bf16 %v1169_v24, %v1517_v42  ;;  %v531_v44 = vmul.bf16 %v1169_v24, %v1601_v34  ;;  %v532_v60 = vmul.bf16 %v1169_v24, %v1520_v43  ;;  %v533_v58 = vmul.bf16 %v1169_v24, %v1604_v30 }
  0x44   : > { %v534_v49 = vunpack.c.l.bf16 %v518_v35  ;;  %v535_v51 = vunpack.c.l.bf16 %v519_v36  ;;  %v536_v22 = vunpack.c.l.bf16 %v520_v37  ;;  %v537_v23 = vunpack.c.l.bf16 %v521_v45 }
  0x45   : > { %v538_v53 = vunpack.c.l.bf16 %v522_v38  ;;  %v539_v40 = vunpack.c.l.bf16 %v523_v12  ;;  %v540_v26 = vunpack.c.l.bf16 %v524_v41  ;;  %v541_v47 = vunpack.c.l.bf16 %v525_v57 }
  0x46   : > { %v542_v48 = vunpack.c.l.bf16 %v526_v39  ;;  %v543_v52 = vunpack.c.l.bf16 %v527_v17  ;;  %v544_v63 = vunpack.c.l.bf16 %v528_v55  ;;  %v545_v0 = vunpack.c.l.bf16 %v529_v18 }
  0x47   : > { %v546_v61 = vunpack.c.l.bf16 %v530_v59  ;;  %v547_v42 = vunpack.c.l.bf16 %v531_v44  ;;  %v548_v2 = vunpack.c.l.bf16 %v532_v60  ;;  %v549_v3 = vunpack.c.l.bf16 %v533_v58 }
  0x48   : > { %v566_v5 = vrot.slane %v534_v49, 1  ;;  %v567_v43 = vrot.slane %v535_v51, 1  ;;  %v569_v62 = vrot.slane %v536_v22, 1  ;;  %v570_v24 = vrot.slane %v537_v23, 1  ;;  %v1170_v49 = vld [vmem:[%s1348_s27 + $0x8] sm:$0xe] }
  0x49   : > { %v572_v35 = vrot.slane %v538_v53, 1  ;;  %v573_v36 = vrot.slane %v539_v40, 1  ;;  %v575_v37 = vrot.slane %v540_v26, 1  ;;  %v576_v45 = vrot.slane %v541_v47, 1  ;;  %v1171_v40 = vld [vmem:[%s1348_s27 + $0x10] sm:$0xe] }
  0x4a   : > { %v568_v38 = vsel %vm305_vm0, %v566_v5, %v567_v43  ;;  %v571_v12 = vsel %vm305_vm0, %v569_v62, %v570_v24  ;;  %v578_v41 = vrot.slane %v542_v48, 1  ;;  %v579_v57 = vrot.slane %v543_v52, 1 }
  0x4b   : > { %v574_v39 = vsel %vm305_vm0, %v572_v35, %v573_v36  ;;  %v577_v17 = vsel %vm305_vm0, %v575_v37, %v576_v45  ;;  %v581_v55 = vrot.slane %v544_v63, 1  ;;  %v582_v18 = vrot.slane %v545_v0, 1  ;;  %v1172_v63 = vld [vmem:[%s1348_s27 + $0x18] sm:$0xe] }
  0x4c   : > { %v580_v59 = vsel %vm305_vm0, %v578_v41, %v579_v57  ;;  %v584_v44 = vrot.slane %v546_v61, 1  ;;  %v585_v60 = vrot.slane %v547_v42, 1  ;;  %v587_v58 = vrot.slane %v548_v2, 1  ;;  %v1174_v42 = vld [vmem:[%s1348_s27 + $0x28] sm:$0xe] }
  0x4d   : > { %v583_v51 = vsel %vm305_vm0, %v581_v55, %v582_v18  ;;  %v588_v22 = vrot.slane %v549_v3, 1  ;;  %v1630_v23 = vadd.f32 %v568_v38, %v1543_v6  ;;  %v1633_v53 = vadd.f32 %v571_v12, %v1545_v7  ;;  %v1173_v6 = vld [vmem:[%s1348_s27 + $0x20] sm:$0xe]  ;;  %v1175_v2 = vld [vmem:[%s1348_s27 + $0x30] sm:$0xe] }
  0x4e   : > { %v586_v26 = vsel %vm305_vm0, %v584_v44, %v585_v60  ;;  %v1638_v47 = vadd.f32 %v574_v39, %v1556_v46  ;;  %v1641_v48 = vadd.f32 %v577_v17, %v1558_v1  ;;  %v1644_v52 = vadd.f32 %v580_v59, %v1560_v10  ;;  %v1176_v3 = vld [vmem:[%s1348_s27 + $0x38] sm:$0xe]  ;;  %v1177_v10 = vld [vmem:[%s1348_s27 + $0x40] sm:$0xe] }
  0x4f   : > { %v589_v0 = vsel %vm305_vm0, %v587_v58, %v588_v22  ;;  %v1650_v7 = vadd.f32 %v583_v51, %v1562_v11  ;;  %v1653_v61 = vadd.f32 %v586_v26, %v1570_v16  ;;  %v625_v46 = vmul.bf16 %v1584_v50, %v1170_v49 }
  0x50   : > { %v1659_v1 = vadd.f32 %v589_v0, %v1572_v19  ;;  %v626_v5 = vmul.bf16 %v1584_v50, %v1565_v13  ;;  %v627_v43 = vmul.bf16 %v1584_v50, %v1171_v40  ;;  %v628_v11 = vmul.bf16 %v1584_v50, %v1568_v14 }
  0x51   : > { %v629_v16 = vmul.bf16 %v1584_v50, %v1172_v63  ;;  %v630_v62 = vmul.bf16 %v1584_v50, %v1575_v20  ;;  %v631_v24 = vmul.bf16 %v1584_v50, %v1173_v6  ;;  %v632_v19 = vmul.bf16 %v1584_v50, %v1578_v21 }
  0x52   : > { %v633_v35 = vmul.bf16 %v1584_v50, %v1174_v42  ;;  %v634_v13 = vmul.bf16 %v1584_v50, %v1587_v27  ;;  %v635_v36 = vmul.bf16 %v1584_v50, %v1175_v2  ;;  %v636_v14 = vmul.bf16 %v1584_v50, %v1590_v28 }
  0x53   : > { %v637_v37 = vmul.bf16 %v1584_v50, %v1176_v3  ;;  %v638_v20 = vmul.bf16 %v1584_v50, %v1601_v34  ;;  %v639_v45 = vmul.bf16 %v1584_v50, %v1177_v10  ;;  %v640_v21 = vmul.bf16 %v1584_v50, %v1604_v30 }
  0x54   : > { %v641_v38 = vunpack.c.l.bf16 %v625_v46  ;;  %v642_v12 = vunpack.c.l.bf16 %v626_v5  ;;  %v643_v41 = vunpack.c.l.bf16 %v627_v43  ;;  %v644_v57 = vunpack.c.l.bf16 %v628_v11  ;;  %v1691_v11 = vld [vmem:[%s1348_s27 + $0x30] sm:$0xf] }
  0x55   : > { %v645_v27 = vunpack.c.l.bf16 %v629_v16  ;;  %v646_v39 = vunpack.c.l.bf16 %v630_v62  ;;  %v647_v17 = vunpack.c.l.bf16 %v631_v24  ;;  %v648_v55 = vunpack.c.l.bf16 %v632_v19 }
  0x56   : > { %v649_v18 = vunpack.c.l.bf16 %v633_v35  ;;  %v650_v28 = vunpack.c.l.bf16 %v634_v13  ;;  %v651_v59 = vunpack.c.l.bf16 %v635_v36  ;;  %v652_v44 = vunpack.c.l.bf16 %v636_v14  ;;  %v1695_v35 = vld [vmem:[%s1348_s27 + $0x38] sm:$0xf] }
  0x57   : > { %v653_v60 = vunpack.c.l.bf16 %v637_v37  ;;  %v654_v58 = vunpack.c.l.bf16 %v638_v20  ;;  %v655_v34 = vunpack.c.l.bf16 %v639_v45  ;;  %v656_v49 = vunpack.c.l.bf16 %v640_v21  ;;  %v1701_v20 = vld [vmem:[%s1348_s27 + $0x40] sm:$0xf]  ;;  %v1704_v45 = vld [vmem:[%s1348_s27 + $0x48] sm:$0xf] }
  0x58   : > { %v673_v51 = vrot.slane %v641_v38, 2  ;;  %v674_v22 = vrot.slane %v642_v12, 2  ;;  %v676_v50 = vrot.slane %v643_v41, 2  ;;  %v677_v30 = vrot.slane %v644_v57, 2 }
  0x59   : > { %v679_v40 = vrot.slane %v645_v27, 2  ;;  %v680_v26 = vrot.slane %v646_v39, 2  ;;  %v682_v63 = vrot.slane %v647_v17, 2  ;;  %v683_v6 = vrot.slane %v648_v55, 2  ;;  %v1737_v55 = vld [vmem:[%s1913_s1 + $0x4] sm:$0x1] }
  0x5a   : > { %v675_v0 = vsel %vm414_vm1, %v673_v51, %v674_v22  ;;  %v678_v42 = vsel %vm414_vm1, %v676_v50, %v677_v30  ;;  %v685_v2 = vrot.slane %v649_v18, 2  ;;  %v686_v46 = vrot.slane %v650_v28, 2 }
  0x5b   : > { %v681_v3 = vsel %vm414_vm1, %v679_v40, %v680_v26  ;;  %v684_v10 = vsel %vm414_vm1, %v682_v63, %v683_v6  ;;  %v688_v5 = vrot.slane %v651_v59, 2  ;;  %v689_v43 = vrot.slane %v652_v44, 2  ;;  %v1742_v44 = vld [vmem:[%s1348_s27 + $0x14] sm:$0x1]  ;;  %v1775_v63 = vld [vmem:[%s1348_s27 + $0x3c] sm:$0x1] }
  0x5c   : > { %v687_v16 = vsel %vm414_vm1, %v685_v2, %v686_v46  ;;  %v691_v62 = vrot.slane %v653_v60, 2  ;;  %v692_v24 = vrot.slane %v654_v58, 2  ;;  %v694_v19 = vrot.slane %v655_v34, 2  ;;  %v1756_v34 = vld [vmem:[%s1348_s27 + $0x24] sm:$0x1] }
  0x5d   : > { %v690_v13 = vsel %vm414_vm1, %v688_v5, %v689_v43  ;;  %v695_v36 = vrot.slane %v656_v49, 2  ;;  %v705_v14 = vadd.f32 %v675_v0, %v1630_v23  ;;  %v706_v37 = vadd.f32 %v678_v42, %v1633_v53  ;;  %v1759_v49 = vld [vmem:[%s1348_s27 + $0x2c] sm:$0x1]  ;;  %v1772_v26 = vld [vmem:[%s1348_s27 + $0x34] sm:$0x1] }
  0x5e   : > { %v693_v21 = vsel %vm414_vm1, %v691_v62, %v692_v24  ;;  %v707_v38 = vadd.f32 %v681_v3, %v1638_v47  ;;  %v708_v12 = vadd.f32 %v684_v10, %v1641_v48  ;;  %v709_v41 = vadd.f32 %v687_v16, %v1644_v52  ;;  %v1778_v6 = vld [vmem:[%s1348_s27 + $0x44] sm:$0x1]  ;;  %v1781_v0 = vld [vmem:[%s1348_s27 + $0x4c] sm:$0x1] }
  0x5f   : > { %v696_v57 = vsel %vm414_vm1, %v694_v19, %v695_v36  ;;  %v710_v27 = vadd.f32 %v690_v13, %v1650_v7  ;;  %v711_v23 = vadd.f32 %v693_v21, %v1653_v61  ;;  %v737_v53 = vmul.bf16 %v1691_v11, %v1361_v31 }
  0x60   : > { %v712_v39 = vadd.f32 %v696_v57, %v1659_v1  ;;  %v738_v47 = vmul.bf16 %v1695_v35, %v1361_v31  ;;  %v739_v48 = vmul.bf16 %v1701_v20, %v1361_v31  ;;  %v740_v52 = vmul.bf16 %v1704_v45, %v1361_v31 }
  0x61   : > { %v741_v7 = vunpack.c.l.bf16 %v733_v54  ;;  %v742_v61 = vunpack.c.l.bf16 %v734_v33  ;;  %v743_v1 = vunpack.c.l.bf16 %v735_v56  ;;  %v744_v17 = vunpack.c.l.bf16 %v736_v29  ;;  %v1745_v56 = vld [vmem:[%s1348_s27 + $0x1c] sm:$0x1] }
  0x62   : > { %v745_v54 = vunpack.c.l.bf16 %v737_v53  ;;  %v746_v18 = vunpack.c.l.bf16 %v738_v47  ;;  %v747_v28 = vunpack.c.l.bf16 %v739_v48  ;;  %v748_v59 = vunpack.c.l.bf16 %v740_v52 }
  0x63   : > { %v1739_v33 = vadd.f32 %v741_v7, %v705_v14  ;;  %v874_v31 = vpack.i.b16 %v1737_v55, %v1737_v55  ;;  %v1749_v29 = vadd.f32 %v742_v61, %v706_v37  ;;  %v1751_v60 = vadd.f32 %v743_v1, %v707_v38 }
  0x64   : > { %v1753_v58 = vadd.f32 %v744_v17, %v708_v12  ;;  %v1195_v51 = vcombine.low %v1363_v32, %v1363_v32  ;;  %v1763_v22 = vadd.f32 %v745_v54, %v709_v41  ;;  %v1765_v50 = vadd.f32 %v746_v18, %v710_v27 }
  0x65   : > { %v1767_v30 = vadd.f32 %v747_v28, %v711_v23  ;;  %v1769_v40 = vadd.f32 %v748_v59, %v712_v39  ;;  %v879_v28 = vrot.slane %v874_v31, %v1343_v15  ;;  %vm1043_vm2 = vcmask 60416  }
  0x66   : > { %v776_v42 = vmul.bf16 %v1195_v51, %v1541_v4  ;;  %v777_v32 = vmul.bf16 %v1195_v51, %v1742_v44  ;;  %v778_v2 = vmul.bf16 %v1195_v51, %v1548_v25  ;;  %v779_v46 = vmul.bf16 %v1195_v51, %v1745_v56 }
  0x67   : > { %v780_v3 = vmul.bf16 %v1195_v51, %v1551_v8  ;;  %v781_v10 = vmul.bf16 %v1195_v51, %v1756_v34  ;;  %v782_v5 = vmul.bf16 %v1195_v51, %v1554_v9  ;;  %v783_v43 = vmul.bf16 %v1195_v51, %v1759_v49 }
  0x68   : > { %v784_v16 = vmul.bf16 %v1195_v51, %v1691_v11  ;;  %v785_v62 = vmul.bf16 %v1195_v51, %v1772_v26  ;;  %v786_v4 = vmul.bf16 %v1195_v51, %v1695_v35  ;;  %v787_v24 = vmul.bf16 %v1195_v51, %v1775_v63 }
  0x69   : > { %v788_v25 = vmul.bf16 %v1195_v51, %v1701_v20  ;;  %v789_v19 = vmul.bf16 %v1195_v51, %v1778_v6  ;;  %v790_v8 = vmul.bf16 %v1195_v51, %v1704_v45  ;;  %v791_v13 = vmul.bf16 %v1195_v51, %v1781_v0 }
  0x6a   : > { %v792_v36 = vunpack.c.l.bf16 %v776_v42  ;;  %v793_v9 = vunpack.c.l.bf16 %v777_v32  ;;  %v794_v14 = vunpack.c.l.bf16 %v778_v2  ;;  %v795_v37 = vunpack.c.l.bf16 %v779_v46 }
  0x6b   : > { %v796_v21 = vunpack.c.l.bf16 %v780_v3  ;;  %v797_v11 = vunpack.c.l.bf16 %v781_v10  ;;  %v798_v38 = vunpack.c.l.bf16 %v782_v5  ;;  %v799_v12 = vunpack.c.l.bf16 %v783_v43 }
  0x6c   : > { %v800_v41 = vunpack.c.l.bf16 %v784_v16  ;;  %v801_v35 = vunpack.c.l.bf16 %v785_v62  ;;  %v802_v57 = vunpack.c.l.bf16 %v786_v4  ;;  %v803_v27 = vunpack.c.l.bf16 %v787_v24  ;;  %v1196_v4 = vld [vmem:[%s1348_s27 + $0x10] sm:$0xe]  ;;  %v1197_v24 = vld [vmem:[%s1348_s27 + $0x18] sm:$0xe] }
  0x6d   : > { %v804_v23 = vunpack.c.l.bf16 %v788_v25  ;;  %v805_v20 = vunpack.c.l.bf16 %v789_v19  ;;  %v806_v53 = vunpack.c.l.bf16 %v790_v8  ;;  %v807_v39 = vunpack.c.l.bf16 %v791_v13  ;;  %v1198_v13 = vld [vmem:[%s1348_s27 + $0x20] sm:$0xe] }
  0x6e   : > { %v824_v47 = vrot.slane %v792_v36, 1  ;;  %v825_v45 = vrot.slane %v793_v9, 1  ;;  %v827_v48 = vrot.slane %v794_v14, 1  ;;  %v828_v52 = vrot.slane %v795_v37, 1  ;;  %v1199_v36 = vld [vmem:[%s1348_s27 + $0x28] sm:$0xe] }
  0x6f   : > { %v830_v7 = vrot.slane %v796_v21, 1  ;;  %v831_v61 = vrot.slane %v797_v11, 1  ;;  %v833_v1 = vrot.slane %v798_v38, 1  ;;  %v834_v17 = vrot.slane %v799_v12, 1  ;;  %v1201_v21 = vld [vmem:[%s1348_s27 + $0x38] sm:$0xe] }
  0x70   : > { %v826_v55 = vsel %vm305_vm0, %v824_v47, %v825_v45  ;;  %v836_v54 = vrot.slane %v800_v41, 1  ;;  %v837_v18 = vrot.slane %v801_v35, 1  ;;  %v829_v59 = vsel %vm305_vm0, %v827_v48, %v828_v52  ;;  %v1202_v11 = vld [vmem:[%s1348_s27 + $0x40] sm:$0xe] }
  0x71   : > { %v832_v51 = vsel %vm305_vm0, %v830_v7, %v831_v61  ;;  %v839_v42 = vrot.slane %v802_v57, 1  ;;  %v840_v32 = vrot.slane %v803_v27, 1  ;;  %v835_v2 = vsel %vm305_vm0, %v833_v1, %v834_v17 }
  0x72   : > { %v842_v46 = vrot.slane %v804_v23, 1  ;;  %v843_v3 = vrot.slane %v805_v20, 1  ;;  %v845_v10 = vrot.slane %v806_v53, 1  ;;  %v838_v5 = vsel %vm305_vm0, %v836_v54, %v837_v18 }
  0x73   : > { %v841_v43 = vsel %vm305_vm0, %v839_v42, %v840_v32  ;;  %v846_v16 = vrot.slane %v807_v39, 1  ;;  %v1808_v31 = vadd.f32 %v826_v55, %v1739_v33  ;;  %v1811_v62 = vadd.f32 %v829_v59, %v1749_v29 }
  0x74   : > { %v844_v15 = vsel %vm305_vm0, %v842_v46, %v843_v3  ;;  %v1817_v19 = vadd.f32 %v832_v51, %v1751_v60  ;;  %v1820_v8 = vadd.f32 %v835_v2, %v1753_v58  ;;  %v1204_v9 = vcombine.low %v879_v28, %v879_v28  ;;  %v1200_v60 = vld [vmem:[%s1348_s27 + $0x30] sm:$0xe]  ;;  %v1203_v58 = vld [vmem:[%s1348_s27 + $0x48] sm:$0xe] }
  0x75   : > { %v847_v25 = vsel %vm305_vm0, %v845_v10, %v846_v16  ;;  %v1825_v33 = vadd.f32 %v838_v5, %v1763_v22  ;;  %v1828_v29 = vadd.f32 %v841_v43, %v1765_v50  ;;  %v1831_v14 = vadd.f32 %v844_v15, %v1767_v30 }
  0x76   : > { %v1834_v37 = vadd.f32 %v847_v25, %v1769_v40  ;;  %v884_v38 = vmul.bf16 %v1204_v9, %v1196_v4  ;;  %v885_v12 = vmul.bf16 %v1204_v9, %v1742_v44  ;;  %v886_v41 = vmul.bf16 %v1204_v9, %v1197_v24 }
  0x77   : > { %v887_v22 = vmul.bf16 %v1204_v9, %v1745_v56  ;;  %v888_v35 = vmul.bf16 %v1204_v9, %v1198_v13  ;;  %v889_v50 = vmul.bf16 %v1204_v9, %v1756_v34  ;;  %v890_v57 = vmul.bf16 %v1204_v9, %v1199_v36 }
  0x78   : > { %v891_v30 = vmul.bf16 %v1204_v9, %v1759_v49  ;;  %v892_v27 = vmul.bf16 %v1204_v9, %v1200_v60  ;;  %v893_v40 = vmul.bf16 %v1204_v9, %v1772_v26  ;;  %v894_v23 = vmul.bf16 %v1204_v9, %v1201_v21  ;;  %v1205_v60 = vld [vmem:[%s1914_s2] ss:$0 sm:$0xff] }
  0x79   : > { %v895_v20 = vmul.bf16 %v1204_v9, %v1775_v63  ;;  %v896_v53 = vmul.bf16 %v1204_v9, %v1202_v11  ;;  %v897_v39 = vmul.bf16 %v1204_v9, %v1778_v6  ;;  %v898_v47 = vmul.bf16 %v1204_v9, %v1203_v58 }
  0x7a   : > { %v899_v44 = vmul.bf16 %v1204_v9, %v1781_v0  ;;  %v900_v45 = vunpack.c.l.bf16 %v884_v38  ;;  %v901_v56 = vunpack.c.l.bf16 %v885_v12  ;;  %v902_v48 = vunpack.c.l.bf16 %v886_v41 }
  0x7b   : > { %v903_v52 = vunpack.c.l.bf16 %v887_v22  ;;  %v904_v34 = vunpack.c.l.bf16 %v888_v35  ;;  %v905_v7 = vunpack.c.l.bf16 %v889_v50  ;;  %v906_v61 = vunpack.c.l.bf16 %v890_v57 }
  0x7c   : > { %v907_v49 = vunpack.c.l.bf16 %v891_v30  ;;  %v908_v1 = vunpack.c.l.bf16 %v892_v27  ;;  %v909_v17 = vunpack.c.l.bf16 %v893_v40  ;;  %v910_v26 = vunpack.c.l.bf16 %v894_v23 }
  0x7d   : > { %v911_v55 = vunpack.c.l.bf16 %v895_v20  ;;  %v912_v54 = vunpack.c.l.bf16 %v896_v53  ;;  %v913_v63 = vunpack.c.l.bf16 %v897_v39  ;;  %v914_v18 = vunpack.c.l.bf16 %v898_v47 }
  0x7e   : > { %v915_v28 = vunpack.c.l.bf16 %v899_v44  ;;  %v932_v6 = vrot.slane %v900_v45, 2  ;;  %v933_v59 = vrot.slane %v901_v56, 2  ;;  %v935_v51 = vrot.slane %v902_v48, 2 }
  0x7f   : > { %v936_v0 = vrot.slane %v903_v52, 2  ;;  %v938_v42 = vrot.slane %v904_v34, 2  ;;  %v939_v32 = vrot.slane %v905_v7, 2  ;;  %v941_v2 = vrot.slane %v906_v61, 2 }
  0x80   : > { %v942_v46 = vrot.slane %v907_v49, 2  ;;  %v934_v3 = vsel %vm414_vm1, %v932_v6, %v933_v59  ;;  %v944_v5 = vrot.slane %v908_v1, 2  ;;  %v945_v43 = vrot.slane %v909_v17, 2 }
  0x81   : > { %v937_v10 = vsel %vm414_vm1, %v935_v51, %v936_v0  ;;  %v940_v16 = vsel %vm414_vm1, %v938_v42, %v939_v32  ;;  %v947_v4 = vrot.slane %v910_v26, 2  ;;  %v948_v24 = vrot.slane %v911_v55, 2 }
  0x82   : > { %v943_v15 = vsel %vm414_vm1, %v941_v2, %v942_v46  ;;  %v946_v25 = vsel %vm414_vm1, %v944_v5, %v945_v43  ;;  %v950_v13 = vrot.slane %v912_v54, 2  ;;  %v951_v36 = vrot.slane %v913_v63, 2 }
  0x83   : > { %v953_v9 = vrot.slane %v914_v18, 2  ;;  %v949_v21 = vsel %vm414_vm1, %v947_v4, %v948_v24  ;;  %v954_v11 = vrot.slane %v915_v28, 2  ;;  %v964_v58 = vadd.f32 %v934_v3, %v1808_v31 }
  0x84   : > { %v965_v38 = vadd.f32 %v937_v10, %v1811_v62  ;;  %v952_v12 = vsel %vm414_vm1, %v950_v13, %v951_v36  ;;  %v966_v41 = vadd.f32 %v940_v16, %v1817_v19  ;;  %v967_v22 = vadd.f32 %v943_v15, %v1820_v8 }
  0x85   : > { %v968_v35 = vadd.f32 %v946_v25, %v1825_v33  ;;  %v955_v50 = vsel %vm414_vm1, %v953_v9, %v954_v11  ;;  %v969_v57 = vadd.f32 %v949_v21, %v1828_v29  ;;  %v970_v30 = vadd.f32 %v952_v12, %v1831_v14 }
  0x86   : > { %v979_v27 = vadd.f32 %v1205_v60, %v964_v58  ;;  %v971_v40 = vadd.f32 %v955_v50, %v1834_v37  ;;  %v980_v31 = vadd.f32 %v1205_v60, %v965_v38  ;;  %v1867_v23 = vadd.f32 %v1205_v60, %v966_v41 }
  0x87   : > { %v1869_v62 = vadd.f32 %v1205_v60, %v967_v22  ;;  %v1871_v20 = vadd.f32 %v1205_v60, %v968_v35  ;;  %v1873_v19 = vadd.f32 %v1205_v60, %v969_v57  ;;  %v1875_v8 = vadd.f32 %v1205_v60, %v970_v30 }
  0x88   : > { %v987_v33 = vsub.f32 0.0, %v979_v27  ;;  %v1877_v53 = vadd.f32 %v1205_v60, %v971_v40  ;;  %v988_v29 = vsub.f32 0.0, %v980_v31  ;;  %v989_v14 = vsub.f32 0.0, %v1867_v23 }
  0x89   : > { %v990_v39 = vsub.f32 0.0, %v1869_v62  ;;  %v991_v37 = vsub.f32 0.0, %v1871_v20  ;;  %v992_v47 = vsub.f32 0.0, %v1873_v19  ;;  %v993_v44 = vsub.f32 0.0, %v1875_v8 }
  0x8a   : > { %v995_v45 = vmul.f32 1.442695, %v987_v33  ;;  %v994_v56 = vsub.f32 0.0, %v1877_v53  ;;  %v997_v48 = vmul.f32 1.442695, %v988_v29 }
  0x8b   : > { %v999_v52 = vmul.f32 1.442695, %v989_v14  ;;  %v1001_v34 = vmul.f32 1.442695, %v990_v39  ;;  %v1003_v7 = vmul.f32 1.442695, %v991_v37 }
  0x8c   : > { %1234 = vpow2.f32 %v995_v45  ;;  %v1005_v61 = vmul.f32 1.442695, %v992_v47  ;;  %v1007_v49 = vmul.f32 1.442695, %v993_v44  ;;  %v1009_v1 = vmul.f32 1.442695, %v994_v56 }
  0x8d   : > { %1236 = vpow2.f32 %v997_v48 }
  0x8e   : > { %1238 = vpow2.f32 %v999_v52 }
  0x8f   : > { %1240 = vpow2.f32 %v1001_v34 }
  0x90   : > { %1242 = vpow2.f32 %v1003_v7 }
  0x91   : > { %1244 = vpow2.f32 %v1005_v61 }
  0x92   : > { %1246 = vpow2.f32 %v1007_v49 }
  0x93   : > { %1248 = vpow2.f32 %v1009_v1 }
  0x99   : > { %v1235_v17 = vpop.eup %1234 }
  0x9a   : > { %v1237_v26 = vpop.eup %1236  ;;  %v1011_v55 = vadd.f32 1.0, %v1235_v17 }
  0x9b   : > { %v1239_v54 = vpop.eup %1238  ;;  %v1012_v63 = vadd.f32 1.0, %v1237_v26 }
  0x9c   : > { %v1241_v18 = vpop.eup %1240  ;;  %v1013_v28 = vadd.f32 1.0, %v1239_v54  ;;  %1250 = vrcp.f32 %v1011_v55 }
  0x9d   : > { %v1243_v6 = vpop.eup %1242  ;;  %v1014_v59 = vadd.f32 1.0, %v1241_v18  ;;  %1252 = vrcp.f32 %v1012_v63 }
  0x9e   : > { %v1245_v51 = vpop.eup %1244  ;;  %v1015_v0 = vadd.f32 1.0, %v1243_v6  ;;  %1254 = vrcp.f32 %v1013_v28 }
  0x9f   : > { %v1247_v42 = vpop.eup %1246  ;;  %v1016_v32 = vadd.f32 1.0, %v1245_v51  ;;  %1256 = vrcp.f32 %v1014_v59 }
  0xa0   : > { %v1249_v2 = vpop.eup %1248  ;;  %v1017_v46 = vadd.f32 1.0, %v1247_v42  ;;  %1258 = vrcp.f32 %v1015_v0 }
  0xa1   : > { %v1018_v3 = vadd.f32 1.0, %v1249_v2  ;;  %1260 = vrcp.f32 %v1016_v32 }
  0xa2   : > { %1262 = vrcp.f32 %v1017_v46 }
  0xa3   : > { %1264 = vrcp.f32 %v1018_v3 }
  0xa9   : > { %v1251_v10 = vpop.eup %1250 }
  0xaa   : > { %v1253_v5 = vpop.eup %1252  ;;  %v1027_v43 = vmul.f32 %v1251_v10, %v979_v27 }
  0xab   : > { %v1255_v16 = vpop.eup %1254  ;;  %v1028_v15 = vmul.f32 %v1253_v5, %v980_v31 }
  0xac   : > { %v1257_v4 = vpop.eup %1256  ;;  %v1029_v24 = vmul.f32 %v1255_v16, %v1867_v23  ;;  %v1035_v25 = vpack.c.bf16 %v1027_v43, %v1027_v43 }
  0xad   : > { %v1259_v13 = vpop.eup %1258  ;;  %v1030_v36 = vmul.f32 %v1257_v4, %v1869_v62  ;;  %v1036_v9 = vpack.c.bf16 %v1028_v15, %v1028_v15 }
  0xae   : > { %v1261_v60 = vpop.eup %1260  ;;  %v1031_v21 = vmul.f32 %v1259_v13, %v1871_v20  ;;  %v1037_v11 = vpack.c.bf16 %v1029_v24, %v1029_v24  ;;  %1044 = vst.msk [vmem:[%s192_s8] sm:$0xf] %vm1043_vm2, %v1035_v25 }
  0xaf   : > { %v1263_v58 = vpop.eup %1262  ;;  %v1032_v38 = vmul.f32 %v1261_v60, %v1873_v19  ;;  %v1038_v12 = vpack.c.bf16 %v1030_v36, %v1030_v36  ;;  %1045 = vst.msk [vmem:[%s192_s8 + $0x4] sm:$0xf] %vm1043_vm2, %v1036_v9 }
  0xb0   : > { %v1265_v41 = vpop.eup %1264  ;;  %v1033_v22 = vmul.f32 %v1263_v58, %v1875_v8  ;;  %v1039_v35 = vpack.c.bf16 %v1031_v21, %v1031_v21  ;;  %1046 = vst.msk [vmem:[%s192_s8 + $0x8] sm:$0xf] %vm1043_vm2, %v1037_v11 }
  0xb1   : > { %v1034_v50 = vmul.f32 %v1265_v41, %v1877_v53  ;;  %v1040_v57 = vpack.c.bf16 %v1032_v38, %v1032_v38  ;;  %1047 = vst.msk [vmem:[%s192_s8 + $0xc] sm:$0xf] %vm1043_vm2, %v1038_v12 }
  0xb2   : > { %v1041_v30 = vpack.c.bf16 %v1033_v22, %v1033_v22  ;;  %1048 = vst.msk [vmem:[%s192_s8 + $0x10] sm:$0xf] %vm1043_vm2, %v1039_v35 }
  0xb3   : > { %v1042_v27 = vpack.c.bf16 %v1034_v50, %v1034_v50  ;;  %1049 = vst.msk [vmem:[%s192_s8 + $0x14] sm:$0xf] %vm1043_vm2, %v1040_v57 }
  0xb4   : > { %1050 = vst.msk [vmem:[%s192_s8 + $0x18] sm:$0xf] %vm1043_vm2, %v1041_v30 }
  0xb5   : > { %1051 = vst.msk [vmem:[%s192_s8 + $0x1c] sm:$0xf] %vm1043_vm2, %v1042_v27 }
  0xb6 PF: > { %s13_s14 = sadd.s32 1, %s1288_s14   ;;  %s1916_s12 = smov %s1284_s13 }
  0xb7   : > { %p10_p5 = scmp.ge.s32.totalorder %s13_s14, 4   ;;  %s1917_s13 = smov %s1919_s15 }
  0xb9   :  { %12 = sbr.rel (!%p10_p5) target bundleno = 2 (0x2), region = 65 }

// kernel: _lambda_.24
= control target key start
LH: loop header
LB: loop body
LE: loop exit
PB: predicated region body
PF: predicated region fallthrough
CT: control target
= control target key end

     0   :  { %v514_v0 = vmov 0.0   ;;  %vm515_vm0 = vmmov 0   ;;  %s749_s1 = inlined_call_operand.vmem [shape: f32[128,128], index: 1, kind: input, shape index: {}]   ;;  %s750_s0 = inlined_call_operand.vmem [shape: f32[8,128], index: 0, kind: input, shape index: {}]   ;;  %s751_s3 = inlined_call_operand.vmem [shape: f32[128,128], index: 3, kind: input, shape index: {}]   ;;  %s752_s2 = inlined_call_operand.vmem [shape: f32[1,128], index: 2, kind: input, shape index: {}]   ;;  %s753_s5 = inlined_call_operand.vmem [shape: bf16[128,128], index: 5, kind: input, shape index: {}]   ;;  %s754_s4 = inlined_call_operand.vmem [shape: f32[1,128], index: 4, kind: input, shape index: {}]   ;;  %s755_s7 = inlined_call_operand.vmem [shape: f32[8,128], index: 7, kind: output, shape index: {0}]   ;;  %s756_s6 = inlined_call_operand.vmem [shape: f32[1,128], index: 6, kind: input, shape index: {}]   ;;  %s757_s8 = inlined_call_operand.vmem [shape: f32[8,128], index: 8, kind: output, shape index: {1}]  }
   0x1   :  { %406 = vmatprep.subr.mxu1 %v514_v0  ;;  %v45_v1 = vld [vmem:[%s749_s1 + $0x78] sm:$0xff]  ;;  %v44_v2 = vld [vmem:[%s749_s1 + $0x70] sm:$0xff]  ;;  %438 = vmatprep.mubr.msk.f32.mxu1 %vm515_vm0, %v514_v0  ;;  %v43_v3 = vld [vmem:[%s749_s1 + $0x68] sm:$0xff] }
   0x2   :  { %407 = vmatpush3.msra.mxu1 %v45_v1  ;;  %476 = vmatprep.subr.bf16.mxu0 %v514_v0  ;;  %v42_v4 = vld [vmem:[%s749_s1 + $0x60] sm:$0xff]  ;;  %v41_v5 = vld [vmem:[%s749_s1 + $0x58] sm:$0xff]  ;;  %v40_v6 = vld [vmem:[%s749_s1 + $0x50] sm:$0xff] }
   0x3   :  { %408 = vmatprep.subr.mxu1 %v514_v0  ;;  %492 = vmatprep.mubr.msk.bf16.mxu0 %vm515_vm0, %v514_v0  ;;  %v39_v7 = vld [vmem:[%s749_s1 + $0x48] sm:$0xff]  ;;  %v38_v8 = vld [vmem:[%s749_s1 + $0x40] sm:$0xff]  ;;  %v37_v9 = vld [vmem:[%s749_s1 + $0x38] sm:$0xff] }
   0x4   :  { %409 = vmatpush3.msra.mxu1 %v44_v2  ;;  %v36_v10 = vld [vmem:[%s749_s1 + $0x30] sm:$0xff]  ;;  %v35_v11 = vld [vmem:[%s749_s1 + $0x28] sm:$0xff]  ;;  %v34_v12 = vld [vmem:[%s749_s1 + $0x20] sm:$0xff] }
   0x5   :  { %410 = vmatprep.subr.mxu1 %v514_v0  ;;  %v33_v13 = vld [vmem:[%s749_s1 + $0x18] sm:$0xff]  ;;  %v32_v14 = vld [vmem:[%s749_s1 + $0x10] sm:$0xff]  ;;  %v31_v15 = vld [vmem:[%s749_s1 + $0x8] sm:$0xff] }
   0x6   :  { %411 = vmatpush3.msra.mxu1 %v43_v3  ;;  %v30_v16 = vld [vmem:[%s749_s1] sm:$0xff]  ;;  %v145_v18 = vld [vmem:[%s751_s3 + $0x78] sm:$0xff]  ;;  %v144_v19 = vld [vmem:[%s751_s3 + $0x70] sm:$0xff] }
   0x7   :  { %412 = vmatprep.subr.mxu1 %v514_v0  ;;  %v632_v17 = vld [vmem:[%s750_s0] sm:$0xff]  ;;  %v143_v20 = vld [vmem:[%s751_s3 + $0x68] sm:$0xff]  ;;  %v141_v22 = vld [vmem:[%s751_s3 + $0x58] sm:$0xff] }
   0x8   :  { %413 = vmatpush3.msra.mxu1 %v42_v4  ;;  %v142_v21 = vld [vmem:[%s751_s3 + $0x60] sm:$0xff]  ;;  %v140_v23 = vld [vmem:[%s751_s3 + $0x50] sm:$0xff]  ;;  %v139_v24 = vld [vmem:[%s751_s3 + $0x48] sm:$0xff] }
   0x9   :  { %414 = vmatprep.subr.mxu1 %v514_v0  ;;  %v138_v25 = vld [vmem:[%s751_s3 + $0x40] sm:$0xff]  ;;  %v137_v26 = vld [vmem:[%s751_s3 + $0x38] sm:$0xff]  ;;  %v136_v27 = vld [vmem:[%s751_s3 + $0x30] sm:$0xff] }
   0xa   :  { %415 = vmatpush3.msra.mxu1 %v41_v5  ;;  %v135_v28 = vld [vmem:[%s751_s3 + $0x28] sm:$0xff]  ;;  %v134_v29 = vld [vmem:[%s751_s3 + $0x20] sm:$0xff]  ;;  %v133_v30 = vld [vmem:[%s751_s3 + $0x18] sm:$0xff] }
   0xb   :  { %416 = vmatprep.subr.mxu1 %v514_v0  ;;  %v132_v31 = vld [vmem:[%s751_s3 + $0x10] sm:$0xff]  ;;  %v131_v32 = vld [vmem:[%s751_s3 + $0x8] sm:$0xff]  ;;  %v130_v33 = vld [vmem:[%s751_s3] sm:$0xff] }
   0xc   :  { %417 = vmatpush3.msra.mxu1 %v40_v6  ;;  %v352_v34 = vld [vmem:[%s752_s2] ss:$0 sm:$0xff]  ;;  %v498_v44 = vld [vmem:[%s753_s5 + $0x38] sm:$0xff]   ;;  %v499_v45 = vld [vmem:[%s753_s5 + $0x30] sm:$0xff]  }
   0xd   :  { %418 = vmatprep.subr.mxu1 %v514_v0  ;;  %477 = vmatpush3.bf16.msra.mxu0 %v498_v44  ;;  %v500_v46 = vld [vmem:[%s753_s5 + $0x28] sm:$0xff]   ;;  %v501_v47 = vld [vmem:[%s753_s5 + $0x20] sm:$0xff]   ;;  %v502_v48 = vld [vmem:[%s753_s5 + $0x18] sm:$0xff]  }
   0xe   :  { %419 = vmatpush3.msra.mxu1 %v39_v7  ;;  %478 = vmatprep.subr.bf16.mxu0 %v514_v0  ;;  %v503_v49 = vld [vmem:[%s753_s5 + $0x10] sm:$0xff]   ;;  %v504_v50 = vld [vmem:[%s753_s5 + $0x8] sm:$0xff]   ;;  %v505_v51 = vld [vmem:[%s753_s5] sm:$0xff]  }
   0xf   :  { %420 = vmatprep.subr.mxu1 %v514_v0  ;;  %v353_v52 = vld [vmem:[%s754_s4] ss:$0 sm:$0xff] }
  0x10   :  { %421 = vmatpush3.msra.mxu1 %v38_v8  ;;  %v354_v63 = vld [vmem:[%s756_s6] ss:$0 sm:$0xff] }
  0x11   :  { %422 = vmatprep.subr.mxu1 %v514_v0  ;;  %479 = vmatpush3.bf16.msra.mxu0 %v499_v45 }
  0x12   :  { %423 = vmatpush3.msra.mxu1 %v37_v9  ;;  %480 = vmatprep.subr.bf16.mxu0 %v514_v0 }
  0x13   :  { %424 = vmatprep.subr.mxu1 %v514_v0 }
  0x14   :  { %425 = vmatpush3.msra.mxu1 %v36_v10 }
  0x15   :  { %426 = vmatprep.subr.mxu1 %v514_v0  ;;  %481 = vmatpush3.bf16.msra.mxu0 %v500_v46 }
  0x16   :  { %427 = vmatpush3.msra.mxu1 %v35_v11  ;;  %482 = vmatprep.subr.bf16.mxu0 %v514_v0 }
  0x17   :  { %428 = vmatprep.subr.mxu1 %v514_v0 }
  0x18   :  { %429 = vmatpush3.msra.mxu1 %v34_v12 }
  0x19   :  { %430 = vmatprep.subr.mxu1 %v514_v0  ;;  %483 = vmatpush3.bf16.msra.mxu0 %v501_v47 }
  0x1a   :  { %431 = vmatpush3.msra.mxu1 %v33_v13  ;;  %484 = vmatprep.subr.bf16.mxu0 %v514_v0 }
  0x1b   :  { %432 = vmatprep.subr.mxu1 %v514_v0 }
  0x1c   :  { %433 = vmatpush3.msra.mxu1 %v32_v14 }
  0x1d   :  { %434 = vmatprep.subr.mxu1 %v514_v0  ;;  %485 = vmatpush3.bf16.msra.mxu0 %v502_v48 }
  0x1e   :  { %435 = vmatpush3.msra.mxu1 %v31_v15  ;;  %486 = vmatprep.subr.bf16.mxu0 %v514_v0 }
  0x1f   :  { %436 = vmatprep.subr.mxu1 %v514_v0 }
  0x20   :  { %437 = vmatpush3.msra.mxu1 %v30_v16 }
  0x21   :  { %439 = vmatmul.mubr.f32.vlgmr.msra.gmra.mxu1 %v632_v17  ;;  %441 = vmatprep.subr.mxu1 %v514_v0 }
  0x22   :  { %473 = vmatprep.mubr.msk.f32.mxu1 %vm515_vm0, %v514_v0  ;;  %442 = vmatpush3.msra.mxu1 %v145_v18 }
  0x23   :  { %443 = vmatprep.subr.mxu1 %v514_v0  ;;  %487 = vmatpush3.bf16.msra.mxu0 %v503_v49 }
  0x24   :  { %444 = vmatpush3.msra.mxu1 %v144_v19  ;;  %488 = vmatprep.subr.bf16.mxu0 %v514_v0 }
  0x25   :  { %445 = vmatprep.subr.mxu1 %v514_v0 }
  0x26   :  { %446 = vmatpush3.msra.mxu1 %v143_v20 }
  0x27   :  { %447 = vmatprep.subr.mxu1 %v514_v0  ;;  %489 = vmatpush3.bf16.msra.mxu0 %v504_v50 }
  0x28   :  { %448 = vmatpush3.msra.mxu1 %v142_v21  ;;  %490 = vmatprep.subr.bf16.mxu0 %v514_v0 }
  0x29   :  { %449 = vmatprep.subr.mxu1 %v514_v0 }
  0x2a   :  { %450 = vmatpush3.msra.mxu1 %v141_v22 }
  0x2b   :  { %451 = vmatprep.subr.mxu1 %v514_v0  ;;  %491 = vmatpush3.bf16.msra.mxu0 %v505_v51 }
  0x2c   :  { %452 = vmatpush3.msra.mxu1 %v140_v23 }
  0x2d   :  { %453 = vmatprep.subr.mxu1 %v514_v0 }
  0x2e   :  { %454 = vmatpush3.msra.mxu1 %v139_v24 }
  0x2f   :  { %455 = vmatprep.subr.mxu1 %v514_v0 }
  0x30   :  { %456 = vmatpush3.msra.mxu1 %v138_v25 }
  0x31   :  { %457 = vmatprep.subr.mxu1 %v514_v0 }
  0x32   :  { %458 = vmatpush3.msra.mxu1 %v137_v26 }
  0x33   :  { %459 = vmatprep.subr.mxu1 %v514_v0 }
  0x34   :  { %460 = vmatpush3.msra.mxu1 %v136_v27 }
  0x35   :  { %461 = vmatprep.subr.mxu1 %v514_v0 }
  0x36   :  { %462 = vmatpush3.msra.mxu1 %v135_v28 }
  0x37   :  { %463 = vmatprep.subr.mxu1 %v514_v0 }
  0x38   :  { %464 = vmatpush3.msra.mxu1 %v134_v29 }
  0x39   :  { %465 = vmatprep.subr.mxu1 %v514_v0 }
  0x3a   :  { %466 = vmatpush3.msra.mxu1 %v133_v30 }
  0x3b   :  { %467 = vmatprep.subr.mxu1 %v514_v0 }
  0x3c   :  { %468 = vmatpush3.msra.mxu1 %v132_v31 }
  0x3d   :  { %469 = vmatprep.subr.mxu1 %v514_v0 }
  0x3e   :  { %470 = vmatpush3.msra.mxu1 %v131_v32 }
  0x3f   :  { %471 = vmatprep.subr.mxu1 %v514_v0 }
  0x40   :  { %472 = vmatpush3.msra.mxu1 %v130_v33 }
  0xe1   :  { %v119_v35 = vpop.f32.mrf.mxu1 }
  0xe2   :  { %v120_v36 = vadd.f32 %v352_v34, %v119_v35 }
  0xe3   :  { %v440_v37 = vpop.f32.mrf.mxu1 }
  0xe4   :  { %v123_v38 = vsub.f32 0.0, %v120_v36 }
  0xe6   :  { %v124_v39 = vmul.f32 1.442695, %v123_v38 }
  0xe8   :  { %506 = vpow2.f32 %v124_v39 }
  0xf5   :  { %v507_v40 = vpop.eup %506 }
  0xf6   :  { %v126_v41 = vadd.f32 1.0, %v507_v40 }
  0xf8   :  { %508 = vrcp.f32 %v126_v41 }
 0x105   :  { %v509_v42 = vpop.eup %508 }
 0x106   :  { %v129_v43 = vmul.f32 %v509_v42, %v120_v36 }
 0x108   :  { %474 = vmatmul.mubr.f32.vlgmr.msra.gmra.mxu1 %v129_v43 }
 0x1c8   :  { %v219_v53 = vpop.f32.mrf.mxu1 }
 0x1c9   :  { %v220_v54 = vadd.f32 %v353_v52, %v219_v53 }
 0x1ca   :  { %v475_v55 = vpop.f32.mrf.mxu1 }
 0x1cb   :  { %v223_v56 = vsub.f32 0.0, %v220_v54 }
 0x1cd   :  { %v224_v57 = vmul.f32 1.442695, %v223_v56 }
 0x1cf   :  { %510 = vpow2.f32 %v224_v57 }
 0x1dc   :  { %v511_v58 = vpop.eup %510 }
 0x1dd   :  { %v226_v59 = vadd.f32 1.0, %v511_v58 }
 0x1df   :  { %512 = vrcp.f32 %v226_v59 }
 0x1ec   :  { %v513_v60 = vpop.eup %512 }
 0x1ed   :  { %229 = vst [vmem:[%s755_s7] sm:$0xff] %v513_v60  ;;  %v230_v61 = vmul.f32 %v513_v60, %v632_v17 }
 0x1ef   :  { %v231_v62 = vpack.c.bf16 %v230_v61, %v230_v61 }
 0x1f1   :  { %493 = vmatmul.mubr.bf16.vlgmr.msra.gmra.mxu0 %v231_v62 }
 0x2b1   :  { %v337_v0 = vpop.f32.mrf.mxu0 }
 0x2b2   :  { %v338_v1 = vadd.f32 %v354_v63, %v337_v0 }
 0x2b3   :  { %v494_v2 = vpop.f32.mrf.mxu0 }
 0x2b4   :  { %343 = vst [vmem:[%s757_s8] sm:$0xff] %v338_v1 }
 0x2b5   :  { %v340_v3 = vpop.f32.mrf.mxu0 }
 0x2b7   :  { %v495_v4 = vpop.f32.mrf.mxu0 }

// kernel: _lambda_.25
= control target key start
LH: loop header
LB: loop body
LE: loop exit
PB: predicated region body
PF: predicated region fallthrough
CT: control target
= control target key end

     0   :  { %s770_s15 = smov 0   ;;  %s772_s16 = smov 0   ;;  %s824_s0 = inlined_call_operand.vmem [shape: f32[2,1,8], index: 0, kind: input, shape index: {}]   ;;  %s825_s1 = inlined_call_operand.vmem [shape: bf16[2,64,8], index: 1, kind: input, shape index: {}]   ;;  %s826_s2 = inlined_call_operand.vmem [shape: bf16[8,128], index: 2, kind: input, shape index: {}]   ;;  %s827_s3 = inlined_call_operand.vmem [shape: f32[1,128], index: 3, kind: input, shape index: {}]   ;;  %s828_s4 = inlined_call_operand.vmem [shape: bf16[2,64,128], index: 4, kind: output, shape index: {}]  }
   0x1   :  { %s774_s17 = smov 0  }
   0x2 LB: > { %s33_s18 = sadd.s32 1, %s739_s16  ;;  %p605_p0 = scmp.ge.s32.totalorder %s743_s17, 1  ;;  %s743_s17 = sphi %s774_s17, %s14_s17   ;;  %s739_s16 = sphi %s772_s16, %s830_s16   ;;  %s735_s15 = sphi %s770_s15, %s829_s15  }
   0x3   : > { %p35_p1 = scmp.ge.s32.totalorder %s33_s18, 2  ;;  %p217_p2 = scmp.lt.s32.totalorder %s743_s17, 3 }
   0x5   : > { %s832_s18 = smov (%p35_p1, %s33_s18), 0  ;;  %p218_p3 = pnand %p605_p0, %p217_p2 }
   0x6   : > { %p264_p4 = scmp.lt.s32.totalorder (!%p218_p3), %s735_s15, 1 }
   0x7   : > { %221 = sbr.rel (%p218_p3) target bundleno = 227 (0xe3), region = 36 }
   0xc   : > { %v333_v0 = vld [vmem:[%s826_s2] sm:$0xf]  ;;  %vm354_vm0 = vcmask 1043456   ;;  %s834_s15 = smov (!%p264_p4, %s735_s15), 1  ;;  %vm341_vm1 = vcmask 64512  }
   0xd   : > { %695 = vmatprep.subr.msk.bf16.mxu0 %vm354_vm0, %v333_v0  ;;  %696 = vmatprep.subr.msk.bf16.mxu1 %vm354_vm0, %v333_v0  ;;  %v356_v1 = vsel %vm354_vm0, %v333_v0, 0  ;;  %s266_s23 = scalar_lea.vmem %s824_s0, %s834_s15  ;;  %s626_s24 = sshll.u32 %s834_s15, 5  ;;  %v611_v29 = vld [vmem:[%s827_s3] ss:$0 sm:$0xff] }
   0xe   : > { %684 = vmatpush3.bf16.msra.mxu0 %v356_v1  ;;  %694 = vmatpush3.bf16.msra.mxu1 %v356_v1  ;;  %s275_s27 = scalar_lea.vmem %s825_s1, %s626_s24  ;;  %v610_v2 = vld [vmem:[%s266_s23] ss:$0 sm:$0xff]  ;;  %s295_s6 = scalar_lea.vmem %s828_s4, %s626_s24 }
   0xf   : > { %v637_v3 = vld [vmem:[%s275_s27] sm:$0xff]   ;;  %v673_v4 = vld [vmem:[%s275_s27 + $0x10] sm:$0xff]   ;;  %v672_v5 = vld [vmem:[%s275_s27 + $0x8] sm:$0xff]  }
  0x10   : > { %v638_v6 = vunpack.c.l.bf16 %v637_v3  ;;  %v639_v7 = vunpack.c.h.bf16 %v637_v3  ;;  %v646_v8 = vunpack.c.l.bf16 %v673_v4  ;;  %v647_v9 = vunpack.c.h.bf16 %v673_v4  ;;  %v674_v10 = vld [vmem:[%s275_s27 + $0x18] sm:$0xff]  }
  0x11   : > { %v642_v11 = vunpack.c.l.bf16 %v672_v5  ;;  %v643_v12 = vunpack.c.h.bf16 %v672_v5  ;;  %v650_v13 = vunpack.c.l.bf16 %v674_v10  ;;  %v651_v14 = vunpack.c.h.bf16 %v674_v10 }
  0x12   : > { %v321_v15 = vmul.f32 %v638_v6, %v610_v2  ;;  %v322_v16 = vmul.f32 %v639_v7, %v610_v2  ;;  %v325_v17 = vmul.f32 %v646_v8, %v610_v2  ;;  %v326_v18 = vmul.f32 %v647_v9, %v610_v2 }
  0x13   : > { %v323_v19 = vmul.f32 %v642_v11, %v610_v2  ;;  %v324_v20 = vmul.f32 %v643_v12, %v610_v2  ;;  %v327_v21 = vmul.f32 %v650_v13, %v610_v2  ;;  %v328_v22 = vmul.f32 %v651_v14, %v610_v2 }
  0x14   : > { %v329_v23 = vpack.c.bf16 %v322_v16, %v321_v15  ;;  %v331_v24 = vpack.c.bf16 %v326_v18, %v325_v17 }
  0x15   : > { %v330_v25 = vpack.c.bf16 %v324_v20, %v323_v19  ;;  %v332_v26 = vpack.c.bf16 %v328_v22, %v327_v21 }
  0x16   : > { %685 = vmatprep.mubr.msk.bf16.mxu0 %vm341_vm1, %v329_v23  ;;  %689 = vmatprep.mubr.msk.bf16.mxu1 %vm341_vm1, %v331_v24 }
  0x17   : > { %686 = vmatmul.mubr.msk.bf16.vlgmr.msra.gmra.mxu0 %vm341_vm1, %v330_v25  ;;  %690 = vmatmul.mubr.msk.bf16.vlgmr.msra.gmra.mxu1 %vm341_vm1, %v332_v26 }
  0xd7   : > { %v687_v27 = vpop.f32.mrf.mxu0  ;;  %v691_v28 = vpop.f32.mrf.mxu1 }
  0xd8   : > { %v401_v34 = vadd.f32 %v687_v27, %v611_v29  ;;  %v417_v35 = vadd.f32 %v691_v28, %v611_v29 }
  0xd9   : > { %v392_v30 = vpop.f32.mrf.mxu0  ;;  %v408_v31 = vpop.f32.mrf.mxu1 }
  0xda   : > { %v393_v38 = vadd.f32 %v611_v29, %v392_v30  ;;  %v409_v39 = vadd.f32 %v611_v29, %v408_v31 }
  0xdb   : > { %v688_v32 = vpop.f32.mrf.mxu0  ;;  %v692_v33 = vpop.f32.mrf.mxu1 }
  0xdc   : > { %v404_v36 = vadd.f32 %v688_v32, %v611_v29  ;;  %v420_v37 = vadd.f32 %v692_v33, %v611_v29 }
  0xdd   : > { %v395_v40 = vpop.f32.mrf.mxu0  ;;  %v411_v41 = vpop.f32.mrf.mxu1 }
  0xde   : > { %v660_v42 = vpack.c.bf16 %v404_v36, %v401_v34  ;;  %v670_v43 = vpack.c.bf16 %v420_v37, %v417_v35  ;;  %v396_v44 = vadd.f32 %v611_v29, %v395_v40  ;;  %v412_v45 = vadd.f32 %v611_v29, %v411_v41 }
  0xe0   : > { %675 = vst [vmem:[%s295_s6 + $0x8] sm:$0xff] %v660_v42   ;;  %677 = vst [vmem:[%s295_s6 + $0x18] sm:$0xff] %v670_v43   ;;  %v655_v46 = vpack.c.bf16 %v396_v44, %v393_v38  ;;  %v665_v47 = vpack.c.bf16 %v412_v45, %v409_v39 }
  0xe2   : > { %656 = vst [vmem:[%s295_s6] sm:$0xff] %v655_v46   ;;  %676 = vst [vmem:[%s295_s6 + $0x10] sm:$0xff] %v665_v47  }
  0xe3 PF: > { %s14_s17 = sadd.s32 1, %s743_s17   ;;  %s829_s15 = smov %s739_s16 }
  0xe4   : > { %p11_p5 = scmp.ge.s32.totalorder %s14_s17, 4   ;;  %s830_s16 = smov %s832_s18 }
  0xe6   :  { %13 = sbr.rel (!%p11_p5) target bundleno = 2 (0x2), region = 75 }

// kernel: _lambda_.26
= control target key start
LH: loop header
LB: loop body
LE: loop exit
PB: predicated region body
PF: predicated region fallthrough
CT: control target
= control target key end

     0   :  { %s540_s9 = smov 0   ;;  %s542_s10 = smov 0   ;;  %s600_s0 = inlined_call_operand.vmem [shape: bf16[2,64,8], index: 0, kind: input, shape index: {}]   ;;  %s601_s1 = inlined_call_operand.vmem [shape: f32[2,1,8], index: 1, kind: input, shape index: {}]   ;;  %s602_s2 = inlined_call_operand.vmem [shape: bf16[2,64,16], index: 2, kind: output, shape index: {}]  }
   0x1   :  { %s544_s11 = smov 0  }
   0x2 LB: > { %s24_s12 = sadd.s32 1, %s518_s10  ;;  %p410_p0 = scmp.ge.s32.totalorder %s522_s11, 1  ;;  %s522_s11 = sphi %s544_s11, %s12_s11   ;;  %s518_s10 = sphi %s542_s10, %s604_s10   ;;  %s514_s9 = sphi %s540_s9, %s603_s9  }
   0x3   : > { %p26_p1 = scmp.ge.s32.totalorder %s24_s12, 2  ;;  %p141_p2 = scmp.lt.s32.totalorder %s522_s11, 3 }
   0x5   : > { %s606_s12 = smov (%p26_p1, %s24_s12), 0  ;;  %p142_p3 = pnand %p410_p0, %p141_p2 }
   0x6   : > { %p175_p4 = scmp.lt.s32.totalorder (!%p142_p3), %s514_s9, 1  ;;  %s524_s20 = smov (!%p142_p3), 8  }
   0x7   : > { %145 = sbr.rel (%p142_p3) target bundleno = 148 (0x94), region = 28 }
   0xc   : > { %s608_s9 = smov (!%p175_p4, %s514_s9), 1  ;;  %vm260_vm0 = vcmask 64512   ;;  %vm301_vm1 = vcmask 125952  }
   0xd   : > { %s426_s13 = sshll.u32 %s608_s9, 5  ;;  %s186_s16 = scalar_lea.vmem %s601_s1, %s608_s9 }
   0xe   : > { %s182_s19 = scalar_lea.vmem %s600_s0, %s426_s13  ;;  %v415_v0 = vld [vmem:[%s186_s16] ss:$0 sm:$0xff]  ;;  %s195_s23 = scalar_lea.vmem %s602_s2, %s426_s13 }
   0xf   : > { %v453_v1 = vld [vmem:[%s182_s19 + $0x10] sm:$0xff]   ;;  %v437_v2 = vld [vmem:[%s182_s19] sm:$0xff]   ;;  %v454_v3 = vld [vmem:[%s182_s19 + $0x18] sm:$0xff]  }
  0x10   : > { %v446_v4 = vunpack.c.l.bf16 %v453_v1  ;;  %v447_v5 = vunpack.c.h.bf16 %v453_v1  ;;  %v438_v6 = vunpack.c.l.bf16 %v437_v2  ;;  %v439_v7 = vunpack.c.h.bf16 %v437_v2  ;;  %v452_v8 = vld [vmem:[%s182_s19 + $0x8] sm:$0xff]  }
  0x11   : > { %v450_v9 = vunpack.c.l.bf16 %v454_v3  ;;  %v451_v10 = vunpack.c.h.bf16 %v454_v3  ;;  %v442_v11 = vunpack.c.l.bf16 %v452_v8  ;;  %v443_v12 = vunpack.c.h.bf16 %v452_v8 }
  0x12   : > { %v224_v13 = vmul.f32 %v446_v4, %v415_v0  ;;  %v225_v14 = vmul.f32 %v447_v5, %v415_v0  ;;  %v220_v15 = vmul.f32 %v438_v6, %v415_v0  ;;  %v221_v16 = vmul.f32 %v439_v7, %v415_v0 }
  0x13   : > { %v226_v17 = vmul.f32 %v450_v9, %v415_v0  ;;  %v227_v18 = vmul.f32 %v451_v10, %v415_v0  ;;  %v222_v19 = vmul.f32 %v442_v11, %v415_v0  ;;  %v223_v20 = vmul.f32 %v443_v12, %v415_v0 }
  0x14   : > { %v490_v21 = vpack.i.bf16 %v225_v14, %v224_v13  ;;  %v480_v22 = vpack.i.bf16 %v221_v16, %v220_v15 }
  0x15   : > { %v495_v23 = vpack.i.bf16 %v227_v18, %v226_v17  ;;  %v485_v24 = vpack.i.bf16 %v223_v20, %v222_v19 }
  0x16   : > { %491 = vrot.lane.b32.xlu1 %v490_v21, %s524_s20  ;;  %481 = vrot.lane.b32.xlu0 %v480_v22, %s524_s20 }
  0x1a   : > { %496 = vrot.lane.b32.xlu1 %v495_v23, %s524_s20  ;;  %486 = vrot.lane.b32.xlu0 %v485_v24, %s524_s20 }
  0x88   : > { %v492_v25 = vpop.permute.xlu1 %491  ;;  %v482_v26 = vpop.permute.xlu0 %481 }
  0x89   : > { %v494_v27 = vunpack.i.h.bf16 %v492_v25  ;;  %v493_v28 = vunpack.i.l.bf16 %v492_v25  ;;  %v484_v29 = vunpack.i.h.bf16 %v482_v26  ;;  %v483_v30 = vunpack.i.l.bf16 %v482_v26 }
  0x8b   : > { %v266_v31 = vsel %vm260_vm0, %v447_v5, %v494_v27  ;;  %v265_v32 = vsel %vm260_vm0, %v446_v4, %v493_v28  ;;  %v262_v33 = vsel %vm260_vm0, %v439_v7, %v484_v29  ;;  %v261_v34 = vsel %vm260_vm0, %v438_v6, %v483_v30 }
  0x8c   : > { %v433_v35 = vpack.c.bf16 %v266_v31, %v266_v31  ;;  %v432_v36 = vpack.c.bf16 %v265_v32, %v265_v32  ;;  %v429_v37 = vpack.c.bf16 %v262_v33, %v262_v33  ;;  %v428_v38 = vpack.c.bf16 %v261_v34, %v261_v34  ;;  %v497_v39 = vpop.permute.xlu1 %496  ;;  %v487_v40 = vpop.permute.xlu0 %486 }
  0x8d   : > { %v499_v41 = vunpack.i.h.bf16 %v497_v39  ;;  %v498_v42 = vunpack.i.l.bf16 %v497_v39  ;;  %v489_v43 = vunpack.i.h.bf16 %v487_v40  ;;  %v488_v44 = vunpack.i.l.bf16 %v487_v40 }
  0x8e   : > { %307 = vst.msk [vmem:[%s195_s23 + $0x14] sm:$0xf] %vm301_vm1, %v433_v35  ;;  %306 = vst.msk [vmem:[%s195_s23 + $0x10] sm:$0xf] %vm301_vm1, %v432_v36 }
  0x8f   : > { %303 = vst.msk [vmem:[%s195_s23 + $0x4] sm:$0xf] %vm301_vm1, %v429_v37  ;;  %302 = vst.msk [vmem:[%s195_s23] sm:$0xf] %vm301_vm1, %v428_v38  ;;  %v268_v45 = vsel %vm260_vm0, %v451_v10, %v499_v41  ;;  %v267_v46 = vsel %vm260_vm0, %v450_v9, %v498_v42  ;;  %v264_v47 = vsel %vm260_vm0, %v443_v12, %v489_v43 }
  0x90   : > { %v263_v48 = vsel %vm260_vm0, %v442_v11, %v488_v44  ;;  %v435_v49 = vpack.c.bf16 %v268_v45, %v268_v45  ;;  %v434_v50 = vpack.c.bf16 %v267_v46, %v267_v46  ;;  %v431_v51 = vpack.c.bf16 %v264_v47, %v264_v47 }
  0x91   : > { %v430_v52 = vpack.c.bf16 %v263_v48, %v263_v48 }
  0x92   : > { %309 = vst.msk [vmem:[%s195_s23 + $0x1c] sm:$0xf] %vm301_vm1, %v435_v49  ;;  %308 = vst.msk [vmem:[%s195_s23 + $0x18] sm:$0xf] %vm301_vm1, %v434_v50 }
  0x93   : > { %305 = vst.msk [vmem:[%s195_s23 + $0xc] sm:$0xf] %vm301_vm1, %v431_v51  ;;  %304 = vst.msk [vmem:[%s195_s23 + $0x8] sm:$0xf] %vm301_vm1, %v430_v52 }
  0x94 PF: > { %s12_s11 = sadd.s32 1, %s522_s11   ;;  %s603_s9 = smov %s518_s10 }
  0x95   : > { %p9_p5 = scmp.ge.s32.totalorder %s12_s11, 4   ;;  %s604_s10 = smov %s606_s12 }
  0x97   :  { %11 = sbr.rel (!%p9_p5) target bundleno = 2 (0x2), region = 61 }

// kernel: _lambda_.27
= control target key start
LH: loop header
LB: loop body
LE: loop exit
PB: predicated region body
PF: predicated region fallthrough
CT: control target
= control target key end

     0   :  { %vm86_vm0 = vcmask 130048   ;;  %s751_s1 = inlined_call_operand.vmem [shape: bf16[16,128], index: 1, kind: input, shape index: {}]   ;;  %s752_s0 = inlined_call_operand.vmem [shape: bf16[128,16], index: 0, kind: input, shape index: {}]   ;;  %s753_s2 = inlined_call_operand.vmem [shape: f32[1,128], index: 2, kind: input, shape index: {}]   ;;  %s754_s3 = inlined_call_operand.vmem [shape: bf16[128,128], index: 3, kind: output, shape index: {}]  }
   0x1   :  { %v514_v0 = vld [vmem:[%s751_s1] sm:$0xff]   ;;  %v517_v3 = vld [vmem:[%s752_s0 + $0x8] sm:$0xff]   ;;  %v519_v5 = vld [vmem:[%s752_s0 + $0x10] sm:$0xff]  }
   0x2   :  { %v515_v1 = vld [vmem:[%s752_s0] sm:$0xff]   ;;  %494 = vmatprep.subr.bf16.mxu0 %v514_v0  ;;  %512 = vmatprep.subr.bf16.mxu1 %v514_v0  ;;  %v518_v4 = vld [vmem:[%s752_s0 + $0x28] sm:$0xff]   ;;  %v520_v6 = vld [vmem:[%s752_s0 + $0x30] sm:$0xff]  }
   0x3   :  { %v516_v2 = vld [vmem:[%s752_s0 + $0x20] sm:$0xff]   ;;  %495 = vmatpush3.bf16.msra.mxu0 %v514_v0  ;;  %513 = vmatpush3.bf16.msra.mxu1 %v514_v0  ;;  %v521_v7 = vld [vmem:[%s752_s0 + $0x18] sm:$0xff]  }
   0x4   :  { %496 = vmatprep.mubr.msk.bf16.mxu0 %vm86_vm0, %v515_v1  ;;  %504 = vmatprep.mubr.msk.bf16.mxu1 %vm86_vm0, %v516_v2  ;;  %v522_v8 = vld [vmem:[%s752_s0 + $0x38] sm:$0xff]   ;;  %v645_v9 = vld [vmem:[%s753_s2] ss:$0 sm:$0xff] }
   0x6   :  { %497 = vmatmul.mubr.msk.bf16.vlgmr.msra.gmra.mxu0 %vm86_vm0, %v517_v3  ;;  %505 = vmatmul.mubr.msk.bf16.vlgmr.msra.gmra.mxu1 %vm86_vm0, %v518_v4 }
   0x7   :  { %500 = vmatprep.mubr.msk.bf16.mxu0 %vm86_vm0, %v519_v5  ;;  %508 = vmatprep.mubr.msk.bf16.mxu1 %vm86_vm0, %v520_v6 }
   0xe   :  { %501 = vmatmul.mubr.msk.bf16.gmra.mxu0 %vm86_vm0, %v521_v7  ;;  %509 = vmatmul.mubr.msk.bf16.gmra.mxu1 %vm86_vm0, %v522_v8 }
  0xc6   :  { %v498_v10 = vpop.f32.mrf.mxu0  ;;  %v506_v11 = vpop.f32.mrf.mxu1 }
  0xc7   :  { %v648_v12 = vadd.f32 %v498_v10, %v645_v9  ;;  %v651_v13 = vadd.f32 %v506_v11, %v645_v9 }
  0xc8   :  { %v145_v14 = vpop.f32.mrf.mxu0  ;;  %v177_v15 = vpop.f32.mrf.mxu1 }
  0xc9   :  { %v210_v16 = vsub.f32 0.0, %v648_v12  ;;  %v218_v17 = vsub.f32 0.0, %v651_v13  ;;  %v656_v18 = vadd.f32 %v645_v9, %v145_v14  ;;  %v659_v19 = vadd.f32 %v645_v9, %v177_v15 }
  0xca   :  { %v499_v20 = vpop.f32.mrf.mxu0  ;;  %v507_v21 = vpop.f32.mrf.mxu1 }
  0xcb   :  { %v228_v22 = vmul.f32 1.442695, %v210_v16  ;;  %v244_v23 = vmul.f32 1.442695, %v218_v17  ;;  %v208_v24 = vsub.f32 0.0, %v656_v18  ;;  %v216_v25 = vsub.f32 0.0, %v659_v19 }
  0xcc   :  { %v664_v26 = vadd.f32 %v499_v20, %v645_v9  ;;  %v667_v27 = vadd.f32 %v507_v21, %v645_v9  ;;  %v148_v28 = vpop.f32.mrf.mxu0  ;;  %v180_v29 = vpop.f32.mrf.mxu1 }
  0xcd   :  { %523 = vpow2.f32 %v228_v22  ;;  %v224_v30 = vmul.f32 1.442695, %v208_v24  ;;  %v240_v31 = vmul.f32 1.442695, %v216_v25  ;;  %v670_v32 = vadd.f32 %v645_v9, %v148_v28 }
  0xce   :  { %525 = vpow2.f32 %v244_v23  ;;  %v211_v33 = vsub.f32 0.0, %v664_v26  ;;  %v219_v34 = vsub.f32 0.0, %v667_v27  ;;  %v675_v35 = vadd.f32 %v645_v9, %v180_v29  ;;  %v502_v36 = vpop.f32.mrf.mxu0  ;;  %v510_v37 = vpop.f32.mrf.mxu1 }
  0xcf   :  { %527 = vpow2.f32 %v224_v30  ;;  %v209_v38 = vsub.f32 0.0, %v670_v32  ;;  %v679_v39 = vadd.f32 %v502_v36, %v645_v9  ;;  %v682_v40 = vadd.f32 %v510_v37, %v645_v9 }
  0xd0   :  { %529 = vpow2.f32 %v240_v31  ;;  %v230_v41 = vmul.f32 1.442695, %v211_v33  ;;  %v246_v42 = vmul.f32 1.442695, %v219_v34  ;;  %v217_v43 = vsub.f32 0.0, %v675_v35  ;;  %v161_v44 = vpop.f32.mrf.mxu0  ;;  %v193_v45 = vpop.f32.mrf.mxu1 }
  0xd1   :  { %v226_v46 = vmul.f32 1.442695, %v209_v38  ;;  %v214_v47 = vsub.f32 0.0, %v679_v39  ;;  %v222_v48 = vsub.f32 0.0, %v682_v40  ;;  %v688_v49 = vadd.f32 %v645_v9, %v161_v44 }
  0xd2   :  { %531 = vpow2.f32 %v230_v41  ;;  %v242_v50 = vmul.f32 1.442695, %v217_v43  ;;  %v691_v51 = vadd.f32 %v645_v9, %v193_v45  ;;  %v503_v52 = vpop.f32.mrf.mxu0  ;;  %v511_v53 = vpop.f32.mrf.mxu1 }
  0xd3   :  { %533 = vpow2.f32 %v246_v42  ;;  %v236_v54 = vmul.f32 1.442695, %v214_v47  ;;  %v252_v55 = vmul.f32 1.442695, %v222_v48  ;;  %v212_v56 = vsub.f32 0.0, %v688_v49 }
  0xd4   :  { %535 = vpow2.f32 %v226_v46  ;;  %v220_v57 = vsub.f32 0.0, %v691_v51  ;;  %v696_v58 = vadd.f32 %v503_v52, %v645_v9  ;;  %v699_v59 = vadd.f32 %v511_v53, %v645_v9  ;;  %v164_v60 = vpop.f32.mrf.mxu0  ;;  %v196_v61 = vpop.f32.mrf.mxu1 }
  0xd5   :  { %537 = vpow2.f32 %v242_v50  ;;  %v232_v62 = vmul.f32 1.442695, %v212_v56  ;;  %v702_v63 = vadd.f32 %v645_v9, %v164_v60  ;;  %v705_v0 = vadd.f32 %v645_v9, %v196_v61 }
  0xd6   :  { %539 = vpow2.f32 %v236_v54  ;;  %v248_v1 = vmul.f32 1.442695, %v220_v57  ;;  %v215_v2 = vsub.f32 0.0, %v696_v58  ;;  %v223_v3 = vsub.f32 0.0, %v699_v59 }
  0xd7   :  { %541 = vpow2.f32 %v252_v55  ;;  %v213_v4 = vsub.f32 0.0, %v702_v63  ;;  %v221_v8 = vsub.f32 0.0, %v705_v0 }
  0xd8   :  { %543 = vpow2.f32 %v232_v62  ;;  %v238_v5 = vmul.f32 1.442695, %v215_v2  ;;  %v254_v6 = vmul.f32 1.442695, %v223_v3 }
  0xd9   :  { %545 = vpow2.f32 %v248_v1  ;;  %v234_v7 = vmul.f32 1.442695, %v213_v4  ;;  %v250_v20 = vmul.f32 1.442695, %v221_v8 }
  0xda   :  { %v524_v10 = vpop.eup %523  ;;  %547 = vpow2.f32 %v238_v5 }
  0xdb   :  { %v526_v9 = vpop.eup %525  ;;  %v258_v11 = vadd.f32 1.0, %v524_v10  ;;  %549 = vpow2.f32 %v254_v6 }
  0xdc   :  { %v528_v14 = vpop.eup %527  ;;  %v266_v15 = vadd.f32 1.0, %v526_v9  ;;  %551 = vpow2.f32 %v234_v7 }
  0xdd   :  { %v530_v16 = vpop.eup %529  ;;  %553 = vrcp.f32 %v258_v11  ;;  %v256_v17 = vadd.f32 1.0, %v528_v14 }
  0xde   :  { %555 = vrcp.f32 %v266_v15  ;;  %v264_v21 = vadd.f32 1.0, %v530_v16 }
  0xdf   :  { %v532_v22 = vpop.eup %531  ;;  %557 = vrcp.f32 %v256_v17 }
  0xe0   :  { %v534_v23 = vpop.eup %533  ;;  %559 = vrcp.f32 %v264_v21  ;;  %v259_v24 = vadd.f32 1.0, %v532_v22 }
  0xe1   :  { %v536_v25 = vpop.eup %535  ;;  %v267_v28 = vadd.f32 1.0, %v534_v23  ;;  %561 = vpow2.f32 %v250_v20 }
  0xe2   :  { %v538_v29 = vpop.eup %537  ;;  %563 = vrcp.f32 %v259_v24  ;;  %v257_v30 = vadd.f32 1.0, %v536_v25 }
  0xe3   :  { %v540_v31 = vpop.eup %539  ;;  %565 = vrcp.f32 %v267_v28  ;;  %v265_v33 = vadd.f32 1.0, %v538_v29 }
  0xe4   :  { %v542_v34 = vpop.eup %541  ;;  %567 = vrcp.f32 %v257_v30  ;;  %v262_v36 = vadd.f32 1.0, %v540_v31 }
  0xe5   :  { %v544_v37 = vpop.eup %543  ;;  %569 = vrcp.f32 %v265_v33  ;;  %v270_v38 = vadd.f32 1.0, %v542_v34 }
  0xe6   :  { %v546_v41 = vpop.eup %545  ;;  %v260_v42 = vadd.f32 1.0, %v544_v37  ;;  %571 = vrcp.f32 %v262_v36 }
  0xe7   :  { %v548_v43 = vpop.eup %547  ;;  %573 = vrcp.f32 %v270_v38  ;;  %v268_v53 = vadd.f32 1.0, %v546_v41 }
  0xe8   :  { %v550_v44 = vpop.eup %549  ;;  %v263_v45 = vadd.f32 1.0, %v548_v43  ;;  %575 = vrcp.f32 %v260_v42 }
  0xe9   :  { %v552_v46 = vpop.eup %551  ;;  %v271_v47 = vadd.f32 1.0, %v550_v44 }
  0xea   :  { %v554_v48 = vpop.eup %553  ;;  %577 = vrcp.f32 %v263_v45  ;;  %v261_v50 = vadd.f32 1.0, %v552_v46 }
  0xeb   :  { %v556_v52 = vpop.eup %555  ;;  %579 = vrcp.f32 %v271_v47  ;;  %v290_v62 = vmul.f32 %v554_v48, %v648_v12 }
  0xec   :  { %v558_v54 = vpop.eup %557  ;;  %581 = vrcp.f32 %v261_v50  ;;  %v298_v3 = vmul.f32 %v556_v52, %v651_v13 }
  0xed   :  { %v560_v55 = vpop.eup %559  ;;  %583 = vrcp.f32 %v268_v53  ;;  %v288_v6 = vmul.f32 %v558_v54, %v656_v18 }
  0xee   :  { %v562_v56 = vpop.eup %561  ;;  %v296_v10 = vmul.f32 %v560_v55, %v659_v19 }
  0xef   :  { %v564_v57 = vpop.eup %563  ;;  %v269_v60 = vadd.f32 1.0, %v562_v56 }
  0xf0   :  { %v566_v61 = vpop.eup %565  ;;  %v291_v1 = vmul.f32 %v564_v57, %v664_v26 }
  0xf1   :  { %v568_v2 = vpop.eup %567  ;;  %v299_v4 = vmul.f32 %v566_v61, %v667_v27  ;;  %585 = vrcp.f32 %v269_v60 }
  0xf2   :  { %v570_v5 = vpop.eup %569  ;;  %v446_v7 = vpack.c.bf16 %v291_v1, %v290_v62  ;;  %v289_v8 = vmul.f32 %v568_v2, %v670_v32 }
  0xf3   :  { %v466_v9 = vpack.c.bf16 %v299_v4, %v298_v3  ;;  %v297_v11 = vmul.f32 %v570_v5, %v675_v35  ;;  %v572_v12 = vpop.eup %571 }
  0xf4   :  { %478 = vst [vmem:[%s754_s3 + $0x8] sm:$0xff] %v446_v7   ;;  %v441_v13 = vpack.c.bf16 %v289_v8, %v288_v6  ;;  %v574_v26 = vpop.eup %573  ;;  %v294_v35 = vmul.f32 %v572_v12, %v679_v39 }
  0xf5   :  { %482 = vst [vmem:[%s754_s3 + $0x28] sm:$0xff] %v466_v9   ;;  %v461_v18 = vpack.c.bf16 %v297_v11, %v296_v10  ;;  %v576_v27 = vpop.eup %575  ;;  %v302_v16 = vmul.f32 %v574_v26, %v682_v40 }
  0xf6   :  { %442 = vst [vmem:[%s754_s3] sm:$0xff] %v441_v13   ;;  %v292_v20 = vmul.f32 %v576_v27, %v688_v49 }
  0xf7   :  { %v578_v19 = vpop.eup %577  ;;  %481 = vst [vmem:[%s754_s3 + $0x20] sm:$0xff] %v461_v18  }
  0xf8   :  { %v580_v32 = vpop.eup %579  ;;  %v295_v14 = vmul.f32 %v578_v19, %v696_v58 }
  0xf9   :  { %v582_v15 = vpop.eup %581  ;;  %v303_v17 = vmul.f32 %v580_v32, %v699_v59 }
  0xfa   :  { %v456_v21 = vpack.c.bf16 %v295_v14, %v294_v35  ;;  %v293_v22 = vmul.f32 %v582_v15, %v702_v63  ;;  %v584_v24 = vpop.eup %583 }
  0xfb   :  { %v476_v23 = vpack.c.bf16 %v303_v17, %v302_v16  ;;  %v300_v40 = vmul.f32 %v584_v24, %v691_v51 }
  0xfc   :  { %480 = vst [vmem:[%s754_s3 + $0x18] sm:$0xff] %v456_v21   ;;  %v451_v25 = vpack.c.bf16 %v293_v22, %v292_v20 }
  0xfd   :  { %484 = vst [vmem:[%s754_s3 + $0x38] sm:$0xff] %v476_v23  }
  0xfe   :  { %v586_v39 = vpop.eup %585  ;;  %479 = vst [vmem:[%s754_s3 + $0x10] sm:$0xff] %v451_v25  }
  0xff   :  { %v301_v49 = vmul.f32 %v586_v39, %v705_v0 }
 0x101   :  { %v471_v58 = vpack.c.bf16 %v301_v49, %v300_v40 }
 0x103   :  { %483 = vst [vmem:[%s754_s3 + $0x30] sm:$0xff] %v471_v58  }

// kernel: _lambda_.29
= control target key start
LH: loop header
LB: loop body
LE: loop exit
PB: predicated region body
PF: predicated region fallthrough
CT: control target
= control target key end

     0   :  { %s306_s6 = smov 0   ;;  %s308_s7 = smov 0   ;;  %s342_s0 = inlined_call_operand.vmem [shape: bf16[2,16,64], index: 0, kind: input, shape index: {}]   ;;  %s343_s1 = inlined_call_operand.vmem [shape: f32[2,1,64], index: 1, kind: output, shape index: {}]  }
   0x1   :  { %s310_s8 = smov 0  }
   0x2 LB: > { %s23_s9 = sadd.s32 1, %s289_s7  ;;  %p236_p0 = scmp.ge.s32.totalorder %s293_s8, 1  ;;  %s293_s8 = sphi %s310_s8, %s11_s8   ;;  %s289_s7 = sphi %s308_s7, %s345_s7   ;;  %s285_s6 = sphi %s306_s6, %s344_s6  }
   0x3   : > { %p25_p1 = scmp.ge.s32.totalorder %s23_s9, 2  ;;  %p106_p2 = scmp.lt.s32.totalorder %s293_s8, 3 }
   0x5   : > { %s347_s9 = smov (%p25_p1, %s23_s9), 0  ;;  %p107_p3 = pnand %p236_p0, %p106_p2 }
   0x6   : > { %p129_p4 = scmp.lt.s32.totalorder (!%p107_p3), %s285_s6, 1 }
   0x7   : > { %110 = sbr.rel (%p107_p3) target bundleno = 46 (0x2e), region = 24 }
   0xc   : > { %vm145_vm0 = vcmask 516096   ;;  %v295_v0 = vmov 0.0   ;;  %s349_s6 = smov (!%p129_p4, %s285_s6), 1  ;;  %vm152_vm1 = vcmask 523264  }
   0xd   : > { %146 = vst.msk [vmem:[#allocation2] sm:$0x1] %vm145_vm0, %v295_v0  ;;  %s241_s10 = sshll.u32 %s349_s6, 3  ;;  %s140_s16 = scalar_lea.vmem %s343_s1, %s349_s6 }
   0xe   : > { %s136_s13 = scalar_lea.vmem %s342_s0, %s241_s10 }
   0xf   : > { %v243_v1 = vld [vmem:[%s136_s13] sm:$0xff]  }
  0x10   : > { %v244_v2 = vunpack.c.l.bf16 %v243_v1  ;;  %v245_v3 = vunpack.c.h.bf16 %v243_v1 }
  0x12   : > { %v153_v4 = vsel %vm152_vm1, %v244_v2, 0.0  ;;  %v154_v5 = vsel %vm152_vm1, %v245_v3, 0.0 }
  0x13   : > { %v155_v6 = vadd.f32 %v154_v5, %v153_v4 }
  0x14   : > { %v147_v12 = vld [vmem:[#allocation2] sm:$0x1] }
  0x15   : > { %v156_v7 = vrot.slane %v155_v6, 4 }
  0x17   : > { %v157_v8 = vadd.f32 %v156_v7, %v155_v6 }
  0x19   : > { %v158_v9 = vrot.slane %v157_v8, 2 }
  0x1b   : > { %v159_v10 = vadd.f32 %v158_v9, %v157_v8 }
  0x1d   : > { %v160_v11 = vrot.slane %v159_v10, 1 }
  0x1f   : > { %v161_v13 = vadd.f32 %v160_v11, %v159_v10 }
  0x21   : > { %v162_v14 = vadd.f32 %v161_v13, %v147_v12 }
  0x23   : > { %164 = vst.msk [vmem:[#allocation2] sm:$0x1] %vm145_vm0, %v162_v14 }
  0x2a   : > { %v168_v15 = vld [vmem:[#allocation2] sm:$0x1] }
  0x2b   : > { %v169_v16 = vmul.f32 0.0625, %v168_v15 }
  0x2d   : > { %170 = vst.msk [vmem:[%s140_s16] sm:$0x1] %vm145_vm0, %v169_v16 }
  0x2e PF: > { %s11_s8 = sadd.s32 1, %s293_s8   ;;  %s344_s6 = smov %s289_s7 }
  0x2f   : > { %p8_p5 = scmp.ge.s32.totalorder %s11_s8, 4   ;;  %s345_s7 = smov %s347_s9 }
  0x31   :  { %10 = sbr.rel (!%p8_p5) target bundleno = 2 (0x2), region = 62 }

// kernel: _lambda_.31
= control target key start
LH: loop header
LB: loop body
LE: loop exit
PB: predicated region body
PF: predicated region fallthrough
CT: control target
= control target key end

     0   :  { %s675_s15 = smov 0   ;;  %s677_s16 = smov 0   ;;  %s726_s0 = inlined_call_operand.vmem [shape: f32[2,1,64], index: 0, kind: input, shape index: {}]   ;;  %s727_s1 = inlined_call_operand.vmem [shape: bf16[2,16,64], index: 1, kind: input, shape index: {}]   ;;  %s728_s2 = inlined_call_operand.vmem [shape: bf16[64,128], index: 2, kind: input, shape index: {}]   ;;  %s729_s3 = inlined_call_operand.vmem [shape: f32[1,128], index: 3, kind: input, shape index: {}]   ;;  %s730_s4 = inlined_call_operand.vmem [shape: bf16[2,16,128], index: 4, kind: output, shape index: {}]  }
   0x1   :  { %s679_s17 = smov 0  }
   0x2 LB: > { %s33_s18 = sadd.s32 1, %s642_s16  ;;  %p548_p0 = scmp.ge.s32.totalorder %s646_s17, 1  ;;  %s646_s17 = sphi %s679_s17, %s14_s17   ;;  %s642_s16 = sphi %s677_s16, %s732_s16   ;;  %s638_s15 = sphi %s675_s15, %s731_s15  }
   0x3   : > { %p35_p1 = scmp.ge.s32.totalorder %s33_s18, 2  ;;  %p217_p2 = scmp.lt.s32.totalorder %s646_s17, 3 }
   0x5   : > { %s734_s18 = smov (%p35_p1, %s33_s18), 0  ;;  %p218_p3 = pnand %p548_p0, %p217_p2 }
   0x6   : > { %p264_p4 = scmp.lt.s32.totalorder (!%p218_p3), %s638_s15, 1 }
   0x7   : > { %221 = sbr.rel (%p218_p3) target bundleno = 231 (0xe7), region = 36 }
   0xc   : > { %v620_v0 = vld [vmem:[%s728_s2 + $0x18] sm:$0xff]   ;;  %v648_v1 = vmov 0.0   ;;  %v621_v2 = vld [vmem:[%s728_s2 + $0x10] sm:$0xff]   ;;  %vm649_vm0 = vmmov 0   ;;  %s736_s15 = smov (!%p264_p4, %s638_s15), 1  ;;  %v622_v3 = vld [vmem:[%s728_s2 + $0x8] sm:$0xff]  }
   0xd   : > { %582 = vmatprep.subr.bf16.mxu0 %v648_v1  ;;  %590 = vmatprep.mubr.msk.bf16.mxu0 %vm649_vm0, %v648_v1  ;;  %s266_s27 = scalar_lea.vmem %s726_s0, %s736_s15  ;;  %s564_s28 = sshll.u32 %s736_s15, 3  ;;  %v623_v8 = vld [vmem:[%s728_s2] sm:$0xff]   ;;  %vm351_vm1 = vcmask 523264  }
   0xe   : > { %583 = vmatpush3.bf16.msra.mxu0 %v620_v0  ;;  %s275_s5 = scalar_lea.vmem %s727_s1, %s564_s28  ;;  %v553_v5 = vld [vmem:[%s266_s27] ss:$0 sm:$0xff]  ;;  %s295_s12 = scalar_lea.vmem %s730_s4, %s564_s28 }
   0xf   : > { %584 = vmatprep.subr.bf16.mxu0 %v648_v1  ;;  %v569_v4 = vld [vmem:[%s275_s5] sm:$0xff]  }
  0x10   : > { %v570_v6 = vunpack.c.l.bf16 %v569_v4  ;;  %v571_v7 = vunpack.c.h.bf16 %v569_v4  ;;  %v554_v13 = vld [vmem:[%s729_s3] ss:$0 sm:$0xff] }
  0x12   : > { %585 = vmatpush3.bf16.msra.mxu0 %v621_v2  ;;  %v309_v9 = vmul.f32 %v570_v6, %v553_v5  ;;  %v310_v10 = vmul.f32 %v571_v7, %v553_v5 }
  0x13   : > { %586 = vmatprep.subr.bf16.mxu0 %v648_v1 }
  0x14   : > { %v311_v11 = vpack.c.bf16 %v310_v10, %v309_v9 }
  0x16   : > { %587 = vmatpush3.bf16.msra.mxu0 %v622_v3 }
  0x17   : > { %588 = vmatprep.subr.bf16.mxu0 %v648_v1 }
  0x1a   : > { %589 = vmatpush3.bf16.msra.mxu0 %v623_v8 }
  0x1d   : > { %591 = vmatmul.mubr.msk.bf16.vlgmr.msra.gmra.mxu0 %vm351_vm1, %v311_v11 }
  0xdd   : > { %v389_v12 = vpop.f32.mrf.mxu0 }
  0xde   : > { %v390_v16 = vadd.f32 %v554_v13, %v389_v12 }
  0xdf   : > { %v592_v14 = vpop.f32.mrf.mxu0 }
  0xe1   : > { %v392_v15 = vpop.f32.mrf.mxu0 }
  0xe2   : > { %v393_v17 = vadd.f32 %v554_v13, %v392_v15 }
  0xe3   : > { %v593_v18 = vpop.f32.mrf.mxu0 }
  0xe4   : > { %v575_v19 = vpack.c.bf16 %v393_v17, %v390_v16 }
  0xe6   : > { %576 = vst [vmem:[%s295_s12] sm:$0xff] %v575_v19  }
  0xe7 PF: > { %s14_s17 = sadd.s32 1, %s646_s17   ;;  %s731_s15 = smov %s642_s16 }
  0xe8   : > { %p11_p5 = scmp.ge.s32.totalorder %s14_s17, 4   ;;  %s732_s16 = smov %s734_s18 }
  0xea   :  { %13 = sbr.rel (!%p11_p5) target bundleno = 2 (0x2), region = 75 }

// kernel: _lambda_.32
= control target key start
LH: loop header
LB: loop body
LE: loop exit
PB: predicated region body
PF: predicated region fallthrough
CT: control target
= control target key end

     0   :  { %s420_s9 = smov 0   ;;  %s422_s10 = smov 0   ;;  %s456_s0 = inlined_call_operand.vmem [shape: bf16[2,16,12], index: 0, kind: input, shape index: {}]   ;;  %s457_s1 = inlined_call_operand.vmem [shape: f32[2,1,12], index: 1, kind: input, shape index: {}]   ;;  %s458_s2 = inlined_call_operand.vmem [shape: bf16[2,16,24], index: 2, kind: output, shape index: {}]  }
   0x1   :  { %s424_s11 = smov 0  }
   0x2 LB: > { %s24_s12 = sadd.s32 1, %s398_s10  ;;  %p332_p0 = scmp.ge.s32.totalorder %s402_s11, 1  ;;  %s402_s11 = sphi %s424_s11, %s12_s11   ;;  %s398_s10 = sphi %s422_s10, %s460_s10   ;;  %s394_s9 = sphi %s420_s9, %s459_s9  }
   0x3   : > { %p26_p1 = scmp.ge.s32.totalorder %s24_s12, 2  ;;  %p141_p2 = scmp.lt.s32.totalorder %s402_s11, 3 }
   0x5   : > { %s462_s12 = smov (%p26_p1, %s24_s12), 0  ;;  %p142_p3 = pnand %p332_p0, %p141_p2 }
   0x6   : > { %p175_p4 = scmp.lt.s32.totalorder (!%p142_p3), %s394_s9, 1  ;;  %s404_s20 = smov (!%p142_p3), 12  }
   0x7   : > { %145 = sbr.rel (%p142_p3) target bundleno = 143 (0x8f), region = 28 }
   0xc   : > { %s464_s9 = smov (!%p175_p4, %s394_s9), 1  ;;  %vm218_vm0 = vcmask 97280   ;;  %vm229_vm1 = vcmask 191488  }
   0xd   : > { %s342_s13 = sshll.u32 %s464_s9, 3  ;;  %s186_s16 = scalar_lea.vmem %s457_s1, %s464_s9 }
   0xe   : > { %s182_s19 = scalar_lea.vmem %s456_s0, %s342_s13  ;;  %v337_v1 = vld [vmem:[%s186_s16] ss:$0 sm:$0xff]  ;;  %s195_s23 = scalar_lea.vmem %s458_s2, %s342_s13 }
   0xf   : > { %v347_v0 = vld [vmem:[%s182_s19] sm:$0xff]  }
  0x10   : > { %v348_v2 = vunpack.c.l.bf16 %v347_v0  ;;  %v349_v3 = vunpack.c.h.bf16 %v347_v0 }
  0x12   : > { %v208_v4 = vmul.f32 %v348_v2, %v337_v1  ;;  %v209_v5 = vmul.f32 %v349_v3, %v337_v1 }
  0x14   : > { %v375_v6 = vpack.i.bf16 %v209_v5, %v208_v4 }
  0x16   : > { %376 = vrot.lane.b32.xlu0 %v375_v6, %s404_s20 }
  0x88   : > { %v377_v7 = vpop.permute.xlu0 %376 }
  0x89   : > { %v379_v8 = vunpack.i.h.bf16 %v377_v7  ;;  %v378_v9 = vunpack.i.l.bf16 %v377_v7 }
  0x8b   : > { %v220_v10 = vsel %vm218_vm0, %v349_v3, %v379_v8  ;;  %v219_v11 = vsel %vm218_vm0, %v348_v2, %v378_v9 }
  0x8c   : > { %v345_v12 = vpack.c.bf16 %v220_v10, %v220_v10  ;;  %v344_v13 = vpack.c.bf16 %v219_v11, %v219_v11 }
  0x8e   : > { %231 = vst.msk [vmem:[%s195_s23 + $0x4] sm:$0xf] %vm229_vm1, %v345_v12  ;;  %230 = vst.msk [vmem:[%s195_s23] sm:$0xf] %vm229_vm1, %v344_v13 }
  0x8f PF: > { %s12_s11 = sadd.s32 1, %s402_s11   ;;  %s459_s9 = smov %s398_s10 }
  0x90   : > { %p9_p5 = scmp.ge.s32.totalorder %s12_s11, 4   ;;  %s460_s10 = smov %s462_s12 }
  0x92   :  { %11 = sbr.rel (!%p9_p5) target bundleno = 2 (0x2), region = 61 }

// kernel: _lambda_.28
= control target key start
LH: loop header
LB: loop body
LE: loop exit
PB: predicated region body
PF: predicated region fallthrough
CT: control target
= control target key end

     0   :  { %v50_v0 = vlaneseq  ;;  %vm2206_vm0 = vcmask 1041409   ;;  %vm2209_vm1 = vcmask 1042434   ;;  %vm2212_vm2 = vcmask 1043459   ;;  %s5740_s1 = inlined_call_operand.vmem [shape: bf16[9,64], index: 1, kind: input, shape index: {}]   ;;  %s5741_s0 = inlined_call_operand.vmem [shape: bf16[32,9,64], index: 0, kind: input, shape index: {}]   ;;  %s5742_s2 = inlined_call_operand.vmem [shape: f32[1,64], index: 2, kind: input, shape index: {}]   ;;  %s5743_s3 = inlined_call_operand.vmem [shape: bf16[32,64], index: 3, kind: output, shape index: {}]  }
   0x1   :  { %v46_v1 = vld [vmem:[%s5740_s1] sm:$0x1]  ;;  %v2528_v11 = vld [vmem:[%s5741_s0 + $0x8] sm:$0x1]  ;;  %v2533_v12 = vld [vmem:[%s5741_s0 + $0x10] sm:$0x1] }
   0x2   :  { %v2511_v2 = vshrl.u32 %v50_v0, 7  ;;  %v48_v3 = vpack.i.b16 %v46_v1, %v46_v1  ;;  %v154_v4 = vshrl.u32 %v46_v1, 16  ;;  %v2523_v10 = vld [vmem:[%s5741_s0] sm:$0x1]  ;;  %v2538_v13 = vld [vmem:[%s5741_s0 + $0x18] sm:$0x1] }
   0x3   :  { %v2543_v14 = vld [vmem:[%s5741_s0 + $0x20] sm:$0x1]  ;;  %v2548_v15 = vld [vmem:[%s5741_s0 + $0x28] sm:$0x1]  ;;  %v2553_v16 = vld [vmem:[%s5741_s0 + $0x30] sm:$0x1] }
   0x4   :  { %5886 = vst [vmem:[#allocation2_spill] sm:$0xff] %v2511_v2  ;;  %v2514_v5 = vsub.s32 0, %v2511_v2  ;;  %v155_v7 = vpack.i.b16 %v154_v4, %v154_v4  ;;  %v2558_v17 = vld [vmem:[%s5741_s0 + $0x38] sm:$0x1]  ;;  %v2563_v18 = vld [vmem:[%s5741_s0 + $0x40] sm:$0x1] }
   0x5   :  { %v2568_v19 = vld [vmem:[%s5741_s0 + $0x48] sm:$0x1]  ;;  %v2573_v20 = vld [vmem:[%s5741_s0 + $0x50] sm:$0x1]  ;;  %v2578_v21 = vld [vmem:[%s5741_s0 + $0x58] sm:$0x1] }
   0x6   :  { %5887 = vst [vmem:[#allocation3_spill] sm:$0xff] %v2514_v5  ;;  %v53_v6 = vrot.slane %v48_v3, %v2514_v5  ;;  %v160_v9 = vrot.slane %v155_v7, %v2514_v5  ;;  %v2590_v26 = vld [vmem:[%s5741_s0 + $0x60] sm:$0x1]  ;;  %v2595_v27 = vld [vmem:[%s5741_s0 + $0x68] sm:$0x1]  ;;  %vm2215_vm3 = vcmask 1044484  }
   0x7   :  { %v2600_v28 = vld [vmem:[%s5741_s0 + $0x70] sm:$0x1]  ;;  %v2613_v33 = vld [vmem:[%s5741_s0 + $0x78] sm:$0x1]  ;;  %v2618_v34 = vld [vmem:[%s5741_s0 + $0x80] sm:$0x1] }
   0x8   :  { %v2517_v8 = vcombine.low %v53_v6, %v53_v6  ;;  %v2584_v24 = vcombine.low %v160_v9, %v160_v9  ;;  %v2623_v35 = vld [vmem:[%s5741_s0 + $0x88] sm:$0x1]  ;;  %v2636_v40 = vld [vmem:[%s5741_s0 + $0x90] sm:$0x1]  ;;  %v2641_v41 = vld [vmem:[%s5741_s0 + $0x98] sm:$0x1] }
   0x9   :  { %5888 = vst [vmem:[#allocation4_spill] sm:$0xff] %v2641_v41  ;;  %v2646_v42 = vld [vmem:[%s5741_s0 + $0xa0] sm:$0x1]  ;;  %v2659_v47 = vld [vmem:[%s5741_s0 + $0xa8] sm:$0x1]  ;;  %vm2218_vm4 = vcmask 1045509  }
   0xa   :  { %v58_v22 = vmul.bf16 %v2517_v8, %v2523_v10  ;;  %v59_v23 = vmul.bf16 %v2517_v8, %v2528_v11  ;;  %v60_v29 = vmul.bf16 %v2517_v8, %v2533_v12  ;;  %v61_v30 = vmul.bf16 %v2517_v8, %v2538_v13  ;;  %5889 = vst [vmem:[#allocation5_spill] sm:$0xff] %v2646_v42  ;;  %v2664_v48 = vld [vmem:[%s5741_s0 + $0xb0] sm:$0x1]  ;;  %v2669_v49 = vld [vmem:[%s5741_s0 + $0xb8] sm:$0x1] }
   0xb   :  { %v62_v31 = vmul.bf16 %v2517_v8, %v2543_v14  ;;  %v63_v32 = vmul.bf16 %v2517_v8, %v2548_v15  ;;  %v64_v36 = vmul.bf16 %v2517_v8, %v2553_v16  ;;  %v65_v37 = vmul.bf16 %v2517_v8, %v2558_v17  ;;  %5890 = vst [vmem:[#allocation6_spill] sm:$0xff] %v2659_v47  ;;  %v2682_v54 = vld [vmem:[%s5741_s0 + $0xc0] sm:$0x1]  ;;  %v2687_v55 = vld [vmem:[%s5741_s0 + $0xc8] sm:$0x1] }
   0xc   :  { %v66_v38 = vmul.bf16 %v2517_v8, %v2563_v18  ;;  %v67_v39 = vmul.bf16 %v2517_v8, %v2568_v19  ;;  %v68_v43 = vmul.bf16 %v2517_v8, %v2573_v20  ;;  %v69_v44 = vmul.bf16 %v2517_v8, %v2578_v21  ;;  %5891 = vst [vmem:[#allocation7_spill] sm:$0xff] %v2664_v48  ;;  %v2692_v56 = vld [vmem:[%s5741_s0 + $0xd0] sm:$0x1]  ;;  %v2705_v61 = vld [vmem:[%s5741_s0 + $0xd8] sm:$0x1] }
   0xd   :  { %v70_v45 = vmul.bf16 %v2517_v8, %v2590_v26  ;;  %v71_v46 = vmul.bf16 %v2517_v8, %v2595_v27  ;;  %5892 = vst [vmem:[#allocation8_spill] sm:$0xff] %v2669_v49  ;;  %v72_v50 = vmul.bf16 %v2517_v8, %v2600_v28  ;;  %v73_v51 = vmul.bf16 %v2517_v8, %v2613_v33  ;;  %v2710_v62 = vld [vmem:[%s5741_s0 + $0xe0] sm:$0x1]  ;;  %v2715_v63 = vld [vmem:[%s5741_s0 + $0xe8] sm:$0x1] }
   0xe   :  { %v74_v52 = vmul.bf16 %v2517_v8, %v2618_v34  ;;  %v75_v53 = vmul.bf16 %v2517_v8, %v2623_v35  ;;  %5893 = vst [vmem:[#allocation9_spill] sm:$0xff] %v2682_v54  ;;  %5894 = vst [vmem:[#allocation10_spill] sm:$0xff] %v2687_v55  ;;  %v76_v57 = vmul.bf16 %v2517_v8, %v2636_v40  ;;  %v2728_v6 = vld [vmem:[%s5741_s0 + $0xf0] sm:$0x1]  ;;  %v2733_v7 = vld [vmem:[%s5741_s0 + $0xf8] sm:$0x1] }
   0xf   :  { %5895 = vst [vmem:[#allocation11_spill] sm:$0xff] %v2692_v56  ;;  %v77_v58 = vmul.bf16 %v2517_v8, %v2641_v41  ;;  %v78_v59 = vmul.bf16 %v2517_v8, %v2646_v42  ;;  %v79_v60 = vmul.bf16 %v2517_v8, %v2659_v47  ;;  %5896 = vst [vmem:[#allocation12_spill] sm:$0xff] %v2705_v61  ;;  %v2753_v47 = vunpack.c.l.bf16 %v61_v30 }
  0x10   :  { %5897 = vst [vmem:[#allocation13_spill] sm:$0xff] %v2710_v62  ;;  %5898 = vst [vmem:[#allocation14_spill] sm:$0xff] %v2715_v63  ;;  %v80_v0 = vmul.bf16 %v2517_v8, %v2664_v48  ;;  %v81_v1 = vmul.bf16 %v2517_v8, %v2669_v49  ;;  %v82_v3 = vmul.bf16 %v2517_v8, %v2682_v54  ;;  %v2747_v49 = vunpack.c.l.bf16 %v58_v22 }
  0x11   :  { %v83_v4 = vmul.bf16 %v2517_v8, %v2687_v55  ;;  %5899 = vst [vmem:[#allocation15_spill] sm:$0xff] %v2728_v6  ;;  %v84_v9 = vmul.bf16 %v2517_v8, %v2692_v56  ;;  %v85_v25 = vmul.bf16 %v2517_v8, %v2705_v61  ;;  %v86_v5 = vmul.bf16 %v2517_v8, %v2710_v62 }
  0x12   :  { %v87_v2 = vmul.bf16 %v2517_v8, %v2715_v63  ;;  %v88_v55 = vmul.bf16 %v2517_v8, %v2728_v6  ;;  %v89_v54 = vmul.bf16 %v2517_v8, %v2733_v7  ;;  %v2749_v48 = vunpack.c.l.bf16 %v59_v23 }
  0x13   :  { %v2751_v56 = vunpack.c.l.bf16 %v60_v29  ;;  %v2755_v61 = vunpack.c.l.bf16 %v62_v31  ;;  %v2757_v62 = vunpack.c.l.bf16 %v63_v32  ;;  %v2759_v42 = vunpack.c.l.bf16 %v64_v36 }
  0x14   :  { %v2761_v63 = vunpack.c.l.bf16 %v65_v37  ;;  %v2763_v6 = vunpack.c.l.bf16 %v66_v38  ;;  %v2765_v41 = vunpack.c.l.bf16 %v67_v39  ;;  %v2767_v8 = vunpack.c.l.bf16 %v68_v43 }
  0x15   :  { %v2769_v22 = vunpack.c.l.bf16 %v69_v44  ;;  %v2771_v23 = vunpack.c.l.bf16 %v70_v45  ;;  %v2773_v29 = vunpack.c.l.bf16 %v71_v46  ;;  %v2775_v30 = vunpack.c.l.bf16 %v72_v50 }
  0x16   :  { %v2777_v31 = vunpack.c.l.bf16 %v73_v51  ;;  %v2779_v32 = vunpack.c.l.bf16 %v74_v52  ;;  %v2781_v36 = vunpack.c.l.bf16 %v75_v53  ;;  %v2783_v37 = vunpack.c.l.bf16 %v76_v57 }
  0x17   :  { %v2785_v38 = vunpack.c.l.bf16 %v77_v58  ;;  %v2787_v39 = vunpack.c.l.bf16 %v78_v59  ;;  %v2789_v43 = vunpack.c.l.bf16 %v79_v60  ;;  %v2791_v44 = vunpack.c.l.bf16 %v80_v0 }
  0x18   :  { %v2793_v45 = vunpack.c.l.bf16 %v81_v1  ;;  %v2795_v46 = vunpack.c.l.bf16 %v82_v3  ;;  %v2797_v50 = vunpack.c.l.bf16 %v83_v4  ;;  %v2799_v51 = vunpack.c.l.bf16 %v84_v9  ;;  %v5913_v3 = vld [vmem:[#allocation5_spill] sm:$0xff]  ;;  %v5914_v4 = vld [vmem:[#allocation6_spill] sm:$0xff]  ;;  %v5915_v9 = vld [vmem:[#allocation7_spill] sm:$0xff] }
  0x19   :  { %5900 = vst [vmem:[#allocation16_spill] sm:$0xff] %v2787_v39  ;;  %5901 = vst [vmem:[#allocation17_spill] sm:$0xff] %v2789_v43  ;;  %v2801_v52 = vunpack.c.l.bf16 %v85_v25  ;;  %v2803_v53 = vunpack.c.l.bf16 %v86_v5  ;;  %v2805_v57 = vunpack.c.l.bf16 %v87_v2  ;;  %v2807_v58 = vunpack.c.l.bf16 %v88_v55  ;;  %v5912_v55 = vld [vmem:[#allocation4_spill] sm:$0xff] }
  0x1a   :  { %5902 = vst [vmem:[#allocation18_spill] sm:$0xff] %v2791_v44  ;;  %5903 = vst [vmem:[#allocation19_spill] sm:$0xff] %v2793_v45  ;;  %v2809_v59 = vunpack.c.l.bf16 %v89_v54  ;;  %v165_v60 = vmul.bf16 %v2584_v24, %v2523_v10  ;;  %v166_v0 = vmul.bf16 %v2584_v24, %v2528_v11  ;;  %v167_v1 = vmul.bf16 %v2584_v24, %v2533_v12 }
  0x1b   :  { %5904 = vst [vmem:[#allocation20_spill] sm:$0xff] %v2795_v46  ;;  %5905 = vst [vmem:[#allocation21_spill] sm:$0xff] %v2797_v50  ;;  %v168_v25 = vmul.bf16 %v2584_v24, %v2538_v13  ;;  %v169_v2 = vmul.bf16 %v2584_v24, %v2543_v14  ;;  %v170_v5 = vmul.bf16 %v2584_v24, %v2548_v15  ;;  %v5922_v50 = vld [vmem:[#allocation14_spill] sm:$0xff]  ;;  %v5923_v46 = vld [vmem:[#allocation15_spill] sm:$0xff]  ;;  %vm2221_vm5 = vcmask 1046534  }
  0x1c   :  { %5906 = vst [vmem:[#allocation22_spill] sm:$0xff] %v2799_v51  ;;  %5907 = vst [vmem:[#allocation23_spill] sm:$0xff] %v2801_v52  ;;  %v171_v54 = vmul.bf16 %v2584_v24, %v2553_v16  ;;  %v172_v10 = vmul.bf16 %v2584_v24, %v2558_v17  ;;  %v173_v11 = vmul.bf16 %v2584_v24, %v2563_v18  ;;  %v5920_v52 = vld [vmem:[#allocation12_spill] sm:$0xff]  ;;  %v5921_v51 = vld [vmem:[#allocation13_spill] sm:$0xff]  ;;  %v2875_v45 = vunpack.c.l.bf16 %v165_v60 }
  0x1d   :  { %5908 = vst [vmem:[#allocation24_spill] sm:$0xff] %v2803_v53  ;;  %5909 = vst [vmem:[#allocation25_spill] sm:$0xff] %v2805_v57  ;;  %v174_v12 = vmul.bf16 %v2584_v24, %v2568_v19  ;;  %v175_v13 = vmul.bf16 %v2584_v24, %v2573_v20  ;;  %v176_v14 = vmul.bf16 %v2584_v24, %v2578_v21  ;;  %v5918_v57 = vld [vmem:[#allocation10_spill] sm:$0xff]  ;;  %v5919_v53 = vld [vmem:[#allocation11_spill] sm:$0xff]  ;;  %v2881_v44 = vunpack.c.l.bf16 %v168_v25 }
  0x1e   :  { %5910 = vst [vmem:[#allocation26_spill] sm:$0xff] %v2807_v58  ;;  %5911 = vst [vmem:[#allocation27_spill] sm:$0xff] %v2809_v59  ;;  %v177_v15 = vmul.bf16 %v2584_v24, %v2590_v26  ;;  %v178_v16 = vmul.bf16 %v2584_v24, %v2595_v27  ;;  %v179_v17 = vmul.bf16 %v2584_v24, %v2600_v28  ;;  %v5916_v59 = vld [vmem:[#allocation8_spill] sm:$0xff]  ;;  %v5917_v58 = vld [vmem:[#allocation9_spill] sm:$0xff]  ;;  %v2887_v43 = vunpack.c.l.bf16 %v171_v54 }
  0x1f   :  { %v180_v18 = vmul.bf16 %v2584_v24, %v2613_v33  ;;  %v181_v19 = vmul.bf16 %v2584_v24, %v2618_v34  ;;  %v182_v20 = vmul.bf16 %v2584_v24, %v2623_v35  ;;  %v183_v21 = vmul.bf16 %v2584_v24, %v2636_v40 }
  0x20   :  { %v184_v26 = vmul.bf16 %v2584_v24, %v5912_v55  ;;  %v185_v27 = vmul.bf16 %v2584_v24, %v5913_v3  ;;  %v186_v28 = vmul.bf16 %v2584_v24, %v5914_v4  ;;  %v187_v33 = vmul.bf16 %v2584_v24, %v5915_v9 }
  0x21   :  { %v188_v34 = vmul.bf16 %v2584_v24, %v5916_v59  ;;  %v189_v35 = vmul.bf16 %v2584_v24, %v5917_v58  ;;  %v190_v40 = vmul.bf16 %v2584_v24, %v5918_v57  ;;  %v191_v55 = vmul.bf16 %v2584_v24, %v5919_v53 }
  0x22   :  { %v192_v3 = vmul.bf16 %v2584_v24, %v5920_v52  ;;  %v193_v4 = vmul.bf16 %v2584_v24, %v5921_v51  ;;  %v194_v9 = vmul.bf16 %v2584_v24, %v5922_v50  ;;  %v195_v59 = vmul.bf16 %v2584_v24, %v5923_v46 }
  0x23   :  { %v196_v58 = vmul.bf16 %v2584_v24, %v2733_v7  ;;  %v2877_v57 = vunpack.c.l.bf16 %v166_v0  ;;  %v2879_v53 = vunpack.c.l.bf16 %v167_v1  ;;  %v2883_v52 = vunpack.c.l.bf16 %v169_v2 }
  0x24   :  { %v2885_v51 = vunpack.c.l.bf16 %v170_v5  ;;  %v2889_v50 = vunpack.c.l.bf16 %v172_v10  ;;  %v2891_v46 = vunpack.c.l.bf16 %v173_v11  ;;  %v2893_v39 = vunpack.c.l.bf16 %v174_v12 }
  0x25   :  { %v2895_v24 = vunpack.c.l.bf16 %v175_v13  ;;  %v2897_v7 = vunpack.c.l.bf16 %v176_v14  ;;  %v2899_v60 = vunpack.c.l.bf16 %v177_v15  ;;  %v2901_v0 = vunpack.c.l.bf16 %v178_v16 }
  0x26   :  { %v2903_v1 = vunpack.c.l.bf16 %v179_v17  ;;  %v2905_v25 = vunpack.c.l.bf16 %v180_v18  ;;  %v2907_v2 = vunpack.c.l.bf16 %v181_v19  ;;  %v2909_v5 = vunpack.c.l.bf16 %v182_v20 }
  0x27   :  { %v2911_v54 = vunpack.c.l.bf16 %v183_v21  ;;  %v2913_v10 = vunpack.c.l.bf16 %v184_v26  ;;  %v2915_v11 = vunpack.c.l.bf16 %v185_v27  ;;  %v2917_v12 = vunpack.c.l.bf16 %v186_v28 }
  0x28   :  { %v2919_v13 = vunpack.c.l.bf16 %v187_v33  ;;  %v2921_v14 = vunpack.c.l.bf16 %v188_v34  ;;  %v2923_v15 = vunpack.c.l.bf16 %v189_v35  ;;  %v2925_v16 = vunpack.c.l.bf16 %v190_v40 }
  0x29   :  { %v2927_v17 = vunpack.c.l.bf16 %v191_v55  ;;  %v2929_v18 = vunpack.c.l.bf16 %v192_v3  ;;  %v2931_v19 = vunpack.c.l.bf16 %v193_v4  ;;  %v2933_v20 = vunpack.c.l.bf16 %v194_v9 }
  0x2a   :  { %v2935_v21 = vunpack.c.l.bf16 %v195_v59  ;;  %v2937_v26 = vunpack.c.l.bf16 %v196_v58  ;;  %v261_v27 = vrot.slane %v2875_v45, 1  ;;  %v262_v28 = vrot.slane %v2877_v57, 1 }
  0x2b   :  { %v263_v33 = vrot.slane %v2879_v53, 1  ;;  %v264_v34 = vrot.slane %v2881_v44, 1  ;;  %v265_v35 = vrot.slane %v2883_v52, 1  ;;  %v266_v40 = vrot.slane %v2885_v51, 1 }
  0x2c   :  { %v267_v55 = vrot.slane %v2887_v43, 1  ;;  %v268_v3 = vrot.slane %v2889_v50, 1  ;;  %v269_v4 = vrot.slane %v2891_v46, 1  ;;  %v270_v9 = vrot.slane %v2893_v39, 1 }
  0x2d   :  { %v271_v45 = vrot.slane %v2895_v24, 1  ;;  %v272_v59 = vrot.slane %v2897_v7, 1  ;;  %v273_v58 = vrot.slane %v2899_v60, 1  ;;  %v274_v44 = vrot.slane %v2901_v0, 1 }
  0x2e   :  { %v275_v57 = vrot.slane %v2903_v1, 1  ;;  %v276_v53 = vrot.slane %v2905_v25, 1  ;;  %v277_v43 = vrot.slane %v2907_v2, 1  ;;  %v278_v52 = vrot.slane %v2909_v5, 1  ;;  %v389_v1 = vld [vmem:[%s5740_s1] sm:$0x2] }
  0x2f   :  { %v279_v51 = vrot.slane %v2911_v54, 1  ;;  %v280_v39 = vrot.slane %v2913_v10, 1  ;;  %v281_v50 = vrot.slane %v2915_v11, 1  ;;  %v282_v46 = vrot.slane %v2917_v12, 1 }
  0x30   :  { %v283_v24 = vrot.slane %v2919_v13, 1  ;;  %v284_v7 = vrot.slane %v2921_v14, 1  ;;  %v285_v60 = vrot.slane %v2923_v15, 1  ;;  %v286_v0 = vrot.slane %v2925_v16, 1  ;;  %v828_v14 = vld [vmem:[%s5740_s1] sm:$0x4] }
  0x31   :  { %v287_v25 = vrot.slane %v2927_v17, 1  ;;  %v288_v2 = vrot.slane %v2929_v18, 1  ;;  %v289_v5 = vrot.slane %v2931_v19, 1  ;;  %v290_v54 = vrot.slane %v2933_v20, 1 }
  0x32   :  { %v291_v10 = vrot.slane %v2935_v21, 1  ;;  %v292_v11 = vrot.slane %v2937_v26, 1  ;;  %v2975_v12 = vadd.f32 %v261_v27, %v2747_v49  ;;  %v2978_v13 = vadd.f32 %v262_v28, %v2749_v48  ;;  %v1267_v49 = vld [vmem:[%s5740_s1] sm:$0x8] }
  0x33   :  { %v2984_v15 = vadd.f32 %v263_v33, %v2751_v56  ;;  %v2987_v16 = vadd.f32 %v264_v34, %v2753_v47  ;;  %v2990_v17 = vadd.f32 %v265_v35, %v2755_v61  ;;  %v391_v18 = vpack.i.b16 %v389_v1, %v389_v1  ;;  %v5924_v27 = vld [vmem:[#allocation2_spill] sm:$0xff] }
  0x34   :  { %v2996_v48 = vadd.f32 %v266_v40, %v2757_v62  ;;  %v2999_v19 = vadd.f32 %v267_v55, %v2759_v42  ;;  %v3002_v56 = vadd.f32 %v268_v3, %v2761_v63  ;;  %v3005_v47 = vadd.f32 %v269_v4, %v2763_v6  ;;  %v5926_v3 = vld [vmem:[#allocation16_spill] sm:$0xff] }
  0x35   :  { %v3008_v61 = vadd.f32 %v270_v9, %v2765_v41  ;;  %v3011_v20 = vadd.f32 %v271_v45, %v2767_v8  ;;  %v593_v21 = vshrl.u32 %v389_v1, 16  ;;  %v830_v26 = vpack.i.b16 %v828_v14, %v828_v14  ;;  %v3073_v45 = vld [vmem:[%s5741_s0 + $0x20] sm:$0x2]  ;;  %v5944_v1 = vld [vmem:[#allocation21_spill] sm:$0xff] }
  0x36   :  { %v834_v62 = vsub.s32 2, %v5924_v27  ;;  %v1032_v28 = vshrl.u32 %v828_v14, 16  ;;  %v1269_v33 = vpack.i.b16 %v1267_v49, %v1267_v49  ;;  %v5759_v42 = vsub.s32 3, %v5924_v27  ;;  %5934 = vst [vmem:[#allocation10_spill] sm:$0xff] %v3073_v45  ;;  %v5946_v14 = vld [vmem:[#allocation22_spill] sm:$0xff]  ;;  %v5948_v49 = vld [vmem:[#allocation23_spill] sm:$0xff] }
  0x37   :  { %v3016_v63 = vadd.f32 %v272_v59, %v2769_v22  ;;  %v3019_v6 = vadd.f32 %v273_v58, %v2771_v23  ;;  %v3022_v41 = vadd.f32 %v274_v44, %v2773_v29  ;;  %v5925_v8 = vsub.s32 1, %v5924_v27 }
  0x38   :  { %v3027_v35 = vadd.f32 %v275_v57, %v2775_v30  ;;  %v3030_v40 = vadd.f32 %v276_v53, %v2777_v31  ;;  %v3033_v55 = vadd.f32 %v277_v43, %v2779_v32  ;;  %v3036_v22 = vadd.f32 %v278_v52, %v2781_v36  ;;  %v3050_v30 = vld [vmem:[%s5741_s0] sm:$0x2]  ;;  %v5929_v32 = vld [vmem:[#allocation17_spill] sm:$0xff]  ;;  %v3058_v36 = vld [vmem:[%s5741_s0 + $0x8] sm:$0x2] }
  0x39   :  { %v396_v34 = vrot.slane %v391_v18, %v5925_v8  ;;  %v3039_v23 = vadd.f32 %v279_v51, %v2783_v37  ;;  %v3042_v29 = vadd.f32 %v280_v39, %v2785_v38  ;;  %v3045_v4 = vadd.f32 %v281_v50, %v5926_v3  ;;  %5928 = vst [vmem:[#allocation5_spill] sm:$0xff] %v3050_v30  ;;  %v3063_v37 = vld [vmem:[%s5741_s0 + $0x10] sm:$0x2]  ;;  %v3068_v38 = vld [vmem:[%s5741_s0 + $0x18] sm:$0x2]  ;;  %v5935_v57 = vld [vmem:[#allocation18_spill] sm:$0xff] }
  0x3a   :  { %v594_v31 = vpack.i.b16 %v593_v21, %v593_v21  ;;  %v3053_v9 = vadd.f32 %v282_v46, %v5929_v32  ;;  %5931 = vst [vmem:[#allocation7_spill] sm:$0xff] %v3058_v36  ;;  %5932 = vst [vmem:[#allocation8_spill] sm:$0xff] %v3063_v37  ;;  %v835_v59 = vrot.slane %v830_v26, %v834_v62  ;;  %v5937_v43 = vld [vmem:[#allocation19_spill] sm:$0xff]  ;;  %v5939_v51 = vld [vmem:[#allocation20_spill] sm:$0xff]  ;;  %vm2224_vm6 = vcmask 1047559  }
  0x3b   :  { %5927 = vst [vmem:[#allocation4_spill] sm:$0xff] %v3045_v4  ;;  %5933 = vst [vmem:[#allocation9_spill] sm:$0xff] %v3068_v38  ;;  %v1033_v58 = vpack.i.b16 %v1032_v28, %v1032_v28  ;;  %v1274_v44 = vrot.slane %v1269_v33, %v5759_v42  ;;  %v3078_v53 = vadd.f32 %v283_v24, %v5935_v57  ;;  %v3089_v50 = vld [vmem:[%s5741_s0 + $0x28] sm:$0x2]  ;;  %v3094_v46 = vld [vmem:[%s5741_s0 + $0x30] sm:$0x2] }
  0x3c   :  { %5930 = vst [vmem:[#allocation6_spill] sm:$0xff] %v3053_v9  ;;  %v3081_v52 = vadd.f32 %v284_v7, %v5937_v43  ;;  %v3084_v39 = vadd.f32 %v285_v60, %v5939_v51  ;;  %5941 = vst [vmem:[#allocation14_spill] sm:$0xff] %v3089_v50  ;;  %v3099_v24 = vld [vmem:[%s5741_s0 + $0x38] sm:$0x2]  ;;  %v3101_v7 = vcombine.low %v396_v34, %v396_v34  ;;  %v5950_v26 = vld [vmem:[#allocation24_spill] sm:$0xff]  ;;  %vm2276_vm7 = vcmask 519168  }
  0x3d   :  { %5936 = vst [vmem:[#allocation11_spill] sm:$0xff] %v3078_v53  ;;  %5942 = vst [vmem:[#allocation15_spill] sm:$0xff] %v3094_v46  ;;  %v3104_v60 = vadd.f32 %v286_v0, %v5944_v1  ;;  %v3107_v18 = vadd.f32 %v287_v25, %v5946_v14  ;;  %v3110_v21 = vadd.f32 %v288_v2, %v5948_v49  ;;  %v3118_v33 = vld [vmem:[%s5741_s0 + $0x40] sm:$0x2]  ;;  %v3123_v8 = vld [vmem:[%s5741_s0 + $0x48] sm:$0x2] }
  0x3e   :  { %5938 = vst [vmem:[#allocation12_spill] sm:$0xff] %v3081_v52  ;;  %5940 = vst [vmem:[#allocation13_spill] sm:$0xff] %v3084_v39  ;;  %v3113_v28 = vadd.f32 %v289_v5, %v5950_v26  ;;  %v3128_v0 = vld [vmem:[%s5741_s0 + $0x50] sm:$0x2]  ;;  %v5955_v25 = vld [vmem:[#allocation25_spill] sm:$0xff]  ;;  %v401_v49 = vmul.bf16 %v3101_v7, %v3050_v30  ;;  %v3177_v26 = vrot.slane %v1033_v58, %v834_v62 }
  0x3f   :  { %5943 = vst [vmem:[#allocation16_spill] sm:$0xff] %v3099_v24  ;;  %5945 = vst [vmem:[#allocation17_spill] sm:$0xff] %v3104_v60  ;;  %v3131_v2 = vadd.f32 %v290_v54, %v5955_v25  ;;  %v5957_v5 = vld [vmem:[#allocation26_spill] sm:$0xff]  ;;  %v5959_v3 = vld [vmem:[#allocation27_spill] sm:$0xff]  ;;  %v3179_v25 = vcombine.low %v1274_v44, %v1274_v44  ;;  %v402_v62 = vmul.bf16 %v3101_v7, %v3058_v36 }
  0x40   :  { %5947 = vst [vmem:[#allocation18_spill] sm:$0xff] %v3107_v18  ;;  %5949 = vst [vmem:[#allocation19_spill] sm:$0xff] %v3110_v21  ;;  %v3134_v34 = vadd.f32 %v291_v10, %v5957_v5  ;;  %v3137_v32 = vadd.f32 %v292_v11, %v5959_v3  ;;  %v3142_v57 = vld [vmem:[%s5741_s0 + $0x58] sm:$0x2]  ;;  %v3147_v43 = vld [vmem:[%s5741_s0 + $0x60] sm:$0x2]  ;;  %v404_v58 = vmul.bf16 %v3101_v7, %v3068_v38  ;;  %v3318_v52 = vunpack.c.l.bf16 %v401_v49 }
  0x41   :  { %5951 = vst [vmem:[#allocation20_spill] sm:$0xff] %v3113_v28  ;;  %5952 = vst [vmem:[#allocation21_spill] sm:$0xff] %v3118_v33  ;;  %v3152_v54 = vld [vmem:[%s5741_s0 + $0x68] sm:$0x2]  ;;  %v5964_v10 = vsub.s32 1, %v5924_v27  ;;  %v405_v44 = vmul.bf16 %v3101_v7, %v3073_v45  ;;  %v407_v45 = vmul.bf16 %v3101_v7, %v3094_v46  ;;  %v408_v38 = vmul.bf16 %v3101_v7, %v3099_v24 }
  0x42   :  { %5953 = vst [vmem:[#allocation22_spill] sm:$0xff] %v3123_v8  ;;  %5954 = vst [vmem:[#allocation23_spill] sm:$0xff] %v3128_v0  ;;  %v3161_v11 = vld [vmem:[%s5741_s0 + $0x70] sm:$0x2]  ;;  %v3166_v1 = vld [vmem:[%s5741_s0 + $0x78] sm:$0x2]  ;;  %v410_v24 = vmul.bf16 %v3101_v7, %v3123_v8  ;;  %v3324_v53 = vunpack.c.l.bf16 %v404_v58 }
  0x43   :  { %5956 = vst [vmem:[#allocation24_spill] sm:$0xff] %v3131_v2  ;;  %5958 = vst [vmem:[#allocation25_spill] sm:$0xff] %v3134_v34  ;;  %v3156_v51 = vrot.slane %v594_v31, %v5964_v10  ;;  %v3171_v14 = vld [vmem:[%s5741_s0 + $0x80] sm:$0x2]  ;;  %v3175_v31 = vcombine.low %v835_v59, %v835_v59  ;;  %v3184_v5 = vld [vmem:[%s5741_s0 + $0x88] sm:$0x2]  ;;  %v403_v59 = vmul.bf16 %v3101_v7, %v3063_v37  ;;  %v3330_v9 = vunpack.c.l.bf16 %v407_v45 }
  0x44   :  { %5960 = vst [vmem:[#allocation26_spill] sm:$0xff] %v3137_v32  ;;  %5961 = vst [vmem:[#allocation27_spill] sm:$0xff] %v3142_v57  ;;  %v3189_v3 = vld [vmem:[%s5741_s0 + $0x90] sm:$0x2]  ;;  %v3194_v10 = vld [vmem:[%s5741_s0 + $0x98] sm:$0x2]  ;;  %v409_v37 = vmul.bf16 %v3101_v7, %v3118_v33  ;;  %v411_v33 = vmul.bf16 %v3101_v7, %v3128_v0  ;;  %v416_v8 = vmul.bf16 %v3101_v7, %v3166_v1  ;;  %v3336_v4 = vunpack.c.l.bf16 %v410_v24 }
  0x45   :  { %5962 = vst [vmem:[#allocation28_spill] sm:$0xff] %v3147_v43  ;;  %5963 = vst [vmem:[#allocation29_spill] sm:$0xff] %v3152_v54  ;;  %v3207_v42 = vld [vmem:[%s5741_s0 + $0xa0] sm:$0x2]  ;;  %v3212_v27 = vld [vmem:[%s5741_s0 + $0xa8] sm:$0x2]  ;;  %v417_v2 = vmul.bf16 %v3101_v7, %v3171_v14 }
  0x46   :  { %5965 = vst [vmem:[#allocation30_spill] sm:$0xff] %v3156_v51  ;;  %5966 = vst [vmem:[#allocation31_spill] sm:$0xff] %v3161_v11  ;;  %v3230_v36 = vld [vmem:[%s5741_s0 + $0xb8] sm:$0x2]  ;;  %v3235_v30 = vld [vmem:[%s5741_s0 + $0xc0] sm:$0x2]  ;;  %v421_v21 = vmul.bf16 %v3101_v7, %v3207_v42  ;;  %v422_v18 = vmul.bf16 %v3101_v7, %v3212_v27 }
  0x47   :  { %5967 = vst [vmem:[#allocation32_spill] sm:$0xff] %v3166_v1  ;;  %5968 = vst [vmem:[#allocation33_spill] sm:$0xff] %v3171_v14  ;;  %v3240_v46 = vld [vmem:[%s5741_s0 + $0xc8] sm:$0x2]  ;;  %v3253_v32 = vld [vmem:[%s5741_s0 + $0xd0] sm:$0x2]  ;;  %v418_v1 = vmul.bf16 %v3101_v7, %v3184_v5  ;;  %v419_v14 = vmul.bf16 %v3101_v7, %v3189_v3  ;;  %v424_v39 = vmul.bf16 %v3101_v7, %v3230_v36  ;;  %v3350_v45 = vunpack.c.l.bf16 %v417_v2 }
  0x48   :  { %5969 = vst [vmem:[#allocation34_spill] sm:$0xff] %v3175_v31  ;;  %5970 = vst [vmem:[#allocation35_spill] sm:$0xff] %v3177_v26  ;;  %v406_v26 = vmul.bf16 %v3101_v7, %v3089_v50  ;;  %v412_v50 = vmul.bf16 %v3101_v7, %v3142_v57  ;;  %v413_v31 = vmul.bf16 %v3101_v7, %v3147_v43  ;;  %v3258_v34 = vld [vmem:[%s5741_s0 + $0xd8] sm:$0x2]  ;;  %v3263_v0 = vld [vmem:[%s5741_s0 + $0xe0] sm:$0x2] }
  0x49   :  { %5971 = vst [vmem:[#allocation36_spill] sm:$0xff] %v3179_v25  ;;  %5972 = vst [vmem:[#allocation37_spill] sm:$0xff] %v3184_v5  ;;  %v3217_v25 = vld [vmem:[%s5741_s0 + $0xb0] sm:$0x2]  ;;  %v414_v57 = vmul.bf16 %v3101_v7, %v3152_v54  ;;  %v415_v43 = vmul.bf16 %v3101_v7, %v3161_v11  ;;  %v3276_v28 = vld [vmem:[%s5741_s0 + $0xe8] sm:$0x2]  ;;  %v420_v54 = vmul.bf16 %v3101_v7, %v3194_v10 }
  0x4a   :  { %5973 = vst [vmem:[#allocation38_spill] sm:$0xff] %v3189_v3  ;;  %5974 = vst [vmem:[#allocation39_spill] sm:$0xff] %v3194_v10  ;;  %v3281_v51 = vld [vmem:[%s5741_s0 + $0xf0] sm:$0x2]  ;;  %v3286_v11 = vld [vmem:[%s5741_s0 + $0xf8] sm:$0x2]  ;;  %v423_v60 = vmul.bf16 %v3101_v7, %v3217_v25  ;;  %v425_v5 = vmul.bf16 %v3101_v7, %v3235_v30  ;;  %v426_v3 = vmul.bf16 %v3101_v7, %v3240_v46  ;;  %v3340_v49 = vunpack.c.l.bf16 %v412_v50 }
  0x4b   :  { %5975 = vst [vmem:[#allocation40_spill] sm:$0xff] %v3207_v42  ;;  %5976 = vst [vmem:[#allocation41_spill] sm:$0xff] %v3212_v27  ;;  %v427_v10 = vmul.bf16 %v3101_v7, %v3253_v32  ;;  %v428_v42 = vmul.bf16 %v3101_v7, %v3258_v34  ;;  %v429_v27 = vmul.bf16 %v3101_v7, %v3263_v0  ;;  %v3346_v58 = vunpack.c.l.bf16 %v415_v43 }
  0x4c   :  { %5977 = vst [vmem:[#allocation42_spill] sm:$0xff] %v3217_v25  ;;  %5978 = vst [vmem:[#allocation43_spill] sm:$0xff] %v3230_v36  ;;  %v430_v25 = vmul.bf16 %v3101_v7, %v3276_v28  ;;  %v431_v36 = vmul.bf16 %v3101_v7, %v3281_v51  ;;  %v3356_v24 = vunpack.c.l.bf16 %v420_v54  ;;  %v3360_v50 = vunpack.c.l.bf16 %v422_v18 }
  0x4d   :  { %5979 = vst [vmem:[#allocation44_spill] sm:$0xff] %v3235_v30  ;;  %5980 = vst [vmem:[#allocation45_spill] sm:$0xff] %v3240_v46  ;;  %v432_v30 = vmul.bf16 %v3101_v7, %v3286_v11  ;;  %v3320_v46 = vunpack.c.l.bf16 %v402_v62  ;;  %v3338_v7 = vunpack.c.l.bf16 %v411_v33  ;;  %v3342_v62 = vunpack.c.l.bf16 %v413_v31 }
  0x4e   :  { %5981 = vst [vmem:[#allocation46_spill] sm:$0xff] %v3253_v32  ;;  %5982 = vst [vmem:[#allocation47_spill] sm:$0xff] %v3258_v34  ;;  %v3322_v32 = vunpack.c.l.bf16 %v403_v59  ;;  %v3326_v34 = vunpack.c.l.bf16 %v405_v44  ;;  %v3344_v59 = vunpack.c.l.bf16 %v414_v57  ;;  %v3358_v33 = vunpack.c.l.bf16 %v421_v21 }
  0x4f   :  { %5983 = vst [vmem:[#allocation48_spill] sm:$0xff] %v3263_v0  ;;  %5984 = vst [vmem:[#allocation49_spill] sm:$0xff] %v3276_v28  ;;  %v3328_v0 = vunpack.c.l.bf16 %v406_v26  ;;  %v3332_v28 = vunpack.c.l.bf16 %v408_v38  ;;  %v3348_v26 = vunpack.c.l.bf16 %v416_v8  ;;  %v3352_v38 = vunpack.c.l.bf16 %v418_v1 }
  0x50   :  { %5985 = vst [vmem:[#allocation50_spill] sm:$0xff] %v3281_v51  ;;  %v3334_v51 = vunpack.c.l.bf16 %v409_v37  ;;  %v3354_v37 = vunpack.c.l.bf16 %v419_v14  ;;  %v3362_v31 = vunpack.c.l.bf16 %v423_v60  ;;  %v3364_v57 = vunpack.c.l.bf16 %v424_v39 }
  0x51   :  { %v3366_v43 = vunpack.c.l.bf16 %v425_v5  ;;  %v3368_v8 = vunpack.c.l.bf16 %v426_v3  ;;  %v3370_v2 = vunpack.c.l.bf16 %v427_v10  ;;  %v3372_v1 = vunpack.c.l.bf16 %v428_v42 }
  0x52   :  { %v3374_v14 = vunpack.c.l.bf16 %v429_v27  ;;  %v3376_v54 = vunpack.c.l.bf16 %v430_v25  ;;  %v3378_v21 = vunpack.c.l.bf16 %v431_v36  ;;  %v3380_v18 = vunpack.c.l.bf16 %v432_v30 }
  0x53   :  { %v497_v60 = vrot.slane %v3318_v52, 2  ;;  %v498_v39 = vrot.slane %v3320_v46, 2  ;;  %v499_v5 = vrot.slane %v3322_v32, 2  ;;  %v500_v3 = vrot.slane %v3324_v53, 2 }
  0x54   :  { %v501_v10 = vrot.slane %v3326_v34, 2  ;;  %v502_v42 = vrot.slane %v3328_v0, 2  ;;  %v503_v27 = vrot.slane %v3330_v9, 2  ;;  %v504_v25 = vrot.slane %v3332_v28, 2 }
  0x55   :  { %v505_v36 = vrot.slane %v3334_v51, 2  ;;  %v506_v30 = vrot.slane %v3336_v4, 2  ;;  %v507_v52 = vrot.slane %v3338_v7, 2  ;;  %v508_v46 = vrot.slane %v3340_v49, 2 }
  0x56   :  { %v509_v32 = vrot.slane %v3342_v62, 2  ;;  %v510_v53 = vrot.slane %v3344_v59, 2  ;;  %v511_v34 = vrot.slane %v3346_v58, 2  ;;  %v512_v0 = vrot.slane %v3348_v26, 2 }
  0x57   :  { %v513_v9 = vrot.slane %v3350_v45, 2  ;;  %v514_v28 = vrot.slane %v3352_v38, 2  ;;  %v515_v51 = vrot.slane %v3354_v37, 2  ;;  %v516_v4 = vrot.slane %v3356_v24, 2 }
  0x58   :  { %v517_v44 = vrot.slane %v3358_v33, 2  ;;  %v518_v7 = vrot.slane %v3360_v50, 2  ;;  %v519_v49 = vrot.slane %v3362_v31, 2  ;;  %v520_v62 = vrot.slane %v3364_v57, 2 }
  0x59   :  { %v521_v59 = vrot.slane %v3366_v43, 2  ;;  %v522_v58 = vrot.slane %v3368_v8, 2  ;;  %v523_v26 = vrot.slane %v3370_v2, 2  ;;  %v524_v45 = vrot.slane %v3372_v1, 2 }
  0x5a   :  { %v525_v38 = vrot.slane %v3374_v14, 2  ;;  %v526_v37 = vrot.slane %v3376_v54, 2  ;;  %v527_v24 = vrot.slane %v3378_v21, 2  ;;  %v528_v33 = vrot.slane %v3380_v18, 2  ;;  %v5991_v54 = vld [vmem:[#allocation11_spill] sm:$0xff]  ;;  %v5993_v21 = vld [vmem:[#allocation12_spill] sm:$0xff] }
  0x5b   :  { %v3415_v50 = vadd.f32 %v497_v60, %v2975_v12  ;;  %v3418_v31 = vadd.f32 %v498_v39, %v2978_v13  ;;  %v3421_v57 = vadd.f32 %v499_v5, %v2984_v15  ;;  %v3424_v43 = vadd.f32 %v500_v3, %v2987_v16  ;;  %v5995_v18 = vld [vmem:[#allocation13_spill] sm:$0xff]  ;;  %v3497_v60 = vld [vmem:[%s5741_s0 + $0x8] sm:$0x4]  ;;  %v3502_v39 = vld [vmem:[%s5741_s0 + $0x10] sm:$0x4] }
  0x5c   :  { %v3427_v8 = vadd.f32 %v501_v10, %v2990_v17  ;;  %v3430_v2 = vadd.f32 %v502_v42, %v2996_v48  ;;  %v3433_v1 = vadd.f32 %v503_v27, %v2999_v19  ;;  %v3436_v12 = vadd.f32 %v504_v25, %v3002_v56  ;;  %5997 = vst [vmem:[#allocation52_spill] sm:$0xff] %v3497_v60  ;;  %v3507_v5 = vld [vmem:[%s5741_s0 + $0x18] sm:$0x4]  ;;  %v6002_v42 = vld [vmem:[#allocation18_spill] sm:$0xff]  ;;  %v6004_v25 = vld [vmem:[#allocation19_spill] sm:$0xff] }
  0x5d   :  { %v3439_v13 = vadd.f32 %v505_v36, %v3005_v47  ;;  %v3442_v15 = vadd.f32 %v506_v30, %v3008_v61  ;;  %v3445_v16 = vadd.f32 %v507_v52, %v3011_v20  ;;  %v3448_v17 = vadd.f32 %v508_v46, %v3016_v63  ;;  %5998 = vst [vmem:[#allocation53_spill] sm:$0xff] %v3502_v39  ;;  %v6000_v3 = vld [vmem:[#allocation17_spill] sm:$0xff]  ;;  %v6006_v30 = vld [vmem:[#allocation30_spill] sm:$0xff]  ;;  %v6038_v39 = vld [vmem:[#allocation39_spill] sm:$0xff] }
  0x5e   :  { %v3451_v48 = vadd.f32 %v509_v32, %v3019_v6  ;;  %v3454_v19 = vadd.f32 %v510_v53, %v3022_v41  ;;  %v3457_v56 = vadd.f32 %v511_v34, %v3027_v35  ;;  %v3460_v47 = vadd.f32 %v512_v0, %v3030_v40  ;;  %v5986_v41 = vld [vmem:[#allocation4_spill] sm:$0xff]  ;;  %v3480_v35 = vld [vmem:[%s5741_s0] sm:$0x4]  ;;  %5999 = vst [vmem:[#allocation54_spill] sm:$0xff] %v3507_v5  ;;  %v3530_v32 = vld [vmem:[%s5741_s0 + $0x28] sm:$0x4] }
  0x5f   :  { %v3463_v61 = vadd.f32 %v513_v9, %v3033_v55  ;;  %v3466_v20 = vadd.f32 %v514_v28, %v3036_v22  ;;  %v3469_v63 = vadd.f32 %v515_v51, %v3039_v23  ;;  %v3472_v6 = vadd.f32 %v516_v4, %v3042_v29  ;;  %5988 = vst [vmem:[#allocation51_spill] sm:$0xff] %v3480_v35  ;;  %v5989_v40 = vld [vmem:[#allocation6_spill] sm:$0xff]  ;;  %v3535_v53 = vld [vmem:[%s5741_s0 + $0x30] sm:$0x4]  ;;  %v6014_v51 = vld [vmem:[#allocation25_spill] sm:$0xff] }
  0x60   :  { %v3475_v14 = vadd.f32 %v517_v44, %v5986_v41  ;;  %v3483_v55 = vadd.f32 %v518_v7, %v5989_v40  ;;  %v3486_v22 = vadd.f32 %v519_v49, %v5991_v54  ;;  %v3489_v23 = vadd.f32 %v520_v62, %v5993_v21  ;;  %v3525_v46 = vld [vmem:[%s5741_s0 + $0x20] sm:$0x4]  ;;  %6008 = vst [vmem:[#allocation55_spill] sm:$0xff] %v3530_v32  ;;  %v6010_v34 = vld [vmem:[#allocation20_spill] sm:$0xff]  ;;  %v6020_v41 = vld [vmem:[#allocation7_spill] sm:$0xff] }
  0x61   :  { %v3492_v29 = vadd.f32 %v521_v59, %v5995_v18  ;;  %v3510_v10 = vadd.f32 %v522_v58, %v6000_v3  ;;  %v3513_v27 = vadd.f32 %v523_v26, %v6002_v42  ;;  %v3516_v36 = vadd.f32 %v524_v45, %v6004_v25  ;;  %6007 = vst [vmem:[#allocation30_spill] sm:$0xff] %v3525_v46  ;;  %v6012_v9 = vld [vmem:[#allocation24_spill] sm:$0xff]  ;;  %v6016_v44 = vld [vmem:[#allocation26_spill] sm:$0xff]  ;;  %v6019_v45 = vld [vmem:[#allocation5_spill] sm:$0xff] }
  0x62   :  { %5987 = vst [vmem:[#allocation4_spill] sm:$0xff] %v3475_v14  ;;  %5990 = vst [vmem:[#allocation6_spill] sm:$0xff] %v3483_v55  ;;  %v3520_v52 = vcombine.low %v6006_v30, %v6006_v30  ;;  %v3538_v0 = vadd.f32 %v525_v38, %v6010_v34  ;;  %v3541_v28 = vadd.f32 %v526_v37, %v6012_v9  ;;  %v6021_v54 = vld [vmem:[#allocation8_spill] sm:$0xff]  ;;  %v6022_v18 = vld [vmem:[#allocation9_spill] sm:$0xff] }
  0x63   :  { %5992 = vst [vmem:[#allocation11_spill] sm:$0xff] %v3486_v22  ;;  %5994 = vst [vmem:[#allocation12_spill] sm:$0xff] %v3489_v23  ;;  %v3544_v4 = vadd.f32 %v527_v24, %v6014_v51  ;;  %v3547_v7 = vadd.f32 %v528_v33, %v6016_v44  ;;  %v6023_v42 = vld [vmem:[#allocation10_spill] sm:$0xff]  ;;  %v6025_v9 = vld [vmem:[#allocation15_spill] sm:$0xff] }
  0x64   :  { %5996 = vst [vmem:[#allocation13_spill] sm:$0xff] %v3492_v29  ;;  %6001 = vst [vmem:[#allocation17_spill] sm:$0xff] %v3510_v10  ;;  %v604_v38 = vmul.bf16 %v3520_v52, %v6019_v45  ;;  %v605_v40 = vmul.bf16 %v3520_v52, %v6020_v41  ;;  %v606_v21 = vmul.bf16 %v3520_v52, %v6021_v54  ;;  %v6024_v30 = vld [vmem:[#allocation14_spill] sm:$0xff]  ;;  %v6026_v44 = vld [vmem:[#allocation16_spill] sm:$0xff] }
  0x65   :  { %6003 = vst [vmem:[#allocation18_spill] sm:$0xff] %v3513_v27  ;;  %6005 = vst [vmem:[#allocation19_spill] sm:$0xff] %v3516_v36  ;;  %v607_v3 = vmul.bf16 %v3520_v52, %v6022_v18  ;;  %v608_v25 = vmul.bf16 %v3520_v52, %v6023_v42  ;;  %v609_v34 = vmul.bf16 %v3520_v52, %v6024_v30  ;;  %v6027_v33 = vld [vmem:[#allocation21_spill] sm:$0xff]  ;;  %v6028_v24 = vld [vmem:[#allocation22_spill] sm:$0xff] }
  0x66   :  { %6009 = vst [vmem:[#allocation56_spill] sm:$0xff] %v3535_v53  ;;  %6011 = vst [vmem:[#allocation20_spill] sm:$0xff] %v3538_v0  ;;  %v610_v51 = vmul.bf16 %v3520_v52, %v6025_v9  ;;  %v611_v45 = vmul.bf16 %v3520_v52, %v6026_v44  ;;  %v612_v41 = vmul.bf16 %v3520_v52, %v6027_v33  ;;  %v6029_v37 = vld [vmem:[#allocation23_spill] sm:$0xff]  ;;  %v6031_v58 = vld [vmem:[#allocation28_spill] sm:$0xff]  ;;  %v3627_v23 = vunpack.c.l.bf16 %v604_v38 }
  0x67   :  { %6013 = vst [vmem:[#allocation24_spill] sm:$0xff] %v3541_v28  ;;  %6015 = vst [vmem:[#allocation25_spill] sm:$0xff] %v3544_v4  ;;  %v613_v54 = vmul.bf16 %v3520_v52, %v6028_v24  ;;  %v614_v18 = vmul.bf16 %v3520_v52, %v6029_v37  ;;  %v6030_v26 = vld [vmem:[#allocation27_spill] sm:$0xff]  ;;  %v616_v30 = vmul.bf16 %v3520_v52, %v6031_v58  ;;  %v6032_v59 = vld [vmem:[#allocation29_spill] sm:$0xff]  ;;  %v3633_v22 = vunpack.c.l.bf16 %v607_v3 }
  0x68   :  { %6017 = vst [vmem:[#allocation26_spill] sm:$0xff] %v3547_v7  ;;  %v615_v42 = vmul.bf16 %v3520_v52, %v6030_v26  ;;  %v617_v9 = vmul.bf16 %v3520_v52, %v6032_v59  ;;  %v6033_v62 = vld [vmem:[#allocation31_spill] sm:$0xff]  ;;  %v6034_v53 = vld [vmem:[#allocation32_spill] sm:$0xff]  ;;  %v6035_v32 = vld [vmem:[#allocation33_spill] sm:$0xff]  ;;  %v623_v58 = vmul.bf16 %v3520_v52, %v6038_v39  ;;  %v3639_v55 = vunpack.c.l.bf16 %v610_v51 }
  0x69   :  { %v618_v44 = vmul.bf16 %v3520_v52, %v6033_v62  ;;  %v619_v33 = vmul.bf16 %v3520_v52, %v6034_v53  ;;  %v620_v24 = vmul.bf16 %v3520_v52, %v6035_v32  ;;  %v6036_v46 = vld [vmem:[#allocation37_spill] sm:$0xff]  ;;  %v6037_v5 = vld [vmem:[#allocation38_spill] sm:$0xff]  ;;  %v6039_v60 = vld [vmem:[#allocation40_spill] sm:$0xff]  ;;  %v3645_v14 = vunpack.c.l.bf16 %v613_v54 }
  0x6a   :  { %v621_v37 = vmul.bf16 %v3520_v52, %v6036_v46  ;;  %v622_v26 = vmul.bf16 %v3520_v52, %v6037_v5  ;;  %v624_v59 = vmul.bf16 %v3520_v52, %v6039_v60  ;;  %v6040_v35 = vld [vmem:[#allocation41_spill] sm:$0xff]  ;;  %v6041_v49 = vld [vmem:[#allocation42_spill] sm:$0xff]  ;;  %v6042_v7 = vld [vmem:[#allocation43_spill] sm:$0xff]  ;;  %v3651_v38 = vunpack.c.l.bf16 %v616_v30 }
  0x6b   :  { %v625_v62 = vmul.bf16 %v3520_v52, %v6040_v35  ;;  %v626_v53 = vmul.bf16 %v3520_v52, %v6041_v49  ;;  %v627_v32 = vmul.bf16 %v3520_v52, %v6042_v7  ;;  %v6043_v4 = vld [vmem:[#allocation44_spill] sm:$0xff]  ;;  %v6044_v28 = vld [vmem:[#allocation45_spill] sm:$0xff]  ;;  %v6045_v0 = vld [vmem:[#allocation46_spill] sm:$0xff]  ;;  %v3657_v3 = vunpack.c.l.bf16 %v619_v33 }
  0x6c   :  { %v628_v46 = vmul.bf16 %v3520_v52, %v6043_v4  ;;  %v629_v5 = vmul.bf16 %v3520_v52, %v6044_v28  ;;  %v630_v39 = vmul.bf16 %v3520_v52, %v6045_v0  ;;  %v6046_v36 = vld [vmem:[#allocation47_spill] sm:$0xff]  ;;  %v6047_v27 = vld [vmem:[#allocation48_spill] sm:$0xff]  ;;  %v6048_v10 = vld [vmem:[#allocation49_spill] sm:$0xff]  ;;  %v635_v4 = vmul.bf16 %v3520_v52, %v3286_v11 }
  0x6d   :  { %v631_v60 = vmul.bf16 %v3520_v52, %v6046_v36  ;;  %v632_v35 = vmul.bf16 %v3520_v52, %v6047_v27  ;;  %v633_v49 = vmul.bf16 %v3520_v52, %v6048_v10  ;;  %v6049_v29 = vld [vmem:[#allocation50_spill] sm:$0xff]  ;;  %v3629_v28 = vunpack.c.l.bf16 %v605_v40 }
  0x6e   :  { %v634_v7 = vmul.bf16 %v3520_v52, %v6049_v29  ;;  %v3631_v0 = vunpack.c.l.bf16 %v606_v21  ;;  %v3635_v36 = vunpack.c.l.bf16 %v608_v25  ;;  %v3637_v27 = vunpack.c.l.bf16 %v609_v34 }
  0x6f   :  { %v3641_v10 = vunpack.c.l.bf16 %v611_v45  ;;  %v3643_v29 = vunpack.c.l.bf16 %v612_v41  ;;  %v3647_v11 = vunpack.c.l.bf16 %v614_v18  ;;  %v3649_v52 = vunpack.c.l.bf16 %v615_v42 }
  0x70   :  { %v3653_v40 = vunpack.c.l.bf16 %v617_v9  ;;  %v3655_v21 = vunpack.c.l.bf16 %v618_v44  ;;  %v3659_v25 = vunpack.c.l.bf16 %v620_v24  ;;  %v3661_v34 = vunpack.c.l.bf16 %v621_v37 }
  0x71   :  { %v3663_v51 = vunpack.c.l.bf16 %v622_v26  ;;  %v3665_v45 = vunpack.c.l.bf16 %v623_v58  ;;  %v3667_v41 = vunpack.c.l.bf16 %v624_v59  ;;  %v3669_v54 = vunpack.c.l.bf16 %v625_v62 }
  0x72   :  { %v3671_v18 = vunpack.c.l.bf16 %v626_v53  ;;  %v3673_v42 = vunpack.c.l.bf16 %v627_v32  ;;  %v3675_v30 = vunpack.c.l.bf16 %v628_v46  ;;  %v3677_v9 = vunpack.c.l.bf16 %v629_v5 }
  0x73   :  { %v3679_v44 = vunpack.c.l.bf16 %v630_v39  ;;  %v3681_v33 = vunpack.c.l.bf16 %v631_v60  ;;  %v3683_v24 = vunpack.c.l.bf16 %v632_v35  ;;  %v3685_v37 = vunpack.c.l.bf16 %v633_v49 }
  0x74   :  { %v3687_v26 = vunpack.c.l.bf16 %v634_v7  ;;  %v3689_v58 = vunpack.c.l.bf16 %v635_v4  ;;  %v700_v59 = vrot.slane %v3627_v23, 3  ;;  %v701_v62 = vrot.slane %v3629_v28, 3 }
  0x75   :  { %v702_v53 = vrot.slane %v3631_v0, 3  ;;  %v703_v32 = vrot.slane %v3633_v22, 3  ;;  %v704_v46 = vrot.slane %v3635_v36, 3  ;;  %v705_v5 = vrot.slane %v3637_v27, 3 }
  0x76   :  { %v706_v39 = vrot.slane %v3639_v55, 3  ;;  %v707_v60 = vrot.slane %v3641_v10, 3  ;;  %v708_v35 = vrot.slane %v3643_v29, 3  ;;  %v709_v49 = vrot.slane %v3645_v14, 3 }
  0x77   :  { %v710_v23 = vrot.slane %v3647_v11, 3  ;;  %v711_v7 = vrot.slane %v3649_v52, 3  ;;  %v712_v4 = vrot.slane %v3651_v38, 3  ;;  %v713_v22 = vrot.slane %v3653_v40, 3 }
  0x78   :  { %v714_v28 = vrot.slane %v3655_v21, 3  ;;  %v715_v0 = vrot.slane %v3657_v3, 3  ;;  %v716_v55 = vrot.slane %v3659_v25, 3  ;;  %v717_v36 = vrot.slane %v3661_v34, 3 }
  0x79   :  { %v718_v27 = vrot.slane %v3663_v51, 3  ;;  %v719_v14 = vrot.slane %v3665_v45, 3  ;;  %v720_v10 = vrot.slane %v3667_v41, 3  ;;  %v721_v29 = vrot.slane %v3669_v54, 3 }
  0x7a   :  { %v722_v11 = vrot.slane %v3671_v18, 3  ;;  %v723_v52 = vrot.slane %v3673_v42, 3  ;;  %v724_v38 = vrot.slane %v3675_v30, 3  ;;  %v725_v40 = vrot.slane %v3677_v9, 3 }
  0x7b   :  { %v726_v21 = vrot.slane %v3679_v44, 3  ;;  %v727_v3 = vrot.slane %v3681_v33, 3  ;;  %v728_v25 = vrot.slane %v3683_v24, 3  ;;  %v729_v34 = vrot.slane %v3685_v37, 3  ;;  %v6054_v33 = vld [vmem:[#allocation4_spill] sm:$0xff] }
  0x7c   :  { %v730_v51 = vrot.slane %v3687_v26, 3  ;;  %v731_v45 = vrot.slane %v3689_v58, 3  ;;  %v3724_v41 = vadd.f32 %v700_v59, %v3415_v50  ;;  %v3727_v54 = vadd.f32 %v701_v62, %v3418_v31  ;;  %v3809_v37 = vld [vmem:[%s5741_s0 + $0x58] sm:$0x4]  ;;  %v3814_v26 = vld [vmem:[%s5741_s0 + $0x60] sm:$0x4] }
  0x7d   :  { %v3730_v18 = vadd.f32 %v702_v53, %v3421_v57  ;;  %v3733_v42 = vadd.f32 %v703_v32, %v3424_v43  ;;  %v3736_v30 = vadd.f32 %v704_v46, %v3427_v8  ;;  %v3739_v9 = vadd.f32 %v705_v5, %v3430_v2  ;;  %6056 = vst [vmem:[#allocation14_spill] sm:$0xff] %v3809_v37  ;;  %v6061_v58 = vld [vmem:[#allocation11_spill] sm:$0xff]  ;;  %v6063_v62 = vld [vmem:[#allocation12_spill] sm:$0xff]  ;;  %v6065_v32 = vld [vmem:[#allocation13_spill] sm:$0xff] }
  0x7e   :  { %v3742_v44 = vadd.f32 %v706_v39, %v3433_v1  ;;  %v3745_v50 = vadd.f32 %v707_v60, %v3436_v12  ;;  %v3748_v31 = vadd.f32 %v708_v35, %v3439_v13  ;;  %v3751_v57 = vadd.f32 %v709_v49, %v3442_v15  ;;  %v3765_v1 = vld [vmem:[%s5741_s0 + $0x38] sm:$0x4]  ;;  %6057 = vst [vmem:[#allocation15_spill] sm:$0xff] %v3814_v26  ;;  %v3836_v5 = vld [vmem:[%s5741_s0 + $0x70] sm:$0x4] }
  0x7f   :  { %v3754_v43 = vadd.f32 %v710_v23, %v3445_v16  ;;  %v3757_v8 = vadd.f32 %v711_v7, %v3448_v17  ;;  %v3760_v2 = vadd.f32 %v712_v4, %v3451_v48  ;;  %6050 = vst [vmem:[#allocation5_spill] sm:$0xff] %v3765_v1  ;;  %v3768_v12 = vadd.f32 %v713_v22, %v3454_v19  ;;  %v3782_v17 = vld [vmem:[%s5741_s0 + $0x40] sm:$0x4]  ;;  %v3787_v48 = vld [vmem:[%s5741_s0 + $0x48] sm:$0x4]  ;;  %v6070_v35 = vld [vmem:[#allocation17_spill] sm:$0xff] }
  0x80   :  { %v3771_v13 = vadd.f32 %v714_v28, %v3457_v56  ;;  %v3774_v15 = vadd.f32 %v715_v0, %v3460_v47  ;;  %v3777_v16 = vadd.f32 %v716_v55, %v3463_v61  ;;  %6051 = vst [vmem:[#allocation7_spill] sm:$0xff] %v3782_v17  ;;  %6052 = vst [vmem:[#allocation8_spill] sm:$0xff] %v3787_v48  ;;  %v3792_v19 = vld [vmem:[%s5741_s0 + $0x50] sm:$0x4]  ;;  %v3841_v39 = vld [vmem:[%s5741_s0 + $0x78] sm:$0x4] }
  0x81   :  { %6053 = vst [vmem:[#allocation9_spill] sm:$0xff] %v3792_v19  ;;  %v3795_v56 = vadd.f32 %v717_v36, %v3466_v20  ;;  %v3798_v47 = vadd.f32 %v718_v27, %v3469_v63  ;;  %v3801_v61 = vadd.f32 %v719_v14, %v3472_v6  ;;  %v3804_v24 = vadd.f32 %v720_v10, %v6054_v33  ;;  %v3819_v20 = vld [vmem:[%s5741_s0 + $0x68] sm:$0x4]  ;;  %v6059_v63 = vld [vmem:[#allocation6_spill] sm:$0xff]  ;;  %v6076_v28 = vld [vmem:[#allocation20_spill] sm:$0xff] }
  0x82   :  { %6058 = vst [vmem:[#allocation16_spill] sm:$0xff] %v3819_v20  ;;  %v3822_v6 = vadd.f32 %v721_v29, %v6059_v63  ;;  %v3825_v59 = vadd.f32 %v722_v11, %v6061_v58  ;;  %v3828_v53 = vadd.f32 %v723_v52, %v6063_v62  ;;  %v3831_v46 = vadd.f32 %v724_v38, %v6065_v32  ;;  %v3846_v60 = vld [vmem:[%s5741_s0 + $0x80] sm:$0x4]  ;;  %v6074_v4 = vld [vmem:[#allocation19_spill] sm:$0xff]  ;;  %v3868_v36 = vld [vmem:[%s5741_s0 + $0x90] sm:$0x4] }
  0x83   :  { %6055 = vst [vmem:[#allocation10_spill] sm:$0xff] %v3804_v24  ;;  %6067 = vst [vmem:[#allocation28_spill] sm:$0xff] %v3836_v5  ;;  %v3849_v49 = vadd.f32 %v725_v40, %v6070_v35  ;;  %v6072_v23 = vld [vmem:[#allocation18_spill] sm:$0xff]  ;;  %v3855_v22 = vadd.f32 %v727_v3, %v6074_v4  ;;  %v3858_v0 = vadd.f32 %v728_v25, %v6076_v28  ;;  %v3863_v55 = vld [vmem:[%s5741_s0 + $0x88] sm:$0x4] }
  0x84   :  { %6060 = vst [vmem:[#allocation21_spill] sm:$0xff] %v3822_v6  ;;  %6062 = vst [vmem:[#allocation22_spill] sm:$0xff] %v3825_v59  ;;  %v3852_v7 = vadd.f32 %v726_v21, %v6072_v23  ;;  %v3873_v27 = vld [vmem:[%s5741_s0 + $0x98] sm:$0x4]  ;;  %v6081_v14 = vld [vmem:[#allocation24_spill] sm:$0xff] }
  0x85   :  { %6064 = vst [vmem:[#allocation23_spill] sm:$0xff] %v3828_v53  ;;  %6066 = vst [vmem:[#allocation27_spill] sm:$0xff] %v3831_v46  ;;  %v3876_v10 = vadd.f32 %v729_v34, %v6081_v14  ;;  %v6083_v29 = vld [vmem:[#allocation25_spill] sm:$0xff]  ;;  %v6085_v52 = vld [vmem:[#allocation26_spill] sm:$0xff] }
  0x86   :  { %6068 = vst [vmem:[#allocation29_spill] sm:$0xff] %v3841_v39  ;;  %6069 = vst [vmem:[#allocation31_spill] sm:$0xff] %v3846_v60  ;;  %v3879_v11 = vadd.f32 %v730_v51, %v6083_v29  ;;  %v3882_v38 = vadd.f32 %v731_v45, %v6085_v52  ;;  %v3887_v40 = vld [vmem:[%s5741_s0 + $0xa0] sm:$0x4]  ;;  %v3892_v21 = vld [vmem:[%s5741_s0 + $0xa8] sm:$0x4] }
  0x87   :  { %6071 = vst [vmem:[#allocation32_spill] sm:$0xff] %v3849_v49  ;;  %6073 = vst [vmem:[#allocation33_spill] sm:$0xff] %v3852_v7  ;;  %v3897_v3 = vld [vmem:[%s5741_s0 + $0xb0] sm:$0x4]  ;;  %v6090_v25 = vld [vmem:[#allocation34_spill] sm:$0xff] }
  0x88   :  { %6075 = vst [vmem:[#allocation37_spill] sm:$0xff] %v3855_v22  ;;  %6077 = vst [vmem:[#allocation38_spill] sm:$0xff] %v3858_v0  ;;  %v847_v34 = vmul.bf16 %v6090_v25, %v3765_v1  ;;  %v3904_v51 = vld [vmem:[%s5741_s0 + $0xb8] sm:$0x4]  ;;  %v3909_v45 = vld [vmem:[%s5741_s0 + $0xc0] sm:$0x4]  ;;  %v848_v63 = vmul.bf16 %v6090_v25, %v3782_v17  ;;  %v849_v58 = vmul.bf16 %v6090_v25, %v3787_v48 }
  0x89   :  { %6078 = vst [vmem:[#allocation39_spill] sm:$0xff] %v3863_v55  ;;  %6079 = vst [vmem:[#allocation40_spill] sm:$0xff] %v3868_v36  ;;  %v3914_v33 = vld [vmem:[%s5741_s0 + $0xc8] sm:$0x4]  ;;  %v850_v62 = vmul.bf16 %v6090_v25, %v3792_v19  ;;  %v851_v32 = vmul.bf16 %v6090_v25, %v3809_v37  ;;  %v3927_v35 = vld [vmem:[%s5741_s0 + $0xd0] sm:$0x4]  ;;  %v852_v28 = vmul.bf16 %v6090_v25, %v3814_v26 }
  0x8a   :  { %6080 = vst [vmem:[#allocation41_spill] sm:$0xff] %v3873_v27  ;;  %6082 = vst [vmem:[#allocation42_spill] sm:$0xff] %v3876_v10  ;;  %v3932_v23 = vld [vmem:[%s5741_s0 + $0xd8] sm:$0x4]  ;;  %v3937_v4 = vld [vmem:[%s5741_s0 + $0xe0] sm:$0x4]  ;;  %v853_v14 = vmul.bf16 %v6090_v25, %v3819_v20  ;;  %v854_v29 = vmul.bf16 %v6090_v25, %v3836_v5  ;;  %v855_v52 = vmul.bf16 %v6090_v25, %v3841_v39  ;;  %v4029_v59 = vunpack.c.l.bf16 %v847_v34 }
  0x8b   :  { %6084 = vst [vmem:[#allocation43_spill] sm:$0xff] %v3879_v11  ;;  %6086 = vst [vmem:[#allocation44_spill] sm:$0xff] %v3882_v38  ;;  %v3950_v37 = vld [vmem:[%s5741_s0 + $0xe8] sm:$0x4]  ;;  %v3955_v19 = vld [vmem:[%s5741_s0 + $0xf0] sm:$0x4]  ;;  %v856_v5 = vmul.bf16 %v6090_v25, %v3846_v60  ;;  %v857_v39 = vmul.bf16 %v6090_v25, %v3863_v55  ;;  %v858_v26 = vmul.bf16 %v6090_v25, %v3868_v36  ;;  %v4035_v6 = vunpack.c.l.bf16 %v850_v62 }
  0x8c   :  { %6087 = vst [vmem:[#allocation45_spill] sm:$0xff] %v3887_v40  ;;  %6088 = vst [vmem:[#allocation46_spill] sm:$0xff] %v3892_v21  ;;  %v3960_v20 = vld [vmem:[%s5741_s0 + $0xf8] sm:$0x4]  ;;  %v859_v48 = vmul.bf16 %v6090_v25, %v3873_v27  ;;  %v860_v17 = vmul.bf16 %v6090_v25, %v3887_v40  ;;  %v861_v1 = vmul.bf16 %v6090_v25, %v3892_v21  ;;  %v6110_v46 = vld [vmem:[#allocation55_spill] sm:$0xff]  ;;  %v4045_v24 = vunpack.c.l.bf16 %v855_v52 }
  0x8d   :  { %6089 = vst [vmem:[#allocation47_spill] sm:$0xff] %v3897_v3  ;;  %6091 = vst [vmem:[#allocation48_spill] sm:$0xff] %v3904_v51  ;;  %v862_v38 = vmul.bf16 %v6090_v25, %v3897_v3  ;;  %v863_v60 = vmul.bf16 %v6090_v25, %v3904_v51  ;;  %v864_v55 = vmul.bf16 %v6090_v25, %v3909_v45  ;;  %v6112_v53 = vld [vmem:[#allocation56_spill] sm:$0xff]  ;;  %v4049_v34 = vunpack.c.l.bf16 %v857_v39 }
  0x8e   :  { %6092 = vst [vmem:[#allocation49_spill] sm:$0xff] %v3909_v45  ;;  %6093 = vst [vmem:[#allocation50_spill] sm:$0xff] %v3914_v33  ;;  %v865_v36 = vmul.bf16 %v6090_v25, %v3914_v33  ;;  %v866_v27 = vmul.bf16 %v6090_v25, %v3927_v35  ;;  %v867_v40 = vmul.bf16 %v6090_v25, %v3932_v23  ;;  %v6100_v33 = vld [vmem:[#allocation51_spill] sm:$0xff]  ;;  %v4055_v62 = vunpack.c.l.bf16 %v860_v17 }
  0x8f   :  { %6094 = vst [vmem:[#allocation4_spill] sm:$0xff] %v3927_v35  ;;  %6095 = vst [vmem:[#allocation6_spill] sm:$0xff] %v3932_v23  ;;  %v868_v21 = vmul.bf16 %v6090_v25, %v3937_v4  ;;  %v869_v3 = vmul.bf16 %v6090_v25, %v3950_v37  ;;  %v870_v51 = vmul.bf16 %v6090_v25, %v3955_v19  ;;  %v6102_v35 = vld [vmem:[#allocation52_spill] sm:$0xff] }
  0x90   :  { %6096 = vst [vmem:[#allocation11_spill] sm:$0xff] %v3937_v4  ;;  %6097 = vst [vmem:[#allocation12_spill] sm:$0xff] %v3950_v37  ;;  %v871_v45 = vmul.bf16 %v6090_v25, %v3960_v20  ;;  %v6101_v11 = vmul.bf16 %v6090_v25, %v6100_v33  ;;  %v6103_v23 = vmul.bf16 %v6090_v25, %v6102_v35  ;;  %v6104_v4 = vld [vmem:[#allocation53_spill] sm:$0xff]  ;;  %v4069_v39 = vunpack.c.l.bf16 %v867_v40 }
  0x91   :  { %6098 = vst [vmem:[#allocation13_spill] sm:$0xff] %v3955_v19  ;;  %6099 = vst [vmem:[#allocation17_spill] sm:$0xff] %v3960_v20  ;;  %v6105_v22 = vmul.bf16 %v6090_v25, %v6104_v4  ;;  %v6106_v19 = vld [vmem:[#allocation54_spill] sm:$0xff]  ;;  %v6111_v35 = vmul.bf16 %v6090_v25, %v6110_v46  ;;  %v6113_v4 = vmul.bf16 %v6090_v25, %v6112_v53  ;;  %v4041_v46 = vunpack.c.l.bf16 %v853_v14 }
  0x92   :  { %v3997_v10 = vunpack.c.l.bf16 %v6101_v11  ;;  %v4002_v0 = vunpack.c.l.bf16 %v6103_v23  ;;  %v6107_v7 = vmul.bf16 %v6090_v25, %v6106_v19  ;;  %v6108_v20 = vld [vmem:[#allocation30_spill] sm:$0xff]  ;;  %v4031_v19 = vunpack.c.l.bf16 %v848_v63 }
  0x93   :  { %v4007_v37 = vunpack.c.l.bf16 %v6105_v22  ;;  %v6109_v33 = vmul.bf16 %v6090_v25, %v6108_v20  ;;  %v4022_v23 = vunpack.c.l.bf16 %v6111_v35  ;;  %v4027_v22 = vunpack.c.l.bf16 %v6113_v4 }
  0x94   :  { %v4012_v49 = vunpack.c.l.bf16 %v6107_v7  ;;  %v4033_v7 = vunpack.c.l.bf16 %v849_v58  ;;  %v4039_v20 = vunpack.c.l.bf16 %v852_v28  ;;  %v4043_v35 = vunpack.c.l.bf16 %v854_v29 }
  0x95   :  { %v4017_v11 = vunpack.c.l.bf16 %v6109_v33  ;;  %v4037_v33 = vunpack.c.l.bf16 %v851_v32  ;;  %v4047_v25 = vunpack.c.l.bf16 %v856_v5  ;;  %v4051_v63 = vunpack.c.l.bf16 %v858_v26 }
  0x96   :  { %v4053_v58 = vunpack.c.l.bf16 %v859_v48  ;;  %v4057_v32 = vunpack.c.l.bf16 %v861_v1  ;;  %v4059_v4 = vunpack.c.l.bf16 %v862_v38  ;;  %v4061_v28 = vunpack.c.l.bf16 %v863_v60 }
  0x97   :  { %v4063_v14 = vunpack.c.l.bf16 %v864_v55  ;;  %v4065_v29 = vunpack.c.l.bf16 %v865_v36  ;;  %v4067_v5 = vunpack.c.l.bf16 %v866_v27  ;;  %v4071_v26 = vunpack.c.l.bf16 %v868_v21 }
  0x98   :  { %v4073_v48 = vunpack.c.l.bf16 %v869_v3  ;;  %v4075_v17 = vunpack.c.l.bf16 %v870_v51  ;;  %v4077_v1 = vunpack.c.l.bf16 %v871_v45  ;;  %v936_v38 = vrot.slane %v3997_v10, 4 }
  0x99   :  { %v937_v60 = vrot.slane %v4002_v0, 4  ;;  %v938_v55 = vrot.slane %v4007_v37, 4  ;;  %v939_v36 = vrot.slane %v4012_v49, 4  ;;  %v940_v27 = vrot.slane %v4017_v11, 4 }
  0x9a   :  { %v941_v40 = vrot.slane %v4022_v23, 4  ;;  %v942_v21 = vrot.slane %v4027_v22, 4  ;;  %v943_v3 = vrot.slane %v4029_v59, 4  ;;  %v944_v51 = vrot.slane %v4031_v19, 4 }
  0x9b   :  { %v945_v45 = vrot.slane %v4033_v7, 4  ;;  %v946_v10 = vrot.slane %v4035_v6, 4  ;;  %v947_v0 = vrot.slane %v4037_v33, 4  ;;  %v948_v37 = vrot.slane %v4039_v20, 4 }
  0x9c   :  { %v949_v49 = vrot.slane %v4041_v46, 4  ;;  %v950_v52 = vrot.slane %v4043_v35, 4  ;;  %v951_v11 = vrot.slane %v4045_v24, 4  ;;  %v952_v23 = vrot.slane %v4047_v25, 4 }
  0x9d   :  { %v953_v59 = vrot.slane %v4049_v34, 4  ;;  %v954_v19 = vrot.slane %v4051_v63, 4  ;;  %v955_v22 = vrot.slane %v4053_v58, 4  ;;  %v956_v6 = vrot.slane %v4055_v62, 4 }
  0x9e   :  { %v957_v7 = vrot.slane %v4057_v32, 4  ;;  %v958_v20 = vrot.slane %v4059_v4, 4  ;;  %v959_v46 = vrot.slane %v4061_v28, 4  ;;  %v960_v33 = vrot.slane %v4063_v14, 4 }
  0x9f   :  { %v961_v24 = vrot.slane %v4065_v29, 4  ;;  %v962_v35 = vrot.slane %v4067_v5, 4  ;;  %v963_v25 = vrot.slane %v4069_v39, 4  ;;  %v964_v34 = vrot.slane %v4071_v26, 4 }
  0xa0   :  { %v965_v63 = vrot.slane %v4073_v48, 4  ;;  %v966_v58 = vrot.slane %v4075_v17, 4  ;;  %v967_v62 = vrot.slane %v4077_v1, 4  ;;  %v4112_v32 = vadd.f32 %v936_v38, %v3724_v41  ;;  %v6125_v38 = vld [vmem:[#allocation27_spill] sm:$0xff] }
  0xa1   :  { %v4115_v4 = vadd.f32 %v937_v60, %v3727_v54  ;;  %v4118_v28 = vadd.f32 %v938_v55, %v3730_v18  ;;  %v4121_v14 = vadd.f32 %v939_v36, %v3733_v42  ;;  %v4124_v29 = vadd.f32 %v940_v27, %v3736_v30  ;;  %v6127_v55 = vld [vmem:[#allocation32_spill] sm:$0xff]  ;;  %v6129_v27 = vld [vmem:[#allocation33_spill] sm:$0xff] }
  0xa2   :  { %v4127_v5 = vadd.f32 %v941_v40, %v3739_v9  ;;  %v4130_v39 = vadd.f32 %v942_v21, %v3742_v44  ;;  %v4133_v41 = vadd.f32 %v943_v3, %v3745_v50  ;;  %v4136_v54 = vadd.f32 %v944_v51, %v3748_v31  ;;  %v6131_v21 = vld [vmem:[#allocation35_spill] sm:$0xff]  ;;  %v4214_v51 = vld [vmem:[%s5741_s0 + $0x18] sm:$0x8] }
  0xa3   :  { %v4139_v18 = vadd.f32 %v945_v45, %v3751_v57  ;;  %v4142_v42 = vadd.f32 %v946_v10, %v3754_v43  ;;  %v4145_v30 = vadd.f32 %v947_v0, %v3757_v8  ;;  %v4148_v9 = vadd.f32 %v948_v37, %v3760_v2  ;;  %v4219_v45 = vld [vmem:[%s5741_s0 + $0x20] sm:$0x8]  ;;  %v4224_v10 = vld [vmem:[%s5741_s0 + $0x28] sm:$0x8]  ;;  %v6135_v0 = vld [vmem:[#allocation37_spill] sm:$0xff] }
  0xa4   :  { %v4151_v44 = vadd.f32 %v949_v49, %v3768_v12  ;;  %v4154_v50 = vadd.f32 %v950_v52, %v3771_v13  ;;  %v4157_v31 = vadd.f32 %v951_v11, %v3774_v15  ;;  %v4160_v57 = vadd.f32 %v952_v23, %v3777_v16  ;;  %v6114_v12 = vld [vmem:[#allocation10_spill] sm:$0xff]  ;;  %v6116_v13 = vld [vmem:[#allocation21_spill] sm:$0xff]  ;;  %v6120_v16 = vld [vmem:[#allocation23_spill] sm:$0xff]  ;;  %6134 = vst [vmem:[#allocation27_spill] sm:$0xff] %v4224_v10 }
  0xa5   :  { %v4163_v43 = vadd.f32 %v953_v59, %v3795_v56  ;;  %v4166_v8 = vadd.f32 %v954_v19, %v3798_v47  ;;  %v4169_v2 = vadd.f32 %v955_v22, %v3801_v61  ;;  %v4172_v26 = vadd.f32 %v956_v6, %v6114_v12  ;;  %v6118_v15 = vld [vmem:[#allocation22_spill] sm:$0xff]  ;;  %v4191_v47 = vld [vmem:[%s5741_s0 + $0x8] sm:$0x8]  ;;  %v4196_v61 = vld [vmem:[%s5741_s0 + $0x10] sm:$0x8]  ;;  %6133 = vst [vmem:[#allocation23_spill] sm:$0xff] %v4219_v45 }
  0xa6   :  { %v4175_v48 = vadd.f32 %v957_v7, %v6116_v13  ;;  %v4178_v17 = vadd.f32 %v958_v20, %v6118_v15  ;;  %v4181_v1 = vadd.f32 %v959_v46, %v6120_v16  ;;  %v4186_v56 = vld [vmem:[%s5741_s0] sm:$0x8]  ;;  %6123 = vst [vmem:[#allocation26_spill] sm:$0xff] %v4191_v47  ;;  %6124 = vst [vmem:[#allocation34_spill] sm:$0xff] %v4196_v61  ;;  %v6141_v59 = vld [vmem:[#allocation43_spill] sm:$0xff] }
  0xa7   :  { %6115 = vst [vmem:[#allocation18_spill] sm:$0xff] %v4172_v26  ;;  %6122 = vst [vmem:[#allocation25_spill] sm:$0xff] %v4186_v56  ;;  %v4199_v60 = vadd.f32 %v960_v33, %v6125_v38  ;;  %v4202_v36 = vadd.f32 %v961_v24, %v6127_v55  ;;  %v4205_v40 = vadd.f32 %v962_v35, %v6129_v27  ;;  %v6137_v49 = vld [vmem:[#allocation38_spill] sm:$0xff]  ;;  %v6143_v22 = vld [vmem:[#allocation44_spill] sm:$0xff] }
  0xa8   :  { %6117 = vst [vmem:[#allocation19_spill] sm:$0xff] %v4175_v48  ;;  %6119 = vst [vmem:[#allocation20_spill] sm:$0xff] %v4178_v17  ;;  %v4209_v3 = vcombine.low %v6131_v21, %v6131_v21  ;;  %v4227_v37 = vadd.f32 %v963_v25, %v6135_v0  ;;  %v4230_v52 = vadd.f32 %v964_v34, %v6137_v49  ;;  %v6139_v11 = vld [vmem:[#allocation42_spill] sm:$0xff]  ;;  %v6146_v24 = vld [vmem:[#allocation51_spill] sm:$0xff] }
  0xa9   :  { %6121 = vst [vmem:[#allocation24_spill] sm:$0xff] %v4181_v1  ;;  %6126 = vst [vmem:[#allocation56_spill] sm:$0xff] %v4199_v60  ;;  %v4233_v23 = vadd.f32 %v965_v63, %v6139_v11  ;;  %v4236_v19 = vadd.f32 %v966_v58, %v6141_v59  ;;  %v4239_v6 = vadd.f32 %v967_v62, %v6143_v22  ;;  %v6147_v58 = vld [vmem:[#allocation52_spill] sm:$0xff]  ;;  %v6148_v12 = vld [vmem:[#allocation53_spill] sm:$0xff] }
  0xaa   :  { %6128 = vst [vmem:[#allocation10_spill] sm:$0xff] %v4202_v36  ;;  %6130 = vst [vmem:[#allocation21_spill] sm:$0xff] %v4205_v40  ;;  %v1043_v35 = vmul.bf16 %v4209_v3, %v6146_v24  ;;  %v1044_v62 = vmul.bf16 %v4209_v3, %v6147_v58  ;;  %v1045_v13 = vmul.bf16 %v4209_v3, %v6148_v12  ;;  %v6149_v15 = vld [vmem:[#allocation54_spill] sm:$0xff]  ;;  %v6151_v27 = vld [vmem:[#allocation55_spill] sm:$0xff] }
  0xab   :  { %6132 = vst [vmem:[#allocation22_spill] sm:$0xff] %v4214_v51  ;;  %6136 = vst [vmem:[#allocation32_spill] sm:$0xff] %v4227_v37  ;;  %v1046_v16 = vmul.bf16 %v4209_v3, %v6149_v15  ;;  %v6150_v38 = vld [vmem:[#allocation30_spill] sm:$0xff]  ;;  %v1048_v21 = vmul.bf16 %v4209_v3, %v6151_v27  ;;  %v1049_v0 = vmul.bf16 %v4209_v3, %v6112_v53  ;;  %v6152_v49 = vld [vmem:[#allocation5_spill] sm:$0xff] }
  0xac   :  { %6138 = vst [vmem:[#allocation33_spill] sm:$0xff] %v4230_v52  ;;  %6140 = vst [vmem:[#allocation35_spill] sm:$0xff] %v4233_v23  ;;  %v1047_v55 = vmul.bf16 %v4209_v3, %v6150_v38  ;;  %v1050_v11 = vmul.bf16 %v4209_v3, %v6152_v49  ;;  %v6153_v59 = vld [vmem:[#allocation7_spill] sm:$0xff]  ;;  %v6154_v24 = vld [vmem:[#allocation8_spill] sm:$0xff]  ;;  %v4317_v1 = vunpack.c.l.bf16 %v1043_v35 }
  0xad   :  { %6142 = vst [vmem:[#allocation37_spill] sm:$0xff] %v4236_v19  ;;  %6144 = vst [vmem:[#allocation38_spill] sm:$0xff] %v4239_v6  ;;  %v1051_v22 = vmul.bf16 %v4209_v3, %v6153_v59  ;;  %v1052_v58 = vmul.bf16 %v4209_v3, %v6154_v24  ;;  %v6155_v12 = vld [vmem:[#allocation9_spill] sm:$0xff]  ;;  %v6156_v63 = vld [vmem:[#allocation14_spill] sm:$0xff]  ;;  %v4323_v17 = vunpack.c.l.bf16 %v1046_v16  ;;  %v4329_v48 = vunpack.c.l.bf16 %v1049_v0 }
  0xae   :  { %v1053_v15 = vmul.bf16 %v4209_v3, %v6155_v12  ;;  %v1054_v38 = vmul.bf16 %v4209_v3, %v6156_v63  ;;  %v6157_v34 = vld [vmem:[#allocation15_spill] sm:$0xff]  ;;  %v6158_v25 = vld [vmem:[#allocation16_spill] sm:$0xff]  ;;  %v6160_v46 = vld [vmem:[#allocation29_spill] sm:$0xff] }
  0xaf   :  { %v1055_v27 = vmul.bf16 %v4209_v3, %v6157_v34  ;;  %v1056_v53 = vmul.bf16 %v4209_v3, %v6158_v25  ;;  %v6159_v33 = vld [vmem:[#allocation28_spill] sm:$0xff]  ;;  %v1058_v59 = vmul.bf16 %v4209_v3, %v6160_v46  ;;  %v6161_v20 = vld [vmem:[#allocation31_spill] sm:$0xff]  ;;  %v6164_v51 = vld [vmem:[#allocation41_spill] sm:$0xff]  ;;  %v4335_v26 = vunpack.c.l.bf16 %v1052_v58 }
  0xb0   :  { %v1057_v49 = vmul.bf16 %v4209_v3, %v6159_v33  ;;  %v1059_v24 = vmul.bf16 %v4209_v3, %v6161_v20  ;;  %v6162_v10 = vld [vmem:[#allocation39_spill] sm:$0xff]  ;;  %v6163_v45 = vld [vmem:[#allocation40_spill] sm:$0xff]  ;;  %v1062_v34 = vmul.bf16 %v4209_v3, %v6164_v51  ;;  %v6165_v61 = vld [vmem:[#allocation45_spill] sm:$0xff] }
  0xb1   :  { %v1060_v12 = vmul.bf16 %v4209_v3, %v6162_v10  ;;  %v1061_v63 = vmul.bf16 %v4209_v3, %v6163_v45  ;;  %v1063_v25 = vmul.bf16 %v4209_v3, %v6165_v61  ;;  %v6166_v47 = vld [vmem:[#allocation46_spill] sm:$0xff]  ;;  %v6167_v56 = vld [vmem:[#allocation47_spill] sm:$0xff]  ;;  %v6168_v7 = vld [vmem:[#allocation48_spill] sm:$0xff]  ;;  %v4341_v35 = vunpack.c.l.bf16 %v1055_v27 }
  0xb2   :  { %v1064_v33 = vmul.bf16 %v4209_v3, %v6166_v47  ;;  %v1065_v46 = vmul.bf16 %v4209_v3, %v6167_v56  ;;  %v1066_v20 = vmul.bf16 %v4209_v3, %v6168_v7  ;;  %v6169_v6 = vld [vmem:[#allocation49_spill] sm:$0xff]  ;;  %v6170_v19 = vld [vmem:[#allocation50_spill] sm:$0xff]  ;;  %v6171_v23 = vld [vmem:[#allocation4_spill] sm:$0xff]  ;;  %v4347_v16 = vunpack.c.l.bf16 %v1058_v59 }
  0xb3   :  { %v1067_v10 = vmul.bf16 %v4209_v3, %v6169_v6  ;;  %v1068_v45 = vmul.bf16 %v4209_v3, %v6170_v19  ;;  %v1069_v51 = vmul.bf16 %v4209_v3, %v6171_v23  ;;  %v6172_v52 = vld [vmem:[#allocation6_spill] sm:$0xff]  ;;  %v6173_v37 = vld [vmem:[#allocation11_spill] sm:$0xff]  ;;  %v6174_v40 = vld [vmem:[#allocation12_spill] sm:$0xff]  ;;  %v4319_v19 = vunpack.c.l.bf16 %v1044_v62 }
  0xb4   :  { %v1070_v61 = vmul.bf16 %v4209_v3, %v6172_v52  ;;  %v1071_v47 = vmul.bf16 %v4209_v3, %v6173_v37  ;;  %v1072_v56 = vmul.bf16 %v4209_v3, %v6174_v40  ;;  %v6175_v36 = vld [vmem:[#allocation13_spill] sm:$0xff]  ;;  %v4321_v23 = vunpack.c.l.bf16 %v1045_v13 }
  0xb5   :  { %v1073_v7 = vmul.bf16 %v4209_v3, %v6175_v36  ;;  %v6176_v60 = vld [vmem:[#allocation17_spill] sm:$0xff]  ;;  %v4325_v52 = vunpack.c.l.bf16 %v1047_v55  ;;  %v4327_v37 = vunpack.c.l.bf16 %v1048_v21  ;;  %v4331_v40 = vunpack.c.l.bf16 %v1050_v11 }
  0xb6   :  { %v1074_v6 = vmul.bf16 %v4209_v3, %v6176_v60  ;;  %v4333_v36 = vunpack.c.l.bf16 %v1051_v22  ;;  %v4337_v60 = vunpack.c.l.bf16 %v1053_v15  ;;  %v4339_v3 = vunpack.c.l.bf16 %v1054_v38 }
  0xb7   :  { %v4343_v62 = vunpack.c.l.bf16 %v1056_v53  ;;  %v4345_v13 = vunpack.c.l.bf16 %v1057_v49  ;;  %v4349_v55 = vunpack.c.l.bf16 %v1059_v24  ;;  %v4351_v21 = vunpack.c.l.bf16 %v1060_v12 }
  0xb8   :  { %v4353_v0 = vunpack.c.l.bf16 %v1061_v63  ;;  %v4355_v11 = vunpack.c.l.bf16 %v1062_v34  ;;  %v4357_v22 = vunpack.c.l.bf16 %v1063_v25  ;;  %v4359_v58 = vunpack.c.l.bf16 %v1064_v33 }
  0xb9   :  { %v4361_v15 = vunpack.c.l.bf16 %v1065_v46  ;;  %v4363_v38 = vunpack.c.l.bf16 %v1066_v20  ;;  %v4365_v27 = vunpack.c.l.bf16 %v1067_v10  ;;  %v4367_v53 = vunpack.c.l.bf16 %v1068_v45 }
  0xba   :  { %v4369_v49 = vunpack.c.l.bf16 %v1069_v51  ;;  %v4371_v59 = vunpack.c.l.bf16 %v1070_v61  ;;  %v4373_v24 = vunpack.c.l.bf16 %v1071_v47  ;;  %v4375_v12 = vunpack.c.l.bf16 %v1072_v56 }
  0xbb   :  { %v4377_v63 = vunpack.c.l.bf16 %v1073_v7  ;;  %v4379_v34 = vunpack.c.l.bf16 %v1074_v6  ;;  %v1139_v25 = vrot.slane %v4317_v1, 5  ;;  %v1140_v33 = vrot.slane %v4319_v19, 5 }
  0xbc   :  { %v1141_v46 = vrot.slane %v4321_v23, 5  ;;  %v1142_v20 = vrot.slane %v4323_v17, 5  ;;  %v1143_v10 = vrot.slane %v4325_v52, 5  ;;  %v1144_v45 = vrot.slane %v4327_v37, 5 }
  0xbd   :  { %v1145_v51 = vrot.slane %v4329_v48, 5  ;;  %v1146_v61 = vrot.slane %v4331_v40, 5  ;;  %v1147_v47 = vrot.slane %v4333_v36, 5  ;;  %v1148_v56 = vrot.slane %v4335_v26, 5 }
  0xbe   :  { %v1149_v1 = vrot.slane %v4337_v60, 5  ;;  %v1150_v7 = vrot.slane %v4339_v3, 5  ;;  %v1151_v6 = vrot.slane %v4341_v35, 5  ;;  %v1152_v17 = vrot.slane %v4343_v62, 5 }
  0xbf   :  { %v1153_v19 = vrot.slane %v4345_v13, 5  ;;  %v1154_v23 = vrot.slane %v4347_v16, 5  ;;  %v1155_v48 = vrot.slane %v4349_v55, 5  ;;  %v1156_v52 = vrot.slane %v4351_v21, 5 }
  0xc0   :  { %v1157_v37 = vrot.slane %v4353_v0, 5  ;;  %v1158_v26 = vrot.slane %v4355_v11, 5  ;;  %v1159_v40 = vrot.slane %v4357_v22, 5  ;;  %v1160_v36 = vrot.slane %v4359_v58, 5 }
  0xc1   :  { %v1161_v60 = vrot.slane %v4361_v15, 5  ;;  %v1162_v3 = vrot.slane %v4363_v38, 5  ;;  %v1163_v35 = vrot.slane %v4365_v27, 5  ;;  %v1164_v62 = vrot.slane %v4367_v53, 5 }
  0xc2   :  { %v1165_v13 = vrot.slane %v4369_v49, 5  ;;  %v1166_v16 = vrot.slane %v4371_v59, 5  ;;  %v1167_v55 = vrot.slane %v4373_v24, 5  ;;  %v1168_v21 = vrot.slane %v4375_v12, 5  ;;  %v4494_v24 = vld [vmem:[%s5741_s0 + $0x30] sm:$0x8] }
  0xc3   :  { %v1169_v0 = vrot.slane %v4377_v63, 5  ;;  %v1170_v11 = vrot.slane %v4379_v34, 5  ;;  %v4414_v22 = vadd.f32 %v1139_v25, %v4112_v32  ;;  %v4417_v58 = vadd.f32 %v1140_v33, %v4115_v4  ;;  %6183 = vst [vmem:[#allocation53_spill] sm:$0xff] %v4494_v24  ;;  %v4499_v12 = vld [vmem:[%s5741_s0 + $0x58] sm:$0x8]  ;;  %v6188_v63 = vld [vmem:[#allocation20_spill] sm:$0xff] }
  0xc4   :  { %v4420_v15 = vadd.f32 %v1141_v46, %v4118_v28  ;;  %v4423_v38 = vadd.f32 %v1142_v20, %v4121_v14  ;;  %v4426_v27 = vadd.f32 %v1143_v10, %v4124_v29  ;;  %v4429_v53 = vadd.f32 %v1144_v45, %v4127_v5  ;;  %6184 = vst [vmem:[#allocation54_spill] sm:$0xff] %v4499_v12  ;;  %v6190_v25 = vld [vmem:[#allocation24_spill] sm:$0xff]  ;;  %v4521_v10 = vld [vmem:[%s5741_s0 + $0x38] sm:$0x8]  ;;  %v4526_v45 = vld [vmem:[%s5741_s0 + $0x68] sm:$0x8] }
  0xc5   :  { %v4432_v49 = vadd.f32 %v1145_v51, %v4130_v39  ;;  %v4435_v32 = vadd.f32 %v1146_v61, %v4133_v41  ;;  %v4438_v4 = vadd.f32 %v1147_v47, %v4136_v54  ;;  %v4441_v28 = vadd.f32 %v1148_v56, %v4139_v18  ;;  %v6192_v46 = vld [vmem:[#allocation56_spill] sm:$0xff]  ;;  %6194 = vst [vmem:[#allocation9_spill] sm:$0xff] %v4521_v10  ;;  %v4531_v51 = vld [vmem:[%s5741_s0 + $0x80] sm:$0x8]  ;;  %v4536_v61 = vld [vmem:[%s5741_s0 + $0x88] sm:$0x8] }
  0xc6   :  { %v4444_v14 = vadd.f32 %v1149_v1, %v4142_v42  ;;  %v4447_v29 = vadd.f32 %v1150_v7, %v4145_v30  ;;  %v4450_v5 = vadd.f32 %v1151_v6, %v4148_v9  ;;  %v4453_v39 = vadd.f32 %v1152_v17, %v4151_v44  ;;  %v4467_v42 = vld [vmem:[%s5741_s0 + $0x40] sm:$0x8]  ;;  %v4472_v30 = vld [vmem:[%s5741_s0 + $0x48] sm:$0x8]  ;;  %v4477_v9 = vld [vmem:[%s5741_s0 + $0x50] sm:$0x8] }
  0xc7   :  { %v4456_v41 = vadd.f32 %v1153_v19, %v4154_v50  ;;  %v4459_v54 = vadd.f32 %v1154_v23, %v4157_v31  ;;  %v4462_v18 = vadd.f32 %v1155_v48, %v4160_v57  ;;  %6177 = vst [vmem:[#allocation42_spill] sm:$0xff] %v4467_v42  ;;  %6178 = vst [vmem:[#allocation43_spill] sm:$0xff] %v4472_v30  ;;  %v6181_v57 = vld [vmem:[#allocation18_spill] sm:$0xff]  ;;  %v6200_v1 = vld [vmem:[#allocation21_spill] sm:$0xff] }
  0xc8   :  { %6179 = vst [vmem:[#allocation44_spill] sm:$0xff] %v4477_v9  ;;  %v4480_v44 = vadd.f32 %v1156_v52, %v4163_v43  ;;  %v4483_v50 = vadd.f32 %v1157_v37, %v4166_v8  ;;  %v4486_v31 = vadd.f32 %v1158_v26, %v4169_v2  ;;  %v4489_v59 = vadd.f32 %v1159_v40, %v6181_v57  ;;  %v4504_v43 = vld [vmem:[%s5741_s0 + $0x60] sm:$0x8]  ;;  %v6186_v8 = vld [vmem:[#allocation19_spill] sm:$0xff]  ;;  %v6202_v6 = vld [vmem:[#allocation32_spill] sm:$0xff] }
  0xc9   :  { %6185 = vst [vmem:[#allocation30_spill] sm:$0xff] %v4504_v43  ;;  %v4507_v2 = vadd.f32 %v1160_v36, %v6186_v8  ;;  %v4510_v34 = vadd.f32 %v1161_v60, %v6188_v63  ;;  %v4513_v33 = vadd.f32 %v1162_v3, %v6190_v25  ;;  %v4516_v20 = vadd.f32 %v1163_v35, %v6192_v46  ;;  %v6198_v47 = vld [vmem:[#allocation10_spill] sm:$0xff]  ;;  %v6204_v19 = vld [vmem:[#allocation33_spill] sm:$0xff]  ;;  %v4553_v48 = vld [vmem:[%s5741_s0 + $0x70] sm:$0x8] }
  0xca   :  { %6180 = vst [vmem:[#allocation51_spill] sm:$0xff] %v4486_v31  ;;  %6182 = vst [vmem:[#allocation52_spill] sm:$0xff] %v4489_v59  ;;  %v4539_v56 = vadd.f32 %v1164_v62, %v6198_v47  ;;  %v4542_v7 = vadd.f32 %v1165_v13, %v6200_v1  ;;  %v4545_v17 = vadd.f32 %v1166_v16, %v6202_v6  ;;  %v4558_v52 = vld [vmem:[%s5741_s0 + $0x78] sm:$0x8]  ;;  %v4563_v37 = vld [vmem:[%s5741_s0 + $0x90] sm:$0x8] }
  0xcb   :  { %6187 = vst [vmem:[#allocation55_spill] sm:$0xff] %v4507_v2  ;;  %6189 = vst [vmem:[#allocation5_spill] sm:$0xff] %v4510_v34  ;;  %v4548_v23 = vadd.f32 %v1167_v55, %v6204_v19  ;;  %v6209_v26 = vld [vmem:[#allocation35_spill] sm:$0xff]  ;;  %v6211_v36 = vld [vmem:[#allocation37_spill] sm:$0xff] }
  0xcc   :  { %6191 = vst [vmem:[#allocation7_spill] sm:$0xff] %v4513_v33  ;;  %6193 = vst [vmem:[#allocation8_spill] sm:$0xff] %v4516_v20  ;;  %v4566_v40 = vadd.f32 %v1168_v21, %v6209_v26  ;;  %v4569_v60 = vadd.f32 %v1169_v0, %v6211_v36  ;;  %v6213_v3 = vld [vmem:[#allocation38_spill] sm:$0xff]  ;;  %v4577_v62 = vld [vmem:[%s5741_s0 + $0x98] sm:$0x8] }
  0xcd   :  { %6195 = vst [vmem:[#allocation14_spill] sm:$0xff] %v4526_v45  ;;  %6196 = vst [vmem:[#allocation15_spill] sm:$0xff] %v4531_v51  ;;  %v4572_v35 = vadd.f32 %v1170_v11, %v6213_v3  ;;  %v4582_v13 = vld [vmem:[%s5741_s0 + $0xa0] sm:$0x8]  ;;  %v4587_v16 = vld [vmem:[%s5741_s0 + $0xa8] sm:$0x8] }
  0xce   :  { %6197 = vst [vmem:[#allocation16_spill] sm:$0xff] %v4536_v61  ;;  %6199 = vst [vmem:[#allocation28_spill] sm:$0xff] %v4539_v56  ;;  %v6218_v55 = vld [vmem:[#allocation36_spill] sm:$0xff]  ;;  %v4599_v11 = vld [vmem:[%s5741_s0 + $0xb8] sm:$0x8] }
  0xcf   :  { %6201 = vst [vmem:[#allocation29_spill] sm:$0xff] %v4542_v7  ;;  %6203 = vst [vmem:[#allocation31_spill] sm:$0xff] %v4545_v17  ;;  %v1285_v21 = vmul.bf16 %v6218_v55, %v4494_v24  ;;  %v4594_v0 = vld [vmem:[%s5741_s0 + $0xb0] sm:$0x8]  ;;  %v4604_v57 = vld [vmem:[%s5741_s0 + $0xc0] sm:$0x8]  ;;  %v1286_v8 = vmul.bf16 %v6218_v55, %v4521_v10  ;;  %v1287_v63 = vmul.bf16 %v6218_v55, %v4467_v42 }
  0xd0   :  { %6205 = vst [vmem:[#allocation39_spill] sm:$0xff] %v4548_v23  ;;  %6206 = vst [vmem:[#allocation40_spill] sm:$0xff] %v4553_v48  ;;  %v1288_v25 = vmul.bf16 %v6218_v55, %v4472_v30  ;;  %v1289_v46 = vmul.bf16 %v6218_v55, %v4477_v9  ;;  %v4617_v47 = vld [vmem:[%s5741_s0 + $0xc8] sm:$0x8]  ;;  %v4622_v1 = vld [vmem:[%s5741_s0 + $0xd0] sm:$0x8]  ;;  %v1290_v19 = vmul.bf16 %v6218_v55, %v4499_v12 }
  0xd1   :  { %6207 = vst [vmem:[#allocation41_spill] sm:$0xff] %v4558_v52  ;;  %6208 = vst [vmem:[#allocation45_spill] sm:$0xff] %v4563_v37  ;;  %v4627_v6 = vld [vmem:[%s5741_s0 + $0xd8] sm:$0x8]  ;;  %v1291_v26 = vmul.bf16 %v6218_v55, %v4504_v43  ;;  %v1292_v36 = vmul.bf16 %v6218_v55, %v4526_v45  ;;  %v1293_v3 = vmul.bf16 %v6218_v55, %v4553_v48  ;;  %v4640_v9 = vld [vmem:[%s5741_s0 + $0xe0] sm:$0x8]  ;;  %v4721_v34 = vunpack.c.l.bf16 %v1285_v21 }
  0xd2   :  { %6210 = vst [vmem:[#allocation46_spill] sm:$0xff] %v4566_v40  ;;  %6212 = vst [vmem:[#allocation47_spill] sm:$0xff] %v4569_v60  ;;  %v4645_v30 = vld [vmem:[%s5741_s0 + $0xe8] sm:$0x8]  ;;  %v4650_v43 = vld [vmem:[%s5741_s0 + $0xf0] sm:$0x8]  ;;  %v1294_v45 = vmul.bf16 %v6218_v55, %v4558_v52  ;;  %v1295_v48 = vmul.bf16 %v6218_v55, %v4531_v51  ;;  %v1296_v12 = vmul.bf16 %v6218_v55, %v4536_v61  ;;  %v4727_v2 = vunpack.c.l.bf16 %v1288_v25 }
  0xd3   :  { %6214 = vst [vmem:[#allocation48_spill] sm:$0xff] %v4572_v35  ;;  %6215 = vst [vmem:[#allocation49_spill] sm:$0xff] %v4577_v62  ;;  %v1297_v42 = vmul.bf16 %v6218_v55, %v4563_v37  ;;  %v4663_v10 = vld [vmem:[%s5741_s0 + $0xf8] sm:$0x8]  ;;  %v1298_v24 = vmul.bf16 %v6218_v55, %v4577_v62  ;;  %v1299_v52 = vmul.bf16 %v6218_v55, %v4582_v13  ;;  %v6239_v33 = vld [vmem:[#allocation27_spill] sm:$0xff]  ;;  %v4737_v59 = vunpack.c.l.bf16 %v1293_v3 }
  0xd4   :  { %6216 = vst [vmem:[#allocation50_spill] sm:$0xff] %v4582_v13  ;;  %6217 = vst [vmem:[#allocation4_spill] sm:$0xff] %v4587_v16  ;;  %v1300_v51 = vmul.bf16 %v6218_v55, %v4587_v16  ;;  %v1301_v61 = vmul.bf16 %v6218_v55, %v4594_v0  ;;  %v1302_v37 = vmul.bf16 %v6218_v55, %v4599_v11  ;;  %v4741_v21 = vunpack.c.l.bf16 %v1295_v48 }
  0xd5   :  { %6219 = vst [vmem:[#allocation6_spill] sm:$0xff] %v4594_v0  ;;  %6220 = vst [vmem:[#allocation11_spill] sm:$0xff] %v4599_v11  ;;  %v1303_v35 = vmul.bf16 %v6218_v55, %v4604_v57  ;;  %v1304_v60 = vmul.bf16 %v6218_v55, %v4617_v47  ;;  %v1305_v62 = vmul.bf16 %v6218_v55, %v4622_v1  ;;  %v4747_v25 = vunpack.c.l.bf16 %v1298_v24 }
  0xd6   :  { %6221 = vst [vmem:[#allocation12_spill] sm:$0xff] %v4604_v57  ;;  %6222 = vst [vmem:[#allocation13_spill] sm:$0xff] %v4617_v47  ;;  %v1306_v13 = vmul.bf16 %v6218_v55, %v4627_v6  ;;  %v1307_v16 = vmul.bf16 %v6218_v55, %v4640_v9  ;;  %v1308_v0 = vmul.bf16 %v6218_v55, %v4645_v30  ;;  %v6229_v47 = vld [vmem:[#allocation25_spill] sm:$0xff]  ;;  %v1389_v3 = vrot.slane %v4737_v59, 6 }
  0xd7   :  { %6223 = vst [vmem:[#allocation17_spill] sm:$0xff] %v4622_v1  ;;  %6224 = vst [vmem:[#allocation18_spill] sm:$0xff] %v4627_v6  ;;  %v1309_v11 = vmul.bf16 %v6218_v55, %v4650_v43  ;;  %v1310_v57 = vmul.bf16 %v6218_v55, %v4663_v10  ;;  %v6230_v40 = vmul.bf16 %v6218_v55, %v6229_v47  ;;  %v6231_v1 = vld [vmem:[#allocation26_spill] sm:$0xff]  ;;  %v4761_v48 = vunpack.c.l.bf16 %v1305_v62 }
  0xd8   :  { %6225 = vst [vmem:[#allocation19_spill] sm:$0xff] %v4640_v9  ;;  %6226 = vst [vmem:[#allocation20_spill] sm:$0xff] %v4645_v30  ;;  %v6232_v6 = vmul.bf16 %v6218_v55, %v6231_v1  ;;  %v6233_v9 = vld [vmem:[#allocation34_spill] sm:$0xff]  ;;  %v6240_v1 = vmul.bf16 %v6218_v55, %v6239_v33  ;;  %v4767_v24 = vunpack.c.l.bf16 %v1308_v0 }
  0xd9   :  { %6227 = vst [vmem:[#allocation24_spill] sm:$0xff] %v4650_v43  ;;  %6228 = vst [vmem:[#allocation56_spill] sm:$0xff] %v4663_v10  ;;  %v4694_v23 = vunpack.c.l.bf16 %v6230_v40  ;;  %v6234_v7 = vmul.bf16 %v6218_v55, %v6233_v9  ;;  %v6235_v43 = vld [vmem:[#allocation22_spill] sm:$0xff]  ;;  %v6237_v10 = vld [vmem:[#allocation23_spill] sm:$0xff]  ;;  %v4723_v9 = vunpack.c.l.bf16 %v1286_v8  ;;  %v4743_v8 = vunpack.c.l.bf16 %v1296_v12 }
  0xda   :  { %v4699_v17 = vunpack.c.l.bf16 %v6232_v6  ;;  %v6236_v56 = vmul.bf16 %v6218_v55, %v6235_v43  ;;  %v6238_v47 = vmul.bf16 %v6218_v55, %v6237_v10  ;;  %v4719_v6 = vunpack.c.l.bf16 %v6240_v1 }
  0xdb   :  { %v4704_v30 = vunpack.c.l.bf16 %v6234_v7  ;;  %v4725_v7 = vunpack.c.l.bf16 %v1287_v63  ;;  %v4731_v43 = vunpack.c.l.bf16 %v1290_v19  ;;  %v4733_v10 = vunpack.c.l.bf16 %v1291_v26 }
  0xdc   :  { %v4709_v20 = vunpack.c.l.bf16 %v6236_v56  ;;  %v4714_v40 = vunpack.c.l.bf16 %v6238_v47  ;;  %v4729_v56 = vunpack.c.l.bf16 %v1289_v46  ;;  %v4735_v47 = vunpack.c.l.bf16 %v1292_v36 }
  0xdd   :  { %v4739_v55 = vunpack.c.l.bf16 %v1294_v45  ;;  %v4745_v63 = vunpack.c.l.bf16 %v1297_v42  ;;  %v4749_v46 = vunpack.c.l.bf16 %v1299_v52  ;;  %v4751_v1 = vunpack.c.l.bf16 %v1300_v51 }
  0xde   :  { %v4753_v19 = vunpack.c.l.bf16 %v1301_v61  ;;  %v4755_v26 = vunpack.c.l.bf16 %v1302_v37  ;;  %v4757_v36 = vunpack.c.l.bf16 %v1303_v35  ;;  %v4759_v45 = vunpack.c.l.bf16 %v1304_v60 }
  0xdf   :  { %v4763_v12 = vunpack.c.l.bf16 %v1306_v13  ;;  %v4765_v42 = vunpack.c.l.bf16 %v1307_v16  ;;  %v4769_v52 = vunpack.c.l.bf16 %v1309_v11  ;;  %v4771_v51 = vunpack.c.l.bf16 %v1310_v57 }
  0xe0   :  { %v1375_v61 = vrot.slane %v4694_v23, 6  ;;  %v1376_v37 = vrot.slane %v4699_v17, 6  ;;  %v1377_v35 = vrot.slane %v4704_v30, 6  ;;  %v1378_v60 = vrot.slane %v4709_v20, 6 }
  0xe1   :  { %v1379_v62 = vrot.slane %v4714_v40, 6  ;;  %v1380_v13 = vrot.slane %v4719_v6, 6  ;;  %v1381_v16 = vrot.slane %v4721_v34, 6  ;;  %v1382_v0 = vrot.slane %v4723_v9, 6  ;;  %v1706_v34 = vld [vmem:[%s5740_s1 + $0x4] sm:$0x1] }
  0xe2   :  { %v1383_v11 = vrot.slane %v4725_v7, 6  ;;  %v1384_v57 = vrot.slane %v4727_v2, 6  ;;  %v1385_v23 = vrot.slane %v4729_v56, 6  ;;  %v1386_v17 = vrot.slane %v4731_v43, 6  ;;  %v2487_v43 = vld [vmem:[%s5740_s1] sm:$0x8] }
  0xe3   :  { %v1387_v30 = vrot.slane %v4733_v10, 6  ;;  %v1388_v20 = vrot.slane %v4735_v47, 6  ;;  %v1390_v9 = vrot.slane %v4739_v55, 6  ;;  %v1391_v40 = vrot.slane %v4741_v21, 6 }
  0xe4   :  { %v1392_v2 = vrot.slane %v4743_v8, 6  ;;  %v1471_v6 = vshrl.u32 %v2487_v43, 16  ;;  %v1393_v10 = vrot.slane %v4745_v63, 6  ;;  %v1394_v7 = vrot.slane %v4747_v25, 6 }
  0xe5   :  { %v1395_v59 = vrot.slane %v4749_v46, 6  ;;  %v1396_v56 = vrot.slane %v4751_v1, 6  ;;  %v1397_v47 = vrot.slane %v4753_v19, 6  ;;  %v1398_v55 = vrot.slane %v4755_v26, 6 }
  0xe6   :  { %v1399_v21 = vrot.slane %v4757_v36, 6  ;;  %v1708_v8 = vpack.i.b16 %v1706_v34, %v1706_v34  ;;  %v1400_v33 = vrot.slane %v4759_v45, 6  ;;  %v1401_v31 = vrot.slane %v4761_v48, 6  ;;  %v6262_v34 = vld [vmem:[#allocation29_spill] sm:$0xff] }
  0xe7   :  { %v1402_v43 = vrot.slane %v4763_v12, 6  ;;  %v1403_v63 = vrot.slane %v4765_v42, 6  ;;  %v1404_v25 = vrot.slane %v4767_v24, 6  ;;  %v1405_v46 = vrot.slane %v4769_v52, 6 }
  0xe8   :  { %v1406_v1 = vrot.slane %v4771_v51, 6  ;;  %v1472_v19 = vpack.i.b16 %v1471_v6, %v1471_v6  ;;  %v4812_v26 = vadd.f32 %v1375_v61, %v4414_v22  ;;  %v4815_v36 = vadd.f32 %v1376_v37, %v4417_v58  ;;  %v6241_v22 = vld [vmem:[#allocation3_spill] sm:$0xff] }
  0xe9   :  { %v4818_v45 = vadd.f32 %v1377_v35, %v4420_v15  ;;  %v4821_v48 = vadd.f32 %v1378_v60, %v4423_v38  ;;  %v4824_v12 = vadd.f32 %v1379_v62, %v4426_v27  ;;  %v4827_v42 = vadd.f32 %v1380_v13, %v4429_v53  ;;  %v6245_v60 = vld [vmem:[#allocation52_spill] sm:$0xff] }
  0xea   :  { %v4830_v24 = vadd.f32 %v1381_v16, %v4432_v49  ;;  %v1713_v52 = vrot.slane %v1708_v8, %v6241_v22  ;;  %v4834_v58 = vadd.f32 %v1382_v0, %v4435_v32  ;;  %v4837_v15 = vadd.f32 %v1383_v11, %v4438_v4  ;;  %v6242_v32 = vld [vmem:[#allocation2_spill] sm:$0xff]  ;;  %v6255_v11 = vld [vmem:[#allocation8_spill] sm:$0xff] }
  0xeb   :  { %v4840_v38 = vadd.f32 %v1384_v57, %v4441_v28  ;;  %v4843_v27 = vadd.f32 %v1385_v23, %v4444_v14  ;;  %v4846_v53 = vadd.f32 %v1386_v17, %v4447_v29  ;;  %v4849_v49 = vadd.f32 %v1387_v30, %v4450_v5  ;;  %v4899_v23 = vld [vmem:[%s5741_s0 + $0x4] sm:$0x1]  ;;  %v4904_v17 = vld [vmem:[%s5741_s0 + $0x14] sm:$0x1]  ;;  %v4909_v30 = vld [vmem:[%s5741_s0 + $0x1c] sm:$0x1] }
  0xec   :  { %v4852_v51 = vadd.f32 %v1388_v20, %v4453_v39  ;;  %v6243_v61 = vsub.s32 3, %v6242_v32  ;;  %v4857_v4 = vadd.f32 %v1389_v3, %v4456_v41  ;;  %v4860_v28 = vadd.f32 %v1390_v9, %v4459_v54  ;;  %v6244_v39 = vld [vmem:[#allocation51_spill] sm:$0xff]  ;;  %6257 = vst [vmem:[#allocation36_spill] sm:$0xff] %v4899_v23  ;;  %6258 = vst [vmem:[#allocation3_spill] sm:$0xff] %v4904_v17  ;;  %v6260_v20 = vld [vmem:[#allocation28_spill] sm:$0xff] }
  0xed   :  { %v4863_v14 = vadd.f32 %v1391_v40, %v4462_v18  ;;  %v4866_v29 = vadd.f32 %v1392_v2, %v4480_v44  ;;  %v4869_v5 = vadd.f32 %v1393_v10, %v4483_v50  ;;  %v4872_v35 = vadd.f32 %v1394_v7, %v6244_v39  ;;  %v4880_v41 = vld [vmem:[%s5741_s0 + $0xc] sm:$0x1]  ;;  %v6251_v44 = vld [vmem:[#allocation5_spill] sm:$0xff]  ;;  %6259 = vst [vmem:[#allocation2_spill] sm:$0xff] %v4909_v30  ;;  %v4925_v10 = vld [vmem:[%s5741_s0 + $0x24] sm:$0x1] }
  0xee   :  { %v1477_v37 = vrot.slane %v1472_v19, %v6243_v61  ;;  %v4875_v62 = vadd.f32 %v1395_v59, %v6245_v60  ;;  %6247 = vst [vmem:[#allocation21_spill] sm:$0xff] %v4880_v41  ;;  %v4882_v54 = vcombine.low %v1713_v52, %v1713_v52  ;;  %v6249_v18 = vld [vmem:[#allocation55_spill] sm:$0xff]  ;;  %v4888_v16 = vadd.f32 %v1397_v47, %v6251_v44  ;;  %v6275_v8 = vld [vmem:[#allocation48_spill] sm:$0xff]  ;;  %v6279_v60 = vld [vmem:[#allocation34_spill] sm:$0xff] }
  0xef   :  { %v4885_v13 = vadd.f32 %v1396_v56, %v6249_v18  ;;  %v6253_v50 = vld [vmem:[#allocation7_spill] sm:$0xff]  ;;  %v4894_v57 = vadd.f32 %v1399_v21, %v6255_v11  ;;  %v4912_v3 = vadd.f32 %v1400_v33, %v6260_v20  ;;  %v4915_v9 = vadd.f32 %v1401_v31, %v6262_v34  ;;  %6266 = vst [vmem:[#allocation5_spill] sm:$0xff] %v4925_v10  ;;  %v4935_v31 = vld [vmem:[%s5741_s0 + $0x34] sm:$0x1]  ;;  %v6271_v56 = vld [vmem:[#allocation46_spill] sm:$0xff] }
  0xf0   :  { %6246 = vst [vmem:[#allocation10_spill] sm:$0xff] %v4875_v62  ;;  %6248 = vst [vmem:[#allocation32_spill] sm:$0xff] %v4882_v54  ;;  %v4891_v0 = vadd.f32 %v1398_v55, %v6253_v50  ;;  %v6264_v40 = vld [vmem:[#allocation31_spill] sm:$0xff]  ;;  %v4920_v6 = vcombine.low %v1477_v37, %v1477_v37  ;;  %v4941_v47 = vadd.f32 %v1404_v25, %v6271_v56  ;;  %v6277_v25 = vld [vmem:[#allocation25_spill] sm:$0xff] }
  0xf1   :  { %6250 = vst [vmem:[#allocation33_spill] sm:$0xff] %v4885_v13  ;;  %6252 = vst [vmem:[#allocation35_spill] sm:$0xff] %v4888_v16  ;;  %v4918_v2 = vadd.f32 %v1402_v43, %v6264_v40  ;;  %v4930_v7 = vld [vmem:[%s5741_s0 + $0x2c] sm:$0x1]  ;;  %v4947_v43 = vadd.f32 %v1406_v1, %v6275_v8  ;;  %v6278_v37 = vld [vmem:[#allocation26_spill] sm:$0xff] }
  0xf2   :  { %6254 = vst [vmem:[#allocation37_spill] sm:$0xff] %v4891_v0  ;;  %6256 = vst [vmem:[#allocation38_spill] sm:$0xff] %v4894_v57  ;;  %v6269_v33 = vld [vmem:[#allocation39_spill] sm:$0xff]  ;;  %v1482_v32 = vmul.bf16 %v4920_v6, %v6277_v25  ;;  %v1483_v39 = vmul.bf16 %v4920_v6, %v6278_v37  ;;  %v1484_v18 = vmul.bf16 %v4920_v6, %v6279_v60  ;;  %v6280_v44 = vld [vmem:[#allocation22_spill] sm:$0xff] }
  0xf3   :  { %6261 = vst [vmem:[#allocation51_spill] sm:$0xff] %v4912_v3  ;;  %6263 = vst [vmem:[#allocation52_spill] sm:$0xff] %v4915_v9  ;;  %v4938_v59 = vadd.f32 %v1403_v63, %v6269_v33  ;;  %v6273_v55 = vld [vmem:[#allocation47_spill] sm:$0xff]  ;;  %v1485_v50 = vmul.bf16 %v4920_v6, %v6280_v44  ;;  %v6283_v33 = vld [vmem:[#allocation53_spill] sm:$0xff] }
  0xf4   :  { %6265 = vst [vmem:[#allocation55_spill] sm:$0xff] %v4918_v2  ;;  %6267 = vst [vmem:[#allocation7_spill] sm:$0xff] %v4930_v7  ;;  %v4944_v21 = vadd.f32 %v1405_v46, %v6273_v55  ;;  %v6281_v11 = vld [vmem:[#allocation23_spill] sm:$0xff]  ;;  %v1488_v56 = vmul.bf16 %v4920_v6, %v6283_v33  ;;  %v6284_v55 = vld [vmem:[#allocation9_spill] sm:$0xff]  ;;  %v5027_v0 = vunpack.c.l.bf16 %v1482_v32 }
  0xf5   :  { %6268 = vst [vmem:[#allocation8_spill] sm:$0xff] %v4935_v31  ;;  %6270 = vst [vmem:[#allocation28_spill] sm:$0xff] %v4938_v59  ;;  %v1486_v20 = vmul.bf16 %v4920_v6, %v6281_v11  ;;  %v6282_v34 = vld [vmem:[#allocation27_spill] sm:$0xff]  ;;  %v1489_v8 = vmul.bf16 %v4920_v6, %v6284_v55  ;;  %v6285_v25 = vld [vmem:[#allocation42_spill] sm:$0xff]  ;;  %v5033_v16 = vunpack.c.l.bf16 %v1485_v50 }
  0xf6   :  { %6272 = vst [vmem:[#allocation29_spill] sm:$0xff] %v4941_v47  ;;  %6274 = vst [vmem:[#allocation31_spill] sm:$0xff] %v4944_v21  ;;  %v1487_v40 = vmul.bf16 %v4920_v6, %v6282_v34  ;;  %v1490_v37 = vmul.bf16 %v4920_v6, %v6285_v25  ;;  %v6286_v61 = vld [vmem:[#allocation43_spill] sm:$0xff]  ;;  %v6287_v1 = vld [vmem:[#allocation44_spill] sm:$0xff]  ;;  %v5039_v13 = vunpack.c.l.bf16 %v1488_v56 }
  0xf7   :  { %6276 = vst [vmem:[#allocation39_spill] sm:$0xff] %v4947_v43  ;;  %v1491_v60 = vmul.bf16 %v4920_v6, %v6286_v61  ;;  %v1492_v44 = vmul.bf16 %v4920_v6, %v6287_v1  ;;  %v6288_v46 = vld [vmem:[#allocation54_spill] sm:$0xff]  ;;  %v6291_v22 = vld [vmem:[#allocation40_spill] sm:$0xff]  ;;  %v6292_v19 = vld [vmem:[#allocation41_spill] sm:$0xff] }
  0xf8   :  { %v1493_v11 = vmul.bf16 %v4920_v6, %v6288_v46  ;;  %v6289_v63 = vld [vmem:[#allocation30_spill] sm:$0xff]  ;;  %v1496_v55 = vmul.bf16 %v4920_v6, %v6291_v22  ;;  %v1497_v25 = vmul.bf16 %v4920_v6, %v6292_v19  ;;  %v6293_v31 = vld [vmem:[#allocation15_spill] sm:$0xff]  ;;  %v6294_v7 = vld [vmem:[#allocation16_spill] sm:$0xff] }
  0xf9   :  { %v1494_v34 = vmul.bf16 %v4920_v6, %v6289_v63  ;;  %v6290_v52 = vld [vmem:[#allocation14_spill] sm:$0xff]  ;;  %v1498_v61 = vmul.bf16 %v4920_v6, %v6293_v31  ;;  %v1499_v1 = vmul.bf16 %v4920_v6, %v6294_v7  ;;  %v6295_v10 = vld [vmem:[#allocation45_spill] sm:$0xff]  ;;  %v6298_v41 = vld [vmem:[#allocation4_spill] sm:$0xff]  ;;  %v5045_v62 = vunpack.c.l.bf16 %v1491_v60 }
  0xfa   :  { %v1495_v33 = vmul.bf16 %v4920_v6, %v6290_v52  ;;  %v1500_v46 = vmul.bf16 %v4920_v6, %v6295_v10  ;;  %v6296_v30 = vld [vmem:[#allocation49_spill] sm:$0xff]  ;;  %v6297_v17 = vld [vmem:[#allocation50_spill] sm:$0xff]  ;;  %v1503_v22 = vmul.bf16 %v4920_v6, %v6298_v41  ;;  %v6300_v54 = vld [vmem:[#allocation11_spill] sm:$0xff]  ;;  %v5057_v50 = vunpack.c.l.bf16 %v1497_v25 }
  0xfb   :  { %v1501_v63 = vmul.bf16 %v4920_v6, %v6296_v30  ;;  %v1502_v52 = vmul.bf16 %v4920_v6, %v6297_v17  ;;  %v6299_v23 = vld [vmem:[#allocation6_spill] sm:$0xff]  ;;  %v1505_v31 = vmul.bf16 %v4920_v6, %v6300_v54  ;;  %v6301_v43 = vld [vmem:[#allocation12_spill] sm:$0xff]  ;;  %v6302_v21 = vld [vmem:[#allocation13_spill] sm:$0xff]  ;;  %v5051_v32 = vunpack.c.l.bf16 %v1494_v34 }
  0xfc   :  { %v1504_v19 = vmul.bf16 %v4920_v6, %v6299_v23  ;;  %v1506_v7 = vmul.bf16 %v4920_v6, %v6301_v43  ;;  %v1507_v10 = vmul.bf16 %v4920_v6, %v6302_v21  ;;  %v6303_v47 = vld [vmem:[#allocation17_spill] sm:$0xff]  ;;  %v6304_v59 = vld [vmem:[#allocation18_spill] sm:$0xff]  ;;  %v6305_v2 = vld [vmem:[#allocation19_spill] sm:$0xff]  ;;  %v5029_v21 = vunpack.c.l.bf16 %v1483_v39 }
  0xfd   :  { %v1508_v30 = vmul.bf16 %v4920_v6, %v6303_v47  ;;  %v1509_v17 = vmul.bf16 %v4920_v6, %v6304_v59  ;;  %v1510_v41 = vmul.bf16 %v4920_v6, %v6305_v2  ;;  %v6306_v9 = vld [vmem:[#allocation20_spill] sm:$0xff]  ;;  %v5031_v47 = vunpack.c.l.bf16 %v1484_v18 }
  0xfe   :  { %v1511_v23 = vmul.bf16 %v4920_v6, %v6306_v9  ;;  %v6307_v3 = vld [vmem:[#allocation24_spill] sm:$0xff]  ;;  %v5035_v59 = vunpack.c.l.bf16 %v1486_v20  ;;  %v5037_v2 = vunpack.c.l.bf16 %v1487_v40  ;;  %v5041_v9 = vunpack.c.l.bf16 %v1489_v8 }
  0xff   :  { %v1512_v54 = vmul.bf16 %v4920_v6, %v6307_v3  ;;  %v6308_v57 = vld [vmem:[#allocation56_spill] sm:$0xff]  ;;  %v5043_v3 = vunpack.c.l.bf16 %v1490_v37  ;;  %v5053_v39 = vunpack.c.l.bf16 %v1495_v33  ;;  %v5055_v18 = vunpack.c.l.bf16 %v1496_v55 }
 0x100   :  { %v1513_v43 = vmul.bf16 %v4920_v6, %v6308_v57  ;;  %v5047_v57 = vunpack.c.l.bf16 %v1492_v44  ;;  %v5049_v6 = vunpack.c.l.bf16 %v1493_v11  ;;  %v5059_v20 = vunpack.c.l.bf16 %v1498_v61 }
 0x101   :  { %v5061_v40 = vunpack.c.l.bf16 %v1499_v1  ;;  %v5063_v56 = vunpack.c.l.bf16 %v1500_v46  ;;  %v5065_v8 = vunpack.c.l.bf16 %v1501_v63  ;;  %v5067_v37 = vunpack.c.l.bf16 %v1502_v52 }
 0x102   :  { %v5069_v60 = vunpack.c.l.bf16 %v1503_v22  ;;  %v5071_v44 = vunpack.c.l.bf16 %v1504_v19  ;;  %v5073_v11 = vunpack.c.l.bf16 %v1505_v31  ;;  %v5075_v34 = vunpack.c.l.bf16 %v1506_v7 }
 0x103   :  { %v5077_v33 = vunpack.c.l.bf16 %v1507_v10  ;;  %v5079_v55 = vunpack.c.l.bf16 %v1508_v30  ;;  %v5081_v25 = vunpack.c.l.bf16 %v1509_v17  ;;  %v5083_v61 = vunpack.c.l.bf16 %v1510_v41 }
 0x104   :  { %v5085_v1 = vunpack.c.l.bf16 %v1511_v23  ;;  %v5087_v46 = vunpack.c.l.bf16 %v1512_v54  ;;  %v5089_v63 = vunpack.c.l.bf16 %v1513_v43  ;;  %v1578_v52 = vrot.slane %v5027_v0, 7 }
 0x105   :  { %v1579_v22 = vrot.slane %v5029_v21, 7  ;;  %v1580_v19 = vrot.slane %v5031_v47, 7  ;;  %v1581_v31 = vrot.slane %v5033_v16, 7  ;;  %v1582_v7 = vrot.slane %v5035_v59, 7 }
 0x106   :  { %v1583_v10 = vrot.slane %v5037_v2, 7  ;;  %v1584_v30 = vrot.slane %v5039_v13, 7  ;;  %v1585_v17 = vrot.slane %v5041_v9, 7  ;;  %v1586_v41 = vrot.slane %v5043_v3, 7 }
 0x107   :  { %v1587_v23 = vrot.slane %v5045_v62, 7  ;;  %v1588_v0 = vrot.slane %v5047_v57, 7  ;;  %v1589_v54 = vrot.slane %v5049_v6, 7  ;;  %v1590_v43 = vrot.slane %v5051_v32, 7 }
 0x108   :  { %v1591_v16 = vrot.slane %v5053_v39, 7  ;;  %v1592_v21 = vrot.slane %v5055_v18, 7  ;;  %v1593_v47 = vrot.slane %v5057_v50, 7  ;;  %v1594_v13 = vrot.slane %v5059_v20, 7 }
 0x109   :  { %v1595_v59 = vrot.slane %v5061_v40, 7  ;;  %v1596_v2 = vrot.slane %v5063_v56, 7  ;;  %v1597_v62 = vrot.slane %v5065_v8, 7  ;;  %v1598_v9 = vrot.slane %v5067_v37, 7 }
 0x10a   :  { %v1599_v3 = vrot.slane %v5069_v60, 7  ;;  %v1600_v57 = vrot.slane %v5071_v44, 7  ;;  %v1601_v6 = vrot.slane %v5073_v11, 7  ;;  %v1602_v32 = vrot.slane %v5075_v34, 7 }
 0x10b   :  { %v1603_v39 = vrot.slane %v5077_v33, 7  ;;  %v1604_v18 = vrot.slane %v5079_v55, 7  ;;  %v1605_v50 = vrot.slane %v5081_v25, 7  ;;  %v1606_v20 = vrot.slane %v5083_v61, 7  ;;  %v5199_v25 = vld [vmem:[%s5741_s0 + $0x3c] sm:$0x1] }
 0x10c   :  { %v1607_v40 = vrot.slane %v5085_v1, 7  ;;  %v1608_v56 = vrot.slane %v5087_v46, 7  ;;  %v1609_v8 = vrot.slane %v5089_v63, 7  ;;  %v5124_v37 = vadd.f32 %v1578_v52, %v4812_v26  ;;  %v5204_v61 = vld [vmem:[%s5741_s0 + $0x44] sm:$0x1]  ;;  %v6322_v1 = vld [vmem:[#allocation35_spill] sm:$0xff] }
 0x10d   :  { %v5127_v60 = vadd.f32 %v1579_v22, %v4815_v36  ;;  %v5130_v44 = vadd.f32 %v1580_v19, %v4818_v45  ;;  %v5133_v11 = vadd.f32 %v1581_v31, %v4821_v48  ;;  %v5136_v34 = vadd.f32 %v1582_v7, %v4824_v12  ;;  %v6324_v63 = vld [vmem:[#allocation37_spill] sm:$0xff]  ;;  %v6326_v22 = vld [vmem:[#allocation38_spill] sm:$0xff]  ;;  %v5231_v7 = vld [vmem:[%s5741_s0 + $0x6c] sm:$0x1] }
 0x10e   :  { %v5139_v33 = vadd.f32 %v1583_v10, %v4827_v42  ;;  %v5142_v55 = vadd.f32 %v1584_v30, %v4830_v24  ;;  %v5145_v26 = vadd.f32 %v1585_v17, %v4834_v58  ;;  %v5148_v36 = vadd.f32 %v1586_v41, %v4837_v15  ;;  %v5226_v31 = vld [vmem:[%s5741_s0 + $0x64] sm:$0x1]  ;;  %v5236_v10 = vld [vmem:[%s5741_s0 + $0x74] sm:$0x1]  ;;  %v5241_v30 = vld [vmem:[%s5741_s0 + $0x8c] sm:$0x1] }
 0x10f   :  { %v5151_v45 = vadd.f32 %v1587_v23, %v4840_v38  ;;  %v5154_v48 = vadd.f32 %v1588_v0, %v4843_v27  ;;  %v5157_v12 = vadd.f32 %v1589_v54, %v4846_v53  ;;  %v5160_v42 = vadd.f32 %v1590_v43, %v4849_v49  ;;  %v5177_v27 = vld [vmem:[%s5741_s0 + $0x4c] sm:$0x1]  ;;  %v5182_v53 = vld [vmem:[%s5741_s0 + $0x54] sm:$0x1] }
 0x110   :  { %v5163_v24 = vadd.f32 %v1591_v16, %v4852_v51  ;;  %v5166_v58 = vadd.f32 %v1592_v21, %v4857_v4  ;;  %v5169_v15 = vadd.f32 %v1593_v47, %v4860_v28  ;;  %v5172_v38 = vadd.f32 %v1594_v13, %v4863_v14  ;;  %v6318_v28 = vld [vmem:[#allocation10_spill] sm:$0xff]  ;;  %v5246_v17 = vld [vmem:[%s5741_s0 + $0x94] sm:$0x1]  ;;  %v6328_v41 = vld [vmem:[#allocation51_spill] sm:$0xff] }
 0x111   :  { %6309 = vst [vmem:[#allocation46_spill] sm:$0xff] %v5157_v12  ;;  %6310 = vst [vmem:[#allocation47_spill] sm:$0xff] %v5160_v42  ;;  %v5185_v49 = vadd.f32 %v1595_v59, %v4866_v29  ;;  %v5188_v51 = vadd.f32 %v1596_v2, %v4869_v5  ;;  %v5191_v4 = vadd.f32 %v1597_v62, %v4872_v35  ;;  %v5209_v29 = vld [vmem:[%s5741_s0 + $0x5c] sm:$0x1]  ;;  %v6330_v0 = vld [vmem:[#allocation52_spill] sm:$0xff] }
 0x112   :  { %6311 = vst [vmem:[#allocation48_spill] sm:$0xff] %v5163_v24  ;;  %6312 = vst [vmem:[#allocation25_spill] sm:$0xff] %v5166_v58  ;;  %v5194_v14 = vadd.f32 %v1598_v9, %v6318_v28  ;;  %v6320_v5 = vld [vmem:[#allocation33_spill] sm:$0xff]  ;;  %v5215_v46 = vadd.f32 %v1600_v57, %v6322_v1  ;;  %v5218_v52 = vadd.f32 %v1601_v6, %v6324_v63  ;;  %v6332_v43 = vld [vmem:[#allocation55_spill] sm:$0xff] }
 0x113   :  { %6313 = vst [vmem:[#allocation26_spill] sm:$0xff] %v5169_v15  ;;  %6314 = vst [vmem:[#allocation34_spill] sm:$0xff] %v5172_v38  ;;  %v5212_v35 = vadd.f32 %v1599_v3, %v6320_v5  ;;  %v5221_v19 = vadd.f32 %v1602_v32, %v6326_v22  ;;  %v5249_v23 = vadd.f32 %v1603_v39, %v6328_v41  ;;  %v6334_v21 = vld [vmem:[#allocation28_spill] sm:$0xff]  ;;  %v1689_v13 = vld [vmem:[%s5741_s0 + $0x7c] sm:$0x1] }
 0x114   :  { %6315 = vst [vmem:[#allocation22_spill] sm:$0xff] %v5185_v49  ;;  %6316 = vst [vmem:[#allocation23_spill] sm:$0xff] %v5188_v51  ;;  %v5252_v54 = vadd.f32 %v1604_v18, %v6330_v0  ;;  %v5255_v16 = vadd.f32 %v1605_v50, %v6332_v43  ;;  %v5258_v47 = vadd.f32 %v1606_v20, %v6334_v21  ;;  %v1690_v59 = vld [vmem:[%s5741_s0 + $0x84] sm:$0x1]  ;;  %v1693_v2 = vld [vmem:[%s5741_s0 + $0x9c] sm:$0x1] }
 0x115   :  { %6317 = vst [vmem:[#allocation27_spill] sm:$0xff] %v5191_v4  ;;  %6319 = vst [vmem:[#allocation53_spill] sm:$0xff] %v5194_v14  ;;  %v6336_v62 = vld [vmem:[#allocation29_spill] sm:$0xff]  ;;  %v6338_v3 = vld [vmem:[#allocation31_spill] sm:$0xff] }
 0x116   :  { %6321 = vst [vmem:[#allocation9_spill] sm:$0xff] %v5212_v35  ;;  %6323 = vst [vmem:[#allocation42_spill] sm:$0xff] %v5215_v46  ;;  %v5270_v9 = vadd.f32 %v1607_v40, %v6336_v62  ;;  %v5273_v57 = vadd.f32 %v1608_v56, %v6338_v3  ;;  %v6340_v6 = vld [vmem:[#allocation39_spill] sm:$0xff]  ;;  %v1694_v39 = vld [vmem:[%s5741_s0 + $0xa4] sm:$0x1] }
 0x117   :  { %6325 = vst [vmem:[#allocation43_spill] sm:$0xff] %v5218_v52  ;;  %6327 = vst [vmem:[#allocation44_spill] sm:$0xff] %v5221_v19  ;;  %v5276_v32 = vadd.f32 %v1609_v8, %v6340_v6  ;;  %v1695_v18 = vld [vmem:[%s5741_s0 + $0xac] sm:$0x1]  ;;  %v1696_v50 = vld [vmem:[%s5741_s0 + $0xb4] sm:$0x1] }
 0x118   :  { %6329 = vst [vmem:[#allocation54_spill] sm:$0xff] %v5249_v23  ;;  %6331 = vst [vmem:[#allocation30_spill] sm:$0xff] %v5252_v54  ;;  %v6342_v20 = vld [vmem:[#allocation32_spill] sm:$0xff]  ;;  %v1697_v56 = vld [vmem:[%s5741_s0 + $0xbc] sm:$0x1] }
 0x119   :  { %6333 = vst [vmem:[#allocation14_spill] sm:$0xff] %v5255_v16  ;;  %6335 = vst [vmem:[#allocation40_spill] sm:$0xff] %v5258_v47  ;;  %v1725_v40 = vmul.bf16 %v6342_v20, %v5199_v25  ;;  %v1698_v8 = vld [vmem:[%s5741_s0 + $0xc4] sm:$0x1]  ;;  %v1699_v28 = vld [vmem:[%s5741_s0 + $0xcc] sm:$0x1]  ;;  %v1726_v5 = vmul.bf16 %v6342_v20, %v5204_v61  ;;  %v1727_v1 = vmul.bf16 %v6342_v20, %v5177_v27 }
 0x11a   :  { %6337 = vst [vmem:[#allocation41_spill] sm:$0xff] %v5270_v9  ;;  %6339 = vst [vmem:[#allocation15_spill] sm:$0xff] %v5273_v57  ;;  %v1728_v25 = vmul.bf16 %v6342_v20, %v5182_v53  ;;  %v1729_v63 = vmul.bf16 %v6342_v20, %v5209_v29  ;;  %v1700_v22 = vld [vmem:[%s5741_s0 + $0xd4] sm:$0x1]  ;;  %v1701_v41 = vld [vmem:[%s5741_s0 + $0xdc] sm:$0x1]  ;;  %v1730_v27 = vmul.bf16 %v6342_v20, %v5226_v31 }
 0x11b   :  { %6341 = vst [vmem:[#allocation16_spill] sm:$0xff] %v5276_v32  ;;  %v1702_v61 = vld [vmem:[%s5741_s0 + $0xe4] sm:$0x1]  ;;  %v1731_v53 = vmul.bf16 %v6342_v20, %v5231_v7  ;;  %v1732_v29 = vmul.bf16 %v6342_v20, %v5236_v10  ;;  %v1733_v0 = vmul.bf16 %v6342_v20, %v1689_v13  ;;  %v1703_v43 = vld [vmem:[%s5741_s0 + $0xec] sm:$0x1]  ;;  %v1734_v62 = vmul.bf16 %v6342_v20, %v1690_v59  ;;  %v6355_v35 = vld [vmem:[#allocation8_spill] sm:$0xff] }
 0x11c   :  { %v1704_v21 = vld [vmem:[%s5741_s0 + $0xf4] sm:$0x1]  ;;  %v1705_v31 = vld [vmem:[%s5741_s0 + $0xfc] sm:$0x1]  ;;  %v1735_v7 = vmul.bf16 %v6342_v20, %v5241_v30  ;;  %v1736_v10 = vmul.bf16 %v6342_v20, %v5246_v17  ;;  %v1737_v13 = vmul.bf16 %v6342_v20, %v1693_v2  ;;  %v1738_v3 = vmul.bf16 %v6342_v20, %v1694_v39  ;;  %v6353_v46 = vld [vmem:[#allocation7_spill] sm:$0xff] }
 0x11d   :  { %v1739_v6 = vmul.bf16 %v6342_v20, %v1695_v18  ;;  %v1740_v32 = vmul.bf16 %v6342_v20, %v1696_v50  ;;  %v1741_v57 = vmul.bf16 %v6342_v20, %v1697_v56  ;;  %v1742_v9 = vmul.bf16 %v6342_v20, %v1698_v8  ;;  %v6343_v50 = vld [vmem:[#allocation36_spill] sm:$0xff]  ;;  %v6345_v8 = vld [vmem:[#allocation21_spill] sm:$0xff] }
 0x11e   :  { %v1743_v59 = vmul.bf16 %v6342_v20, %v1699_v28  ;;  %v1744_v47 = vmul.bf16 %v6342_v20, %v1700_v22  ;;  %v1745_v30 = vmul.bf16 %v6342_v20, %v1701_v41  ;;  %v1746_v17 = vmul.bf16 %v6342_v20, %v1702_v61  ;;  %v6347_v22 = vld [vmem:[#allocation3_spill] sm:$0xff]  ;;  %v6349_v61 = vld [vmem:[#allocation2_spill] sm:$0xff] }
 0x11f   :  { %v1747_v2 = vmul.bf16 %v6342_v20, %v1703_v43  ;;  %v1748_v39 = vmul.bf16 %v6342_v20, %v1704_v21  ;;  %v1749_v18 = vmul.bf16 %v6342_v20, %v1705_v31  ;;  %v6344_v16 = vmul.bf16 %v6342_v20, %v6343_v50  ;;  %v6351_v21 = vld [vmem:[#allocation5_spill] sm:$0xff] }
 0x120   :  { %v6346_v54 = vmul.bf16 %v6342_v20, %v6345_v8  ;;  %v6348_v23 = vmul.bf16 %v6342_v20, %v6347_v22  ;;  %v6350_v19 = vmul.bf16 %v6342_v20, %v6349_v61  ;;  %v6352_v52 = vmul.bf16 %v6342_v20, %v6351_v21 }
 0x121   :  { %v1750_v56 = vunpack.c.l.bf16 %v6344_v16  ;;  %v6354_v50 = vmul.bf16 %v6342_v20, %v6353_v46  ;;  %v6356_v8 = vmul.bf16 %v6342_v20, %v6355_v35  ;;  %v1757_v14 = vunpack.c.l.bf16 %v1725_v40 }
 0x122   :  { %v1751_v28 = vunpack.c.l.bf16 %v6346_v54  ;;  %v1752_v41 = vunpack.c.l.bf16 %v6348_v23  ;;  %v1753_v43 = vunpack.c.l.bf16 %v6350_v19  ;;  %v1754_v31 = vunpack.c.l.bf16 %v6352_v52 }
 0x123   :  { %v1755_v16 = vunpack.c.l.bf16 %v6354_v50  ;;  %v1756_v54 = vunpack.c.l.bf16 %v6356_v8  ;;  %v1758_v4 = vunpack.c.l.bf16 %v1726_v5  ;;  %v1759_v22 = vunpack.c.l.bf16 %v1727_v1 }
 0x124   :  { %v1760_v23 = vunpack.c.l.bf16 %v1728_v25  ;;  %v1761_v51 = vunpack.c.l.bf16 %v1729_v63  ;;  %v1762_v49 = vunpack.c.l.bf16 %v1730_v27  ;;  %v1763_v61 = vunpack.c.l.bf16 %v1731_v53 }
 0x125   :  { %v1764_v19 = vunpack.c.l.bf16 %v1732_v29  ;;  %v1765_v38 = vunpack.c.l.bf16 %v1733_v0  ;;  %v1766_v15 = vunpack.c.l.bf16 %v1734_v62  ;;  %v1767_v21 = vunpack.c.l.bf16 %v1735_v7 }
 0x126   :  { %v1768_v52 = vunpack.c.l.bf16 %v1736_v10  ;;  %v1769_v58 = vunpack.c.l.bf16 %v1737_v13  ;;  %v1770_v24 = vunpack.c.l.bf16 %v1738_v3  ;;  %v1771_v46 = vunpack.c.l.bf16 %v1739_v6  ;;  %v6362_v6 = vld [vmem:[#allocation34_spill] sm:$0xff] }
 0x127   :  { %v1772_v50 = vunpack.c.l.bf16 %v1740_v32  ;;  %v1773_v42 = vunpack.c.l.bf16 %v1741_v57  ;;  %v1774_v12 = vunpack.c.l.bf16 %v1742_v9  ;;  %v1775_v35 = vunpack.c.l.bf16 %v1743_v59  ;;  %v5381_v32 = vld [vmem:[%s5742_s2] ss:$0 sm:$0xff] }
 0x128   :  { %v1776_v20 = vunpack.c.l.bf16 %v1744_v47  ;;  %v1777_v40 = vunpack.c.l.bf16 %v1745_v30  ;;  %v1778_v5 = vunpack.c.l.bf16 %v1746_v17  ;;  %v1779_v1 = vunpack.c.l.bf16 %v1747_v2  ;;  %v6363_v30 = vld [vmem:[#allocation22_spill] sm:$0xff] }
 0x129   :  { %v1780_v25 = vunpack.c.l.bf16 %v1748_v39  ;;  %v1781_v63 = vunpack.c.l.bf16 %v1749_v18  ;;  %v1782_v27 = vadd.f32 %v1750_v56, %v5124_v37  ;;  %v1783_v53 = vadd.f32 %v1751_v28, %v5127_v60  ;;  %v6367_v18 = vld [vmem:[#allocation9_spill] sm:$0xff]  ;;  %v6368_v28 = vld [vmem:[#allocation42_spill] sm:$0xff] }
 0x12a   :  { %v1784_v29 = vadd.f32 %v1752_v41, %v5130_v44  ;;  %v1785_v0 = vadd.f32 %v1753_v43, %v5133_v11  ;;  %v1786_v62 = vadd.f32 %v1754_v31, %v5136_v34  ;;  %v1787_v57 = vadd.f32 %v1755_v16, %v5139_v33  ;;  %v6357_v11 = vld [vmem:[#allocation46_spill] sm:$0xff]  ;;  %v6358_v34 = vld [vmem:[#allocation47_spill] sm:$0xff]  ;;  %v6359_v33 = vld [vmem:[#allocation48_spill] sm:$0xff] }
 0x12b   :  { %v1788_v9 = vadd.f32 %v1756_v54, %v5142_v55  ;;  %v1789_v47 = vadd.f32 %v1757_v14, %v5145_v26  ;;  %v1790_v37 = vadd.f32 %v1758_v4, %v5148_v36  ;;  %v1791_v60 = vadd.f32 %v1759_v22, %v5151_v45  ;;  %v6360_v55 = vld [vmem:[#allocation25_spill] sm:$0xff]  ;;  %v6361_v26 = vld [vmem:[#allocation26_spill] sm:$0xff]  ;;  %v6365_v4 = vld [vmem:[#allocation27_spill] sm:$0xff] }
 0x12c   :  { %v1792_v44 = vadd.f32 %v1760_v23, %v5154_v48  ;;  %v1793_v7 = vadd.f32 %v1761_v51, %v6357_v11  ;;  %v1794_v10 = vadd.f32 %v1762_v49, %v6358_v34  ;;  %v1795_v13 = vadd.f32 %v1763_v61, %v6359_v33  ;;  %v6364_v48 = vld [vmem:[#allocation23_spill] sm:$0xff]  ;;  %v6370_v16 = vld [vmem:[#allocation44_spill] sm:$0xff]  ;;  %v6371_v54 = vld [vmem:[#allocation54_spill] sm:$0xff] }
 0x12d   :  { %v1796_v3 = vadd.f32 %v1764_v19, %v6360_v55  ;;  %v1797_v14 = vadd.f32 %v1765_v38, %v6361_v26  ;;  %v1798_v59 = vadd.f32 %v1766_v15, %v6362_v6  ;;  %v1799_v17 = vadd.f32 %v1767_v21, %v6363_v30  ;;  %v6366_v15 = vld [vmem:[#allocation53_spill] sm:$0xff]  ;;  %v6372_v23 = vld [vmem:[#allocation30_spill] sm:$0xff] }
 0x12e   :  { %v5394_v36 = vadd.f32 %v5381_v32, %v1782_v27  ;;  %v5397_v45 = vadd.f32 %v5381_v32, %v1783_v53  ;;  %v1800_v51 = vadd.f32 %v1768_v52, %v6364_v48  ;;  %v5401_v49 = vadd.f32 %v1769_v58, %v6365_v4  ;;  %v6369_v58 = vld [vmem:[#allocation43_spill] sm:$0xff]  ;;  %v6373_v52 = vld [vmem:[#allocation14_spill] sm:$0xff]  ;;  %v6374_v27 = vld [vmem:[#allocation40_spill] sm:$0xff] }
 0x12f   :  { %v5404_v2 = vadd.f32 %v5381_v32, %v1784_v29  ;;  %v5407_v38 = vadd.f32 %v5381_v32, %v1785_v0  ;;  %v5410_v39 = vadd.f32 %v1770_v24, %v6366_v15  ;;  %v5413_v56 = vadd.f32 %v1771_v46, %v6367_v18  ;;  %v6375_v53 = vld [vmem:[#allocation41_spill] sm:$0xff] }
 0x130   :  { %v5416_v41 = vadd.f32 %v1772_v50, %v6368_v28  ;;  %v5419_v43 = vadd.f32 %v5381_v32, %v1786_v62  ;;  %v5422_v31 = vadd.f32 %v1773_v42, %v6369_v58  ;;  %v5425_v8 = vadd.f32 %v1774_v12, %v6370_v16 }
 0x131   :  { %v5428_v22 = vadd.f32 %v1775_v35, %v6371_v54  ;;  %v5431_v24 = vadd.f32 %v5381_v32, %v1787_v57  ;;  %v5434_v61 = vadd.f32 %v1776_v20, %v6372_v23  ;;  %v5437_v19 = vadd.f32 %v5381_v32, %v1788_v9  ;;  %v6377_v9 = vld [vmem:[#allocation16_spill] sm:$0xff] }
 0x132   :  { %v1853_v21 = vsub.f32 0.0, %v5394_v36  ;;  %v1854_v42 = vsub.f32 0.0, %v5397_v45  ;;  %v5442_v46 = vadd.f32 %v1777_v40, %v6373_v52  ;;  %v5445_v12 = vadd.f32 %v5381_v32, %v1789_v47  ;;  %v6376_v40 = vld [vmem:[#allocation15_spill] sm:$0xff] }
 0x133   :  { %v1855_v50 = vsub.f32 0.0, %v5404_v2  ;;  %v1856_v35 = vsub.f32 0.0, %v5407_v38  ;;  %v5450_v20 = vadd.f32 %v1778_v5, %v6374_v27  ;;  %v5453_v29 = vadd.f32 %v1779_v1, %v6375_v53 }
 0x134   :  { %v5456_v0 = vadd.f32 %v5381_v32, %v1790_v37  ;;  %v1857_v62 = vsub.f32 0.0, %v5419_v43  ;;  %v5460_v57 = vadd.f32 %v1780_v25, %v6376_v40  ;;  %v5463_v47 = vadd.f32 %v1781_v63, %v6377_v9 }
 0x135   :  { %v5466_v11 = vadd.f32 %v5381_v32, %v1791_v60  ;;  %v1858_v5 = vsub.f32 0.0, %v5431_v24  ;;  %v5470_v34 = vadd.f32 %v5381_v32, %v1792_v44  ;;  %v1859_v1 = vsub.f32 0.0, %v5437_v19 }
 0x136   :  { %v1885_v37 = vmul.f32 1.442695, %v1853_v21  ;;  %v1887_v33 = vmul.f32 1.442695, %v1854_v42  ;;  %v5474_v55 = vadd.f32 %v5381_v32, %v1793_v7  ;;  %v1860_v25 = vsub.f32 0.0, %v5445_v12 }
 0x137   :  { %v1889_v26 = vmul.f32 1.442695, %v1855_v50  ;;  %v1891_v63 = vmul.f32 1.442695, %v1856_v35  ;;  %v5478_v6 = vadd.f32 %v5381_v32, %v1794_v10  ;;  %v1861_v60 = vsub.f32 0.0, %v5456_v0 }
 0x138   :  { %2359 = vpow2.f32 %v1885_v37  ;;  %v1893_v30 = vmul.f32 1.442695, %v1857_v62  ;;  %v5482_v44 = vadd.f32 %v5381_v32, %v1795_v13  ;;  %v1862_v48 = vsub.f32 0.0, %v5466_v11 }
 0x139   :  { %2361 = vpow2.f32 %v1887_v33  ;;  %v1895_v4 = vmul.f32 1.442695, %v1858_v5  ;;  %v5486_v7 = vadd.f32 %v5381_v32, %v1796_v3  ;;  %v1863_v15 = vsub.f32 0.0, %v5470_v34 }
 0x13a   :  { %2363 = vpow2.f32 %v1889_v26  ;;  %v1897_v18 = vmul.f32 1.442695, %v1859_v1  ;;  %v5490_v10 = vadd.f32 %v5381_v32, %v1797_v14  ;;  %v1864_v28 = vsub.f32 0.0, %v5474_v55 }
 0x13b   :  { %2365 = vpow2.f32 %v1891_v63  ;;  %v1899_v58 = vmul.f32 1.442695, %v1860_v25  ;;  %v5494_v13 = vadd.f32 %v5381_v32, %v1798_v59  ;;  %v1865_v16 = vsub.f32 0.0, %v5478_v6 }
 0x13c   :  { %2367 = vpow2.f32 %v1893_v30  ;;  %v1901_v54 = vmul.f32 1.442695, %v1861_v60  ;;  %v5498_v3 = vadd.f32 %v5381_v32, %v1799_v17  ;;  %v1866_v23 = vsub.f32 0.0, %v5482_v44 }
 0x13d   :  { %2369 = vpow2.f32 %v1895_v4  ;;  %v1903_v21 = vmul.f32 1.442695, %v1862_v48  ;;  %v5502_v14 = vadd.f32 %v5381_v32, %v1800_v51  ;;  %v1867_v42 = vsub.f32 0.0, %v5486_v7 }
 0x13e   :  { %2371 = vpow2.f32 %v1897_v18  ;;  %v1905_v52 = vmul.f32 1.442695, %v1863_v15  ;;  %v5507_v59 = vadd.f32 %v5381_v32, %v5401_v49  ;;  %v1868_v50 = vsub.f32 0.0, %v5490_v10 }
 0x13f   :  { %2373 = vpow2.f32 %v1899_v58  ;;  %v1907_v17 = vmul.f32 1.442695, %v1864_v28  ;;  %v5512_v35 = vadd.f32 %v5381_v32, %v5410_v39  ;;  %v1869_v27 = vsub.f32 0.0, %v5494_v13 }
 0x140   :  { %2375 = vpow2.f32 %v1901_v54  ;;  %v1909_v51 = vmul.f32 1.442695, %v1865_v16  ;;  %v5517_v53 = vadd.f32 %v5381_v32, %v5413_v56  ;;  %v1870_v62 = vsub.f32 0.0, %v5498_v3 }
 0x141   :  { %2377 = vpow2.f32 %v1903_v21  ;;  %v1911_v49 = vmul.f32 1.442695, %v1866_v23  ;;  %v5522_v40 = vadd.f32 %v5381_v32, %v5416_v41  ;;  %v1871_v9 = vsub.f32 0.0, %v5502_v14 }
 0x142   :  { %2379 = vpow2.f32 %v1905_v52  ;;  %v1913_v39 = vmul.f32 1.442695, %v1867_v42  ;;  %v5527_v5 = vadd.f32 %v5381_v32, %v5422_v31  ;;  %v1872_v1 = vsub.f32 0.0, %v5507_v59 }
 0x143   :  { %2381 = vpow2.f32 %v1907_v17  ;;  %v1915_v56 = vmul.f32 1.442695, %v1868_v50  ;;  %v5532_v37 = vadd.f32 %v5381_v32, %v5425_v8  ;;  %v1873_v33 = vsub.f32 0.0, %v5512_v35 }
 0x144   :  { %2383 = vpow2.f32 %v1909_v51  ;;  %v1917_v41 = vmul.f32 1.442695, %v1869_v27  ;;  %v5539_v26 = vadd.f32 %v5381_v32, %v5428_v22  ;;  %v1874_v31 = vsub.f32 0.0, %v5517_v53 }
 0x145   :  { %v5535_v25 = vpop.eup %2359  ;;  %2385 = vpow2.f32 %v1911_v49  ;;  %v1919_v63 = vmul.f32 1.442695, %v1870_v62  ;;  %v5544_v30 = vadd.f32 %v5381_v32, %v5434_v61  ;;  %v1875_v8 = vsub.f32 0.0, %v5522_v40 }
 0x146   :  { %v2362_v60 = vpop.eup %2361  ;;  %2387 = vpow2.f32 %v1913_v39  ;;  %v1921_v48 = vmul.f32 1.442695, %v1871_v9  ;;  %v5549_v15 = vadd.f32 %v5381_v32, %v5442_v46  ;;  %v1876_v22 = vsub.f32 0.0, %v5527_v5 }
 0x147   :  { %v2364_v4 = vpop.eup %2363  ;;  %2389 = vpow2.f32 %v1915_v56  ;;  %v1923_v18 = vmul.f32 1.442695, %v1872_v1  ;;  %v5554_v58 = vadd.f32 %v5381_v32, %v5450_v20  ;;  %v1877_v61 = vsub.f32 0.0, %v5532_v37 }
 0x148   :  { %v2366_v28 = vpop.eup %2365  ;;  %2391 = vpow2.f32 %v1917_v41  ;;  %v1925_v16 = vmul.f32 1.442695, %v1873_v33  ;;  %v5559_v23 = vadd.f32 %v5381_v32, %v5453_v29  ;;  %v1878_v46 = vsub.f32 0.0, %v5539_v26 }
 0x149   :  { %6378 = vst [vmem:[#allocation45_spill] sm:$0xff] %v5554_v58  ;;  %v2368_v54 = vpop.eup %2367  ;;  %2393 = vpow2.f32 %v1919_v63  ;;  %v1927_v21 = vmul.f32 1.442695, %v1874_v31  ;;  %v5564_v52 = vadd.f32 %v5381_v32, %v5460_v57  ;;  %v1879_v20 = vsub.f32 0.0, %v5544_v30 }
 0x14a   :  { %6379 = vst [vmem:[#allocation49_spill] sm:$0xff] %v5559_v23  ;;  %v2370_v42 = vpop.eup %2369  ;;  %2395 = vpow2.f32 %v1921_v48  ;;  %v1929_v50 = vmul.f32 1.442695, %v1875_v8  ;;  %v5569_v27 = vadd.f32 %v5381_v32, %v5463_v47  ;;  %v1880_v29 = vsub.f32 0.0, %v5549_v15 }
 0x14b   :  { %6380 = vst [vmem:[#allocation50_spill] sm:$0xff] %v5564_v52  ;;  %v2372_v17 = vpop.eup %2371  ;;  %2397 = vpow2.f32 %v1923_v18  ;;  %v1931_v51 = vmul.f32 1.442695, %v1876_v22  ;;  %v1881_v49 = vsub.f32 0.0, %v5554_v58  ;;  %v1933_v9 = vmul.f32 1.442695, %v1877_v61 }
 0x14c   :  { %6381 = vst [vmem:[#allocation4_spill] sm:$0xff] %v5569_v27  ;;  %v2374_v62 = vpop.eup %2373  ;;  %2399 = vpow2.f32 %v1925_v16  ;;  %v1882_v39 = vsub.f32 0.0, %v5559_v23  ;;  %v1935_v1 = vmul.f32 1.442695, %v1878_v46  ;;  %v1883_v33 = vsub.f32 0.0, %v5564_v52 }
 0x14d   :  { %v2376_v57 = vpop.eup %2375  ;;  %2401 = vpow2.f32 %v1927_v21  ;;  %v1937_v32 = vmul.f32 1.442695, %v1879_v20  ;;  %v1884_v41 = vsub.f32 0.0, %v5569_v27  ;;  %v1939_v31 = vmul.f32 1.442695, %v1880_v29 }
 0x14e   :  { %v2378_v56 = vpop.eup %2377  ;;  %2403 = vpow2.f32 %v1929_v50  ;;  %v1941_v8 = vmul.f32 1.442695, %v1881_v49  ;;  %v1943_v22 = vmul.f32 1.442695, %v1882_v39  ;;  %v1945_v61 = vmul.f32 1.442695, %v1883_v33 }
 0x14f   :  { %v2380_v47 = vpop.eup %2379  ;;  %2405 = vpow2.f32 %v1931_v51  ;;  %v1947_v46 = vmul.f32 1.442695, %v1884_v41  ;;  %v1949_v20 = vadd.f32 1.0, %v5535_v25  ;;  %v1950_v51 = vadd.f32 1.0, %v2362_v60 }
 0x150   :  { %v2382_v63 = vpop.eup %2381  ;;  %2407 = vpow2.f32 %v1933_v9  ;;  %v1951_v9 = vadd.f32 1.0, %v2364_v4  ;;  %v1953_v27 = vadd.f32 1.0, %v2368_v54  ;;  %v1956_v25 = vadd.f32 1.0, %v2374_v62 }
 0x151   :  { %v2384_v48 = vpop.eup %2383  ;;  %2409 = vpow2.f32 %v1935_v1  ;;  %v1952_v1 = vadd.f32 1.0, %v2366_v28  ;;  %v1957_v60 = vadd.f32 1.0, %v2376_v57  ;;  %v1958_v4 = vadd.f32 1.0, %v2378_v56 }
 0x152   :  { %v2386_v18 = vpop.eup %2385  ;;  %2411 = vpow2.f32 %v1937_v32  ;;  %v1954_v32 = vadd.f32 1.0, %v2370_v42  ;;  %v1959_v28 = vadd.f32 1.0, %v2380_v47 }
 0x153   :  { %v2388_v16 = vpop.eup %2387  ;;  %2413 = vpow2.f32 %v1939_v31  ;;  %v1955_v31 = vadd.f32 1.0, %v2372_v17 }
 0x154   :  { %v2390_v21 = vpop.eup %2389  ;;  %2415 = vpow2.f32 %v1941_v8 }
 0x155   :  { %v2392_v50 = vpop.eup %2391  ;;  %2417 = vpow2.f32 %v1943_v22  ;;  %v1964_v52 = vadd.f32 1.0, %v2390_v21 }
 0x156   :  { %v2394_v29 = vpop.eup %2393  ;;  %2419 = vpow2.f32 %v1945_v61  ;;  %v1965_v57 = vadd.f32 1.0, %v2392_v50 }
 0x157   :  { %v2396_v49 = vpop.eup %2395  ;;  %2421 = vpow2.f32 %v1947_v46  ;;  %v1966_v56 = vadd.f32 1.0, %v2394_v29 }
 0x158   :  { %v2398_v39 = vpop.eup %2397  ;;  %2423 = vrcp.f32 %v1949_v20  ;;  %v1960_v20 = vadd.f32 1.0, %v2382_v63 }
 0x159   :  { %v2400_v33 = vpop.eup %2399  ;;  %2425 = vrcp.f32 %v1950_v51  ;;  %v1961_v51 = vadd.f32 1.0, %v2384_v48  ;;  %v1968_v23 = vadd.f32 1.0, %v2398_v39 }
 0x15a   :  { %v2402_v41 = vpop.eup %2401  ;;  %2427 = vrcp.f32 %v1951_v9  ;;  %v1962_v9 = vadd.f32 1.0, %v2386_v18 }
 0x15b   :  { %v2404_v8 = vpop.eup %2403  ;;  %2429 = vrcp.f32 %v1952_v1  ;;  %v1963_v1 = vadd.f32 1.0, %v2388_v16  ;;  %v1970_v63 = vadd.f32 1.0, %v2402_v41 }
 0x15c   :  { %v2406_v22 = vpop.eup %2405  ;;  %2431 = vrcp.f32 %v1953_v27 }
 0x15d   :  { %v2408_v61 = vpop.eup %2407  ;;  %2433 = vrcp.f32 %v1954_v32  ;;  %v1967_v32 = vadd.f32 1.0, %v2396_v49 }
 0x15e   :  { %v2410_v46 = vpop.eup %2409  ;;  %2435 = vrcp.f32 %v1955_v31  ;;  %v1969_v31 = vadd.f32 1.0, %v2400_v33  ;;  %v1973_v58 = vadd.f32 1.0, %v2408_v61 }
 0x15f   :  { %v2412_v54 = vpop.eup %2411  ;;  %2437 = vrcp.f32 %v1956_v25  ;;  %v1971_v25 = vadd.f32 1.0, %v2404_v8  ;;  %v1974_v18 = vadd.f32 1.0, %v2410_v46 }
 0x160   :  { %v2414_v42 = vpop.eup %2413  ;;  %2439 = vrcp.f32 %v1957_v60  ;;  %v1972_v60 = vadd.f32 1.0, %v2406_v22  ;;  %v1975_v16 = vadd.f32 1.0, %v2412_v54 }
 0x161   :  { %v2416_v17 = vpop.eup %2415  ;;  %2441 = vrcp.f32 %v1958_v4  ;;  %v5577_v21 = vadd.f32 1.0, %v2414_v42 }
 0x162   :  { %v2418_v62 = vpop.eup %2417  ;;  %2443 = vrcp.f32 %v1959_v28  ;;  %v5580_v49 = vadd.f32 1.0, %v2416_v17 }
 0x163   :  { %v2420_v27 = vpop.eup %2419  ;;  %2445 = vrcp.f32 %v1960_v20  ;;  %v5582_v39 = vadd.f32 1.0, %v2418_v62 }
 0x164   :  { %v2422_v47 = vpop.eup %2421  ;;  %2447 = vrcp.f32 %v1961_v51  ;;  %v5585_v8 = vadd.f32 1.0, %v2420_v27 }
 0x165   :  { %v2424_v48 = vpop.eup %2423  ;;  %2449 = vrcp.f32 %v1962_v9  ;;  %v5588_v28 = vadd.f32 1.0, %v2422_v47 }
 0x166   :  { %v2426_v4 = vpop.eup %2425  ;;  %2451 = vrcp.f32 %v1963_v1  ;;  %v2013_v50 = vmul.f32 %v2424_v48, %v5394_v36 }
 0x167   :  { %v2428_v29 = vpop.eup %2427  ;;  %2453 = vrcp.f32 %v1964_v52  ;;  %v2014_v33 = vmul.f32 %v2426_v4, %v5397_v45 }
 0x168   :  { %v2430_v41 = vpop.eup %2429  ;;  %2455 = vrcp.f32 %v1965_v57  ;;  %v2015_v22 = vmul.f32 %v2428_v29, %v5404_v2  ;;  %v2327_v61 = vpack.c.bf16 %v2013_v50, %v2013_v50 }
 0x169   :  { %v2432_v46 = vpop.eup %2431  ;;  %2457 = vrcp.f32 %v1966_v56  ;;  %v2016_v36 = vmul.f32 %v2430_v41, %v5407_v38  ;;  %v2328_v54 = vpack.c.bf16 %v2014_v33, %v2014_v33 }
 0x16a   :  { %v2434_v20 = vpop.eup %2433  ;;  %2459 = vrcp.f32 %v1967_v32  ;;  %v2017_v52 = vmul.f32 %v2432_v46, %v5419_v43  ;;  %v2329_v42 = vpack.c.bf16 %v2015_v22, %v2015_v22  ;;  %v5592_v45 = vunpack.c.l.b16 %v2327_v61 }
 0x16b   :  { %v2436_v51 = vpop.eup %2435  ;;  %2461 = vrcp.f32 %v1968_v23  ;;  %v2018_v17 = vmul.f32 %v2434_v20, %v5431_v24  ;;  %v2330_v2 = vpack.c.bf16 %v2016_v36, %v2016_v36  ;;  %v5595_v9 = vunpack.c.l.b16 %v2328_v54 }
 0x16c   :  { %v2438_v62 = vpop.eup %2437  ;;  %2463 = vrcp.f32 %v1969_v31  ;;  %v2019_v1 = vmul.f32 %v2436_v51, %v5437_v19  ;;  %v2331_v38 = vpack.c.bf16 %v2017_v52, %v2017_v52  ;;  %v5598_v57 = vunpack.c.l.b16 %v2329_v42 }
 0x16d   :  { %v2440_v27 = vpop.eup %2439  ;;  %2465 = vrcp.f32 %v1970_v63  ;;  %v2020_v43 = vmul.f32 %v2438_v62, %v5445_v12  ;;  %v2332_v56 = vpack.c.bf16 %v2018_v17, %v2018_v17  ;;  %v5601_v32 = vunpack.c.l.b16 %v2330_v2 }
 0x16e   :  { %v2442_v23 = vpop.eup %2441  ;;  %2467 = vrcp.f32 %v1971_v25  ;;  %v2021_v24 = vmul.f32 %v2440_v27, %v5456_v0  ;;  %v2333_v47 = vpack.c.bf16 %v2019_v1, %v2019_v1  ;;  %v5604_v48 = vunpack.c.l.b16 %v2331_v38 }
 0x16f   :  { %v2444_v31 = vpop.eup %2443  ;;  %2469 = vrcp.f32 %v1972_v60  ;;  %v2022_v19 = vmul.f32 %v2442_v23, %v5466_v11  ;;  %v2334_v4 = vpack.c.bf16 %v2020_v43, %v2020_v43  ;;  %v5607_v50 = vunpack.c.l.b16 %v2332_v56 }
 0x170   :  { %v2446_v63 = vpop.eup %2445  ;;  %2471 = vrcp.f32 %v1973_v58  ;;  %v2023_v12 = vmul.f32 %v2444_v31, %v5470_v34  ;;  %v2335_v29 = vpack.c.bf16 %v2021_v24, %v2021_v24  ;;  %v5610_v33 = vunpack.c.l.b16 %v2333_v47 }
 0x171   :  { %v2448_v0 = vpop.eup %2447  ;;  %2473 = vrcp.f32 %v1974_v18  ;;  %v2024_v25 = vmul.f32 %v2446_v63, %v5474_v55  ;;  %v2336_v41 = vpack.c.bf16 %v2022_v19, %v2022_v19  ;;  %v5613_v60 = vunpack.c.l.b16 %v2334_v4 }
 0x172   :  { %v2450_v11 = vpop.eup %2449  ;;  %2475 = vrcp.f32 %v1975_v16  ;;  %v2025_v22 = vmul.f32 %v2448_v0, %v5478_v6  ;;  %v2337_v61 = vpack.c.bf16 %v2023_v12, %v2023_v12  ;;  %v5616_v46 = vunpack.c.l.b16 %v2335_v29 }
 0x173   :  { %v2452_v58 = vpop.eup %2451  ;;  %2477 = vrcp.f32 %v5577_v21  ;;  %v2026_v34 = vmul.f32 %v2450_v11, %v5482_v44  ;;  %v2338_v36 = vpack.c.bf16 %v2024_v25, %v2024_v25  ;;  %v5620_v54 = vunpack.c.l.b16 %v2336_v41 }
 0x174   :  { %v2454_v55 = vpop.eup %2453  ;;  %2479 = vrcp.f32 %v5580_v49  ;;  %v2027_v18 = vmul.f32 %v2452_v58, %v5486_v7  ;;  %v2339_v16 = vpack.c.bf16 %v2025_v22, %v2025_v22  ;;  %v5624_v20 = vunpack.c.l.b16 %v2337_v61 }
 0x175   :  { %v2456_v6 = vpop.eup %2455  ;;  %2481 = vrcp.f32 %v5582_v39  ;;  %v2028_v21 = vmul.f32 %v2454_v55, %v5490_v10  ;;  %v2340_v52 = vpack.c.bf16 %v2026_v34, %v2026_v34  ;;  %v5628_v44 = vunpack.c.l.b16 %v2338_v36 }
 0x176   :  { %v2458_v42 = vpop.eup %2457  ;;  %2483 = vrcp.f32 %v5585_v8  ;;  %v2029_v51 = vmul.f32 %v2456_v6, %v5494_v13  ;;  %v2341_v49 = vpack.c.bf16 %v2027_v18, %v2027_v18  ;;  %v5632_v17 = vunpack.c.l.b16 %v2339_v16 }
 0x177   :  { %v2460_v7 = vpop.eup %2459  ;;  %2485 = vrcp.f32 %v5588_v28  ;;  %v2030_v2 = vmul.f32 %v2458_v42, %v5498_v3  ;;  %v2342_v62 = vpack.c.bf16 %v2028_v21, %v2028_v21  ;;  %v5636_v39 = vunpack.c.l.b16 %v2340_v52 }
 0x178   :  { %v2462_v10 = vpop.eup %2461  ;;  %v2031_v1 = vmul.f32 %v2460_v7, %v5502_v14  ;;  %v2343_v38 = vpack.c.bf16 %v2029_v51, %v2029_v51  ;;  %v5639_v27 = vunpack.c.l.b16 %v2341_v49  ;;  %v2205_v13 = vrot.slane %v5595_v9, 7 }
 0x179   :  { %v2464_v8 = vpop.eup %2463  ;;  %v2032_v43 = vmul.f32 %v2462_v10, %v5507_v59  ;;  %v2344_v56 = vpack.c.bf16 %v2030_v2, %v2030_v2  ;;  %v5643_v28 = vunpack.c.l.b16 %v2342_v62  ;;  %v2208_v3 = vrot.slane %v5598_v57, 6  ;;  %v6382_v2 = vld [vmem:[#allocation45_spill] sm:$0xff] }
 0x17a   :  { %v2466_v23 = vpop.eup %2465  ;;  %v2033_v24 = vmul.f32 %v2464_v8, %v5512_v35  ;;  %v2345_v47 = vpack.c.bf16 %v2031_v1, %v2031_v1  ;;  %v5647_v31 = vunpack.c.l.b16 %v2343_v38  ;;  %v2207_v14 = vsel %vm2206_vm0, %v2205_v13, %v5592_v45  ;;  %v6383_v13 = vld [vmem:[#allocation49_spill] sm:$0xff] }
 0x17b   :  { %v2468_v19 = vpop.eup %2467  ;;  %v2034_v9 = vmul.f32 %v2466_v23, %v5517_v53  ;;  %v2346_v4 = vpack.c.bf16 %v2032_v43, %v2032_v43  ;;  %v5652_v63 = vunpack.c.l.b16 %v2344_v56  ;;  %v2210_v59 = vsel %vm2209_vm1, %v2208_v3, %v2207_v14  ;;  %v6384_v3 = vld [vmem:[#allocation50_spill] sm:$0xff]  ;;  %v6385_v14 = vld [vmem:[#allocation4_spill] sm:$0xff] }
 0x17c   :  { %v2470_v12 = vpop.eup %2469  ;;  %v2035_v57 = vmul.f32 %v2468_v19, %v5522_v40  ;;  %v2347_v29 = vpack.c.bf16 %v2033_v24, %v2033_v24  ;;  %v5656_v35 = vunpack.c.l.b16 %v2345_v47  ;;  %v2211_v0 = vrot.slane %v5601_v32, 5 }
 0x17d   :  { %v2472_v25 = vpop.eup %2471  ;;  %v2036_v45 = vmul.f32 %v2470_v12, %v5527_v5  ;;  %v2348_v41 = vpack.c.bf16 %v2034_v9, %v2034_v9  ;;  %v5660_v11 = vunpack.c.l.b16 %v2346_v4  ;;  %v2214_v53 = vrot.slane %v5604_v48, 4 }
 0x17e   :  { %v2474_v22 = vpop.eup %2473  ;;  %v2037_v61 = vmul.f32 %v2472_v25, %v5532_v37  ;;  %v2349_v58 = vpack.c.bf16 %v2035_v57, %v2035_v57  ;;  %v5664_v34 = vunpack.c.l.b16 %v2347_v29  ;;  %v2213_v40 = vsel %vm2212_vm2, %v2211_v0, %v2210_v59 }
 0x17f   :  { %v2476_v36 = vpop.eup %2475  ;;  %v2038_v55 = vmul.f32 %v2474_v22, %v5539_v26  ;;  %v2350_v32 = vpack.c.bf16 %v2036_v45, %v2036_v45  ;;  %v5668_v18 = vunpack.c.l.b16 %v2348_v41  ;;  %v2216_v5 = vsel %vm2215_vm3, %v2214_v53, %v2213_v40 }
 0x180   :  { %v2478_v16 = vpop.eup %2477  ;;  %v2039_v6 = vmul.f32 %v2476_v36, %v5544_v30  ;;  %v2351_v48 = vpack.c.bf16 %v2037_v61, %v2037_v61  ;;  %v5672_v21 = vunpack.c.l.b16 %v2349_v58  ;;  %v2217_v37 = vrot.slane %v5607_v50, 3 }
 0x181   :  { %v2480_v52 = vpop.eup %2479  ;;  %v2040_v42 = vmul.f32 %v2478_v16, %v5549_v15  ;;  %v2352_v51 = vpack.c.bf16 %v2038_v55, %v2038_v55  ;;  %v5676_v49 = vunpack.c.l.b16 %v2350_v32  ;;  %v2220_v26 = vrot.slane %v5610_v33, 2 }
 0x182   :  { %v2482_v7 = vpop.eup %2481  ;;  %v2041_v62 = vmul.f32 %v2480_v52, %v6382_v2  ;;  %v2353_v10 = vpack.c.bf16 %v2039_v6, %v2039_v6  ;;  %v2197_v1 = vunpack.c.l.b16 %v2351_v48  ;;  %v2219_v30 = vsel %vm2218_vm4, %v2217_v37, %v2216_v5 }
 0x183   :  { %v2484_v38 = vpop.eup %2483  ;;  %v2042_v8 = vmul.f32 %v2482_v7, %v6383_v13  ;;  %v2354_v43 = vpack.c.bf16 %v2040_v42, %v2040_v42  ;;  %v2198_v50 = vunpack.c.l.b16 %v2352_v51  ;;  %v2222_v56 = vsel %vm2221_vm5, %v2220_v26, %v2219_v30 }
 0x184   :  { %v2486_v15 = vpop.eup %2485  ;;  %v2043_v23 = vmul.f32 %v2484_v38, %v6384_v3  ;;  %v2355_v24 = vpack.c.bf16 %v2041_v62, %v2041_v62  ;;  %v2199_v47 = vunpack.c.l.b16 %v2353_v10  ;;  %v2223_v33 = vrot.slane %v5613_v60, 1 }
 0x185   :  { %v2044_v19 = vmul.f32 %v2486_v15, %v6385_v14  ;;  %v2356_v9 = vpack.c.bf16 %v2042_v8, %v2042_v8  ;;  %v2200_v4 = vunpack.c.l.b16 %v2354_v43  ;;  %v2226_v59 = vrot.slane %v5620_v54, 7 }
 0x186   :  { %v2357_v12 = vpack.c.bf16 %v2043_v23, %v2043_v23  ;;  %v2201_v57 = vunpack.c.l.b16 %v2355_v24  ;;  %v2225_v29 = vsel %vm2224_vm6, %v2223_v33, %v2222_v56  ;;  %v2228_v0 = vrot.slane %v5624_v20, 6 }
 0x187   :  { %v2358_v25 = vpack.c.bf16 %v2044_v19, %v2044_v19  ;;  %v2202_v45 = vunpack.c.l.b16 %v2356_v9  ;;  %v2227_v41 = vsel %vm2206_vm0, %v2226_v59, %v5616_v46  ;;  %v2230_v53 = vrot.slane %v5628_v44, 5 }
 0x188   :  { %v2203_v60 = vunpack.c.l.b16 %v2357_v12  ;;  %v2229_v22 = vsel %vm2209_vm1, %v2228_v0, %v2227_v41  ;;  %v2232_v61 = vrot.slane %v5632_v17, 4  ;;  %v2234_v54 = vrot.slane %v5636_v39, 3 }
 0x189   :  { %v2204_v58 = vunpack.c.l.b16 %v2358_v25  ;;  %v2231_v40 = vsel %vm2212_vm2, %v2230_v53, %v2229_v22  ;;  %v2236_v20 = vrot.slane %v5639_v27, 2  ;;  %v2238_v36 = vrot.slane %v5643_v28, 1 }
 0x18a   :  { %v2233_v55 = vsel %vm2215_vm3, %v2232_v61, %v2231_v40  ;;  %v2240_v46 = vrot.slane %v5652_v63, 7  ;;  %v2242_v44 = vrot.slane %v5656_v35, 6  ;;  %v2244_v32 = vrot.slane %v5660_v11, 5 }
 0x18b   :  { %v2235_v5 = vsel %vm2218_vm4, %v2234_v54, %v2233_v55  ;;  %v2246_v17 = vrot.slane %v5664_v34, 4  ;;  %v2248_v39 = vrot.slane %v5668_v18, 3  ;;  %v2250_v16 = vrot.slane %v5672_v21, 2 }
 0x18c   :  { %v2237_v27 = vsel %vm2221_vm5, %v2236_v20, %v2235_v5  ;;  %v2241_v28 = vsel %vm2206_vm0, %v2240_v46, %v5647_v31  ;;  %v2252_v6 = vrot.slane %v5676_v49, 1  ;;  %v2254_v63 = vrot.slane %v2198_v50, 7 }
 0x18d   :  { %v2239_v35 = vsel %vm2224_vm6, %v2238_v36, %v2237_v27  ;;  %v2243_v11 = vsel %vm2209_vm1, %v2242_v44, %v2241_v28  ;;  %v2256_v48 = vrot.slane %v2199_v47, 6  ;;  %v2258_v37 = vrot.slane %v2200_v4, 5 }
 0x18e   :  { %v2245_v34 = vsel %vm2212_vm2, %v2244_v32, %v2243_v11  ;;  %v2255_v18 = vsel %vm2206_vm0, %v2254_v63, %v2197_v1  ;;  %v2260_v52 = vrot.slane %v2201_v57, 4  ;;  %v2262_v21 = vrot.slane %v2202_v45, 3 }
 0x18f   :  { %v2247_v42 = vsel %vm2215_vm3, %v2246_v17, %v2245_v34  ;;  %v2257_v51 = vsel %vm2209_vm1, %v2256_v48, %v2255_v18  ;;  %v2264_v31 = vrot.slane %v2203_v60, 2  ;;  %v2266_v26 = vrot.slane %v2204_v58, 1 }
 0x190   :  { %v2249_v49 = vsel %vm2218_vm4, %v2248_v39, %v2247_v42  ;;  %v2259_v7 = vsel %vm2212_vm2, %v2258_v37, %v2257_v51  ;;  %v2268_v2 = vpack.c.b16 %v2225_v29, %v2225_v29  ;;  %v2269_v62 = vpack.c.b16 %v2239_v35, %v2239_v35 }
 0x191   :  { %v2251_v10 = vsel %vm2221_vm5, %v2250_v16, %v2249_v49  ;;  %v2261_v30 = vsel %vm2215_vm3, %v2260_v52, %v2259_v7 }
 0x192   :  { %v2253_v1 = vsel %vm2224_vm6, %v2252_v6, %v2251_v10  ;;  %v2263_v38 = vsel %vm2218_vm4, %v2262_v21, %v2261_v30  ;;  %2277 = vst.msk [vmem:[%s5743_s3] sm:$0xf] %vm2276_vm7, %v2268_v2  ;;  %2278 = vst.msk [vmem:[%s5743_s3 + $0x4] sm:$0xf] %vm2276_vm7, %v2269_v62 }
 0x193   :  { %v2265_v13 = vsel %vm2221_vm5, %v2264_v31, %v2263_v38  ;;  %v2270_v8 = vpack.c.b16 %v2253_v1, %v2253_v1 }
 0x194   :  { %v2267_v43 = vsel %vm2224_vm6, %v2266_v26, %v2265_v13 }
 0x195   :  { %v2271_v50 = vpack.c.b16 %v2267_v43, %v2267_v43  ;;  %2279 = vst.msk [vmem:[%s5743_s3 + $0x8] sm:$0xf] %vm2276_vm7, %v2270_v8 }
 0x197   :  { %2280 = vst.msk [vmem:[%s5743_s3 + $0xc] sm:$0xf] %vm2276_vm7, %v2271_v50 }

// kernel: _lambda_.33
= control target key start
LH: loop header
LB: loop body
LE: loop exit
PB: predicated region body
PF: predicated region fallthrough
CT: control target
= control target key end

     0   :  { %vm55_vm0 = vcmask 1043456   ;;  %vm48_vm1 = vcmask 195584   ;;  %s256_s1 = inlined_call_operand.vmem [shape: bf16[24,128], index: 1, kind: input, shape index: {}]   ;;  %s257_s0 = inlined_call_operand.vmem [shape: bf16[32,24], index: 0, kind: input, shape index: {}]   ;;  %s258_s2 = inlined_call_operand.vmem [shape: f32[1,128], index: 2, kind: input, shape index: {}]   ;;  %s259_s3 = inlined_call_operand.vmem [shape: bf16[32,128], index: 3, kind: output, shape index: {}]  }
   0x1   :  { %v195_v0 = vld [vmem:[%s256_s1 + $0x8] ss:$0 sps:$4 sm:$0xff]   ;;  %v196_v1 = vld [vmem:[%s256_s1] sm:$0xff]  }
   0x2   :  { %194 = vmatprep.subr.msk.bf16.mxu0 %vm55_vm0, %v195_v0  ;;  %v57_v2 = vsel %vm55_vm0, %v195_v0, 0  ;;  %v197_v3 = vld [vmem:[%s257_s0] sm:$0xff]   ;;  %v198_v4 = vld [vmem:[%s257_s0 + $0x8] sm:$0xff]  }
   0x3   :  { %187 = vmatpush3.bf16.msra.mxu0 %v57_v2  ;;  %190 = vmatprep.mubr.msk.bf16.mxu0 %vm48_vm1, %v197_v3  ;;  %v156_v5 = vld [vmem:[%s258_s2] ss:$0 sm:$0xff] }
   0x4   :  { %188 = vmatprep.subr.bf16.mxu0 %v196_v1 }
   0x7   :  { %189 = vmatpush3.bf16.msra.mxu0 %v196_v1 }
   0xa   :  { %191 = vmatmul.mubr.msk.bf16.vlgmr.msra.gmra.mxu0 %vm48_vm1, %v198_v4 }
  0xca   :  { %v192_v6 = vpop.f32.mrf.mxu0 }
  0xcb   :  { %v102_v7 = vadd.f32 %v192_v6, %v156_v5 }
  0xcc   :  { %v93_v8 = vpop.f32.mrf.mxu0 }
  0xcd   :  { %v110_v9 = vsub.f32 0.0, %v102_v7  ;;  %v94_v10 = vadd.f32 %v156_v5, %v93_v8 }
  0xce   :  { %v193_v11 = vpop.f32.mrf.mxu0 }
  0xcf   :  { %v116_v12 = vmul.f32 1.442695, %v110_v9  ;;  %v108_v13 = vsub.f32 0.0, %v94_v10  ;;  %v105_v14 = vadd.f32 %v193_v11, %v156_v5 }
  0xd0   :  { %v96_v15 = vpop.f32.mrf.mxu0 }
  0xd1   :  { %199 = vpow2.f32 %v116_v12  ;;  %v112_v16 = vmul.f32 1.442695, %v108_v13  ;;  %v111_v17 = vsub.f32 0.0, %v105_v14  ;;  %v97_v18 = vadd.f32 %v156_v5, %v96_v15 }
  0xd3   :  { %201 = vpow2.f32 %v112_v16  ;;  %v118_v19 = vmul.f32 1.442695, %v111_v17  ;;  %v109_v20 = vsub.f32 0.0, %v97_v18 }
  0xd5   :  { %203 = vpow2.f32 %v118_v19  ;;  %v114_v21 = vmul.f32 1.442695, %v109_v20 }
  0xd7   :  { %205 = vpow2.f32 %v114_v21 }
  0xde   :  { %v200_v22 = vpop.eup %199 }
  0xdf   :  { %v122_v23 = vadd.f32 1.0, %v200_v22 }
  0xe0   :  { %v202_v24 = vpop.eup %201 }
  0xe1   :  { %v120_v25 = vadd.f32 1.0, %v202_v24  ;;  %207 = vrcp.f32 %v122_v23 }
  0xe2   :  { %v204_v26 = vpop.eup %203 }
  0xe3   :  { %v123_v27 = vadd.f32 1.0, %v204_v26  ;;  %209 = vrcp.f32 %v120_v25 }
  0xe4   :  { %v206_v28 = vpop.eup %205 }
  0xe5   :  { %211 = vrcp.f32 %v123_v27  ;;  %v121_v29 = vadd.f32 1.0, %v206_v28 }
  0xe7   :  { %213 = vrcp.f32 %v121_v29 }
  0xee   :  { %v208_v30 = vpop.eup %207 }
  0xef   :  { %v130_v33 = vmul.f32 %v208_v30, %v102_v7 }
  0xf0   :  { %v210_v31 = vpop.eup %209 }
  0xf1   :  { %v128_v36 = vmul.f32 %v210_v31, %v94_v10 }
  0xf2   :  { %v212_v32 = vpop.eup %211 }
  0xf3   :  { %v131_v34 = vmul.f32 %v212_v32, %v105_v14 }
  0xf4   :  { %v214_v35 = vpop.eup %213 }
  0xf5   :  { %v179_v37 = vpack.c.bf16 %v131_v34, %v130_v33  ;;  %v129_v38 = vmul.f32 %v214_v35, %v97_v18 }
  0xf7   :  { %181 = vst [vmem:[%s259_s3 + $0x8] sm:$0xff] %v179_v37   ;;  %v174_v39 = vpack.c.bf16 %v129_v38, %v128_v36 }
  0xf9   :  { %175 = vst [vmem:[%s259_s3] sm:$0xff] %v174_v39  }

// kernel: _lambda_.35
= control target key start
LH: loop header
LB: loop body
LE: loop exit
PB: predicated region body
PF: predicated region fallthrough
CT: control target
= control target key end

     0   :  { %s306_s6 = smov 0   ;;  %s308_s7 = smov 0   ;;  %s342_s0 = inlined_call_operand.vmem [shape: bf16[2,16,96], index: 0, kind: input, shape index: {}]   ;;  %s343_s1 = inlined_call_operand.vmem [shape: f32[2,1,96], index: 1, kind: output, shape index: {}]  }
   0x1   :  { %s310_s8 = smov 0  }
   0x2 LB: > { %s23_s9 = sadd.s32 1, %s289_s7  ;;  %p236_p0 = scmp.ge.s32.totalorder %s293_s8, 1  ;;  %s293_s8 = sphi %s310_s8, %s11_s8   ;;  %s289_s7 = sphi %s308_s7, %s345_s7   ;;  %s285_s6 = sphi %s306_s6, %s344_s6  }
   0x3   : > { %p25_p1 = scmp.ge.s32.totalorder %s23_s9, 2  ;;  %p106_p2 = scmp.lt.s32.totalorder %s293_s8, 3 }
   0x5   : > { %s347_s9 = smov (%p25_p1, %s23_s9), 0  ;;  %p107_p3 = pnand %p236_p0, %p106_p2 }
   0x6   : > { %p129_p4 = scmp.lt.s32.totalorder (!%p107_p3), %s285_s6, 1 }
   0x7   : > { %110 = sbr.rel (%p107_p3) target bundleno = 46 (0x2e), region = 24 }
   0xc   : > { %vm145_vm0 = vcmask 778240   ;;  %v295_v0 = vmov 0.0   ;;  %s349_s6 = smov (!%p129_p4, %s285_s6), 1  ;;  %vm152_vm1 = vcmask 785408  }
   0xd   : > { %146 = vst.msk [vmem:[#allocation2] sm:$0x1] %vm145_vm0, %v295_v0  ;;  %s241_s10 = sshll.u32 %s349_s6, 3  ;;  %s140_s16 = scalar_lea.vmem %s343_s1, %s349_s6 }
   0xe   : > { %s136_s13 = scalar_lea.vmem %s342_s0, %s241_s10 }
   0xf   : > { %v243_v1 = vld [vmem:[%s136_s13] sm:$0xff]  }
  0x10   : > { %v244_v2 = vunpack.c.l.bf16 %v243_v1  ;;  %v245_v3 = vunpack.c.h.bf16 %v243_v1 }
  0x12   : > { %v153_v4 = vsel %vm152_vm1, %v244_v2, 0.0  ;;  %v154_v5 = vsel %vm152_vm1, %v245_v3, 0.0 }
  0x13   : > { %v155_v6 = vadd.f32 %v154_v5, %v153_v4 }
  0x14   : > { %v147_v12 = vld [vmem:[#allocation2] sm:$0x1] }
  0x15   : > { %v156_v7 = vrot.slane %v155_v6, 4 }
  0x17   : > { %v157_v8 = vadd.f32 %v156_v7, %v155_v6 }
  0x19   : > { %v158_v9 = vrot.slane %v157_v8, 2 }
  0x1b   : > { %v159_v10 = vadd.f32 %v158_v9, %v157_v8 }
  0x1d   : > { %v160_v11 = vrot.slane %v159_v10, 1 }
  0x1f   : > { %v161_v13 = vadd.f32 %v160_v11, %v159_v10 }
  0x21   : > { %v162_v14 = vadd.f32 %v161_v13, %v147_v12 }
  0x23   : > { %164 = vst.msk [vmem:[#allocation2] sm:$0x1] %vm145_vm0, %v162_v14 }
  0x2a   : > { %v168_v15 = vld [vmem:[#allocation2] sm:$0x1] }
  0x2b   : > { %v169_v16 = vmul.f32 0.0625, %v168_v15 }
  0x2d   : > { %170 = vst.msk [vmem:[%s140_s16] sm:$0x1] %vm145_vm0, %v169_v16 }
  0x2e PF: > { %s11_s8 = sadd.s32 1, %s293_s8   ;;  %s344_s6 = smov %s289_s7 }
  0x2f   : > { %p8_p5 = scmp.ge.s32.totalorder %s11_s8, 4   ;;  %s345_s7 = smov %s347_s9 }
  0x31   :  { %10 = sbr.rel (!%p8_p5) target bundleno = 2 (0x2), region = 62 }

// kernel: _lambda_.34
= control target key start
LH: loop header
LB: loop body
LE: loop exit
PB: predicated region body
PF: predicated region fallthrough
CT: control target
= control target key end

     0   :  { %s743_s12 = smov 0   ;;  %s745_s13 = smov 0   ;;  %s910_s0 = inlined_call_operand.vmem [shape: bf16[2,6,6,96], index: 0, kind: input, shape index: {}]   ;;  %s911_s1 = inlined_call_operand.vmem [shape: bf16[9,96], index: 1, kind: input, shape index: {}]   ;;  %s912_s2 = inlined_call_operand.vmem [shape: f32[1,96], index: 2, kind: input, shape index: {}]   ;;  %s913_s3 = inlined_call_operand.vmem [shape: bf16[2,4,4,96], index: 3, kind: output, shape index: {}]  }
   0x1   :  { %s747_s14 = smov 0  }
   0x2 LB: > { %s25_s15 = sadd.s32 1, %s717_s13  ;;  %p626_p0 = scmp.ge.s32.totalorder %s721_s14, 1  ;;  %s721_s14 = sphi %s747_s14, %s13_s14   ;;  %s717_s13 = sphi %s745_s13, %s915_s13   ;;  %s713_s12 = sphi %s743_s12, %s914_s12  }
   0x3   : > { %p27_p1 = scmp.ge.s32.totalorder %s25_s15, 2  ;;  %p151_p2 = scmp.lt.s32.totalorder %s721_s14, 3 }
   0x5   : > { %s917_s15 = smov (%p27_p1, %s25_s15), 0  ;;  %p152_p3 = pnand %p626_p0, %p151_p2 }
   0x6   : > { %p179_p4 = scmp.lt.s32.totalorder (!%p152_p3), %s713_s12, 1 }
   0x7   : > { %155 = sbr.rel (%p152_p3) target bundleno = 105 (0x69), region = 32 }
   0xc   : > { %v201_v0 = vld [vmem:[%s911_s1] sm:$0x1]  ;;  %v205_v1 = vlaneseq  ;;  %v260_v2 = vld [vmem:[%s911_s1] sm:$0x2]  ;;  %v322_v7 = vld [vmem:[%s911_s1] sm:$0x4] }
   0xd   : > { %v203_v3 = vpack.i.b16 %v201_v0, %v201_v0  ;;  %v225_v4 = vshrl.u32 %v201_v0, 16  ;;  %v262_v5 = vpack.i.b16 %v260_v2, %v260_v2  ;;  %v299_v6 = vshrl.u32 %v260_v2, 16  ;;  %v396_v8 = vld [vmem:[%s911_s1] sm:$0x8]  ;;  %s919_s12 = smov (!%p179_p4, %s713_s12), 1 }
   0xe   : > { %v206_v9 = vshrl.u32 %v205_v1, 7  ;;  %v324_v10 = vpack.i.b16 %v322_v7, %v322_v7  ;;  %v358_v11 = vshrl.u32 %v322_v7, 16  ;;  %v398_v12 = vpack.i.b16 %v396_v8, %v396_v8  ;;  %v455_v13 = vld [vmem:[%s911_s1 + $0x4] sm:$0x1]  ;;  %s658_s26 = smul.u32 24, %s919_s12  ;;  %s657_s5 = sshll.u32 %s919_s12, 3 }
   0xf   : > { %v226_v14 = vpack.i.b16 %v225_v4, %v225_v4  ;;  %v300_v15 = vpack.i.b16 %v299_v6, %v299_v6  ;;  %v420_v16 = vshrl.u32 %v396_v8, 16  ;;  %v457_v17 = vpack.i.b16 %v455_v13, %v455_v13  ;;  %s192_s8 = scalar_lea.vmem %s913_s3, %s657_s5 }
  0x10   : > { %v207_v18 = vsub.s32 0, %v206_v9  ;;  %v266_v19 = vsub.s32 1, %v206_v9  ;;  %v328_v20 = vsub.s32 2, %v206_v9  ;;  %v359_v21 = vpack.i.b16 %v358_v11, %v358_v11  ;;  %s782_s29 = scalar_lea.vmem %s910_s0, %s658_s26 }
  0x11   : > { %v402_v22 = vsub.s32 3, %v206_v9  ;;  %v421_v23 = vpack.i.b16 %v420_v16, %v420_v16  ;;  %v197_v28 = vld [vmem:[%s782_s29] sm:$0x3]  ;;  %v630_v38 = vld [vmem:[%s782_s29 + $0x4] sm:$0x3]  ;;  %vm526_vm0 = vcmask 779264  }
  0x12   : > { %v784_v24 = vrot.slane %v203_v3, %v207_v18  ;;  %v786_v25 = vrot.slane %v226_v14, %v207_v18  ;;  %v788_v26 = vrot.slane %v262_v5, %v266_v19  ;;  %v790_v27 = vrot.slane %v300_v15, %v266_v19  ;;  %v221_v29 = vld [vmem:[%s782_s29] sm:$0x7]  ;;  %v634_v39 = vld [vmem:[%s782_s29 + $0x4] sm:$0x7]  ;;  %v642_v45 = vld [vmem:[%s782_s29 + $0x8] sm:$0x3] }
  0x13   : > { %v256_v30 = vld [vmem:[%s782_s29] sm:$0x6]  ;;  %v795_v31 = vrot.slane %v324_v10, %v328_v20  ;;  %v797_v32 = vrot.slane %v359_v21, %v328_v20  ;;  %v799_v33 = vrot.slane %v398_v12, %v402_v22  ;;  %v801_v34 = vrot.slane %v421_v23, %v402_v22  ;;  %v638_v40 = vld [vmem:[%s782_s29 + $0x4] sm:$0x6]  ;;  %v646_v46 = vld [vmem:[%s782_s29 + $0x8] sm:$0x7] }
  0x14   : > { %v209_v35 = vmul.bf16 %v784_v24, %v197_v28  ;;  %v232_v36 = vmul.bf16 %v786_v25, %v221_v29  ;;  %v268_v37 = vmul.bf16 %v788_v26, %v256_v30  ;;  %v809_v41 = vrot.slane %v457_v17, %v207_v18  ;;  %v650_v47 = vld [vmem:[%s782_s29 + $0x8] sm:$0x6]  ;;  %v198_v52 = vld [vmem:[%s782_s29 + $0x4] sm:$0x3]  ;;  %v643_v8 = vld [vmem:[%s782_s29 + $0xc] sm:$0x3] }
  0x15   : > { %v306_v42 = vmul.bf16 %v630_v38, %v790_v27  ;;  %v330_v43 = vmul.bf16 %v634_v39, %v795_v31  ;;  %v365_v44 = vmul.bf16 %v638_v40, %v797_v32  ;;  %v404_v51 = vmul.bf16 %v642_v45, %v799_v33  ;;  %v222_v56 = vld [vmem:[%s782_s29 + $0x4] sm:$0x7]  ;;  %v631_v61 = vld [vmem:[%s782_s29 + $0x8] sm:$0x3]  ;;  %v647_v13 = vld [vmem:[%s782_s29 + $0xc] sm:$0x7] }
  0x16   : > { %v213_v48 = vunpack.c.l.bf16 %v209_v35  ;;  %v236_v49 = vunpack.c.l.bf16 %v232_v36  ;;  %v272_v50 = vunpack.c.l.bf16 %v268_v37  ;;  %v427_v55 = vmul.bf16 %v646_v46, %v801_v34  ;;  %v257_v57 = vld [vmem:[%s782_s29 + $0x4] sm:$0x6]  ;;  %v635_v62 = vld [vmem:[%s782_s29 + $0x8] sm:$0x7]  ;;  %v651_v18 = vld [vmem:[%s782_s29 + $0xc] sm:$0x6] }
  0x17   : > { %v334_v53 = vunpack.c.l.bf16 %v330_v43  ;;  %v369_v54 = vunpack.c.l.bf16 %v365_v44  ;;  %v463_v60 = vmul.bf16 %v650_v47, %v809_v41  ;;  %v310_v63 = vunpack.c.l.bf16 %v306_v42  ;;  %v639_v7 = vld [vmem:[%s782_s29 + $0x8] sm:$0x6]  ;;  %v632_v47 = vld [vmem:[%s782_s29 + $0xc] sm:$0x3] }
  0x18   : > { %v244_v58 = vrot.slane %v236_v49, 1  ;;  %v280_v59 = vrot.slane %v272_v50, 2  ;;  %v408_v0 = vunpack.c.l.bf16 %v404_v51  ;;  %v825_v1 = vunpack.c.l.bf16 %v427_v55  ;;  %v199_v23 = vld [vmem:[%s782_s29 + $0x8] sm:$0x3] }
  0x19   : > { %v210_v2 = vmul.bf16 %v784_v24, %v198_v52  ;;  %v342_v4 = vrot.slane %v334_v53, 1  ;;  %v233_v5 = vmul.bf16 %v786_v25, %v222_v56  ;;  %v269_v6 = vmul.bf16 %v788_v26, %v257_v57  ;;  %v223_v36 = vld [vmem:[%s782_s29 + $0x8] sm:$0x7]  ;;  %v636_v52 = vld [vmem:[%s782_s29 + $0xc] sm:$0x7] }
  0x1a   : > { %v252_v3 = vadd.f32 %v244_v58, %v213_v48  ;;  %v377_v9 = vrot.slane %v369_v54, 2  ;;  %v832_v10 = vunpack.c.l.bf16 %v463_v60  ;;  %v307_v11 = vmul.bf16 %v631_v61, %v790_v27  ;;  %v258_v37 = vld [vmem:[%s782_s29 + $0x8] sm:$0x6]  ;;  %v640_v53 = vld [vmem:[%s782_s29 + $0xc] sm:$0x6] }
  0x1b   : > { %v331_v12 = vmul.bf16 %v635_v62, %v795_v31  ;;  %v214_v15 = vunpack.c.l.bf16 %v210_v2  ;;  %v237_v16 = vunpack.c.l.bf16 %v233_v5  ;;  %v273_v17 = vunpack.c.l.bf16 %v269_v6  ;;  %v644_v58 = vld [vmem:[%s782_s29 + $0x10] sm:$0x3] }
  0x1c   : > { %v288_v14 = vadd.f32 %v280_v59, %v252_v3  ;;  %v439_v19 = vrot.slane %v825_v1, 1  ;;  %v366_v21 = vmul.bf16 %v639_v7, %v797_v32  ;;  %v405_v22 = vmul.bf16 %v643_v8, %v799_v33  ;;  %v652_v5 = vld [vmem:[%s782_s29 + $0x10] sm:$0x6] }
  0x1d   : > { %v335_v20 = vunpack.c.l.bf16 %v331_v12  ;;  %v245_v29 = vrot.slane %v237_v16, 1  ;;  %v281_v30 = vrot.slane %v273_v17, 2  ;;  %v428_v35 = vmul.bf16 %v647_v13, %v801_v34 }
  0x1e   : > { %v314_v28 = vadd.f32 %v310_v63, %v288_v14  ;;  %v475_v38 = vrot.slane %v832_v10, 2  ;;  %v311_v39 = vunpack.c.l.bf16 %v307_v11  ;;  %v370_v40 = vunpack.c.l.bf16 %v366_v21  ;;  %v200_v14 = vld [vmem:[%s782_s29 + $0xc] sm:$0x3] }
  0x1f   : > { %v464_v42 = vmul.bf16 %v651_v18, %v809_v41  ;;  %v253_v44 = vadd.f32 %v245_v29, %v214_v15  ;;  %v343_v45 = vrot.slane %v335_v20, 1  ;;  %v211_v46 = vmul.bf16 %v784_v24, %v199_v23  ;;  %v224_v20 = vld [vmem:[%s782_s29 + $0xc] sm:$0x7] }
  0x20   : > { %v350_v43 = vadd.f32 %v342_v4, %v314_v28  ;;  %v409_v48 = vunpack.c.l.bf16 %v405_v22  ;;  %v432_v49 = vunpack.c.l.bf16 %v428_v35  ;;  %v234_v50 = vmul.bf16 %v786_v25, %v223_v36  ;;  %v648_v4 = vld [vmem:[%s782_s29 + $0x10] sm:$0x7] }
  0x21   : > { %v270_v51 = vmul.bf16 %v788_v26, %v258_v37  ;;  %v289_v55 = vadd.f32 %v281_v30, %v253_v44  ;;  %v378_v56 = vrot.slane %v370_v40, 2  ;;  %v468_v57 = vunpack.c.l.bf16 %v464_v42  ;;  %v637_v44 = vld [vmem:[%s782_s29 + $0x10] sm:$0x7] }
  0x22   : > { %v385_v54 = vadd.f32 %v377_v9, %v350_v43  ;;  %v215_v59 = vunpack.c.l.bf16 %v211_v46  ;;  %v238_v60 = vunpack.c.l.bf16 %v234_v50  ;;  %v308_v62 = vmul.bf16 %v632_v47, %v790_v27  ;;  %v633_v43 = vld [vmem:[%s782_s29 + $0x10] sm:$0x3] }
  0x23   : > { %v274_v61 = vunpack.c.l.bf16 %v270_v51  ;;  %v315_v1 = vadd.f32 %v311_v39, %v289_v55  ;;  %v332_v2 = vmul.bf16 %v636_v52, %v795_v31  ;;  %v367_v3 = vmul.bf16 %v640_v53, %v797_v32 }
  0x24   : > { %v412_v63 = vadd.f32 %v408_v0, %v385_v54  ;;  %v440_v6 = vrot.slane %v432_v49, 1  ;;  %v246_v7 = vrot.slane %v238_v60, 1  ;;  %v406_v9 = vmul.bf16 %v644_v58, %v799_v33  ;;  %v864_v0 = vld [vmem:[%s912_s2] ss:$0 sm:$0xff]  ;;  %v645_v54 = vld [vmem:[%s782_s29 + $0x14] sm:$0x3] }
  0x25   : > { %v282_v8 = vrot.slane %v274_v61, 2  ;;  %v351_v11 = vadd.f32 %v343_v45, %v315_v1  ;;  %v336_v12 = vunpack.c.l.bf16 %v332_v2  ;;  %v371_v13 = vunpack.c.l.bf16 %v367_v3  ;;  %v653_v1 = vld [vmem:[%s782_s29 + $0x14] sm:$0x6] }
  0x26   : > { %v447_v10 = vadd.f32 %v439_v19, %v412_v63  ;;  %v254_v15 = vadd.f32 %v246_v7, %v215_v59  ;;  %v312_v16 = vunpack.c.l.bf16 %v308_v62  ;;  %v429_v17 = vmul.bf16 %v648_v4, %v801_v34  ;;  %v259_v19 = vld [vmem:[%s782_s29 + $0xc] sm:$0x6]  ;;  %v649_v59 = vld [vmem:[%s782_s29 + $0x14] sm:$0x7] }
  0x27   : > { %v465_v18 = vmul.bf16 %v652_v5, %v809_v41  ;;  %v386_v22 = vadd.f32 %v378_v56, %v351_v11  ;;  %v476_v23 = vrot.slane %v468_v57, 2  ;;  %v410_v28 = vunpack.c.l.bf16 %v406_v9 }
  0x28   : > { %v483_v21 = vadd.f32 %v475_v38, %v447_v10  ;;  %v290_v29 = vadd.f32 %v282_v8, %v254_v15  ;;  %v344_v30 = vrot.slane %v336_v12, 1  ;;  %v379_v35 = vrot.slane %v371_v13, 2  ;;  %v641_v38 = vld [vmem:[%s782_s29 + $0x10] sm:$0x6] }
  0x29   : > { %v212_v36 = vmul.bf16 %v784_v24, %v200_v14  ;;  %v413_v39 = vadd.f32 %v409_v48, %v386_v22  ;;  %v235_v40 = vmul.bf16 %v786_v25, %v224_v20  ;;  %v271_v42 = vmul.bf16 %v788_v26, %v259_v19 }
  0x2a   : > { %v872_v37 = vadd.f32 %v864_v0, %v483_v21  ;;  %v316_v45 = vadd.f32 %v312_v16, %v290_v29  ;;  %v433_v46 = vunpack.c.l.bf16 %v429_v17  ;;  %v469_v47 = vunpack.c.l.bf16 %v465_v18 }
  0x2b   : > { %v216_v49 = vunpack.c.l.bf16 %v212_v36  ;;  %v448_v24 = vadd.f32 %v440_v6, %v413_v39  ;;  %v239_v51 = vunpack.c.l.bf16 %v235_v40  ;;  %v275_v52 = vunpack.c.l.bf16 %v271_v42 }
  0x2c   : > { %v498_v50 = vsub.f32 0.0, %v872_v37  ;;  %v352_v48 = vadd.f32 %v344_v30, %v316_v45  ;;  %v309_v25 = vmul.bf16 %v633_v43, %v790_v27  ;;  %v333_v26 = vmul.bf16 %v637_v44, %v795_v31 }
  0x2d   : > { %v368_v53 = vmul.bf16 %v641_v38, %v797_v32  ;;  %v484_v56 = vadd.f32 %v476_v23, %v448_v24  ;;  %v247_v57 = vrot.slane %v239_v51, 1  ;;  %v283_v58 = vrot.slane %v275_v52, 2 }
  0x2e   : > { %v502_v55 = vmul.f32 1.442695, %v498_v50  ;;  %v387_v60 = vadd.f32 %v379_v35, %v352_v48  ;;  %v441_v61 = vrot.slane %v433_v46, 1  ;;  %v313_v62 = vunpack.c.l.bf16 %v309_v25 }
  0x2f   : > { %v337_v63 = vunpack.c.l.bf16 %v333_v26  ;;  %v495_v2 = vadd.f32 %v864_v0, %v484_v56  ;;  %v255_v3 = vadd.f32 %v247_v57, %v216_v49  ;;  %v372_v27 = vunpack.c.l.bf16 %v368_v53 }
  0x30   : > { %683 = vpow2.f32 %v502_v55  ;;  %v414_v4 = vadd.f32 %v410_v28, %v387_v60  ;;  %v477_v31 = vrot.slane %v469_v47, 2  ;;  %v407_v32 = vmul.bf16 %v645_v54, %v799_v33 }
  0x31   : > { %v430_v5 = vmul.bf16 %v649_v59, %v801_v34  ;;  %v499_v6 = vsub.f32 0.0, %v495_v2  ;;  %v291_v7 = vadd.f32 %v283_v58, %v255_v3  ;;  %v345_v8 = vrot.slane %v337_v63, 1 }
  0x32   : > { %v466_v9 = vmul.bf16 %v653_v1, %v809_v41  ;;  %v449_v10 = vadd.f32 %v441_v61, %v414_v4  ;;  %v380_v13 = vrot.slane %v372_v27, 2  ;;  %v411_v17 = vunpack.c.l.bf16 %v407_v32 }
  0x33   : > { %v504_v11 = vmul.f32 1.442695, %v499_v6  ;;  %v317_v12 = vadd.f32 %v313_v62, %v291_v7  ;;  %v434_v14 = vunpack.c.l.bf16 %v430_v5 }
  0x34   : > { %v485_v15 = vadd.f32 %v477_v31, %v449_v10  ;;  %v470_v18 = vunpack.c.l.bf16 %v466_v9 }
  0x35   : > { %685 = vpow2.f32 %v504_v11  ;;  %v353_v16 = vadd.f32 %v345_v8, %v317_v12  ;;  %v442_v19 = vrot.slane %v434_v14, 1 }
  0x36   : > { %v496_v20 = vadd.f32 %v864_v0, %v485_v15  ;;  %v478_v22 = vrot.slane %v470_v18, 2 }
  0x37   : > { %v388_v33 = vadd.f32 %v380_v13, %v353_v16 }
  0x38   : > { %v500_v34 = vsub.f32 0.0, %v496_v20 }
  0x39   : > { %v415_v21 = vadd.f32 %v411_v17, %v388_v33 }
  0x3a   : > { %v506_v23 = vmul.f32 1.442695, %v500_v34 }
  0x3b   : > { %v450_v41 = vadd.f32 %v442_v19, %v415_v21 }
  0x3c   : > { %687 = vpow2.f32 %v506_v23 }
  0x3d   : > { %v684_v28 = vpop.eup %683  ;;  %v486_v30 = vadd.f32 %v478_v22, %v450_v41 }
  0x3e   : > { %v510_v29 = vadd.f32 1.0, %v684_v28 }
  0x3f   : > { %v497_v35 = vadd.f32 %v864_v0, %v486_v30 }
  0x40   : > { %689 = vrcp.f32 %v510_v29 }
  0x41   : > { %v501_v36 = vsub.f32 0.0, %v497_v35 }
  0x42   : > { %v686_v39 = vpop.eup %685 }
  0x43   : > { %v511_v40 = vadd.f32 1.0, %v686_v39  ;;  %v508_v42 = vmul.f32 1.442695, %v501_v36 }
  0x45   : > { %691 = vrcp.f32 %v511_v40 }
  0x46   : > { %693 = vpow2.f32 %v508_v42 }
  0x49   : > { %v688_v43 = vpop.eup %687 }
  0x4a   : > { %v512_v44 = vadd.f32 1.0, %v688_v43 }
  0x4c   : > { %695 = vrcp.f32 %v512_v44 }
  0x4d   : > { %v690_v38 = vpop.eup %689 }
  0x4e   : > { %v518_v45 = vmul.f32 %v690_v38, %v872_v37 }
  0x50   : > { %v522_v46 = vpack.c.bf16 %v518_v45, %v518_v45 }
  0x52   : > { %527 = vst.msk [vmem:[%s192_s8] sm:$0x3] %vm526_vm0, %v522_v46  ;;  %v692_v0 = vpop.eup %691 }
  0x53   : > { %v694_v47 = vpop.eup %693  ;;  %v519_v49 = vmul.f32 %v692_v0, %v495_v2 }
  0x54   : > { %v513_v50 = vadd.f32 1.0, %v694_v47 }
  0x55   : > { %v523_v24 = vpack.c.bf16 %v519_v49, %v519_v49 }
  0x56   : > { %697 = vrcp.f32 %v513_v50 }
  0x57   : > { %528 = vst.msk [vmem:[%s192_s8 + $0x2] sm:$0x3] %vm526_vm0, %v523_v24 }
  0x59   : > { %v696_v51 = vpop.eup %695 }
  0x5a   : > { %v520_v52 = vmul.f32 %v696_v51, %v496_v20 }
  0x5c   : > { %v524_v48 = vpack.c.bf16 %v520_v52, %v520_v52 }
  0x5e   : > { %529 = vst.msk [vmem:[%s192_s8 + $0x4] sm:$0x3] %vm526_vm0, %v524_v48 }
  0x63   : > { %v698_v37 = vpop.eup %697 }
  0x64   : > { %v521_v25 = vmul.f32 %v698_v37, %v497_v35 }
  0x66   : > { %v525_v26 = vpack.c.bf16 %v521_v25, %v521_v25 }
  0x68   : > { %530 = vst.msk [vmem:[%s192_s8 + $0x6] sm:$0x3] %vm526_vm0, %v525_v26 }
  0x69 PF: > { %s13_s14 = sadd.s32 1, %s721_s14   ;;  %s914_s12 = smov %s717_s13 }
  0x6a   : > { %p10_p5 = scmp.ge.s32.totalorder %s13_s14, 4   ;;  %s915_s13 = smov %s917_s15 }
  0x6c   :  { %12 = sbr.rel (!%p10_p5) target bundleno = 2 (0x2), region = 65 }

// kernel: _lambda_.37
= control target key start
LH: loop header
LB: loop body
LE: loop exit
PB: predicated region body
PF: predicated region fallthrough
CT: control target
= control target key end

     0   :  { %s701_s15 = smov 0   ;;  %s703_s16 = smov 0   ;;  %s766_s0 = inlined_call_operand.vmem [shape: f32[2,1,96], index: 0, kind: input, shape index: {}]   ;;  %s767_s1 = inlined_call_operand.vmem [shape: bf16[2,16,96], index: 1, kind: input, shape index: {}]   ;;  %s768_s2 = inlined_call_operand.vmem [shape: bf16[96,128], index: 2, kind: input, shape index: {}]   ;;  %s769_s3 = inlined_call_operand.vmem [shape: f32[1,128], index: 3, kind: input, shape index: {}]   ;;  %s770_s4 = inlined_call_operand.vmem [shape: bf16[2,16,128], index: 4, kind: output, shape index: {}]  }
   0x1   :  { %s705_s17 = smov 0  }
   0x2 LB: > { %s33_s18 = sadd.s32 1, %s668_s16  ;;  %p564_p0 = scmp.ge.s32.totalorder %s672_s17, 1  ;;  %s672_s17 = sphi %s705_s17, %s14_s17   ;;  %s668_s16 = sphi %s703_s16, %s772_s16   ;;  %s664_s15 = sphi %s701_s15, %s771_s15  }
   0x3   : > { %p35_p1 = scmp.ge.s32.totalorder %s33_s18, 2  ;;  %p217_p2 = scmp.lt.s32.totalorder %s672_s17, 3 }
   0x5   : > { %s774_s18 = smov (%p35_p1, %s33_s18), 0  ;;  %p218_p3 = pnand %p564_p0, %p217_p2 }
   0x6   : > { %p264_p4 = scmp.lt.s32.totalorder (!%p218_p3), %s664_s15, 1 }
   0x7   : > { %221 = sbr.rel (%p218_p3) target bundleno = 239 (0xef), region = 36 }
   0xc   : > { %v644_v0 = vld [vmem:[%s768_s2 + $0x28] sm:$0xff]   ;;  %v674_v1 = vmov 0.0   ;;  %v645_v2 = vld [vmem:[%s768_s2 + $0x20] sm:$0xff]   ;;  %vm675_vm0 = vmmov 0   ;;  %s776_s15 = smov (!%p264_p4, %s664_s15), 1  ;;  %v646_v3 = vld [vmem:[%s768_s2 + $0x18] sm:$0xff]  }
   0xd   : > { %602 = vmatprep.subr.bf16.mxu0 %v674_v1  ;;  %614 = vmatprep.mubr.msk.bf16.mxu0 %vm675_vm0, %v674_v1  ;;  %s582_s25 = sshll.u32 %s776_s15, 3  ;;  %v647_v4 = vld [vmem:[%s768_s2 + $0x10] sm:$0xff]   ;;  %s266_s7 = scalar_lea.vmem %s766_s0, %s776_s15  ;;  %v648_v8 = vld [vmem:[%s768_s2 + $0x8] sm:$0xff]   ;;  %v649_v12 = vld [vmem:[%s768_s2] sm:$0xff]   ;;  %vm367_vm1 = vcmask 785408  }
   0xe   : > { %603 = vmatpush3.bf16.msra.mxu0 %v644_v0  ;;  %s275_s28 = scalar_lea.vmem %s767_s1, %s582_s25  ;;  %v569_v9 = vld [vmem:[%s266_s7] ss:$0 sm:$0xff]  ;;  %s295_s20 = scalar_lea.vmem %s770_s4, %s582_s25 }
   0xf   : > { %604 = vmatprep.subr.bf16.mxu0 %v674_v1  ;;  %v587_v5 = vld [vmem:[%s275_s28] sm:$0xff]  }
  0x10   : > { %v588_v6 = vunpack.c.l.bf16 %v587_v5  ;;  %v589_v7 = vunpack.c.h.bf16 %v587_v5  ;;  %v570_v15 = vld [vmem:[%s769_s3] ss:$0 sm:$0xff] }
  0x12   : > { %605 = vmatpush3.bf16.msra.mxu0 %v645_v2  ;;  %v309_v10 = vmul.f32 %v588_v6, %v569_v9  ;;  %v310_v11 = vmul.f32 %v589_v7, %v569_v9 }
  0x13   : > { %606 = vmatprep.subr.bf16.mxu0 %v674_v1 }
  0x14   : > { %v311_v13 = vpack.c.bf16 %v310_v11, %v309_v10 }
  0x16   : > { %607 = vmatpush3.bf16.msra.mxu0 %v646_v3 }
  0x17   : > { %608 = vmatprep.subr.bf16.mxu0 %v674_v1 }
  0x1a   : > { %609 = vmatpush3.bf16.msra.mxu0 %v647_v4 }
  0x1b   : > { %610 = vmatprep.subr.bf16.mxu0 %v674_v1 }
  0x1e   : > { %611 = vmatpush3.bf16.msra.mxu0 %v648_v8 }
  0x1f   : > { %612 = vmatprep.subr.bf16.mxu0 %v674_v1 }
  0x22   : > { %613 = vmatpush3.bf16.msra.mxu0 %v649_v12 }
  0x25   : > { %615 = vmatmul.mubr.msk.bf16.vlgmr.msra.gmra.mxu0 %vm367_vm1, %v311_v13 }
  0xe5   : > { %v405_v14 = vpop.f32.mrf.mxu0 }
  0xe6   : > { %v406_v18 = vadd.f32 %v570_v15, %v405_v14 }
  0xe7   : > { %v616_v16 = vpop.f32.mrf.mxu0 }
  0xe9   : > { %v408_v17 = vpop.f32.mrf.mxu0 }
  0xea   : > { %v409_v19 = vadd.f32 %v570_v15, %v408_v17 }
  0xeb   : > { %v617_v20 = vpop.f32.mrf.mxu0 }
  0xec   : > { %v593_v21 = vpack.c.bf16 %v409_v19, %v406_v18 }
  0xee   : > { %594 = vst [vmem:[%s295_s20] sm:$0xff] %v593_v21  }
  0xef PF: > { %s14_s17 = sadd.s32 1, %s672_s17   ;;  %s771_s15 = smov %s668_s16 }
  0xf0   : > { %p11_p5 = scmp.ge.s32.totalorder %s14_s17, 4   ;;  %s772_s16 = smov %s774_s18 }
  0xf2   :  { %13 = sbr.rel (!%p11_p5) target bundleno = 2 (0x2), region = 75 }

// kernel: _lambda_.38
= control target key start
LH: loop header
LB: loop body
LE: loop exit
PB: predicated region body
PF: predicated region fallthrough
CT: control target
= control target key end

     0   :  { %s514_s12 = smov 0   ;;  %s516_s13 = smov 0   ;;  %s553_s0 = inlined_call_operand.vmem [shape: bf16[2,16,12], index: 0, kind: input, shape index: {}]   ;;  %s554_s1 = inlined_call_operand.vmem [shape: f32[2,1,12], index: 1, kind: input, shape index: {}]   ;;  %s555_s2 = inlined_call_operand.vmem [shape: bf16[2,16,24], index: 2, kind: input, shape index: {}]   ;;  %s556_s3 = inlined_call_operand.vmem [shape: bf16[2,16,24], index: 3, kind: output, shape index: {}]  }
   0x1   :  { %s518_s14 = smov 0  }
   0x2 LB: > { %s25_s15 = sadd.s32 1, %s487_s13  ;;  %p419_p0 = scmp.ge.s32.totalorder %s491_s14, 1  ;;  %s491_s14 = sphi %s518_s14, %s13_s14   ;;  %s487_s13 = sphi %s516_s13, %s558_s13   ;;  %s483_s12 = sphi %s514_s12, %s557_s12  }
   0x3   : > { %p27_p1 = scmp.ge.s32.totalorder %s25_s15, 2  ;;  %p183_p2 = scmp.lt.s32.totalorder %s491_s14, 3 }
   0x5   : > { %s560_s15 = smov (%p27_p1, %s25_s15), 0  ;;  %p184_p3 = pnand %p419_p0, %p183_p2 }
   0x6   : > { %p228_p4 = scmp.lt.s32.totalorder (!%p184_p3), %s483_s12, 1  ;;  %s493_s23 = smov (!%p184_p3), 12  }
   0x7   : > { %187 = sbr.rel (%p184_p3) target bundleno = 145 (0x91), region = 32 }
   0xc   : > { %s562_s12 = smov (!%p228_p4, %s483_s12), 1  ;;  %vm281_vm0 = vcmask 97280   ;;  %vm298_vm1 = vcmask 191488  }
   0xd   : > { %s431_s16 = sshll.u32 %s562_s12, 3  ;;  %s239_s19 = scalar_lea.vmem %s554_s1, %s562_s12 }
   0xe   : > { %s235_s22 = scalar_lea.vmem %s553_s0, %s431_s16  ;;  %v426_v1 = vld [vmem:[%s239_s19] ss:$0 sm:$0xff]  ;;  %s248_s26 = scalar_lea.vmem %s555_s2, %s431_s16 }
   0xf   : > { %v437_v0 = vld [vmem:[%s235_s22] sm:$0xff]   ;;  %s258_s29 = scalar_lea.vmem %s556_s3, %s431_s16 }
  0x10   : > { %v438_v2 = vunpack.c.l.bf16 %v437_v0  ;;  %v439_v3 = vunpack.c.h.bf16 %v437_v0  ;;  %v441_v6 = vld [vmem:[%s248_s26] sm:$0xff]  }
  0x11   : > { %v442_v7 = vunpack.c.l.bf16 %v441_v6  ;;  %v443_v11 = vunpack.c.h.bf16 %v441_v6 }
  0x12   : > { %v271_v4 = vmul.f32 %v438_v2, %v426_v1  ;;  %v272_v5 = vmul.f32 %v439_v3, %v426_v1 }
  0x14   : > { %275 = vrot.lane.b32.xlu0 %v271_v4, %s493_s23 }
  0x18   : > { %277 = vrot.lane.b32.xlu0 %v272_v5, %s493_s23 }
  0x86   : > { %v276_v8 = vpop.permute.xlu0 %275 }
  0x87   : > { %v282_v9 = vsel %vm281_vm0, %v438_v2, %v276_v8 }
  0x88   : > { %v288_v10 = vadd.f32 %v442_v7, %v282_v9 }
  0x8a   : > { %v434_v12 = vpack.c.bf16 %v288_v10, %v288_v10  ;;  %v278_v13 = vpop.permute.xlu0 %277 }
  0x8b   : > { %v283_v14 = vsel %vm281_vm0, %v439_v3, %v278_v13 }
  0x8c   : > { %299 = vst.msk [vmem:[%s258_s29] sm:$0xf] %vm298_vm1, %v434_v12  ;;  %v289_v15 = vadd.f32 %v443_v11, %v283_v14 }
  0x8e   : > { %v435_v16 = vpack.c.bf16 %v289_v15, %v289_v15 }
  0x90   : > { %300 = vst.msk [vmem:[%s258_s29 + $0x4] sm:$0xf] %vm298_vm1, %v435_v16 }
  0x91 PF: > { %s13_s14 = sadd.s32 1, %s491_s14   ;;  %s557_s12 = smov %s487_s13 }
  0x92   : > { %p10_p5 = scmp.ge.s32.totalorder %s13_s14, 4   ;;  %s558_s13 = smov %s560_s15 }
  0x94   :  { %12 = sbr.rel (!%p10_p5) target bundleno = 2 (0x2), region = 68 }

// kernel: _lambda_.41
= control target key start
LH: loop header
LB: loop body
LE: loop exit
PB: predicated region body
PF: predicated region fallthrough
CT: control target
= control target key end

     0   :  { %v159_v0 = vmov 0.0   ;;  %vm160_vm0 = vmmov 0   ;;  %vm71_vm1 = vcmask 785408   ;;  %s208_s1 = inlined_call_operand.vmem [shape: bf16[96,128], index: 1, kind: input, shape index: {}]   ;;  %s209_s0 = inlined_call_operand.vmem [shape: bf16[8,96], index: 0, kind: input, shape index: {}]   ;;  %s210_s2 = inlined_call_operand.vmem [shape: f32[1,128], index: 2, kind: input, shape index: {}]   ;;  %s211_s3 = inlined_call_operand.vmem [shape: f32[8,128], index: 3, kind: output, shape index: {}]  }
   0x1   :  { %135 = vmatprep.subr.bf16.mxu0 %v159_v0  ;;  %v153_v1 = vld [vmem:[%s208_s1 + $0x28] sm:$0xff]   ;;  %147 = vmatprep.mubr.msk.bf16.mxu0 %vm160_vm0, %v159_v0  ;;  %v154_v2 = vld [vmem:[%s208_s1 + $0x20] sm:$0xff]   ;;  %v155_v3 = vld [vmem:[%s208_s1 + $0x18] sm:$0xff]  }
   0x2   :  { %136 = vmatpush3.bf16.msra.mxu0 %v153_v1  ;;  %v156_v4 = vld [vmem:[%s208_s1 + $0x10] sm:$0xff]   ;;  %v157_v5 = vld [vmem:[%s208_s1 + $0x8] sm:$0xff]   ;;  %v158_v6 = vld [vmem:[%s208_s1] sm:$0xff]  }
   0x3   :  { %137 = vmatprep.subr.bf16.mxu0 %v159_v0  ;;  %v15_v7 = vld [vmem:[%s209_s0] sm:$0xf] }
   0x4   :  { %v120_v8 = vld [vmem:[%s210_s2] ss:$0 sm:$0xff] }
   0x6   :  { %138 = vmatpush3.bf16.msra.mxu0 %v154_v2 }
   0x7   :  { %139 = vmatprep.subr.bf16.mxu0 %v159_v0 }
   0xa   :  { %140 = vmatpush3.bf16.msra.mxu0 %v155_v3 }
   0xb   :  { %141 = vmatprep.subr.bf16.mxu0 %v159_v0 }
   0xe   :  { %142 = vmatpush3.bf16.msra.mxu0 %v156_v4 }
   0xf   :  { %143 = vmatprep.subr.bf16.mxu0 %v159_v0 }
  0x12   :  { %144 = vmatpush3.bf16.msra.mxu0 %v157_v5 }
  0x13   :  { %145 = vmatprep.subr.bf16.mxu0 %v159_v0 }
  0x16   :  { %146 = vmatpush3.bf16.msra.mxu0 %v158_v6 }
  0x19   :  { %148 = vmatmul.mubr.msk.bf16.vlgmr.msra.gmra.mxu0 %vm71_vm1, %v15_v7 }
  0xd9   :  { %v109_v9 = vpop.f32.mrf.mxu0 }
  0xda   :  { %v110_v10 = vadd.f32 %v120_v8, %v109_v9 }
  0xdb   :  { %v149_v11 = vpop.f32.mrf.mxu0 }
  0xdc   :  { %115 = vst [vmem:[%s211_s3] sm:$0xff] %v110_v10 }
  0xdd   :  { %v112_v12 = vpop.f32.mrf.mxu0 }
  0xdf   :  { %v150_v13 = vpop.f32.mrf.mxu0 }

</bundles_post_ra>
